<compile_context>
chip_gen: v5e
topology: v5e:2x2
jax: 0.10.0
libtpu: 0.0.40
codegen_flags: <defaults>
</compile_context>

<pallas_src>
import functools

import jax
import jax.numpy as jnp
from jax import lax
from jax.experimental import pallas as pl
from jax.experimental.pallas import tpu as pltpu

WIDTH = 20          # matches `width = 20` in the PyTorch script
LANE_TILE = 512     # lane tile for the pointwise kernels (multiple of 128)

# Set to jnp.bfloat16 on v6e/v7x to halve HBM/VMEM traffic of matmul inputs
# (accumulation / epilogue stay f32).  Kept f32 by default so numerics match the
# PyTorch module.
MATMUL_DTYPE = jnp.float32


# ----------------------------------------------------------------------------
# small helpers
# ----------------------------------------------------------------------------
def _round_up(n, m):
    return ((n + m - 1) // m) * m


def _pad_lanes(x, n_to):
    pad = n_to - x.shape[-1]
    if pad == 0:
        return x
    return jnp.pad(x, [(0, 0)] * (x.ndim - 1) + [(0, pad)])


def _tiles(n, tile):
    tn = min(tile, _round_up(n, 128))   # lane tile, always a multiple of 128
    return tn, _round_up(n, tn)


def _gelu_exact(x):
    # PyTorch F.gelu default (approximate='none'): 0.5*x*(1+erf(x/sqrt(2)))
    return 0.5 * x * (1.0 + lax.erf(x * 0.7071067811865476))


# ----------------------------------------------------------------------------
# Pallas kernels (all operate on (C, N_tile) blocks: channels in sublanes,
# flattened batch*spatial in lanes -> lane-dense loads/stores)
# ----------------------------------------------------------------------------
def _linear_t_kernel(x_ref, w_ref, b_ref, o_ref, *, act):
    # o = act?( W @ x + b ),  x: (Cin, tn), W: (Cout, Cin), b: (Cout, 1)
    cin = x_ref.shape[0]
    if cin < 8:
        # K too small to be worth an MXU pass (fc0 has K=3): unrolled VPU FMAs.
        x = x_ref[...]
        w = w_ref[...]
        y = w[:, 0:1] * x[0:1, :]
        for k in range(1, cin):
            y = y + w[:, k:k + 1] * x[k:k + 1, :]
    else:
        y = jnp.dot(w_ref[...].astype(MATMUL_DTYPE), x_ref[...].astype(MATMUL_DTYPE),
                    preferred_element_type=jnp.float32)
    y = y + b_ref[...]
    if act:
        y = _gelu_exact(y)
    o_ref[...] = y.astype(o_ref.dtype)


def _block_kernel(x_ref, w_ref, b_ref, s_ref, o_ref, *, act):
    # Fused Fourier block epilogue: o = act?( spectral + W @ x + b )
    y = jnp.dot(w_ref[...].astype(MATMUL_DTYPE), x_ref[...].astype(MATMUL_DTYPE),
                preferred_element_type=jnp.float32)
    y = y + b_ref[...] + s_ref[...]
    if act:
        y = _gelu_exact(y)
    o_ref[...] = y.astype(o_ref.dtype)


def _head_kernel(x_ref, w1_ref, b1_ref, w2_ref, b2_ref, o_ref):
    # fc1 + exact GELU + fc2 fused: the (128, tn) intermediate never leaves VMEM,
    # and only the lane-dense (2, tn) result is written to HBM.
    h = jnp.dot(w1_ref[...].astype(MATMUL_DTYPE), x_ref[...].astype(MATMUL_DTYPE),
                preferred_element_type=jnp.float32)
    h = _gelu_exact(h + b1_ref[...])
    y = jnp.dot(w2_ref[...].astype(MATMUL_DTYPE), h.astype(MATMUL_DTYPE),
                preferred_element_type=jnp.float32)
    o_ref[...] = (y + b2_ref[...]).astype(o_ref.dtype)


def _spectral_mix_kernel(xr_ref, xi_ref, wr_ref, wi_ref, or_ref, oi_ref):
    # All 2*m1*m2 modes of BOTH frequency corners in one kernel invocation
    # (no per-mode grid).  Karatsuba complex product: 3 real matmuls per mode.
    xr = xr_ref[...].astype(MATMUL_DTYPE)
    xi = xi_ref[...].astype(MATMUL_DTYPE)
    wr = wr_ref[...].astype(MATMUL_DTYPE)
    wi = wi_ref[...].astype(MATMUL_DTYPE)
    xs = xr + xi
    ws = wr + wi
    for m in range(xr_ref.shape[0]):             # static unroll over modes
        rr = jnp.dot(xr[m], wr[m], preferred_element_type=jnp.float32)
        ii = jnp.dot(xi[m], wi[m], preferred_element_type=jnp.float32)
        tt = jnp.dot(xs[m], ws[m], preferred_element_type=jnp.float32)
        or_ref[m] = rr - ii
        oi_ref[m] = tt - rr - ii


# ----------------------------------------------------------------------------
# Pallas wrappers
# ----------------------------------------------------------------------------
def linear_t(x, w, b, act=False, tile=LANE_TILE):
    """x: (Cin, N), w: (Cout, Cin), b: (Cout, 1) -> (Cout, N) float32."""
    cin, n = x.shape
    cout = w.shape[0]
    tn, np_ = _tiles(n, tile)
    out = pl.pallas_call(
        functools.partial(_linear_t_kernel, act=act),
        out_shape=jax.ShapeDtypeStruct((cout, np_), jnp.float32),
        grid_spec=pltpu.PrefetchScalarGridSpec(
            num_scalar_prefetch=0,
            grid=(np_ // tn,),
            in_specs=[
                pl.BlockSpec((cin, tn), lambda i: (0, i)),
                pl.BlockSpec((cout, cin), lambda i: (0, 0)),
                pl.BlockSpec((cout, 1), lambda i: (0, 0)),
            ],
            out_specs=pl.BlockSpec((cout, tn), lambda i: (0, i)),
        ),
        compiler_params=pltpu.CompilerParams(dimension_semantics=("parallel",)),
    )(_pad_lanes(x, np_), w, b)
    return out if np_ == n else out[:, :n]


def fourier_block(x, w, b, spec, act, tile=LANE_TILE):
    """Fused gelu?(spec + W @ x + b); x, spec: (C, N); w: (Cout, Cin); b: (Cout, 1)."""
    cin, n = x.shape
    cout = w.shape[0]
    tn, np_ = _tiles(n, tile)
    out = pl.pallas_call(
        functools.partial(_block_kernel, act=act),
        out_shape=jax.ShapeDtypeStruct((cout, np_), jnp.float32),
        grid_spec=pltpu.PrefetchScalarGridSpec(
            num_scalar_prefetch=0,
            grid=(np_ // tn,),
            in_specs=[
                pl.BlockSpec((cin, tn), lambda i: (0, i)),
                pl.BlockSpec((cout, cin), lambda i: (0, 0)),
                pl.BlockSpec((cout, 1), lambda i: (0, 0)),
                pl.BlockSpec((cout, tn), lambda i: (0, i)),
            ],
            out_specs=pl.BlockSpec((cout, tn), lambda i: (0, i)),
        ),
        compiler_params=pltpu.CompilerParams(dimension_semantics=("parallel",)),
    )(_pad_lanes(x, np_), w, b, _pad_lanes(spec, np_))
    return out if np_ == n else out[:, :n]


def head_t(x, w1, b1, w2, b2, tile=LANE_TILE):
    """Fused fc1 + GELU + fc2.  x: (Cin, N) -> (Cout, N)."""
    cin, n = x.shape
    chid = w1.shape[0]
    cout = w2.shape[0]
    tn, np_ = _tiles(n, tile)
    out = pl.pallas_call(
        _head_kernel,
        out_shape=jax.ShapeDtypeStruct((cout, np_), jnp.float32),
        grid_spec=pltpu.PrefetchScalarGridSpec(
            num_scalar_prefetch=0,
            grid=(np_ // tn,),
            in_specs=[
                pl.BlockSpec((cin, tn), lambda i: (0, i)),
                pl.BlockSpec((chid, cin), lambda i: (0, 0)),
                pl.BlockSpec((chid, 1), lambda i: (0, 0)),
                pl.BlockSpec((cout, chid), lambda i: (0, 0)),
                pl.BlockSpec((cout, 1), lambda i: (0, 0)),
            ],
            out_specs=pl.BlockSpec((cout, tn), lambda i: (0, i)),
        ),
        compiler_params=pltpu.CompilerParams(dimension_semantics=("parallel",)),
    )(_pad_lanes(x, np_), w1, b1, w2, b2)
    return out if np_ == n else out[:, :n]


def spectral_mix(xr, xi, wr, wi):
    """Batched complex matmul: (M,B,Cin) x (M,Cin,Cout) -> (M,B,Cout) (re, im).
    One pallas_call; the whole problem (<200 KB) lives in VMEM."""
    m, b, _ = xr.shape
    cout = wr.shape[2]
    return pl.pallas_call(
        _spectral_mix_kernel,
        out_shape=(
            jax.ShapeDtypeStruct((m, b, cout), jnp.float32),
            jax.ShapeDtypeStruct((m, b, cout), jnp.float32),
        ),
    )(xr, xi, wr, wi)


# ----------------------------------------------------------------------------
# SpectralConv2d_fast equivalent (FFT in plain JAX, mode mixing in Pallas)
# ----------------------------------------------------------------------------
def spectral_conv2d(h, wr, wi, modes1, modes2, B, H, W):
    """h: (Cin, B*H*W) f32; wr/wi: (2*m1*m2, Cin, Cout) pre-transposed weights."""
    # TODO(synk): rfft2 / irfft2 have no Pallas/Mosaic primitive; done in plain JAX.
    cin = h.shape[0]
    cout = wr.shape[2]
    mh = modes1 * modes2
    wf = W // 2 + 1

    x_ft = jnp.fft.rfft2(h.reshape(cin, B, H, W), axes=(2, 3))   # (Cin,B,H,Wf) c64

    def corner_to_mbi(z):  # (Cin, B, m1, m2) -> (m1*m2, B, Cin)
        return jnp.transpose(z, (2, 3, 1, 0)).reshape(mh, B, cin)

    xm = jnp.concatenate(
        [corner_to_mbi(x_ft[:, :, :modes1, :modes2]),
         corner_to_mbi(x_ft[:, :, H - modes1:, :modes2])], axis=0)  # (2*mh, B, Cin)

    out_r, out_i = spectral_mix(jnp.real(xm).astype(jnp.float32),
                                jnp.imag(xm).astype(jnp.float32), wr, wi)
    om = lax.complex(out_r, out_i)                                  # (2*mh, B, Cout)

    def mbo_to_corner(z):  # (m1*m2, B, Cout) -> (Cout, B, m1, m2)
        return jnp.transpose(z.reshape(modes1, modes2, B, cout), (3, 2, 0, 1))

    out_ft = jnp.zeros((cout, B, H, wf), dtype=jnp.complex64)
    out_ft = out_ft.at[:, :, :modes1, :modes2].set(mbo_to_corner(om[:mh]))
    out_ft = out_ft.at[:, :, H - modes1:, :modes2].set(mbo_to_corner(om[mh:]))
    y = jnp.fft.irfft2(out_ft, s=(H, W), axes=(2, 3))
    return y.reshape(cout, B * H * W).astype(jnp.float32)


# ----------------------------------------------------------------------------
# FNO2d forward
# ----------------------------------------------------------------------------
def fno2d_forward(x, params, modes1, modes2):
    """x: (B, H, W, 3) float32 -> (B, H, W, 2) float32."""
    B, H, W, _ = x.shape
    N = B * H * W

    # channels-first (C, N) activation layout keeps N in the lane dimension.
    h = linear_t(jnp.transpose(x.reshape(N, 3)), params["fc0_w"], params["fc0_b"])

    for layer in range(4):
        wr, wi = params[f"conv{layer}"]
        spec = spectral_conv2d(h, wr, wi, modes1, modes2, B, H, W)
        wk, bk = params[f"w{layer}"]
        h = fourier_block(h, wk, bk, spec, act=(layer < 3))   # last block: no GELU

    out = head_t(h, params["fc1_w"], params["fc1_b"], params["fc2_w"], params["fc2_b"])
    return jnp.transpose(out).reshape(B, H, W, 2)


# ----------------------------------------------------------------------------
# Deterministic parameter init (shapes match the PyTorch module, pre-transposed)
# ----------------------------------------------------------------------------
def init_params(key, modes1, modes2):
    C = WIDTH
    params = {}
    keys = jax.random.split(key, 32)
    ki = iter(range(32))

    def lin_init(kw, kb, fan_in, fan_out):
        # nn.Linear / nn.Conv2d default init, stored as (fan_out, fan_in) weight
        # and (fan_out, 1) bias to match the (C, N) activation layout.
        bound = 1.0 / float(fan_in) ** 0.5
        wgt = jax.random.uniform(kw, (fan_out, fan_in), jnp.float32, -bound, bound)
        bias = jax.random.uniform(kb, (fan_out, 1), jnp.float32, -bound, bound)
        return wgt, bias

    params["fc0_w"], params["fc0_b"] = lin_init(keys[next(ki)], keys[next(ki)], 3, C)
    params["fc1_w"], params["fc1_b"] = lin_init(keys[next(ki)], keys[next(ki)], C, 128)
    params["fc2_w"], params["fc2_b"] = lin_init(keys[next(ki)], keys[next(ki)], 128, 2)

    scale = 1.0 / (C * C)
    mh = modes1 * modes2

    def to_mio(w):  # torch layout (Cin, Cout, m1, m2) -> (m1*m2, Cin, Cout)
        return jnp.transpose(w, (2, 3, 0, 1)).reshape(mh, C, C)

    for layer in range(4):
        w1r = scale * jax.random.uniform(keys[next(ki)], (C, C, modes1, modes2), jnp.float32)
        w1i = scale * jax.random.uniform(keys[next(ki)], (C, C, modes1, modes2), jnp.float32)
        w2r = scale * jax.random.uniform(keys[next(ki)], (C, C, modes1, modes2), jnp.float32)
        w2i = scale * jax.random.uniform(keys[next(ki)], (C, C, modes1, modes2), jnp.float32)
        # both frequency corners packed into one (2*m1*m2, Cin, Cout) tensor
        params[f"conv{layer}"] = (jnp.concatenate([to_mio(w1r), to_mio(w2r)], axis=0),
                                  jnp.concatenate([to_mio(w1i), to_mio(w2i)], axis=0))
        params[f"w{layer}"] = lin_init(keys[next(ki)], keys[next(ki)], C, C)
    return params


# ----------------------------------------------------------------------------
# Pure-JAX reference (mirrors the PyTorch forward) for a sanity check
# ----------------------------------------------------------------------------
def _reference_forward(x, params, modes1, modes2):
    B, H, W, _ = x.shape
    C = WIDTH
    mh = modes1 * modes2

    h = x @ params["fc0_w"].T + params["fc0_b"][:, 0]
    h = jnp.transpose(h, (0, 3, 1, 2))                       # (B, C, H, W)
    for layer in range(4):
        wr, wi = params[f"conv{layer}"]
        wc = lax.complex(wr, wi)                             # (2*mh, Cin, Cout)
        w1 = jnp.transpose(wc[:mh].reshape(modes1, modes2, C, C), (2, 3, 0, 1))
        w2 = jnp.transpose(wc[mh:].reshape(modes1, modes2, C, C), (2, 3, 0, 1))
        x_ft = jnp.fft.rfft2(h, axes=(2, 3))
        out_ft = jnp.zeros((B, C, H, W // 2 + 1), jnp.complex64)
        out_ft = out_ft.at[:, :, :modes1, :modes2].set(
            jnp.einsum("bixy,ioxy->boxy", x_ft[:, :, :modes1, :modes2], w1))
        out_ft = out_ft.at[:, :, H - modes1:, :modes2].set(
            jnp.einsum("bixy,ioxy->boxy", x_ft[:, :, H - modes1:, :modes2], w2))
        spec = jnp.fft.irfft2(out_ft, s=(H, W), axes=(2, 3))
        wk, bk = params[f"w{layer}"]
        h = spec + jnp.einsum("oc,bcxy->boxy", wk, h) + bk[:, 0][None, :, None, None]
        if layer < 3:
            h = _gelu_exact(h)
    h = jnp.transpose(h, (0, 2, 3, 1))                       # (B, H, W, C)
    h = _gelu_exact(h @ params["fc1_w"].T + params["fc1_b"][:, 0])
    return h @ params["fc2_w"].T + params["fc2_b"][:, 0]


if __name__ == "__main__":
    modes1, modes2 = 4, 4
    B, H, W = 2, 16, 16

    key = jax.random.PRNGKey(0)
    k_params, k_x = jax.random.split(key)
    params = init_params(k_params, modes1, modes2)
    x = jax.random.normal(k_x, (B, H, W, 3), dtype=jnp.float32)

    fwd = jax.jit(functools.partial(fno2d_forward, modes1=modes1, modes2=modes2))
    out = fwd(x, params)
    jax.block_until_ready(out)
    assert out.shape == (B, H, W, 2) and out.dtype == jnp.float32

    # Sanity check against a pure-JAX reference (loose tol: XLA's default f32
    # matmul precision on TPU can differ slightly from the Pallas/MXU path).
    ref = jax.jit(functools.partial(_reference_forward, modes1=modes1, modes2=modes2))(x, params)
    rel_err = float(jnp.max(jnp.abs(out - ref)) / (jnp.max(jnp.abs(ref)) + 1e-6))
    assert rel_err < 5e-2, f"relative error too large: {rel_err}"

    print("KERNEL_OK")
</pallas_src>

<mosaic_0001>
module attributes {stable_mosaic.version = 11 : i64} {
  func.func @_linear_t_kernel(%arg0: i32, %arg1: memref<3x512xf32, #tpu.memory_space<vmem>>, %arg2: memref<20x3xf32, #tpu.memory_space<vmem>>, %arg3: memref<20x1xf32, #tpu.memory_space<vmem>>, %arg4: memref<20x512xf32, #tpu.memory_space<vmem>>) attributes {dimension_semantics = [#tpu.dimension_semantics<parallel>], iteration_bounds = array<i64: 1>, scalar_prefetch = 0 : i64, scratch_operands = 0 : i64, tpu.core_type = #tpu.core_type<tc>, window_params = [{transform_indices = @transform_0, window_bounds = array<i64: 3, 512>}, {pipeline_mode = #tpu.pipeline_mode<synchronous>, transform_indices = @transform_1, window_bounds = array<i64: 20, 3>}, {pipeline_mode = #tpu.pipeline_mode<synchronous>, transform_indices = @transform_2, window_bounds = array<i64: 20, 1>}, {transform_indices = @transform_3, window_bounds = array<i64: 20, 512>}]} {
    %c0 = arith.constant 0 : index
    %c0_0 = arith.constant 0 : index
    %0 = vector.load %arg1[%c0, %c0_0] : memref<3x512xf32, #tpu.memory_space<vmem>>, vector<3x512xf32>
    %c0_1 = arith.constant 0 : index
    %c0_2 = arith.constant 0 : index
    %1 = vector.load %arg2[%c0_1, %c0_2] : memref<20x3xf32, #tpu.memory_space<vmem>>, vector<20x3xf32>
    %2 = vector.extract_strided_slice %1 {offsets = [0, 0], sizes = [20, 1], strides = [1, 1]} : vector<20x3xf32> to vector<20x1xf32>
    %3 = vector.extract_strided_slice %0 {offsets = [0, 0], sizes = [1, 512], strides = [1, 1]} : vector<3x512xf32> to vector<1x512xf32>
    %4 = vector.broadcast %2 : vector<20x1xf32> to vector<20x512xf32>
    %5 = vector.broadcast %3 : vector<1x512xf32> to vector<20x512xf32>
    %6 = arith.mulf %4, %5 : vector<20x512xf32>
    %7 = vector.extract_strided_slice %1 {offsets = [0, 1], sizes = [20, 1], strides = [1, 1]} : vector<20x3xf32> to vector<20x1xf32>
    %8 = vector.extract_strided_slice %0 {offsets = [1, 0], sizes = [1, 512], strides = [1, 1]} : vector<3x512xf32> to vector<1x512xf32>
    %9 = vector.broadcast %7 : vector<20x1xf32> to vector<20x512xf32>
    %10 = vector.broadcast %8 : vector<1x512xf32> to vector<20x512xf32>
    %11 = arith.mulf %9, %10 : vector<20x512xf32>
    %12 = arith.addf %6, %11 : vector<20x512xf32>
    %13 = vector.extract_strided_slice %1 {offsets = [0, 2], sizes = [20, 1], strides = [1, 1]} : vector<20x3xf32> to vector<20x1xf32>
    %14 = vector.extract_strided_slice %0 {offsets = [2, 0], sizes = [1, 512], strides = [1, 1]} : vector<3x512xf32> to vector<1x512xf32>
    %15 = vector.broadcast %13 : vector<20x1xf32> to vector<20x512xf32>
    %16 = vector.broadcast %14 : vector<1x512xf32> to vector<20x512xf32>
    %17 = arith.mulf %15, %16 : vector<20x512xf32>
    %18 = arith.addf %12, %17 : vector<20x512xf32>
    %c0_3 = arith.constant 0 : index
    %c0_4 = arith.constant 0 : index
    %19 = vector.load %arg3[%c0_3, %c0_4] : memref<20x1xf32, #tpu.memory_space<vmem>>, vector<20x1xf32>
    %20 = vector.broadcast %19 : vector<20x1xf32> to vector<20x512xf32>
    %21 = arith.addf %18, %20 : vector<20x512xf32>
    %c0_5 = arith.constant 0 : index
    %c0_6 = arith.constant 0 : index
    %22 = vector.load %arg4[%c0_5, %c0_6] : memref<20x512xf32, #tpu.memory_space<vmem>>, vector<20x512xf32>
    tpu.vector_store %arg4[%c0_5, %c0_6], %21 {strides = array<i32>} : memref<20x512xf32, #tpu.memory_space<vmem>>, vector<20x512xf32>,
    return
  }
  func.func @transform_0(%arg0: i32) -> (i32, i32) {
    %c0_i32 = arith.constant 0 : i32
    %c0_i32_0 = arith.constant 0 : i32
    return %c0_i32, %arg0 : i32, i32
  }
  func.func @transform_1(%arg0: i32) -> (i32, i32) {
    %c0_i32 = arith.constant 0 : i32
    %c0_i32_0 = arith.constant 0 : i32
    %c0_i32_1 = arith.constant 0 : i32
    return %c0_i32, %c0_i32_0 : i32, i32
  }
  func.func @transform_2(%arg0: i32) -> (i32, i32) {
    %c0_i32 = arith.constant 0 : i32
    %c0_i32_0 = arith.constant 0 : i32
    %c0_i32_1 = arith.constant 0 : i32
    return %c0_i32, %c0_i32_0 : i32, i32
  }
  func.func @transform_3(%arg0: i32) -> (i32, i32) {
    %c0_i32 = arith.constant 0 : i32
    %c0_i32_0 = arith.constant 0 : i32
    return %c0_i32, %arg0 : i32, i32
  }
}

module attributes {stable_mosaic.version = 11 : i64} {
  func.func @_spectral_mix_kernel(%arg0: memref<32x2x20xf32, #tpu.memory_space<vmem>>, %arg1: memref<32x2x20xf32, #tpu.memory_space<vmem>>, %arg2: memref<32x20x20xf32, #tpu.memory_space<vmem>>, %arg3: memref<32x20x20xf32, #tpu.memory_space<vmem>>, %arg4: memref<32x2x20xf32, #tpu.memory_space<vmem>>, %arg5: memref<32x2x20xf32, #tpu.memory_space<vmem>>) attributes {dimension_semantics = [], scalar_prefetch = 0 : i64, scratch_operands = 0 : i64, tpu.core_type = #tpu.core_type<tc>} {
    %c0 = arith.constant 0 : index
    %c0_0 = arith.constant 0 : index
    %c0_1 = arith.constant 0 : index
    %0 = vector.load %arg0[%c0, %c0_0, %c0_1] : memref<32x2x20xf32, #tpu.memory_space<vmem>>, vector<32x2x20xf32>
    %c0_2 = arith.constant 0 : index
    %c0_3 = arith.constant 0 : index
    %c0_4 = arith.constant 0 : index
    %1 = vector.load %arg1[%c0_2, %c0_3, %c0_4] : memref<32x2x20xf32, #tpu.memory_space<vmem>>, vector<32x2x20xf32>
    %c0_5 = arith.constant 0 : index
    %c0_6 = arith.constant 0 : index
    %c0_7 = arith.constant 0 : index
    %2 = vector.load %arg2[%c0_5, %c0_6, %c0_7] : memref<32x20x20xf32, #tpu.memory_space<vmem>>, vector<32x20x20xf32>
    %c0_8 = arith.constant 0 : index
    %c0_9 = arith.constant 0 : index
    %c0_10 = arith.constant 0 : index
    %3 = vector.load %arg3[%c0_8, %c0_9, %c0_10] : memref<32x20x20xf32, #tpu.memory_space<vmem>>, vector<32x20x20xf32>
    %4 = arith.addf %0, %1 : vector<32x2x20xf32>
    %5 = arith.addf %2, %3 : vector<32x20x20xf32>
    %6 = vector.extract_strided_slice %0 {offsets = [0, 0, 0], sizes = [1, 2, 20], strides = [1, 1, 1]} : vector<32x2x20xf32> to vector<1x2x20xf32>
    %7 = vector.shape_cast %6 : vector<1x2x20xf32> to vector<2x20xf32>
    %8 = vector.extract_strided_slice %2 {offsets = [0, 0, 0], sizes = [1, 20, 20], strides = [1, 1, 1]} : vector<32x20x20xf32> to vector<1x20x20xf32>
    %9 = vector.shape_cast %8 : vector<1x20x20xf32> to vector<20x20xf32>
    %cst = arith.constant dense<0.000000e+00> : vector<2x20xf32>
    %10 = tpu.matmul %7, %9, %cst {dimension_numbers = #tpu.dot_dimension_numbers<[1], [0], [0], [1], [0, 0, 1, 1], [], []>} : vector<2x20xf32>, vector<20x20xf32>, vector<2x20xf32> -> vector<2x20xf32>
    %11 = vector.extract_strided_slice %1 {offsets = [0, 0, 0], sizes = [1, 2, 20], strides = [1, 1, 1]} : vector<32x2x20xf32> to vector<1x2x20xf32>
    %12 = vector.shape_cast %11 : vector<1x2x20xf32> to vector<2x20xf32>
    %13 = vector.extract_strided_slice %3 {offsets = [0, 0, 0], sizes = [1, 20, 20], strides = [1, 1, 1]} : vector<32x20x20xf32> to vector<1x20x20xf32>
    %14 = vector.shape_cast %13 : vector<1x20x20xf32> to vector<20x20xf32>
    %cst_11 = arith.constant dense<0.000000e+00> : vector<2x20xf32>
    %15 = tpu.matmul %12, %14, %cst_11 {dimension_numbers = #tpu.dot_dimension_numbers<[1], [0], [0], [1], [0, 0, 1, 1], [], []>} : vector<2x20xf32>, vector<20x20xf32>, vector<2x20xf32> -> vector<2x20xf32>
    %16 = vector.extract_strided_slice %4 {offsets = [0, 0, 0], sizes = [1, 2, 20], strides = [1, 1, 1]} : vector<32x2x20xf32> to vector<1x2x20xf32>
    %17 = vector.shape_cast %16 : vector<1x2x20xf32> to vector<2x20xf32>
    %18 = vector.extract_strided_slice %5 {offsets = [0, 0, 0], sizes = [1, 20, 20], strides = [1, 1, 1]} : vector<32x20x20xf32> to vector<1x20x20xf32>
    %19 = vector.shape_cast %18 : vector<1x20x20xf32> to vector<20x20xf32>
    %cst_12 = arith.constant dense<0.000000e+00> : vector<2x20xf32>
    %20 = tpu.matmul %17, %19, %cst_12 {dimension_numbers = #tpu.dot_dimension_numbers<[1], [0], [0], [1], [0, 0, 1, 1], [], []>} : vector<2x20xf32>, vector<20x20xf32>, vector<2x20xf32> -> vector<2x20xf32>
    %21 = arith.subf %10, %15 : vector<2x20xf32>
    %c0_13 = arith.constant 0 : index
    %c0_14 = arith.constant 0 : index
    %c0_15 = arith.constant 0 : index
    %22 = vector.load %arg4[%c0_13, %c0_14, %c0_15] : memref<32x2x20xf32, #tpu.memory_space<vmem>>, vector<1x2x20xf32>
    %23 = vector.shape_cast %22 : vector<1x2x20xf32> to vector<2x20xf32>
    %24 = vector.shape_cast %21 : vector<2x20xf32> to vector<1x2x20xf32>
    tpu.vector_store %arg4[%c0_13, %c0_14, %c0_15], %24 {strides = array<i32>} : memref<32x2x20xf32, #tpu.memory_space<vmem>>, vector<1x2x20xf32>,
    %25 = arith.subf %20, %10 : vector<2x20xf32>
    %26 = arith.subf %25, %15 : vector<2x20xf32>
    %c0_16 = arith.constant 0 : index
    %c0_17 = arith.constant 0 : index
    %c0_18 = arith.constant 0 : index
    %27 = vector.load %arg5[%c0_16, %c0_17, %c0_18] : memref<32x2x20xf32, #tpu.memory_space<vmem>>, vector<1x2x20xf32>
    %28 = vector.shape_cast %27 : vector<1x2x20xf32> to vector<2x20xf32>
    %29 = vector.shape_cast %26 : vector<2x20xf32> to vector<1x2x20xf32>
    tpu.vector_store %arg5[%c0_16, %c0_17, %c0_18], %29 {strides = array<i32>} : memref<32x2x20xf32, #tpu.memory_space<vmem>>, vector<1x2x20xf32>,
    %30 = vector.extract_strided_slice %0 {offsets = [1, 0, 0], sizes = [1, 2, 20], strides = [1, 1, 1]} : vector<32x2x20xf32> to vector<1x2x20xf32>
    %31 = vector.shape_cast %30 : vector<1x2x20xf32> to vector<2x20xf32>
    %32 = vector.extract_strided_slice %2 {offsets = [1, 0, 0], sizes = [1, 20, 20], strides = [1, 1, 1]} : vector<32x20x20xf32> to vector<1x20x20xf32>
    %33 = vector.shape_cast %32 : vector<1x20x20xf32> to vector<20x20xf32>
    %cst_19 = arith.constant dense<0.000000e+00> : vector<2x20xf32>
    %34 = tpu.matmul %31, %33, %cst_19 {dimension_numbers = #tpu.dot_dimension_numbers<[1], [0], [0], [1], [0, 0, 1, 1], [], []>} : vector<2x20xf32>, vector<20x20xf32>, vector<2x20xf32> -> vector<2x20xf32>
    %35 = vector.extract_strided_slice %1 {offsets = [1, 0, 0], sizes = [1, 2, 20], strides = [1, 1, 1]} : vector<32x2x20xf32> to vector<1x2x20xf32>
    %36 = vector.shape_cast %35 : vector<1x2x20xf32> to vector<2x20xf32>
    %37 = vector.extract_strided_slice %3 {offsets = [1, 0, 0], sizes = [1, 20, 20], strides = [1, 1, 1]} : vector<32x20x20xf32> to vector<1x20x20xf32>
    %38 = vector.shape_cast %37 : vector<1x20x20xf32> to vector<20x20xf32>
    %cst_20 = arith.constant dense<0.000000e+00> : vector<2x20xf32>
    %39 = tpu.matmul %36, %38, %cst_20 {dimension_numbers = #tpu.dot_dimension_numbers<[1], [0], [0], [1], [0, 0, 1, 1], [], []>} : vector<2x20xf32>, vector<20x20xf32>, vector<2x20xf32> -> vector<2x20xf32>
    %40 = vector.extract_strided_slice %4 {offsets = [1, 0, 0], sizes = [1, 2, 20], strides = [1, 1, 1]} : vector<32x2x20xf32> to vector<1x2x20xf32>
    %41 = vector.shape_cast %40 : vector<1x2x20xf32> to vector<2x20xf32>
    %42 = vector.extract_strided_slice %5 {offsets = [1, 0, 0], sizes = [1, 20, 20], strides = [1, 1, 1]} : vector<32x20x20xf32> to vector<1x20x20xf32>
    %43 = vector.shape_cast %42 : vector<1x20x20xf32> to vector<20x20xf32>
    %cst_21 = arith.constant dense<0.000000e+00> : vector<2x20xf32>
    %44 = tpu.matmul %41, %43, %cst_21 {dimension_numbers = #tpu.dot_dimension_numbers<[1], [0], [0], [1], [0, 0, 1, 1], [], []>} : vector<2x20xf32>, vector<20x20xf32>, vector<2x20xf32> -> vector<2x20xf32>
    %45 = arith.subf %34, %39 : vector<2x20xf32>
    %c1 = arith.constant 1 : index
    %c0_22 = arith.constant 0 : index
    %c0_23 = arith.constant 0 : index
    %46 = vector.load %arg4[%c1, %c0_22, %c0_23] : memref<32x2x20xf32, #tpu.memory_space<vmem>>, vector<1x2x20xf32>
    %47 = vector.shape_cast %46 : vector<1x2x20xf32> to vector<2x20xf32>
    %48 = vector.shape_cast %45 : vector<2x20xf32> to vector<1x2x20xf32>
    tpu.vector_store %arg4[%c1, %c0_22, %c0_23], %48 {strides = array<i32>} : memref<32x2x20xf32, #tpu.memory_space<vmem>>, vector<1x2x20xf32>,
    %49 = arith.subf %44, %34 : vector<2x20xf32>
    %50 = arith.subf %49, %39 : vector<2x20xf32>
    %c1_24 = arith.constant 1 : index
    %c0_25 = arith.constant 0 : index
    %c0_26 = arith.constant 0 : index
    %51 = vector.load %arg5[%c1_24, %c0_25, %c0_26] : memref<32x2x20xf32, #tpu.memory_space<vmem>>, vector<1x2x20xf32>
    %52 = vector.shape_cast %51 : vector<1x2x20xf32> to vector<2x20xf32>
    %53 = vector.shape_cast %50 : vector<2x20xf32> to vector<1x2x20xf32>
    tpu.vector_store %arg5[%c1_24, %c0_25, %c0_26], %53 {strides = array<i32>} : memref<32x2x20xf32, #tpu.memory_space<vmem>>, vector<1x2x20xf32>,
    %54 = vector.extract_strided_slice %0 {offsets = [2, 0, 0], sizes = [1, 2, 20], strides = [1, 1, 1]} : vector<32x2x20xf32> to vector<1x2x20xf32>
    %55 = vector.shape_cast %54 : vector<1x2x20xf32> to vector<2x20xf32>
    %56 = vector.extract_strided_slice %2 {offsets = [2, 0, 0], sizes = [1, 20, 20], strides = [1, 1, 1]} : vector<32x20x20xf32> to vector<1x20x20xf32>
    %57 = vector.shape_cast %56 : vector<1x20x20xf32> to vector<20x20xf32>
    %cst_27 = arith.constant dense<0.000000e+00> : vector<2x20xf32>
    %58 = tpu.matmul %55, %57, %cst_27 {dimension_numbers = #tpu.dot_dimension_numbers<[1], [0], [0], [1], [0, 0, 1, 1], [], []>} : vector<2x20xf32>, vector<20x20xf32>, vector<2x20xf32> -> vector<2x20xf32>
    %59 = vector.extract_strided_slice %1 {offsets = [2, 0, 0], sizes = [1, 2, 20], strides = [1, 1, 1]} : vector<32x2x20xf32> to vector<1x2x20xf32>
    %60 = vector.shape_cast %59 : vector<1x2x20xf32> to vector<2x20xf32>
    %61 = vector.extract_strided_slice %3 {offsets = [2, 0, 0], sizes = [1, 20, 20], strides = [1, 1, 1]} : vector<32x20x20xf32> to vector<1x20x20xf32>
    %62 = vector.shape_cast %61 : vector<1x20x20xf32> to vector<20x20xf32>
    %cst_28 = arith.constant dense<0.000000e+00> : vector<2x20xf32>
    %63 = tpu.matmul %60, %62, %cst_28 {dimension_numbers = #tpu.dot_dimension_numbers<[1], [0], [0], [1], [0, 0, 1, 1], [], []>} : vector<2x20xf32>, vector<20x20xf32>, vector<2x20xf32> -> vector<2x20xf32>
    %64 = vector.extract_strided_slice %4 {offsets = [2, 0, 0], sizes = [1, 2, 20], strides = [1, 1, 1]} : vector<32x2x20xf32> to vector<1x2x20xf32>
    %65 = vector.shape_cast %64 : vector<1x2x20xf32> to vector<2x20xf32>
    %66 = vector.extract_strided_slice %5 {offsets = [2, 0, 0], sizes = [1, 20, 20], strides = [1, 1, 1]} : vector<32x20x20xf32> to vector<1x20x20xf32>
    %67 = vector.shape_cast %66 : vector<1x20x20xf32> to vector<20x20xf32>
    %cst_29 = arith.constant dense<0.000000e+00> : vector<2x20xf32>
    %68 = tpu.matmul %65, %67, %cst_29 {dimension_numbers = #tpu.dot_dimension_numbers<[1], [0], [0], [1], [0, 0, 1, 1], [], []>} : vector<2x20xf32>, vector<20x20xf32>, vector<2x20xf32> -> vector<2x20xf32>
    %69 = arith.subf %58, %63 : vector<2x20xf32>
    %c2 = arith.constant 2 : index
    %c0_30 = arith.constant 0 : index
    %c0_31 = arith.constant 0 : index
    %70 = vector.load %arg4[%c2, %c0_30, %c0_31] : memref<32x2x20xf32, #tpu.memory_space<vmem>>, vector<1x2x20xf32>
    %71 = vector.shape_cast %70 : vector<1x2x20xf32> to vector<2x20xf32>
    %72 = vector.shape_cast %69 : vector<2x20xf32> to vector<1x2x20xf32>
    tpu.vector_store %arg4[%c2, %c0_30, %c0_31], %72 {strides = array<i32>} : memref<32x2x20xf32, #tpu.memory_space<vmem>>, vector<1x2x20xf32>,
    %73 = arith.subf %68, %58 : vector<2x20xf32>
    %74 = arith.subf %73, %63 : vector<2x20xf32>
    %c2_32 = arith.constant 2 : index
    %c0_33 = arith.constant 0 : index
    %c0_34 = arith.constant 0 : index
    %75 = vector.load %arg5[%c2_32, %c0_33, %c0_34] : memref<32x2x20xf32, #tpu.memory_space<vmem>>, vector<1x2x20xf32>
    %76 = vector.shape_cast %75 : vector<1x2x20xf32> to vector<2x20xf32>
    %77 = vector.shape_cast %74 : vector<2x20xf32> to vector<1x2x20xf32>
    tpu.vector_store %arg5[%c2_32, %c0_33, %c0_34], %77 {strides = array<i32>} : memref<32x2x20xf32, #tpu.memory_space<vmem>>, vector<1x2x20xf32>,
    %78 = vector.extract_strided_slice %0 {offsets = [3, 0, 0], sizes = [1, 2, 20], strides = [1, 1, 1]} : vector<32x2x20xf32> to vector<1x2x20xf32>
    %79 = vector.shape_cast %78 : vector<1x2x20xf32> to vector<2x20xf32>
    %80 = vector.extract_strided_slice %2 {offsets = [3, 0, 0], sizes = [1, 20, 20], strides = [1, 1, 1]} : vector<32x20x20xf32> to vector<1x20x20xf32>
    %81 = vector.shape_cast %80 : vector<1x20x20xf32> to vector<20x20xf32>
    %cst_35 = arith.constant dense<0.000000e+00> : vector<2x20xf32>
    %82 = tpu.matmul %79, %81, %cst_35 {dimension_numbers = #tpu.dot_dimension_numbers<[1], [0], [0], [1], [0, 0, 1, 1], [], []>} : vector<2x20xf32>, vector<20x20xf32>, vector<2x20xf32> -> vector<2x20xf32>
    %83 = vector.extract_strided_slice %1 {offsets = [3, 0, 0], sizes = [1, 2, 20], strides = [1, 1, 1]} : vector<32x2x20xf32> to vector<1x2x20xf32>
    %84 = vector.shape_cast %83 : vector<1x2x20xf32> to vector<2x20xf32>
    %85 = vector.extract_strided_slice %3 {offsets = [3, 0, 0], sizes = [1, 20, 20], strides = [1, 1, 1]} : vector<32x20x20xf32> to vector<1x20x20xf32>
    %86 = vector.shape_cast %85 : vector<1x20x20xf32> to vector<20x20xf32>
    %cst_36 = arith.constant dense<0.000000e+00> : vector<2x20xf32>
    %87 = tpu.matmul %84, %86, %cst_36 {dimension_numbers = #tpu.dot_dimension_numbers<[1], [0], [0], [1], [0, 0, 1, 1], [], []>} : vector<2x20xf32>, vector<20x20xf32>, vector<2x20xf32> -> vector<2x20xf32>
    %88 = vector.extract_strided_slice %4 {offsets = [3, 0, 0], sizes = [1, 2, 20], strides = [1, 1, 1]} : vector<32x2x20xf32> to vector<1x2x20xf32>
    %89 = vector.shape_cast %88 : vector<1x2x20xf32> to vector<2x20xf32>
    %90 = vector.extract_strided_slice %5 {offsets = [3, 0, 0], sizes = [1, 20, 20], strides = [1, 1, 1]} : vector<32x20x20xf32> to vector<1x20x20xf32>
    %91 = vector.shape_cast %90 : vector<1x20x20xf32> to vector<20x20xf32>
    %cst_37 = arith.constant dense<0.000000e+00> : vector<2x20xf32>
    %92 = tpu.matmul %89, %91, %cst_37 {dimension_numbers = #tpu.dot_dimension_numbers<[1], [0], [0], [1], [0, 0, 1, 1], [], []>} : vector<2x20xf32>, vector<20x20xf32>, vector<2x20xf32> -> vector<2x20xf32>
    %93 = arith.subf %82, %87 : vector<2x20xf32>
    %c3 = arith.constant 3 : index
    %c0_38 = arith.constant 0 : index
    %c0_39 = arith.constant 0 : index
    %94 = vector.load %arg4[%c3, %c0_38, %c0_39] : memref<32x2x20xf32, #tpu.memory_space<vmem>>, vector<1x2x20xf32>
    %95 = vector.shape_cast %94 : vector<1x2x20xf32> to vector<2x20xf32>
    %96 = vector.shape_cast %93 : vector<2x20xf32> to vector<1x2x20xf32>
    tpu.vector_store %arg4[%c3, %c0_38, %c0_39], %96 {strides = array<i32>} : memref<32x2x20xf32, #tpu.memory_space<vmem>>, vector<1x2x20xf32>,
    %97 = arith.subf %92, %82 : vector<2x20xf32>
    %98 = arith.subf %97, %87 : vector<2x20xf32>
    %c3_40 = arith.constant 3 : index
    %c0_41 = arith.constant 0 : index
    %c0_42 = arith.constant 0 : index
    %99 = vector.load %arg5[%c3_40, %c0_41, %c0_42] : memref<32x2x20xf32, #tpu.memory_space<vmem>>, vector<1x2x20xf32>
    %100 = vector.shape_cast %99 : vector<1x2x20xf32> to vector<2x20xf32>
    %101 = vector.shape_cast %98 : vector<2x20xf32> to vector<1x2x20xf32>
    tpu.vector_store %arg5[%c3_40, %c0_41, %c0_42], %101 {strides = array<i32>} : memref<32x2x20xf32, #tpu.memory_space<vmem>>, vector<1x2x20xf32>,
    %102 = vector.extract_strided_slice %0 {offsets = [4, 0, 0], sizes = [1, 2, 20], strides = [1, 1, 1]} : vector<32x2x20xf32> to vector<1x2x20xf32>
    %103 = vector.shape_cast %102 : vector<1x2x20xf32> to vector<2x20xf32>
    %104 = vector.extract_strided_slice %2 {offsets = [4, 0, 0], sizes = [1, 20, 20], strides = [1, 1, 1]} : vector<32x20x20xf32> to vector<1x20x20xf32>
    %105 = vector.shape_cast %104 : vector<1x20x20xf32> to vector<20x20xf32>
    %cst_43 = arith.constant dense<0.000000e+00> : vector<2x20xf32>
    %106 = tpu.matmul %103, %105, %cst_43 {dimension_numbers = #tpu.dot_dimension_numbers<[1], [0], [0], [1], [0, 0, 1, 1], [], []>} : vector<2x20xf32>, vector<20x20xf32>, vector<2x20xf32> -> vector<2x20xf32>
    %107 = vector.extract_strided_slice %1 {offsets = [4, 0, 0], sizes = [1, 2, 20], strides = [1, 1, 1]} : vector<32x2x20xf32> to vector<1x2x20xf32>
    %108 = vector.shape_cast %107 : vector<1x2x20xf32> to vector<2x20xf32>
    %109 = vector.extract_strided_slice %3 {offsets = [4, 0, 0], sizes = [1, 20, 20], strides = [1, 1, 1]} : vector<32x20x20xf32> to vector<1x20x20xf32>
    %110 = vector.shape_cast %109 : vector<1x20x20xf32> to vector<20x20xf32>
    %cst_44 = arith.constant dense<0.000000e+00> : vector<2x20xf32>
    %111 = tpu.matmul %108, %110, %cst_44 {dimension_numbers = #tpu.dot_dimension_numbers<[1], [0], [0], [1], [0, 0, 1, 1], [], []>} : vector<2x20xf32>, vector<20x20xf32>, vector<2x20xf32> -> vector<2x20xf32>
    %112 = vector.extract_strided_slice %4 {offsets = [4, 0, 0], sizes = [1, 2, 20], strides = [1, 1, 1]} : vector<32x2x20xf32> to vector<1x2x20xf32>
    %113 = vector.shape_cast %112 : vector<1x2x20xf32> to vector<2x20xf32>
    %114 = vector.extract_strided_slice %5 {offsets = [4, 0, 0], sizes = [1, 20, 20], strides = [1, 1, 1]} : vector<32x20x20xf32> to vector<1x20x20xf32>
    %115 = vector.shape_cast %114 : vector<1x20x20xf32> to vector<20x20xf32>
    %cst_45 = arith.constant dense<0.000000e+00> : vector<2x20xf32>
    %116 = tpu.matmul %113, %115, %cst_45 {dimension_numbers = #tpu.dot_dimension_numbers<[1], [0], [0], [1], [0, 0, 1, 1], [], []>} : vector<2x20xf32>, vector<20x20xf32>, vector<2x20xf32> -> vector<2x20xf32>
    %117 = arith.subf %106, %111 : vector<2x20xf32>
    %c4 = arith.constant 4 : index
    %c0_46 = arith.constant 0 : index
    %c0_47 = arith.constant 0 : index
    %118 = vector.load %arg4[%c4, %c0_46, %c0_47] : memref<32x2x20xf32, #tpu.memory_space<vmem>>, vector<1x2x20xf32>
    %119 = vector.shape_cast %118 : vector<1x2x20xf32> to vector<2x20xf32>
    %120 = vector.shape_cast %117 : vector<2x20xf32> to vector<1x2x20xf32>
    tpu.vector_store %arg4[%c4, %c0_46, %c0_47], %120 {strides = array<i32>} : memref<32x2x20xf32, #tpu.memory_space<vmem>>, vector<1x2x20xf32>,
    %121 = arith.subf %116, %106 : vector<2x20xf32>
    %122 = arith.subf %121, %111 : vector<2x20xf32>
    %c4_48 = arith.constant 4 : index
    %c0_49 = arith.constant 0 : index
    %c0_50 = arith.constant 0 : index
    %123 = vector.load %arg5[%c4_48, %c0_49, %c0_50] : memref<32x2x20xf32, #tpu.memory_space<vmem>>, vector<1x2x20xf32>
    %124 = vector.shape_cast %123 : vector<1x2x20xf32> to vector<2x20xf32>
    %125 = vector.shape_cast %122 : vector<2x20xf32> to vector<1x2x20xf32>
    tpu.vector_store %arg5[%c4_48, %c0_49, %c0_50], %125 {strides = array<i32>} : memref<32x2x20xf32, #tpu.memory_space<vmem>>, vector<1x2x20xf32>,
    %126 = vector.extract_strided_slice %0 {offsets = [5, 0, 0], sizes = [1, 2, 20], strides = [1, 1, 1]} : vector<32x2x20xf32> to vector<1x2x20xf32>
    %127 = vector.shape_cast %126 : vector<1x2x20xf32> to vector<2x20xf32>
    %128 = vector.extract_strided_slice %2 {offsets = [5, 0, 0], sizes = [1, 20, 20], strides = [1, 1, 1]} : vector<32x20x20xf32> to vector<1x20x20xf32>
    %129 = vector.shape_cast %128 : vector<1x20x20xf32> to vector<20x20xf32>
    %cst_51 = arith.constant dense<0.000000e+00> : vector<2x20xf32>
    %130 = tpu.matmul %127, %129, %cst_51 {dimension_numbers = #tpu.dot_dimension_numbers<[1], [0], [0], [1], [0, 0, 1, 1], [], []>} : vector<2x20xf32>, vector<20x20xf32>, vector<2x20xf32> -> vector<2x20xf32>
    %131 = vector.extract_strided_slice %1 {offsets = [5, 0, 0], sizes = [1, 2, 20], strides = [1, 1, 1]} : vector<32x2x20xf32> to vector<1x2x20xf32>
    %132 = vector.shape_cast %131 : vector<1x2x20xf32> to vector<2x20xf32>
    %133 = vector.extract_strided_slice %3 {offsets = [5, 0, 0], sizes = [1, 20, 20], strides = [1, 1, 1]} : vector<32x20x20xf32> to vector<1x20x20xf32>
    %134 = vector.shape_cast %133 : vector<1x20x20xf32> to vector<20x20xf32>
    %cst_52 = arith.constant dense<0.000000e+00> : vector<2x20xf32>
    %135 = tpu.matmul %132, %134, %cst_52 {dimension_numbers = #tpu.dot_dimension_numbers<[1], [0], [0], [1], [0, 0, 1, 1], [], []>} : vector<2x20xf32>, vector<20x20xf32>, vector<2x20xf32> -> vector<2x20xf32>
    %136 = vector.extract_strided_slice %4 {offsets = [5, 0, 0], sizes = [1, 2, 20], strides = [1, 1, 1]} : vector<32x2x20xf32> to vector<1x2x20xf32>
    %137 = vector.shape_cast %136 : vector<1x2x20xf32> to vector<2x20xf32>
    %138 = vector.extract_strided_slice %5 {offsets = [5, 0, 0], sizes = [1, 20, 20], strides = [1, 1, 1]} : vector<32x20x20xf32> to vector<1x20x20xf32>
    %139 = vector.shape_cast %138 : vector<1x20x20xf32> to vector<20x20xf32>
    %cst_53 = arith.constant dense<0.000000e+00> : vector<2x20xf32>
    %140 = tpu.matmul %137, %139, %cst_53 {dimension_numbers = #tpu.dot_dimension_numbers<[1], [0], [0], [1], [0, 0, 1, 1], [], []>} : vector<2x20xf32>, vector<20x20xf32>, vector<2x20xf32> -> vector<2x20xf32>
    %141 = arith.subf %130, %135 : vector<2x20xf32>
    %c5 = arith.constant 5 : index
    %c0_54 = arith.constant 0 : index
    %c0_55 = arith.constant 0 : index
    %142 = vector.load %arg4[%c5, %c0_54, %c0_55] : memref<32x2x20xf32, #tpu.memory_space<vmem>>, vector<1x2x20xf32>
    %143 = vector.shape_cast %142 : vector<1x2x20xf32> to vector<2x20xf32>
    %144 = vector.shape_cast %141 : vector<2x20xf32> to vector<1x2x20xf32>
    tpu.vector_store %arg4[%c5, %c0_54, %c0_55], %144 {strides = array<i32>} : memref<32x2x20xf32, #tpu.memory_space<vmem>>, vector<1x2x20xf32>,
    %145 = arith.subf %140, %130 : vector<2x20xf32>
    %146 = arith.subf %145, %135 : vector<2x20xf32>
    %c5_56 = arith.constant 5 : index
    %c0_57 = arith.constant 0 : index
    %c0_58 = arith.constant 0 : index
    %147 = vector.load %arg5[%c5_56, %c0_57, %c0_58] : memref<32x2x20xf32, #tpu.memory_space<vmem>>, vector<1x2x20xf32>
    %148 = vector.shape_cast %147 : vector<1x2x20xf32> to vector<2x20xf32>
    %149 = vector.shape_cast %146 : vector<2x20xf32> to vector<1x2x20xf32>
    tpu.vector_store %arg5[%c5_56, %c0_57, %c0_58], %149 {strides = array<i32>} : memref<32x2x20xf32, #tpu.memory_space<vmem>>, vector<1x2x20xf32>,
    %150 = vector.extract_strided_slice %0 {offsets = [6, 0, 0], sizes = [1, 2, 20], strides = [1, 1, 1]} : vector<32x2x20xf32> to vector<1x2x20xf32>
    %151 = vector.shape_cast %150 : vector<1x2x20xf32> to vector<2x20xf32>
    %152 = vector.extract_strided_slice %2 {offsets = [6, 0, 0], sizes = [1, 20, 20], strides = [1, 1, 1]} : vector<32x20x20xf32> to vector<1x20x20xf32>
    %153 = vector.shape_cast %152 : vector<1x20x20xf32> to vector<20x20xf32>
    %cst_59 = arith.constant dense<0.000000e+00> : vector<2x20xf32>
    %154 = tpu.matmul %151, %153, %cst_59 {dimension_numbers = #tpu.dot_dimension_numbers<[1], [0], [0], [1], [0, 0, 1, 1], [], []>} : vector<2x20xf32>, vector<20x20xf32>, vector<2x20xf32> -> vector<2x20xf32>
    %155 = vector.extract_strided_slice %1 {offsets = [6, 0, 0], sizes = [1, 2, 20], strides = [1, 1, 1]} : vector<32x2x20xf32> to vector<1x2x20xf32>
    %156 = vector.shape_cast %155 : vector<1x2x20xf32> to vector<2x20xf32>
    %157 = vector.extract_strided_slice %3 {offsets = [6, 0, 0], sizes = [1, 20, 20], strides = [1, 1, 1]} : vector<32x20x20xf32> to vector<1x20x20xf32>
    %158 = vector.shape_cast %157 : vector<1x20x20xf32> to vector<20x20xf32>
    %cst_60 = arith.constant dense<0.000000e+00> : vector<2x20xf32>
    %159 = tpu.matmul %156, %158, %cst_60 {dimension_numbers = #tpu.dot_dimension_numbers<[1], [0], [0], [1], [0, 0, 1, 1], [], []>} : vector<2x20xf32>, vector<20x20xf32>, vector<2x20xf32> -> vector<2x20xf32>
    %160 = vector.extract_strided_slice %4 {offsets = [6, 0, 0], sizes = [1, 2, 20], strides = [1, 1, 1]} : vector<32x2x20xf32> to vector<1x2x20xf32>
    %161 = vector.shape_cast %160 : vector<1x2x20xf32> to vector<2x20xf32>
    %162 = vector.extract_strided_slice %5 {offsets = [6, 0, 0], sizes = [1, 20, 20], strides = [1, 1, 1]} : vector<32x20x20xf32> to vector<1x20x20xf32>
    %163 = vector.shape_cast %162 : vector<1x20x20xf32> to vector<20x20xf32>
    %cst_61 = arith.constant dense<0.000000e+00> : vector<2x20xf32>
    %164 = tpu.matmul %161, %163, %cst_61 {dimension_numbers = #tpu.dot_dimension_numbers<[1], [0], [0], [1], [0, 0, 1, 1], [], []>} : vector<2x20xf32>, vector<20x20xf32>, vector<2x20xf32> -> vector<2x20xf32>
    %165 = arith.subf %154, %159 : vector<2x20xf32>
    %c6 = arith.constant 6 : index
    %c0_62 = arith.constant 0 : index
    %c0_63 = arith.constant 0 : index
    %166 = vector.load %arg4[%c6, %c0_62, %c0_63] : memref<32x2x20xf32, #tpu.memory_space<vmem>>, vector<1x2x20xf32>
    %167 = vector.shape_cast %166 : vector<1x2x20xf32> to vector<2x20xf32>
    %168 = vector.shape_cast %165 : vector<2x20xf32> to vector<1x2x20xf32>
    tpu.vector_store %arg4[%c6, %c0_62, %c0_63], %168 {strides = array<i32>} : memref<32x2x20xf32, #tpu.memory_space<vmem>>, vector<1x2x20xf32>,
    %169 = arith.subf %164, %154 : vector<2x20xf32>
    %170 = arith.subf %169, %159 : vector<2x20xf32>
    %c6_64 = arith.constant 6 : index
    %c0_65 = arith.constant 0 : index
    %c0_66 = arith.constant 0 : index
    %171 = vector.load %arg5[%c6_64, %c0_65, %c0_66] : memref<32x2x20xf32, #tpu.memory_space<vmem>>, vector<1x2x20xf32>
    %172 = vector.shape_cast %171 : vector<1x2x20xf32> to vector<2x20xf32>
    %173 = vector.shape_cast %170 : vector<2x20xf32> to vector<1x2x20xf32>
    tpu.vector_store %arg5[%c6_64, %c0_65, %c0_66], %173 {strides = array<i32>} : memref<32x2x20xf32, #tpu.memory_space<vmem>>, vector<1x2x20xf32>,
    %174 = vector.extract_strided_slice %0 {offsets = [7, 0, 0], sizes = [1, 2, 20], strides = [1, 1, 1]} : vector<32x2x20xf32> to vector<1x2x20xf32>
    %175 = vector.shape_cast %174 : vector<1x2x20xf32> to vector<2x20xf32>
    %176 = vector.extract_strided_slice %2 {offsets = [7, 0, 0], sizes = [1, 20, 20], strides = [1, 1, 1]} : vector<32x20x20xf32> to vector<1x20x20xf32>
    %177 = vector.shape_cast %176 : vector<1x20x20xf32> to vector<20x20xf32>
    %cst_67 = arith.constant dense<0.000000e+00> : vector<2x20xf32>
    %178 = tpu.matmul %175, %177, %cst_67 {dimension_numbers = #tpu.dot_dimension_numbers<[1], [0], [0], [1], [0, 0, 1, 1], [], []>} : vector<2x20xf32>, vector<20x20xf32>, vector<2x20xf32> -> vector<2x20xf32>
    %179 = vector.extract_strided_slice %1 {offsets = [7, 0, 0], sizes = [1, 2, 20], strides = [1, 1, 1]} : vector<32x2x20xf32> to vector<1x2x20xf32>
    %180 = vector.shape_cast %179 : vector<1x2x20xf32> to vector<2x20xf32>
    %181 = vector.extract_strided_slice %3 {offsets = [7, 0, 0], sizes = [1, 20, 20], strides = [1, 1, 1]} : vector<32x20x20xf32> to vector<1x20x20xf32>
    %182 = vector.shape_cast %181 : vector<1x20x20xf32> to vector<20x20xf32>
    %cst_68 = arith.constant dense<0.000000e+00> : vector<2x20xf32>
    %183 = tpu.matmul %180, %182, %cst_68 {dimension_numbers = #tpu.dot_dimension_numbers<[1], [0], [0], [1], [0, 0, 1, 1], [], []>} : vector<2x20xf32>, vector<20x20xf32>, vector<2x20xf32> -> vector<2x20xf32>
    %184 = vector.extract_strided_slice %4 {offsets = [7, 0, 0], sizes = [1, 2, 20], strides = [1, 1, 1]} : vector<32x2x20xf32> to vector<1x2x20xf32>
    %185 = vector.shape_cast %184 : vector<1x2x20xf32> to vector<2x20xf32>
    %186 = vector.extract_strided_slice %5 {offsets = [7, 0, 0], sizes = [1, 20, 20], strides = [1, 1, 1]} : vector<32x20x20xf32> to vector<1x20x20xf32>
    %187 = vector.shape_cast %186 : vector<1x20x20xf32> to vector<20x20xf32>
    %cst_69 = arith.constant dense<0.000000e+00> : vector<2x20xf32>
    %188 = tpu.matmul %185, %187, %cst_69 {dimension_numbers = #tpu.dot_dimension_numbers<[1], [0], [0], [1], [0, 0, 1, 1], [], []>} : vector<2x20xf32>, vector<20x20xf32>, vector<2x20xf32> -> vector<2x20xf32>
    %189 = arith.subf %178, %183 : vector<2x20xf32>
    %c7 = arith.constant 7 : index
    %c0_70 = arith.constant 0 : index
    %c0_71 = arith.constant 0 : index
    %190 = vector.load %arg4[%c7, %c0_70, %c0_71] : memref<32x2x20xf32, #tpu.memory_space<vmem>>, vector<1x2x20xf32>
    %191 = vector.shape_cast %190 : vector<1x2x20xf32> to vector<2x20xf32>
    %192 = vector.shape_cast %189 : vector<2x20xf32> to vector<1x2x20xf32>
    tpu.vector_store %arg4[%c7, %c0_70, %c0_71], %192 {strides = array<i32>} : memref<32x2x20xf32, #tpu.memory_space<vmem>>, vector<1x2x20xf32>,
    %193 = arith.subf %188, %178 : vector<2x20xf32>
    %194 = arith.subf %193, %183 : vector<2x20xf32>
    %c7_72 = arith.constant 7 : index
    %c0_73 = arith.constant 0 : index
    %c0_74 = arith.constant 0 : index
    %195 = vector.load %arg5[%c7_72, %c0_73, %c0_74] : memref<32x2x20xf32, #tpu.memory_space<vmem>>, vector<1x2x20xf32>
    %196 = vector.shape_cast %195 : vector<1x2x20xf32> to vector<2x20xf32>
    %197 = vector.shape_cast %194 : vector<2x20xf32> to vector<1x2x20xf32>
    tpu.vector_store %arg5[%c7_72, %c0_73, %c0_74], %197 {strides = array<i32>} : memref<32x2x20xf32, #tpu.memory_space<vmem>>, vector<1x2x20xf32>,
    %198 = vector.extract_strided_slice %0 {offsets = [8, 0, 0], sizes = [1, 2, 20], strides = [1, 1, 1]} : vector<32x2x20xf32> to vector<1x2x20xf32>
    %199 = vector.shape_cast %198 : vector<1x2x20xf32> to vector<2x20xf32>
    %200 = vector.extract_strided_slice %2 {offsets = [8, 0, 0], sizes = [1, 20, 20], strides = [1, 1, 1]} : vector<32x20x20xf32> to vector<1x20x20xf32>
    %201 = vector.shape_cast %200 : vector<1x20x20xf32> to vector<20x20xf32>
    %cst_75 = arith.constant dense<0.000000e+00> : vector<2x20xf32>
    %202 = tpu.matmul %199, %201, %cst_75 {dimension_numbers = #tpu.dot_dimension_numbers<[1], [0], [0], [1], [0, 0, 1, 1], [], []>} : vector<2x20xf32>, vector<20x20xf32>, vector<2x20xf32> -> vector<2x20xf32>
    %203 = vector.extract_strided_slice %1 {offsets = [8, 0, 0], sizes = [1, 2, 20], strides = [1, 1, 1]} : vector<32x2x20xf32> to vector<1x2x20xf32>
    %204 = vector.shape_cast %203 : vector<1x2x20xf32> to vector<2x20xf32>
    %205 = vector.extract_strided_slice %3 {offsets = [8, 0, 0], sizes = [1, 20, 20], strides = [1, 1, 1]} : vector<32x20x20xf32> to vector<1x20x20xf32>
    %206 = vector.shape_cast %205 : vector<1x20x20xf32> to vector<20x20xf32>
    %cst_76 = arith.constant dense<0.000000e+00> : vector<2x20xf32>
    %207 = tpu.matmul %204, %206, %cst_76 {dimension_numbers = #tpu.dot_dimension_numbers<[1], [0], [0], [1], [0, 0, 1, 1], [], []>} : vector<2x20xf32>, vector<20x20xf32>, vector<2x20xf32> -> vector<2x20xf32>
    %208 = vector.extract_strided_slice %4 {offsets = [8, 0, 0], sizes = [1, 2, 20], strides = [1, 1, 1]} : vector<32x2x20xf32> to vector<1x2x20xf32>
    %209 = vector.shape_cast %208 : vector<1x2x20xf32> to vector<2x20xf32>
    %210 = vector.extract_strided_slice %5 {offsets = [8, 0, 0], sizes = [1, 20, 20], strides = [1, 1, 1]} : vector<32x20x20xf32> to vector<1x20x20xf32>
    %211 = vector.shape_cast %210 : vector<1x20x20xf32> to vector<20x20xf32>
    %cst_77 = arith.constant dense<0.000000e+00> : vector<2x20xf32>
    %212 = tpu.matmul %209, %211, %cst_77 {dimension_numbers = #tpu.dot_dimension_numbers<[1], [0], [0], [1], [0, 0, 1, 1], [], []>} : vector<2x20xf32>, vector<20x20xf32>, vector<2x20xf32> -> vector<2x20xf32>
    %213 = arith.subf %202, %207 : vector<2x20xf32>
    %c8 = arith.constant 8 : index
    %c0_78 = arith.constant 0 : index
    %c0_79 = arith.constant 0 : index
    %214 = vector.load %arg4[%c8, %c0_78, %c0_79] : memref<32x2x20xf32, #tpu.memory_space<vmem>>, vector<1x2x20xf32>
    %215 = vector.shape_cast %214 : vector<1x2x20xf32> to vector<2x20xf32>
    %216 = vector.shape_cast %213 : vector<2x20xf32> to vector<1x2x20xf32>
    tpu.vector_store %arg4[%c8, %c0_78, %c0_79], %216 {strides = array<i32>} : memref<32x2x20xf32, #tpu.memory_space<vmem>>, vector<1x2x20xf32>,
    %217 = arith.subf %212, %202 : vector<2x20xf32>
    %218 = arith.subf %217, %207 : vector<2x20xf32>
    %c8_80 = arith.constant 8 : index
    %c0_81 = arith.constant 0 : index
    %c0_82 = arith.constant 0 : index
    %219 = vector.load %arg5[%c8_80, %c0_81, %c0_82] : memref<32x2x20xf32, #tpu.memory_space<vmem>>, vector<1x2x20xf32>
    %220 = vector.shape_cast %219 : vector<1x2x20xf32> to vector<2x20xf32>
    %221 = vector.shape_cast %218 : vector<2x20xf32> to vector<1x2x20xf32>
    tpu.vector_store %arg5[%c8_80, %c0_81, %c0_82], %221 {strides = array<i32>} : memref<32x2x20xf32, #tpu.memory_space<vmem>>, vector<1x2x20xf32>,
    %222 = vector.extract_strided_slice %0 {offsets = [9, 0, 0], sizes = [1, 2, 20], strides = [1, 1, 1]} : vector<32x2x20xf32> to vector<1x2x20xf32>
    %223 = vector.shape_cast %222 : vector<1x2x20xf32> to vector<2x20xf32>
    %224 = vector.extract_strided_slice %2 {offsets = [9, 0, 0], sizes = [1, 20, 20], strides = [1, 1, 1]} : vector<32x20x20xf32> to vector<1x20x20xf32>
    %225 = vector.shape_cast %224 : vector<1x20x20xf32> to vector<20x20xf32>
    %cst_83 = arith.constant dense<0.000000e+00> : vector<2x20xf32>
    %226 = tpu.matmul %223, %225, %cst_83 {dimension_numbers = #tpu.dot_dimension_numbers<[1], [0], [0], [1], [0, 0, 1, 1], [], []>} : vector<2x20xf32>, vector<20x20xf32>, vector<2x20xf32> -> vector<2x20xf32>
    %227 = vector.extract_strided_slice %1 {offsets = [9, 0, 0], sizes = [1, 2, 20], strides = [1, 1, 1]} : vector<32x2x20xf32> to vector<1x2x20xf32>
    %228 = vector.shape_cast %227 : vector<1x2x20xf32> to vector<2x20xf32>
    %229 = vector.extract_strided_slice %3 {offsets = [9, 0, 0], sizes = [1, 20, 20], strides = [1, 1, 1]} : vector<32x20x20xf32> to vector<1x20x20xf32>
    %230 = vector.shape_cast %229 : vector<1x20x20xf32> to vector<20x20xf32>
    %cst_84 = arith.constant dense<0.000000e+00> : vector<2x20xf32>
    %231 = tpu.matmul %228, %230, %cst_84 {dimension_numbers = #tpu.dot_dimension_numbers<[1], [0], [0], [1], [0, 0, 1, 1], [], []>} : vector<2x20xf32>, vector<20x20xf32>, vector<2x20xf32> -> vector<2x20xf32>
    %232 = vector.extract_strided_slice %4 {offsets = [9, 0, 0], sizes = [1, 2, 20], strides = [1, 1, 1]} : vector<32x2x20xf32> to vector<1x2x20xf32>
    %233 = vector.shape_cast %232 : vector<1x2x20xf32> to vector<2x20xf32>
    %234 = vector.extract_strided_slice %5 {offsets = [9, 0, 0], sizes = [1, 20, 20], strides = [1, 1, 1]} : vector<32x20x20xf32> to vector<1x20x20xf32>
    %235 = vector.shape_cast %234 : vector<1x20x20xf32> to vector<20x20xf32>
    %cst_85 = arith.constant dense<0.000000e+00> : vector<2x20xf32>
    %236 = tpu.matmul %233, %235, %cst_85 {dimension_numbers = #tpu.dot_dimension_numbers<[1], [0], [0], [1], [0, 0, 1, 1], [], []>} : vector<2x20xf32>, vector<20x20xf32>, vector<2x20xf32> -> vector<2x20xf32>
    %237 = arith.subf %226, %231 : vector<2x20xf32>
    %c9 = arith.constant 9 : index
    %c0_86 = arith.constant 0 : index
    %c0_87 = arith.constant 0 : index
    %238 = vector.load %arg4[%c9, %c0_86, %c0_87] : memref<32x2x20xf32, #tpu.memory_space<vmem>>, vector<1x2x20xf32>
    %239 = vector.shape_cast %238 : vector<1x2x20xf32> to vector<2x20xf32>
    %240 = vector.shape_cast %237 : vector<2x20xf32> to vector<1x2x20xf32>
    tpu.vector_store %arg4[%c9, %c0_86, %c0_87], %240 {strides = array<i32>} : memref<32x2x20xf32, #tpu.memory_space<vmem>>, vector<1x2x20xf32>,
    %241 = arith.subf %236, %226 : vector<2x20xf32>
    %242 = arith.subf %241, %231 : vector<2x20xf32>
    %c9_88 = arith.constant 9 : index
    %c0_89 = arith.constant 0 : index
    %c0_90 = arith.constant 0 : index
    %243 = vector.load %arg5[%c9_88, %c0_89, %c0_90] : memref<32x2x20xf32, #tpu.memory_space<vmem>>, vector<1x2x20xf32>
    %244 = vector.shape_cast %243 : vector<1x2x20xf32> to vector<2x20xf32>
    %245 = vector.shape_cast %242 : vector<2x20xf32> to vector<1x2x20xf32>
    tpu.vector_store %arg5[%c9_88, %c0_89, %c0_90], %245 {strides = array<i32>} : memref<32x2x20xf32, #tpu.memory_space<vmem>>, vector<1x2x20xf32>,
    %246 = vector.extract_strided_slice %0 {offsets = [10, 0, 0], sizes = [1, 2, 20], strides = [1, 1, 1]} : vector<32x2x20xf32> to vector<1x2x20xf32>
    %247 = vector.shape_cast %246 : vector<1x2x20xf32> to vector<2x20xf32>
    %248 = vector.extract_strided_slice %2 {offsets = [10, 0, 0], sizes = [1, 20, 20], strides = [1, 1, 1]} : vector<32x20x20xf32> to vector<1x20x20xf32>
    %249 = vector.shape_cast %248 : vector<1x20x20xf32> to vector<20x20xf32>
    %cst_91 = arith.constant dense<0.000000e+00> : vector<2x20xf32>
    %250 = tpu.matmul %247, %249, %cst_91 {dimension_numbers = #tpu.dot_dimension_numbers<[1], [0], [0], [1], [0, 0, 1, 1], [], []>} : vector<2x20xf32>, vector<20x20xf32>, vector<2x20xf32> -> vector<2x20xf32>
    %251 = vector.extract_strided_slice %1 {offsets = [10, 0, 0], sizes = [1, 2, 20], strides = [1, 1, 1]} : vector<32x2x20xf32> to vector<1x2x20xf32>
    %252 = vector.shape_cast %251 : vector<1x2x20xf32> to vector<2x20xf32>
    %253 = vector.extract_strided_slice %3 {offsets = [10, 0, 0], sizes = [1, 20, 20], strides = [1, 1, 1]} : vector<32x20x20xf32> to vector<1x20x20xf32>
    %254 = vector.shape_cast %253 : vector<1x20x20xf32> to vector<20x20xf32>
    %cst_92 = arith.constant dense<0.000000e+00> : vector<2x20xf32>
    %255 = tpu.matmul %252, %254, %cst_92 {dimension_numbers = #tpu.dot_dimension_numbers<[1], [0], [0], [1], [0, 0, 1, 1], [], []>} : vector<2x20xf32>, vector<20x20xf32>, vector<2x20xf32> -> vector<2x20xf32>
    %256 = vector.extract_strided_slice %4 {offsets = [10, 0, 0], sizes = [1, 2, 20], strides = [1, 1, 1]} : vector<32x2x20xf32> to vector<1x2x20xf32>
    %257 = vector.shape_cast %256 : vector<1x2x20xf32> to vector<2x20xf32>
    %258 = vector.extract_strided_slice %5 {offsets = [10, 0, 0], sizes = [1, 20, 20], strides = [1, 1, 1]} : vector<32x20x20xf32> to vector<1x20x20xf32>
    %259 = vector.shape_cast %258 : vector<1x20x20xf32> to vector<20x20xf32>
    %cst_93 = arith.constant dense<0.000000e+00> : vector<2x20xf32>
    %260 = tpu.matmul %257, %259, %cst_93 {dimension_numbers = #tpu.dot_dimension_numbers<[1], [0], [0], [1], [0, 0, 1, 1], [], []>} : vector<2x20xf32>, vector<20x20xf32>, vector<2x20xf32> -> vector<2x20xf32>
    %261 = arith.subf %250, %255 : vector<2x20xf32>
    %c10 = arith.constant 10 : index
    %c0_94 = arith.constant 0 : index
    %c0_95 = arith.constant 0 : index
    %262 = vector.load %arg4[%c10, %c0_94, %c0_95] : memref<32x2x20xf32, #tpu.memory_space<vmem>>, vector<1x2x20xf32>
    %263 = vector.shape_cast %262 : vector<1x2x20xf32> to vector<2x20xf32>
    %264 = vector.shape_cast %261 : vector<2x20xf32> to vector<1x2x20xf32>
    tpu.vector_store %arg4[%c10, %c0_94, %c0_95], %264 {strides = array<i32>} : memref<32x2x20xf32, #tpu.memory_space<vmem>>, vector<1x2x20xf32>,
    %265 = arith.subf %260, %250 : vector<2x20xf32>
    %266 = arith.subf %265, %255 : vector<2x20xf32>
    %c10_96 = arith.constant 10 : index
    %c0_97 = arith.constant 0 : index
    %c0_98 = arith.constant 0 : index
    %267 = vector.load %arg5[%c10_96, %c0_97, %c0_98] : memref<32x2x20xf32, #tpu.memory_space<vmem>>, vector<1x2x20xf32>
    %268 = vector.shape_cast %267 : vector<1x2x20xf32> to vector<2x20xf32>
    %269 = vector.shape_cast %266 : vector<2x20xf32> to vector<1x2x20xf32>
    tpu.vector_store %arg5[%c10_96, %c0_97, %c0_98], %269 {strides = array<i32>} : memref<32x2x20xf32, #tpu.memory_space<vmem>>, vector<1x2x20xf32>,
    %270 = vector.extract_strided_slice %0 {offsets = [11, 0, 0], sizes = [1, 2, 20], strides = [1, 1, 1]} : vector<32x2x20xf32> to vector<1x2x20xf32>
    %271 = vector.shape_cast %270 : vector<1x2x20xf32> to vector<2x20xf32>
    %272 = vector.extract_strided_slice %2 {offsets = [11, 0, 0], sizes = [1, 20, 20], strides = [1, 1, 1]} : vector<32x20x20xf32> to vector<1x20x20xf32>
    %273 = vector.shape_cast %272 : vector<1x20x20xf32> to vector<20x20xf32>
    %cst_99 = arith.constant dense<0.000000e+00> : vector<2x20xf32>
    %274 = tpu.matmul %271, %273, %cst_99 {dimension_numbers = #tpu.dot_dimension_numbers<[1], [0], [0], [1], [0, 0, 1, 1], [], []>} : vector<2x20xf32>, vector<20x20xf32>, vector<2x20xf32> -> vector<2x20xf32>
    %275 = vector.extract_strided_slice %1 {offsets = [11, 0, 0], sizes = [1, 2, 20], strides = [1, 1, 1]} : vector<32x2x20xf32> to vector<1x2x20xf32>
    %276 = vector.shape_cast %275 : vector<1x2x20xf32> to vector<2x20xf32>
    %277 = vector.extract_strided_slice %3 {offsets = [11, 0, 0], sizes = [1, 20, 20], strides = [1, 1, 1]} : vector<32x20x20xf32> to vector<1x20x20xf32>
    %278 = vector.shape_cast %277 : vector<1x20x20xf32> to vector<20x20xf32>
    %cst_100 = arith.constant dense<0.000000e+00> : vector<2x20xf32>
    %279 = tpu.matmul %276, %278, %cst_100 {dimension_numbers = #tpu.dot_dimension_numbers<[1], [0], [0], [1], [0, 0, 1, 1], [], []>} : vector<2x20xf32>, vector<20x20xf32>, vector<2x20xf32> -> vector<2x20xf32>
    %280 = vector.extract_strided_slice %4 {offsets = [11, 0, 0], sizes = [1, 2, 20], strides = [1, 1, 1]} : vector<32x2x20xf32> to vector<1x2x20xf32>
    %281 = vector.shape_cast %280 : vector<1x2x20xf32> to vector<2x20xf32>
    %282 = vector.extract_strided_slice %5 {offsets = [11, 0, 0], sizes = [1, 20, 20], strides = [1, 1, 1]} : vector<32x20x20xf32> to vector<1x20x20xf32>
    %283 = vector.shape_cast %282 : vector<1x20x20xf32> to vector<20x20xf32>
    %cst_101 = arith.constant dense<0.000000e+00> : vector<2x20xf32>
    %284 = tpu.matmul %281, %283, %cst_101 {dimension_numbers = #tpu.dot_dimension_numbers<[1], [0], [0], [1], [0, 0, 1, 1], [], []>} : vector<2x20xf32>, vector<20x20xf32>, vector<2x20xf32> -> vector<2x20xf32>
    %285 = arith.subf %274, %279 : vector<2x20xf32>
    %c11 = arith.constant 11 : index
    %c0_102 = arith.constant 0 : index
    %c0_103 = arith.constant 0 : index
    %286 = vector.load %arg4[%c11, %c0_102, %c0_103] : memref<32x2x20xf32, #tpu.memory_space<vmem>>, vector<1x2x20xf32>
    %287 = vector.shape_cast %286 : vector<1x2x20xf32> to vector<2x20xf32>
    %288 = vector.shape_cast %285 : vector<2x20xf32> to vector<1x2x20xf32>
    tpu.vector_store %arg4[%c11, %c0_102, %c0_103], %288 {strides = array<i32>} : memref<32x2x20xf32, #tpu.memory_space<vmem>>, vector<1x2x20xf32>,
    %289 = arith.subf %284, %274 : vector<2x20xf32>
    %290 = arith.subf %289, %279 : vector<2x20xf32>
    %c11_104 = arith.constant 11 : index
    %c0_105 = arith.constant 0 : index
    %c0_106 = arith.constant 0 : index
    %291 = vector.load %arg5[%c11_104, %c0_105, %c0_106] : memref<32x2x20xf32, #tpu.memory_space<vmem>>, vector<1x2x20xf32>
    %292 = vector.shape_cast %291 : vector<1x2x20xf32> to vector<2x20xf32>
    %293 = vector.shape_cast %290 : vector<2x20xf32> to vector<1x2x20xf32>
    tpu.vector_store %arg5[%c11_104, %c0_105, %c0_106], %293 {strides = array<i32>} : memref<32x2x20xf32, #tpu.memory_space<vmem>>, vector<1x2x20xf32>,
    %294 = vector.extract_strided_slice %0 {offsets = [12, 0, 0], sizes = [1, 2, 20], strides = [1, 1, 1]} : vector<32x2x20xf32> to vector<1x2x20xf32>
    %295 = vector.shape_cast %294 : vector<1x2x20xf32> to vector<2x20xf32>
    %296 = vector.extract_strided_slice %2 {offsets = [12, 0, 0], sizes = [1, 20, 20], strides = [1, 1, 1]} : vector<32x20x20xf32> to vector<1x20x20xf32>
    %297 = vector.shape_cast %296 : vector<1x20x20xf32> to vector<20x20xf32>
    %cst_107 = arith.constant dense<0.000000e+00> : vector<2x20xf32>
    %298 = tpu.matmul %295, %297, %cst_107 {dimension_numbers = #tpu.dot_dimension_numbers<[1], [0], [0], [1], [0, 0, 1, 1], [], []>} : vector<2x20xf32>, vector<20x20xf32>, vector<2x20xf32> -> vector<2x20xf32>
    %299 = vector.extract_strided_slice %1 {offsets = [12, 0, 0], sizes = [1, 2, 20], strides = [1, 1, 1]} : vector<32x2x20xf32> to vector<1x2x20xf32>
    %300 = vector.shape_cast %299 : vector<1x2x20xf32> to vector<2x20xf32>
    %301 = vector.extract_strided_slice %3 {offsets = [12, 0, 0], sizes = [1, 20, 20], strides = [1, 1, 1]} : vector<32x20x20xf32> to vector<1x20x20xf32>
    %302 = vector.shape_cast %301 : vector<1x20x20xf32> to vector<20x20xf32>
    %cst_108 = arith.constant dense<0.000000e+00> : vector<2x20xf32>
    %303 = tpu.matmul %300, %302, %cst_108 {dimension_numbers = #tpu.dot_dimension_numbers<[1], [0], [0], [1], [0, 0, 1, 1], [], []>} : vector<2x20xf32>, vector<20x20xf32>, vector<2x20xf32> -> vector<2x20xf32>
    %304 = vector.extract_strided_slice %4 {offsets = [12, 0, 0], sizes = [1, 2, 20], strides = [1, 1, 1]} : vector<32x2x20xf32> to vector<1x2x20xf32>
    %305 = vector.shape_cast %304 : vector<1x2x20xf32> to vector<2x20xf32>
    %306 = vector.extract_strided_slice %5 {offsets = [12, 0, 0], sizes = [1, 20, 20], strides = [1, 1, 1]} : vector<32x20x20xf32> to vector<1x20x20xf32>
    %307 = vector.shape_cast %306 : vector<1x20x20xf32> to vector<20x20xf32>
    %cst_109 = arith.constant dense<0.000000e+00> : vector<2x20xf32>
    %308 = tpu.matmul %305, %307, %cst_109 {dimension_numbers = #tpu.dot_dimension_numbers<[1], [0], [0], [1], [0, 0, 1, 1], [], []>} : vector<2x20xf32>, vector<20x20xf32>, vector<2x20xf32> -> vector<2x20xf32>
    %309 = arith.subf %298, %303 : vector<2x20xf32>
    %c12 = arith.constant 12 : index
    %c0_110 = arith.constant 0 : index
    %c0_111 = arith.constant 0 : index
    %310 = vector.load %arg4[%c12, %c0_110, %c0_111] : memref<32x2x20xf32, #tpu.memory_space<vmem>>, vector<1x2x20xf32>
    %311 = vector.shape_cast %310 : vector<1x2x20xf32> to vector<2x20xf32>
    %312 = vector.shape_cast %309 : vector<2x20xf32> to vector<1x2x20xf32>
    tpu.vector_store %arg4[%c12, %c0_110, %c0_111], %312 {strides = array<i32>} : memref<32x2x20xf32, #tpu.memory_space<vmem>>, vector<1x2x20xf32>,
    %313 = arith.subf %308, %298 : vector<2x20xf32>
    %314 = arith.subf %313, %303 : vector<2x20xf32>
    %c12_112 = arith.constant 12 : index
    %c0_113 = arith.constant 0 : index
    %c0_114 = arith.constant 0 : index
    %315 = vector.load %arg5[%c12_112, %c0_113, %c0_114] : memref<32x2x20xf32, #tpu.memory_space<vmem>>, vector<1x2x20xf32>
    %316 = vector.shape_cast %315 : vector<1x2x20xf32> to vector<2x20xf32>
    %317 = vector.shape_cast %314 : vector<2x20xf32> to vector<1x2x20xf32>
    tpu.vector_store %arg5[%c12_112, %c0_113, %c0_114], %317 {strides = array<i32>} : memref<32x2x20xf32, #tpu.memory_space<vmem>>, vector<1x2x20xf32>,
    %318 = vector.extract_strided_slice %0 {offsets = [13, 0, 0], sizes = [1, 2, 20], strides = [1, 1, 1]} : vector<32x2x20xf32> to vector<1x2x20xf32>
    %319 = vector.shape_cast %318 : vector<1x2x20xf32> to vector<2x20xf32>
    %320 = vector.extract_strided_slice %2 {offsets = [13, 0, 0], sizes = [1, 20, 20], strides = [1, 1, 1]} : vector<32x20x20xf32> to vector<1x20x20xf32>
    %321 = vector.shape_cast %320 : vector<1x20x20xf32> to vector<20x20xf32>
    %cst_115 = arith.constant dense<0.000000e+00> : vector<2x20xf32>
    %322 = tpu.matmul %319, %321, %cst_115 {dimension_numbers = #tpu.dot_dimension_numbers<[1], [0], [0], [1], [0, 0, 1, 1], [], []>} : vector<2x20xf32>, vector<20x20xf32>, vector<2x20xf32> -> vector<2x20xf32>
    %323 = vector.extract_strided_slice %1 {offsets = [13, 0, 0], sizes = [1, 2, 20], strides = [1, 1, 1]} : vector<32x2x20xf32> to vector<1x2x20xf32>
    %324 = vector.shape_cast %323 : vector<1x2x20xf32> to vector<2x20xf32>
    %325 = vector.extract_strided_slice %3 {offsets = [13, 0, 0], sizes = [1, 20, 20], strides = [1, 1, 1]} : vector<32x20x20xf32> to vector<1x20x20xf32>
    %326 = vector.shape_cast %325 : vector<1x20x20xf32> to vector<20x20xf32>
    %cst_116 = arith.constant dense<0.000000e+00> : vector<2x20xf32>
    %327 = tpu.matmul %324, %326, %cst_116 {dimension_numbers = #tpu.dot_dimension_numbers<[1], [0], [0], [1], [0, 0, 1, 1], [], []>} : vector<2x20xf32>, vector<20x20xf32>, vector<2x20xf32> -> vector<2x20xf32>
    %328 = vector.extract_strided_slice %4 {offsets = [13, 0, 0], sizes = [1, 2, 20], strides = [1, 1, 1]} : vector<32x2x20xf32> to vector<1x2x20xf32>
    %329 = vector.shape_cast %328 : vector<1x2x20xf32> to vector<2x20xf32>
    %330 = vector.extract_strided_slice %5 {offsets = [13, 0, 0], sizes = [1, 20, 20], strides = [1, 1, 1]} : vector<32x20x20xf32> to vector<1x20x20xf32>
    %331 = vector.shape_cast %330 : vector<1x20x20xf32> to vector<20x20xf32>
    %cst_117 = arith.constant dense<0.000000e+00> : vector<2x20xf32>
    %332 = tpu.matmul %329, %331, %cst_117 {dimension_numbers = #tpu.dot_dimension_numbers<[1], [0], [0], [1], [0, 0, 1, 1], [], []>} : vector<2x20xf32>, vector<20x20xf32>, vector<2x20xf32> -> vector<2x20xf32>
    %333 = arith.subf %322, %327 : vector<2x20xf32>
    %c13 = arith.constant 13 : index
    %c0_118 = arith.constant 0 : index
    %c0_119 = arith.constant 0 : index
    %334 = vector.load %arg4[%c13, %c0_118, %c0_119] : memref<32x2x20xf32, #tpu.memory_space<vmem>>, vector<1x2x20xf32>
    %335 = vector.shape_cast %334 : vector<1x2x20xf32> to vector<2x20xf32>
    %336 = vector.shape_cast %333 : vector<2x20xf32> to vector<1x2x20xf32>
    tpu.vector_store %arg4[%c13, %c0_118, %c0_119], %336 {strides = array<i32>} : memref<32x2x20xf32, #tpu.memory_space<vmem>>, vector<1x2x20xf32>,
    %337 = arith.subf %332, %322 : vector<2x20xf32>
    %338 = arith.subf %337, %327 : vector<2x20xf32>
    %c13_120 = arith.constant 13 : index
    %c0_121 = arith.constant 0 : index
    %c0_122 = arith.constant 0 : index
    %339 = vector.load %arg5[%c13_120, %c0_121, %c0_122] : memref<32x2x20xf32, #tpu.memory_space<vmem>>, vector<1x2x20xf32>
    %340 = vector.shape_cast %339 : vector<1x2x20xf32> to vector<2x20xf32>
    %341 = vector.shape_cast %338 : vector<2x20xf32> to vector<1x2x20xf32>
    tpu.vector_store %arg5[%c13_120, %c0_121, %c0_122], %341 {strides = array<i32>} : memref<32x2x20xf32, #tpu.memory_space<vmem>>, vector<1x2x20xf32>,
    %342 = vector.extract_strided_slice %0 {offsets = [14, 0, 0], sizes = [1, 2, 20], strides = [1, 1, 1]} : vector<32x2x20xf32> to vector<1x2x20xf32>
    %343 = vector.shape_cast %342 : vector<1x2x20xf32> to vector<2x20xf32>
    %344 = vector.extract_strided_slice %2 {offsets = [14, 0, 0], sizes = [1, 20, 20], strides = [1, 1, 1]} : vector<32x20x20xf32> to vector<1x20x20xf32>
    %345 = vector.shape_cast %344 : vector<1x20x20xf32> to vector<20x20xf32>
    %cst_123 = arith.constant dense<0.000000e+00> : vector<2x20xf32>
    %346 = tpu.matmul %343, %345, %cst_123 {dimension_numbers = #tpu.dot_dimension_numbers<[1], [0], [0], [1], [0, 0, 1, 1], [], []>} : vector<2x20xf32>, vector<20x20xf32>, vector<2x20xf32> -> vector<2x20xf32>
    %347 = vector.extract_strided_slice %1 {offsets = [14, 0, 0], sizes = [1, 2, 20], strides = [1, 1, 1]} : vector<32x2x20xf32> to vector<1x2x20xf32>
    %348 = vector.shape_cast %347 : vector<1x2x20xf32> to vector<2x20xf32>
    %349 = vector.extract_strided_slice %3 {offsets = [14, 0, 0], sizes = [1, 20, 20], strides = [1, 1, 1]} : vector<32x20x20xf32> to vector<1x20x20xf32>
    %350 = vector.shape_cast %349 : vector<1x20x20xf32> to vector<20x20xf32>
    %cst_124 = arith.constant dense<0.000000e+00> : vector<2x20xf32>
    %351 = tpu.matmul %348, %350, %cst_124 {dimension_numbers = #tpu.dot_dimension_numbers<[1], [0], [0], [1], [0, 0, 1, 1], [], []>} : vector<2x20xf32>, vector<20x20xf32>, vector<2x20xf32> -> vector<2x20xf32>
    %352 = vector.extract_strided_slice %4 {offsets = [14, 0, 0], sizes = [1, 2, 20], strides = [1, 1, 1]} : vector<32x2x20xf32> to vector<1x2x20xf32>
    %353 = vector.shape_cast %352 : vector<1x2x20xf32> to vector<2x20xf32>
    %354 = vector.extract_strided_slice %5 {offsets = [14, 0, 0], sizes = [1, 20, 20], strides = [1, 1, 1]} : vector<32x20x20xf32> to vector<1x20x20xf32>
    %355 = vector.shape_cast %354 : vector<1x20x20xf32> to vector<20x20xf32>
    %cst_125 = arith.constant dense<0.000000e+00> : vector<2x20xf32>
    %356 = tpu.matmul %353, %355, %cst_125 {dimension_numbers = #tpu.dot_dimension_numbers<[1], [0], [0], [1], [0, 0, 1, 1], [], []>} : vector<2x20xf32>, vector<20x20xf32>, vector<2x20xf32> -> vector<2x20xf32>
    %357 = arith.subf %346, %351 : vector<2x20xf32>
    %c14 = arith.constant 14 : index
    %c0_126 = arith.constant 0 : index
    %c0_127 = arith.constant 0 : index
    %358 = vector.load %arg4[%c14, %c0_126, %c0_127] : memref<32x2x20xf32, #tpu.memory_space<vmem>>, vector<1x2x20xf32>
    %359 = vector.shape_cast %358 : vector<1x2x20xf32> to vector<2x20xf32>
    %360 = vector.shape_cast %357 : vector<2x20xf32> to vector<1x2x20xf32>
    tpu.vector_store %arg4[%c14, %c0_126, %c0_127], %360 {strides = array<i32>} : memref<32x2x20xf32, #tpu.memory_space<vmem>>, vector<1x2x20xf32>,
    %361 = arith.subf %356, %346 : vector<2x20xf32>
    %362 = arith.subf %361, %351 : vector<2x20xf32>
    %c14_128 = arith.constant 14 : index
    %c0_129 = arith.constant 0 : index
    %c0_130 = arith.constant 0 : index
    %363 = vector.load %arg5[%c14_128, %c0_129, %c0_130] : memref<32x2x20xf32, #tpu.memory_space<vmem>>, vector<1x2x20xf32>
    %364 = vector.shape_cast %363 : vector<1x2x20xf32> to vector<2x20xf32>
    %365 = vector.shape_cast %362 : vector<2x20xf32> to vector<1x2x20xf32>
    tpu.vector_store %arg5[%c14_128, %c0_129, %c0_130], %365 {strides = array<i32>} : memref<32x2x20xf32, #tpu.memory_space<vmem>>, vector<1x2x20xf32>,
    %366 = vector.extract_strided_slice %0 {offsets = [15, 0, 0], sizes = [1, 2, 20], strides = [1, 1, 1]} : vector<32x2x20xf32> to vector<1x2x20xf32>
    %367 = vector.shape_cast %366 : vector<1x2x20xf32> to vector<2x20xf32>
    %368 = vector.extract_strided_slice %2 {offsets = [15, 0, 0], sizes = [1, 20, 20], strides = [1, 1, 1]} : vector<32x20x20xf32> to vector<1x20x20xf32>
    %369 = vector.shape_cast %368 : vector<1x20x20xf32> to vector<20x20xf32>
    %cst_131 = arith.constant dense<0.000000e+00> : vector<2x20xf32>
    %370 = tpu.matmul %367, %369, %cst_131 {dimension_numbers = #tpu.dot_dimension_numbers<[1], [0], [0], [1], [0, 0, 1, 1], [], []>} : vector<2x20xf32>, vector<20x20xf32>, vector<2x20xf32> -> vector<2x20xf32>
    %371 = vector.extract_strided_slice %1 {offsets = [15, 0, 0], sizes = [1, 2, 20], strides = [1, 1, 1]} : vector<32x2x20xf32> to vector<1x2x20xf32>
    %372 = vector.shape_cast %371 : vector<1x2x20xf32> to vector<2x20xf32>
    %373 = vector.extract_strided_slice %3 {offsets = [15, 0, 0], sizes = [1, 20, 20], strides = [1, 1, 1]} : vector<32x20x20xf32> to vector<1x20x20xf32>
    %374 = vector.shape_cast %373 : vector<1x20x20xf32> to vector<20x20xf32>
    %cst_132 = arith.constant dense<0.000000e+00> : vector<2x20xf32>
    %375 = tpu.matmul %372, %374, %cst_132 {dimension_numbers = #tpu.dot_dimension_numbers<[1], [0], [0], [1], [0, 0, 1, 1], [], []>} : vector<2x20xf32>, vector<20x20xf32>, vector<2x20xf32> -> vector<2x20xf32>
    %376 = vector.extract_strided_slice %4 {offsets = [15, 0, 0], sizes = [1, 2, 20], strides = [1, 1, 1]} : vector<32x2x20xf32> to vector<1x2x20xf32>
    %377 = vector.shape_cast %376 : vector<1x2x20xf32> to vector<2x20xf32>
    %378 = vector.extract_strided_slice %5 {offsets = [15, 0, 0], sizes = [1, 20, 20], strides = [1, 1, 1]} : vector<32x20x20xf32> to vector<1x20x20xf32>
    %379 = vector.shape_cast %378 : vector<1x20x20xf32> to vector<20x20xf32>
    %cst_133 = arith.constant dense<0.000000e+00> : vector<2x20xf32>
    %380 = tpu.matmul %377, %379, %cst_133 {dimension_numbers = #tpu.dot_dimension_numbers<[1], [0], [0], [1], [0, 0, 1, 1], [], []>} : vector<2x20xf32>, vector<20x20xf32>, vector<2x20xf32> -> vector<2x20xf32>
    %381 = arith.subf %370, %375 : vector<2x20xf32>
    %c15 = arith.constant 15 : index
    %c0_134 = arith.constant 0 : index
    %c0_135 = arith.constant 0 : index
    %382 = vector.load %arg4[%c15, %c0_134, %c0_135] : memref<32x2x20xf32, #tpu.memory_space<vmem>>, vector<1x2x20xf32>
    %383 = vector.shape_cast %382 : vector<1x2x20xf32> to vector<2x20xf32>
    %384 = vector.shape_cast %381 : vector<2x20xf32> to vector<1x2x20xf32>
    tpu.vector_store %arg4[%c15, %c0_134, %c0_135], %384 {strides = array<i32>} : memref<32x2x20xf32, #tpu.memory_space<vmem>>, vector<1x2x20xf32>,
    %385 = arith.subf %380, %370 : vector<2x20xf32>
    %386 = arith.subf %385, %375 : vector<2x20xf32>
    %c15_136 = arith.constant 15 : index
    %c0_137 = arith.constant 0 : index
    %c0_138 = arith.constant 0 : index
    %387 = vector.load %arg5[%c15_136, %c0_137, %c0_138] : memref<32x2x20xf32, #tpu.memory_space<vmem>>, vector<1x2x20xf32>
    %388 = vector.shape_cast %387 : vector<1x2x20xf32> to vector<2x20xf32>
    %389 = vector.shape_cast %386 : vector<2x20xf32> to vector<1x2x20xf32>
    tpu.vector_store %arg5[%c15_136, %c0_137, %c0_138], %389 {strides = array<i32>} : memref<32x2x20xf32, #tpu.memory_space<vmem>>, vector<1x2x20xf32>,
    %390 = vector.extract_strided_slice %0 {offsets = [16, 0, 0], sizes = [1, 2, 20], strides = [1, 1, 1]} : vector<32x2x20xf32> to vector<1x2x20xf32>
    %391 = vector.shape_cast %390 : vector<1x2x20xf32> to vector<2x20xf32>
    %392 = vector.extract_strided_slice %2 {offsets = [16, 0, 0], sizes = [1, 20, 20], strides = [1, 1, 1]} : vector<32x20x20xf32> to vector<1x20x20xf32>
    %393 = vector.shape_cast %392 : vector<1x20x20xf32> to vector<20x20xf32>
    %cst_139 = arith.constant dense<0.000000e+00> : vector<2x20xf32>
    %394 = tpu.matmul %391, %393, %cst_139 {dimension_numbers = #tpu.dot_dimension_numbers<[1], [0], [0], [1], [0, 0, 1, 1], [], []>} : vector<2x20xf32>, vector<20x20xf32>, vector<2x20xf32> -> vector<2x20xf32>
    %395 = vector.extract_strided_slice %1 {offsets = [16, 0, 0], sizes = [1, 2, 20], strides = [1, 1, 1]} : vector<32x2x20xf32> to vector<1x2x20xf32>
    %396 = vector.shape_cast %395 : vector<1x2x20xf32> to vector<2x20xf32>
    %397 = vector.extract_strided_slice %3 {offsets = [16, 0, 0], sizes = [1, 20, 20], strides = [1, 1, 1]} : vector<32x20x20xf32> to vector<1x20x20xf32>
    %398 = vector.shape_cast %397 : vector<1x20x20xf32> to vector<20x20xf32>
    %cst_140 = arith.constant dense<0.000000e+00> : vector<2x20xf32>
    %399 = tpu.matmul %396, %398, %cst_140 {dimension_numbers = #tpu.dot_dimension_numbers<[1], [0], [0], [1], [0, 0, 1, 1], [], []>} : vector<2x20xf32>, vector<20x20xf32>, vector<2x20xf32> -> vector<2x20xf32>
    %400 = vector.extract_strided_slice %4 {offsets = [16, 0, 0], sizes = [1, 2, 20], strides = [1, 1, 1]} : vector<32x2x20xf32> to vector<1x2x20xf32>
    %401 = vector.shape_cast %400 : vector<1x2x20xf32> to vector<2x20xf32>
    %402 = vector.extract_strided_slice %5 {offsets = [16, 0, 0], sizes = [1, 20, 20], strides = [1, 1, 1]} : vector<32x20x20xf32> to vector<1x20x20xf32>
    %403 = vector.shape_cast %402 : vector<1x20x20xf32> to vector<20x20xf32>
    %cst_141 = arith.constant dense<0.000000e+00> : vector<2x20xf32>
    %404 = tpu.matmul %401, %403, %cst_141 {dimension_numbers = #tpu.dot_dimension_numbers<[1], [0], [0], [1], [0, 0, 1, 1], [], []>} : vector<2x20xf32>, vector<20x20xf32>, vector<2x20xf32> -> vector<2x20xf32>
    %405 = arith.subf %394, %399 : vector<2x20xf32>
    %c16 = arith.constant 16 : index
    %c0_142 = arith.constant 0 : index
    %c0_143 = arith.constant 0 : index
    %406 = vector.load %arg4[%c16, %c0_142, %c0_143] : memref<32x2x20xf32, #tpu.memory_space<vmem>>, vector<1x2x20xf32>
    %407 = vector.shape_cast %406 : vector<1x2x20xf32> to vector<2x20xf32>
    %408 = vector.shape_cast %405 : vector<2x20xf32> to vector<1x2x20xf32>
    tpu.vector_store %arg4[%c16, %c0_142, %c0_143], %408 {strides = array<i32>} : memref<32x2x20xf32, #tpu.memory_space<vmem>>, vector<1x2x20xf32>,
    %409 = arith.subf %404, %394 : vector<2x20xf32>
    %410 = arith.subf %409, %399 : vector<2x20xf32>
    %c16_144 = arith.constant 16 : index
    %c0_145 = arith.constant 0 : index
    %c0_146 = arith.constant 0 : index
    %411 = vector.load %arg5[%c16_144, %c0_145, %c0_146] : memref<32x2x20xf32, #tpu.memory_space<vmem>>, vector<1x2x20xf32>
    %412 = vector.shape_cast %411 : vector<1x2x20xf32> to vector<2x20xf32>
    %413 = vector.shape_cast %410 : vector<2x20xf32> to vector<1x2x20xf32>
    tpu.vector_store %arg5[%c16_144, %c0_145, %c0_146], %413 {strides = array<i32>} : memref<32x2x20xf32, #tpu.memory_space<vmem>>, vector<1x2x20xf32>,
    %414 = vector.extract_strided_slice %0 {offsets = [17, 0, 0], sizes = [1, 2, 20], strides = [1, 1, 1]} : vector<32x2x20xf32> to vector<1x2x20xf32>
    %415 = vector.shape_cast %414 : vector<1x2x20xf32> to vector<2x20xf32>
    %416 = vector.extract_strided_slice %2 {offsets = [17, 0, 0], sizes = [1, 20, 20], strides = [1, 1, 1]} : vector<32x20x20xf32> to vector<1x20x20xf32>
    %417 = vector.shape_cast %416 : vector<1x20x20xf32> to vector<20x20xf32>
    %cst_147 = arith.constant dense<0.000000e+00> : vector<2x20xf32>
    %418 = tpu.matmul %415, %417, %cst_147 {dimension_numbers = #tpu.dot_dimension_numbers<[1], [0], [0], [1], [0, 0, 1, 1], [], []>} : vector<2x20xf32>, vector<20x20xf32>, vector<2x20xf32> -> vector<2x20xf32>
    %419 = vector.extract_strided_slice %1 {offsets = [17, 0, 0], sizes = [1, 2, 20], strides = [1, 1, 1]} : vector<32x2x20xf32> to vector<1x2x20xf32>
    %420 = vector.shape_cast %419 : vector<1x2x20xf32> to vector<2x20xf32>
    %421 = vector.extract_strided_slice %3 {offsets = [17, 0, 0], sizes = [1, 20, 20], strides = [1, 1, 1]} : vector<32x20x20xf32> to vector<1x20x20xf32>
    %422 = vector.shape_cast %421 : vector<1x20x20xf32> to vector<20x20xf32>
    %cst_148 = arith.constant dense<0.000000e+00> : vector<2x20xf32>
    %423 = tpu.matmul %420, %422, %cst_148 {dimension_numbers = #tpu.dot_dimension_numbers<[1], [0], [0], [1], [0, 0, 1, 1], [], []>} : vector<2x20xf32>, vector<20x20xf32>, vector<2x20xf32> -> vector<2x20xf32>
    %424 = vector.extract_strided_slice %4 {offsets = [17, 0, 0], sizes = [1, 2, 20], strides = [1, 1, 1]} : vector<32x2x20xf32> to vector<1x2x20xf32>
    %425 = vector.shape_cast %424 : vector<1x2x20xf32> to vector<2x20xf32>
    %426 = vector.extract_strided_slice %5 {offsets = [17, 0, 0], sizes = [1, 20, 20], strides = [1, 1, 1]} : vector<32x20x20xf32> to vector<1x20x20xf32>
    %427 = vector.shape_cast %426 : vector<1x20x20xf32> to vector<20x20xf32>
    %cst_149 = arith.constant dense<0.000000e+00> : vector<2x20xf32>
    %428 = tpu.matmul %425, %427, %cst_149 {dimension_numbers = #tpu.dot_dimension_numbers<[1], [0], [0], [1], [0, 0, 1, 1], [], []>} : vector<2x20xf32>, vector<20x20xf32>, vector<2x20xf32> -> vector<2x20xf32>
    %429 = arith.subf %418, %423 : vector<2x20xf32>
    %c17 = arith.constant 17 : index
    %c0_150 = arith.constant 0 : index
    %c0_151 = arith.constant 0 : index
    %430 = vector.load %arg4[%c17, %c0_150, %c0_151] : memref<32x2x20xf32, #tpu.memory_space<vmem>>, vector<1x2x20xf32>
    %431 = vector.shape_cast %430 : vector<1x2x20xf32> to vector<2x20xf32>
    %432 = vector.shape_cast %429 : vector<2x20xf32> to vector<1x2x20xf32>
    tpu.vector_store %arg4[%c17, %c0_150, %c0_151], %432 {strides = array<i32>} : memref<32x2x20xf32, #tpu.memory_space<vmem>>, vector<1x2x20xf32>,
    %433 = arith.subf %428, %418 : vector<2x20xf32>
    %434 = arith.subf %433, %423 : vector<2x20xf32>
    %c17_152 = arith.constant 17 : index
    %c0_153 = arith.constant 0 : index
    %c0_154 = arith.constant 0 : index
    %435 = vector.load %arg5[%c17_152, %c0_153, %c0_154] : memref<32x2x20xf32, #tpu.memory_space<vmem>>, vector<1x2x20xf32>
    %436 = vector.shape_cast %435 : vector<1x2x20xf32> to vector<2x20xf32>
    %437 = vector.shape_cast %434 : vector<2x20xf32> to vector<1x2x20xf32>
    tpu.vector_store %arg5[%c17_152, %c0_153, %c0_154], %437 {strides = array<i32>} : memref<32x2x20xf32, #tpu.memory_space<vmem>>, vector<1x2x20xf32>,
    %438 = vector.extract_strided_slice %0 {offsets = [18, 0, 0], sizes = [1, 2, 20], strides = [1, 1, 1]} : vector<32x2x20xf32> to vector<1x2x20xf32>
    %439 = vector.shape_cast %438 : vector<1x2x20xf32> to vector<2x20xf32>
    %440 = vector.extract_strided_slice %2 {offsets = [18, 0, 0], sizes = [1, 20, 20], strides = [1, 1, 1]} : vector<32x20x20xf32> to vector<1x20x20xf32>
    %441 = vector.shape_cast %440 : vector<1x20x20xf32> to vector<20x20xf32>
    %cst_155 = arith.constant dense<0.000000e+00> : vector<2x20xf32>
    %442 = tpu.matmul %439, %441, %cst_155 {dimension_numbers = #tpu.dot_dimension_numbers<[1], [0], [0], [1], [0, 0, 1, 1], [], []>} : vector<2x20xf32>, vector<20x20xf32>, vector<2x20xf32> -> vector<2x20xf32>
    %443 = vector.extract_strided_slice %1 {offsets = [18, 0, 0], sizes = [1, 2, 20], strides = [1, 1, 1]} : vector<32x2x20xf32> to vector<1x2x20xf32>
    %444 = vector.shape_cast %443 : vector<1x2x20xf32> to vector<2x20xf32>
    %445 = vector.extract_strided_slice %3 {offsets = [18, 0, 0], sizes = [1, 20, 20], strides = [1, 1, 1]} : vector<32x20x20xf32> to vector<1x20x20xf32>
    %446 = vector.shape_cast %445 : vector<1x20x20xf32> to vector<20x20xf32>
    %cst_156 = arith.constant dense<0.000000e+00> : vector<2x20xf32>
    %447 = tpu.matmul %444, %446, %cst_156 {dimension_numbers = #tpu.dot_dimension_numbers<[1], [0], [0], [1], [0, 0, 1, 1], [], []>} : vector<2x20xf32>, vector<20x20xf32>, vector<2x20xf32> -> vector<2x20xf32>
    %448 = vector.extract_strided_slice %4 {offsets = [18, 0, 0], sizes = [1, 2, 20], strides = [1, 1, 1]} : vector<32x2x20xf32> to vector<1x2x20xf32>
    %449 = vector.shape_cast %448 : vector<1x2x20xf32> to vector<2x20xf32>
    %450 = vector.extract_strided_slice %5 {offsets = [18, 0, 0], sizes = [1, 20, 20], strides = [1, 1, 1]} : vector<32x20x20xf32> to vector<1x20x20xf32>
    %451 = vector.shape_cast %450 : vector<1x20x20xf32> to vector<20x20xf32>
    %cst_157 = arith.constant dense<0.000000e+00> : vector<2x20xf32>
    %452 = tpu.matmul %449, %451, %cst_157 {dimension_numbers = #tpu.dot_dimension_numbers<[1], [0], [0], [1], [0, 0, 1, 1], [], []>} : vector<2x20xf32>, vector<20x20xf32>, vector<2x20xf32> -> vector<2x20xf32>
    %453 = arith.subf %442, %447 : vector<2x20xf32>
    %c18 = arith.constant 18 : index
    %c0_158 = arith.constant 0 : index
    %c0_159 = arith.constant 0 : index
    %454 = vector.load %arg4[%c18, %c0_158, %c0_159] : memref<32x2x20xf32, #tpu.memory_space<vmem>>, vector<1x2x20xf32>
    %455 = vector.shape_cast %454 : vector<1x2x20xf32> to vector<2x20xf32>
    %456 = vector.shape_cast %453 : vector<2x20xf32> to vector<1x2x20xf32>
    tpu.vector_store %arg4[%c18, %c0_158, %c0_159], %456 {strides = array<i32>} : memref<32x2x20xf32, #tpu.memory_space<vmem>>, vector<1x2x20xf32>,
    %457 = arith.subf %452, %442 : vector<2x20xf32>
    %458 = arith.subf %457, %447 : vector<2x20xf32>
    %c18_160 = arith.constant 18 : index
    %c0_161 = arith.constant 0 : index
    %c0_162 = arith.constant 0 : index
    %459 = vector.load %arg5[%c18_160, %c0_161, %c0_162] : memref<32x2x20xf32, #tpu.memory_space<vmem>>, vector<1x2x20xf32>
    %460 = vector.shape_cast %459 : vector<1x2x20xf32> to vector<2x20xf32>
    %461 = vector.shape_cast %458 : vector<2x20xf32> to vector<1x2x20xf32>
    tpu.vector_store %arg5[%c18_160, %c0_161, %c0_162], %461 {strides = array<i32>} : memref<32x2x20xf32, #tpu.memory_space<vmem>>, vector<1x2x20xf32>,
    %462 = vector.extract_strided_slice %0 {offsets = [19, 0, 0], sizes = [1, 2, 20], strides = [1, 1, 1]} : vector<32x2x20xf32> to vector<1x2x20xf32>
    %463 = vector.shape_cast %462 : vector<1x2x20xf32> to vector<2x20xf32>
    %464 = vector.extract_strided_slice %2 {offsets = [19, 0, 0], sizes = [1, 20, 20], strides = [1, 1, 1]} : vector<32x20x20xf32> to vector<1x20x20xf32>
    %465 = vector.shape_cast %464 : vector<1x20x20xf32> to vector<20x20xf32>
    %cst_163 = arith.constant dense<0.000000e+00> : vector<2x20xf32>
    %466 = tpu.matmul %463, %465, %cst_163 {dimension_numbers = #tpu.dot_dimension_numbers<[1], [0], [0], [1], [0, 0, 1, 1], [], []>} : vector<2x20xf32>, vector<20x20xf32>, vector<2x20xf32> -> vector<2x20xf32>
    %467 = vector.extract_strided_slice %1 {offsets = [19, 0, 0], sizes = [1, 2, 20], strides = [1, 1, 1]} : vector<32x2x20xf32> to vector<1x2x20xf32>
    %468 = vector.shape_cast %467 : vector<1x2x20xf32> to vector<2x20xf32>
    %469 = vector.extract_strided_slice %3 {offsets = [19, 0, 0], sizes = [1, 20, 20], strides = [1, 1, 1]} : vector<32x20x20xf32> to vector<1x20x20xf32>
    %470 = vector.shape_cast %469 : vector<1x20x20xf32> to vector<20x20xf32>
    %cst_164 = arith.constant dense<0.000000e+00> : vector<2x20xf32>
    %471 = tpu.matmul %468, %470, %cst_164 {dimension_numbers = #tpu.dot_dimension_numbers<[1], [0], [0], [1], [0, 0, 1, 1], [], []>} : vector<2x20xf32>, vector<20x20xf32>, vector<2x20xf32> -> vector<2x20xf32>
    %472 = vector.extract_strided_slice %4 {offsets = [19, 0, 0], sizes = [1, 2, 20], strides = [1, 1, 1]} : vector<32x2x20xf32> to vector<1x2x20xf32>
    %473 = vector.shape_cast %472 : vector<1x2x20xf32> to vector<2x20xf32>
    %474 = vector.extract_strided_slice %5 {offsets = [19, 0, 0], sizes = [1, 20, 20], strides = [1, 1, 1]} : vector<32x20x20xf32> to vector<1x20x20xf32>
    %475 = vector.shape_cast %474 : vector<1x20x20xf32> to vector<20x20xf32>
    %cst_165 = arith.constant dense<0.000000e+00> : vector<2x20xf32>
    %476 = tpu.matmul %473, %475, %cst_165 {dimension_numbers = #tpu.dot_dimension_numbers<[1], [0], [0], [1], [0, 0, 1, 1], [], []>} : vector<2x20xf32>, vector<20x20xf32>, vector<2x20xf32> -> vector<2x20xf32>
    %477 = arith.subf %466, %471 : vector<2x20xf32>
    %c19 = arith.constant 19 : index
    %c0_166 = arith.constant 0 : index
    %c0_167 = arith.constant 0 : index
    %478 = vector.load %arg4[%c19, %c0_166, %c0_167] : memref<32x2x20xf32, #tpu.memory_space<vmem>>, vector<1x2x20xf32>
    %479 = vector.shape_cast %478 : vector<1x2x20xf32> to vector<2x20xf32>
    %480 = vector.shape_cast %477 : vector<2x20xf32> to vector<1x2x20xf32>
    tpu.vector_store %arg4[%c19, %c0_166, %c0_167], %480 {strides = array<i32>} : memref<32x2x20xf32, #tpu.memory_space<vmem>>, vector<1x2x20xf32>,
    %481 = arith.subf %476, %466 : vector<2x20xf32>
    %482 = arith.subf %481, %471 : vector<2x20xf32>
    %c19_168 = arith.constant 19 : index
    %c0_169 = arith.constant 0 : index
    %c0_170 = arith.constant 0 : index
    %483 = vector.load %arg5[%c19_168, %c0_169, %c0_170] : memref<32x2x20xf32, #tpu.memory_space<vmem>>, vector<1x2x20xf32>
    %484 = vector.shape_cast %483 : vector<1x2x20xf32> to vector<2x20xf32>
    %485 = vector.shape_cast %482 : vector<2x20xf32> to vector<1x2x20xf32>
    tpu.vector_store %arg5[%c19_168, %c0_169, %c0_170], %485 {strides = array<i32>} : memref<32x2x20xf32, #tpu.memory_space<vmem>>, vector<1x2x20xf32>,
    %486 = vector.extract_strided_slice %0 {offsets = [20, 0, 0], sizes = [1, 2, 20], strides = [1, 1, 1]} : vector<32x2x20xf32> to vector<1x2x20xf32>
    %487 = vector.shape_cast %486 : vector<1x2x20xf32> to vector<2x20xf32>
    %488 = vector.extract_strided_slice %2 {offsets = [20, 0, 0], sizes = [1, 20, 20], strides = [1, 1, 1]} : vector<32x20x20xf32> to vector<1x20x20xf32>
    %489 = vector.shape_cast %488 : vector<1x20x20xf32> to vector<20x20xf32>
    %cst_171 = arith.constant dense<0.000000e+00> : vector<2x20xf32>
    %490 = tpu.matmul %487, %489, %cst_171 {dimension_numbers = #tpu.dot_dimension_numbers<[1], [0], [0], [1], [0, 0, 1, 1], [], []>} : vector<2x20xf32>, vector<20x20xf32>, vector<2x20xf32> -> vector<2x20xf32>
    %491 = vector.extract_strided_slice %1 {offsets = [20, 0, 0], sizes = [1, 2, 20], strides = [1, 1, 1]} : vector<32x2x20xf32> to vector<1x2x20xf32>
    %492 = vector.shape_cast %491 : vector<1x2x20xf32> to vector<2x20xf32>
    %493 = vector.extract_strided_slice %3 {offsets = [20, 0, 0], sizes = [1, 20, 20], strides = [1, 1, 1]} : vector<32x20x20xf32> to vector<1x20x20xf32>
    %494 = vector.shape_cast %493 : vector<1x20x20xf32> to vector<20x20xf32>
    %cst_172 = arith.constant dense<0.000000e+00> : vector<2x20xf32>
    %495 = tpu.matmul %492, %494, %cst_172 {dimension_numbers = #tpu.dot_dimension_numbers<[1], [0], [0], [1], [0, 0, 1, 1], [], []>} : vector<2x20xf32>, vector<20x20xf32>, vector<2x20xf32> -> vector<2x20xf32>
    %496 = vector.extract_strided_slice %4 {offsets = [20, 0, 0], sizes = [1, 2, 20], strides = [1, 1, 1]} : vector<32x2x20xf32> to vector<1x2x20xf32>
    %497 = vector.shape_cast %496 : vector<1x2x20xf32> to vector<2x20xf32>
    %498 = vector.extract_strided_slice %5 {offsets = [20, 0, 0], sizes = [1, 20, 20], strides = [1, 1, 1]} : vector<32x20x20xf32> to vector<1x20x20xf32>
    %499 = vector.shape_cast %498 : vector<1x20x20xf32> to vector<20x20xf32>
    %cst_173 = arith.constant dense<0.000000e+00> : vector<2x20xf32>
    %500 = tpu.matmul %497, %499, %cst_173 {dimension_numbers = #tpu.dot_dimension_numbers<[1], [0], [0], [1], [0, 0, 1, 1], [], []>} : vector<2x20xf32>, vector<20x20xf32>, vector<2x20xf32> -> vector<2x20xf32>
    %501 = arith.subf %490, %495 : vector<2x20xf32>
    %c20 = arith.constant 20 : index
    %c0_174 = arith.constant 0 : index
    %c0_175 = arith.constant 0 : index
    %502 = vector.load %arg4[%c20, %c0_174, %c0_175] : memref<32x2x20xf32, #tpu.memory_space<vmem>>, vector<1x2x20xf32>
    %503 = vector.shape_cast %502 : vector<1x2x20xf32> to vector<2x20xf32>
    %504 = vector.shape_cast %501 : vector<2x20xf32> to vector<1x2x20xf32>
    tpu.vector_store %arg4[%c20, %c0_174, %c0_175], %504 {strides = array<i32>} : memref<32x2x20xf32, #tpu.memory_space<vmem>>, vector<1x2x20xf32>,
    %505 = arith.subf %500, %490 : vector<2x20xf32>
    %506 = arith.subf %505, %495 : vector<2x20xf32>
    %c20_176 = arith.constant 20 : index
    %c0_177 = arith.constant 0 : index
    %c0_178 = arith.constant 0 : index
    %507 = vector.load %arg5[%c20_176, %c0_177, %c0_178] : memref<32x2x20xf32, #tpu.memory_space<vmem>>, vector<1x2x20xf32>
    %508 = vector.shape_cast %507 : vector<1x2x20xf32> to vector<2x20xf32>
    %509 = vector.shape_cast %506 : vector<2x20xf32> to vector<1x2x20xf32>
    tpu.vector_store %arg5[%c20_176, %c0_177, %c0_178], %509 {strides = array<i32>} : memref<32x2x20xf32, #tpu.memory_space<vmem>>, vector<1x2x20xf32>,
    %510 = vector.extract_strided_slice %0 {offsets = [21, 0, 0], sizes = [1, 2, 20], strides = [1, 1, 1]} : vector<32x2x20xf32> to vector<1x2x20xf32>
    %511 = vector.shape_cast %510 : vector<1x2x20xf32> to vector<2x20xf32>
    %512 = vector.extract_strided_slice %2 {offsets = [21, 0, 0], sizes = [1, 20, 20], strides = [1, 1, 1]} : vector<32x20x20xf32> to vector<1x20x20xf32>
    %513 = vector.shape_cast %512 : vector<1x20x20xf32> to vector<20x20xf32>
    %cst_179 = arith.constant dense<0.000000e+00> : vector<2x20xf32>
    %514 = tpu.matmul %511, %513, %cst_179 {dimension_numbers = #tpu.dot_dimension_numbers<[1], [0], [0], [1], [0, 0, 1, 1], [], []>} : vector<2x20xf32>, vector<20x20xf32>, vector<2x20xf32> -> vector<2x20xf32>
    %515 = vector.extract_strided_slice %1 {offsets = [21, 0, 0], sizes = [1, 2, 20], strides = [1, 1, 1]} : vector<32x2x20xf32> to vector<1x2x20xf32>
    %516 = vector.shape_cast %515 : vector<1x2x20xf32> to vector<2x20xf32>
    %517 = vector.extract_strided_slice %3 {offsets = [21, 0, 0], sizes = [1, 20, 20], strides = [1, 1, 1]} : vector<32x20x20xf32> to vector<1x20x20xf32>
    %518 = vector.shape_cast %517 : vector<1x20x20xf32> to vector<20x20xf32>
    %cst_180 = arith.constant dense<0.000000e+00> : vector<2x20xf32>
    %519 = tpu.matmul %516, %518, %cst_180 {dimension_numbers = #tpu.dot_dimension_numbers<[1], [0], [0], [1], [0, 0, 1, 1], [], []>} : vector<2x20xf32>, vector<20x20xf32>, vector<2x20xf32> -> vector<2x20xf32>
    %520 = vector.extract_strided_slice %4 {offsets = [21, 0, 0], sizes = [1, 2, 20], strides = [1, 1, 1]} : vector<32x2x20xf32> to vector<1x2x20xf32>
    %521 = vector.shape_cast %520 : vector<1x2x20xf32> to vector<2x20xf32>
    %522 = vector.extract_strided_slice %5 {offsets = [21, 0, 0], sizes = [1, 20, 20], strides = [1, 1, 1]} : vector<32x20x20xf32> to vector<1x20x20xf32>
    %523 = vector.shape_cast %522 : vector<1x20x20xf32> to vector<20x20xf32>
    %cst_181 = arith.constant dense<0.000000e+00> : vector<2x20xf32>
    %524 = tpu.matmul %521, %523, %cst_181 {dimension_numbers = #tpu.dot_dimension_numbers<[1], [0], [0], [1], [0, 0, 1, 1], [], []>} : vector<2x20xf32>, vector<20x20xf32>, vector<2x20xf32> -> vector<2x20xf32>
    %525 = arith.subf %514, %519 : vector<2x20xf32>
    %c21 = arith.constant 21 : index
    %c0_182 = arith.constant 0 : index
    %c0_183 = arith.constant 0 : index
    %526 = vector.load %arg4[%c21, %c0_182, %c0_183] : memref<32x2x20xf32, #tpu.memory_space<vmem>>, vector<1x2x20xf32>
    %527 = vector.shape_cast %526 : vector<1x2x20xf32> to vector<2x20xf32>
    %528 = vector.shape_cast %525 : vector<2x20xf32> to vector<1x2x20xf32>
    tpu.vector_store %arg4[%c21, %c0_182, %c0_183], %528 {strides = array<i32>} : memref<32x2x20xf32, #tpu.memory_space<vmem>>, vector<1x2x20xf32>,
    %529 = arith.subf %524, %514 : vector<2x20xf32>
    %530 = arith.subf %529, %519 : vector<2x20xf32>
    %c21_184 = arith.constant 21 : index
    %c0_185 = arith.constant 0 : index
    %c0_186 = arith.constant 0 : index
    %531 = vector.load %arg5[%c21_184, %c0_185, %c0_186] : memref<32x2x20xf32, #tpu.memory_space<vmem>>, vector<1x2x20xf32>
    %532 = vector.shape_cast %531 : vector<1x2x20xf32> to vector<2x20xf32>
    %533 = vector.shape_cast %530 : vector<2x20xf32> to vector<1x2x20xf32>
    tpu.vector_store %arg5[%c21_184, %c0_185, %c0_186], %533 {strides = array<i32>} : memref<32x2x20xf32, #tpu.memory_space<vmem>>, vector<1x2x20xf32>,
    %534 = vector.extract_strided_slice %0 {offsets = [22, 0, 0], sizes = [1, 2, 20], strides = [1, 1, 1]} : vector<32x2x20xf32> to vector<1x2x20xf32>
    %535 = vector.shape_cast %534 : vector<1x2x20xf32> to vector<2x20xf32>
    %536 = vector.extract_strided_slice %2 {offsets = [22, 0, 0], sizes = [1, 20, 20], strides = [1, 1, 1]} : vector<32x20x20xf32> to vector<1x20x20xf32>
    %537 = vector.shape_cast %536 : vector<1x20x20xf32> to vector<20x20xf32>
    %cst_187 = arith.constant dense<0.000000e+00> : vector<2x20xf32>
    %538 = tpu.matmul %535, %537, %cst_187 {dimension_numbers = #tpu.dot_dimension_numbers<[1], [0], [0], [1], [0, 0, 1, 1], [], []>} : vector<2x20xf32>, vector<20x20xf32>, vector<2x20xf32> -> vector<2x20xf32>
    %539 = vector.extract_strided_slice %1 {offsets = [22, 0, 0], sizes = [1, 2, 20], strides = [1, 1, 1]} : vector<32x2x20xf32> to vector<1x2x20xf32>
    %540 = vector.shape_cast %539 : vector<1x2x20xf32> to vector<2x20xf32>
    %541 = vector.extract_strided_slice %3 {offsets = [22, 0, 0], sizes = [1, 20, 20], strides = [1, 1, 1]} : vector<32x20x20xf32> to vector<1x20x20xf32>
    %542 = vector.shape_cast %541 : vector<1x20x20xf32> to vector<20x20xf32>
    %cst_188 = arith.constant dense<0.000000e+00> : vector<2x20xf32>
    %543 = tpu.matmul %540, %542, %cst_188 {dimension_numbers = #tpu.dot_dimension_numbers<[1], [0], [0], [1], [0, 0, 1, 1], [], []>} : vector<2x20xf32>, vector<20x20xf32>, vector<2x20xf32> -> vector<2x20xf32>
    %544 = vector.extract_strided_slice %4 {offsets = [22, 0, 0], sizes = [1, 2, 20], strides = [1, 1, 1]} : vector<32x2x20xf32> to vector<1x2x20xf32>
    %545 = vector.shape_cast %544 : vector<1x2x20xf32> to vector<2x20xf32>
    %546 = vector.extract_strided_slice %5 {offsets = [22, 0, 0], sizes = [1, 20, 20], strides = [1, 1, 1]} : vector<32x20x20xf32> to vector<1x20x20xf32>
    %547 = vector.shape_cast %546 : vector<1x20x20xf32> to vector<20x20xf32>
    %cst_189 = arith.constant dense<0.000000e+00> : vector<2x20xf32>
    %548 = tpu.matmul %545, %547, %cst_189 {dimension_numbers = #tpu.dot_dimension_numbers<[1], [0], [0], [1], [0, 0, 1, 1], [], []>} : vector<2x20xf32>, vector<20x20xf32>, vector<2x20xf32> -> vector<2x20xf32>
    %549 = arith.subf %538, %543 : vector<2x20xf32>
    %c22 = arith.constant 22 : index
    %c0_190 = arith.constant 0 : index
    %c0_191 = arith.constant 0 : index
    %550 = vector.load %arg4[%c22, %c0_190, %c0_191] : memref<32x2x20xf32, #tpu.memory_space<vmem>>, vector<1x2x20xf32>
    %551 = vector.shape_cast %550 : vector<1x2x20xf32> to vector<2x20xf32>
    %552 = vector.shape_cast %549 : vector<2x20xf32> to vector<1x2x20xf32>
    tpu.vector_store %arg4[%c22, %c0_190, %c0_191], %552 {strides = array<i32>} : memref<32x2x20xf32, #tpu.memory_space<vmem>>, vector<1x2x20xf32>,
    %553 = arith.subf %548, %538 : vector<2x20xf32>
    %554 = arith.subf %553, %543 : vector<2x20xf32>
    %c22_192 = arith.constant 22 : index
    %c0_193 = arith.constant 0 : index
    %c0_194 = arith.constant 0 : index
    %555 = vector.load %arg5[%c22_192, %c0_193, %c0_194] : memref<32x2x20xf32, #tpu.memory_space<vmem>>, vector<1x2x20xf32>
    %556 = vector.shape_cast %555 : vector<1x2x20xf32> to vector<2x20xf32>
    %557 = vector.shape_cast %554 : vector<2x20xf32> to vector<1x2x20xf32>
    tpu.vector_store %arg5[%c22_192, %c0_193, %c0_194], %557 {strides = array<i32>} : memref<32x2x20xf32, #tpu.memory_space<vmem>>, vector<1x2x20xf32>,
    %558 = vector.extract_strided_slice %0 {offsets = [23, 0, 0], sizes = [1, 2, 20], strides = [1, 1, 1]} : vector<32x2x20xf32> to vector<1x2x20xf32>
    %559 = vector.shape_cast %558 : vector<1x2x20xf32> to vector<2x20xf32>
    %560 = vector.extract_strided_slice %2 {offsets = [23, 0, 0], sizes = [1, 20, 20], strides = [1, 1, 1]} : vector<32x20x20xf32> to vector<1x20x20xf32>
    %561 = vector.shape_cast %560 : vector<1x20x20xf32> to vector<20x20xf32>
    %cst_195 = arith.constant dense<0.000000e+00> : vector<2x20xf32>
    %562 = tpu.matmul %559, %561, %cst_195 {dimension_numbers = #tpu.dot_dimension_numbers<[1], [0], [0], [1], [0, 0, 1, 1], [], []>} : vector<2x20xf32>, vector<20x20xf32>, vector<2x20xf32> -> vector<2x20xf32>
    %563 = vector.extract_strided_slice %1 {offsets = [23, 0, 0], sizes = [1, 2, 20], strides = [1, 1, 1]} : vector<32x2x20xf32> to vector<1x2x20xf32>
    %564 = vector.shape_cast %563 : vector<1x2x20xf32> to vector<2x20xf32>
    %565 = vector.extract_strided_slice %3 {offsets = [23, 0, 0], sizes = [1, 20, 20], strides = [1, 1, 1]} : vector<32x20x20xf32> to vector<1x20x20xf32>
    %566 = vector.shape_cast %565 : vector<1x20x20xf32> to vector<20x20xf32>
    %cst_196 = arith.constant dense<0.000000e+00> : vector<2x20xf32>
    %567 = tpu.matmul %564, %566, %cst_196 {dimension_numbers = #tpu.dot_dimension_numbers<[1], [0], [0], [1], [0, 0, 1, 1], [], []>} : vector<2x20xf32>, vector<20x20xf32>, vector<2x20xf32> -> vector<2x20xf32>
    %568 = vector.extract_strided_slice %4 {offsets = [23, 0, 0], sizes = [1, 2, 20], strides = [1, 1, 1]} : vector<32x2x20xf32> to vector<1x2x20xf32>
    %569 = vector.shape_cast %568 : vector<1x2x20xf32> to vector<2x20xf32>
    %570 = vector.extract_strided_slice %5 {offsets = [23, 0, 0], sizes = [1, 20, 20], strides = [1, 1, 1]} : vector<32x20x20xf32> to vector<1x20x20xf32>
    %571 = vector.shape_cast %570 : vector<1x20x20xf32> to vector<20x20xf32>
    %cst_197 = arith.constant dense<0.000000e+00> : vector<2x20xf32>
    %572 = tpu.matmul %569, %571, %cst_197 {dimension_numbers = #tpu.dot_dimension_numbers<[1], [0], [0], [1], [0, 0, 1, 1], [], []>} : vector<2x20xf32>, vector<20x20xf32>, vector<2x20xf32> -> vector<2x20xf32>
    %573 = arith.subf %562, %567 : vector<2x20xf32>
    %c23 = arith.constant 23 : index
    %c0_198 = arith.constant 0 : index
    %c0_199 = arith.constant 0 : index
    %574 = vector.load %arg4[%c23, %c0_198, %c0_199] : memref<32x2x20xf32, #tpu.memory_space<vmem>>, vector<1x2x20xf32>
    %575 = vector.shape_cast %574 : vector<1x2x20xf32> to vector<2x20xf32>
    %576 = vector.shape_cast %573 : vector<2x20xf32> to vector<1x2x20xf32>
    tpu.vector_store %arg4[%c23, %c0_198, %c0_199], %576 {strides = array<i32>} : memref<32x2x20xf32, #tpu.memory_space<vmem>>, vector<1x2x20xf32>,
    %577 = arith.subf %572, %562 : vector<2x20xf32>
    %578 = arith.subf %577, %567 : vector<2x20xf32>
    %c23_200 = arith.constant 23 : index
    %c0_201 = arith.constant 0 : index
    %c0_202 = arith.constant 0 : index
    %579 = vector.load %arg5[%c23_200, %c0_201, %c0_202] : memref<32x2x20xf32, #tpu.memory_space<vmem>>, vector<1x2x20xf32>
    %580 = vector.shape_cast %579 : vector<1x2x20xf32> to vector<2x20xf32>
    %581 = vector.shape_cast %578 : vector<2x20xf32> to vector<1x2x20xf32>
    tpu.vector_store %arg5[%c23_200, %c0_201, %c0_202], %581 {strides = array<i32>} : memref<32x2x20xf32, #tpu.memory_space<vmem>>, vector<1x2x20xf32>,
    %582 = vector.extract_strided_slice %0 {offsets = [24, 0, 0], sizes = [1, 2, 20], strides = [1, 1, 1]} : vector<32x2x20xf32> to vector<1x2x20xf32>
    %583 = vector.shape_cast %582 : vector<1x2x20xf32> to vector<2x20xf32>
    %584 = vector.extract_strided_slice %2 {offsets = [24, 0, 0], sizes = [1, 20, 20], strides = [1, 1, 1]} : vector<32x20x20xf32> to vector<1x20x20xf32>
    %585 = vector.shape_cast %584 : vector<1x20x20xf32> to vector<20x20xf32>
    %cst_203 = arith.constant dense<0.000000e+00> : vector<2x20xf32>
    %586 = tpu.matmul %583, %585, %cst_203 {dimension_numbers = #tpu.dot_dimension_numbers<[1], [0], [0], [1], [0, 0, 1, 1], [], []>} : vector<2x20xf32>, vector<20x20xf32>, vector<2x20xf32> -> vector<2x20xf32>
    %587 = vector.extract_strided_slice %1 {offsets = [24, 0, 0], sizes = [1, 2, 20], strides = [1, 1, 1]} : vector<32x2x20xf32> to vector<1x2x20xf32>
    %588 = vector.shape_cast %587 : vector<1x2x20xf32> to vector<2x20xf32>
    %589 = vector.extract_strided_slice %3 {offsets = [24, 0, 0], sizes = [1, 20, 20], strides = [1, 1, 1]} : vector<32x20x20xf32> to vector<1x20x20xf32>
    %590 = vector.shape_cast %589 : vector<1x20x20xf32> to vector<20x20xf32>
    %cst_204 = arith.constant dense<0.000000e+00> : vector<2x20xf32>
    %591 = tpu.matmul %588, %590, %cst_204 {dimension_numbers = #tpu.dot_dimension_numbers<[1], [0], [0], [1], [0, 0, 1, 1], [], []>} : vector<2x20xf32>, vector<20x20xf32>, vector<2x20xf32> -> vector<2x20xf32>
    %592 = vector.extract_strided_slice %4 {offsets = [24, 0, 0], sizes = [1, 2, 20], strides = [1, 1, 1]} : vector<32x2x20xf32> to vector<1x2x20xf32>
    %593 = vector.shape_cast %592 : vector<1x2x20xf32> to vector<2x20xf32>
    %594 = vector.extract_strided_slice %5 {offsets = [24, 0, 0], sizes = [1, 20, 20], strides = [1, 1, 1]} : vector<32x20x20xf32> to vector<1x20x20xf32>
    %595 = vector.shape_cast %594 : vector<1x20x20xf32> to vector<20x20xf32>
    %cst_205 = arith.constant dense<0.000000e+00> : vector<2x20xf32>
    %596 = tpu.matmul %593, %595, %cst_205 {dimension_numbers = #tpu.dot_dimension_numbers<[1], [0], [0], [1], [0, 0, 1, 1], [], []>} : vector<2x20xf32>, vector<20x20xf32>, vector<2x20xf32> -> vector<2x20xf32>
    %597 = arith.subf %586, %591 : vector<2x20xf32>
    %c24 = arith.constant 24 : index
    %c0_206 = arith.constant 0 : index
    %c0_207 = arith.constant 0 : index
    %598 = vector.load %arg4[%c24, %c0_206, %c0_207] : memref<32x2x20xf32, #tpu.memory_space<vmem>>, vector<1x2x20xf32>
    %599 = vector.shape_cast %598 : vector<1x2x20xf32> to vector<2x20xf32>
    %600 = vector.shape_cast %597 : vector<2x20xf32> to vector<1x2x20xf32>
    tpu.vector_store %arg4[%c24, %c0_206, %c0_207], %600 {strides = array<i32>} : memref<32x2x20xf32, #tpu.memory_space<vmem>>, vector<1x2x20xf32>,
    %601 = arith.subf %596, %586 : vector<2x20xf32>
    %602 = arith.subf %601, %591 : vector<2x20xf32>
    %c24_208 = arith.constant 24 : index
    %c0_209 = arith.constant 0 : index
    %c0_210 = arith.constant 0 : index
    %603 = vector.load %arg5[%c24_208, %c0_209, %c0_210] : memref<32x2x20xf32, #tpu.memory_space<vmem>>, vector<1x2x20xf32>
    %604 = vector.shape_cast %603 : vector<1x2x20xf32> to vector<2x20xf32>
    %605 = vector.shape_cast %602 : vector<2x20xf32> to vector<1x2x20xf32>
    tpu.vector_store %arg5[%c24_208, %c0_209, %c0_210], %605 {strides = array<i32>} : memref<32x2x20xf32, #tpu.memory_space<vmem>>, vector<1x2x20xf32>,
    %606 = vector.extract_strided_slice %0 {offsets = [25, 0, 0], sizes = [1, 2, 20], strides = [1, 1, 1]} : vector<32x2x20xf32> to vector<1x2x20xf32>
    %607 = vector.shape_cast %606 : vector<1x2x20xf32> to vector<2x20xf32>
    %608 = vector.extract_strided_slice %2 {offsets = [25, 0, 0], sizes = [1, 20, 20], strides = [1, 1, 1]} : vector<32x20x20xf32> to vector<1x20x20xf32>
    %609 = vector.shape_cast %608 : vector<1x20x20xf32> to vector<20x20xf32>
    %cst_211 = arith.constant dense<0.000000e+00> : vector<2x20xf32>
    %610 = tpu.matmul %607, %609, %cst_211 {dimension_numbers = #tpu.dot_dimension_numbers<[1], [0], [0], [1], [0, 0, 1, 1], [], []>} : vector<2x20xf32>, vector<20x20xf32>, vector<2x20xf32> -> vector<2x20xf32>
    %611 = vector.extract_strided_slice %1 {offsets = [25, 0, 0], sizes = [1, 2, 20], strides = [1, 1, 1]} : vector<32x2x20xf32> to vector<1x2x20xf32>
    %612 = vector.shape_cast %611 : vector<1x2x20xf32> to vector<2x20xf32>
    %613 = vector.extract_strided_slice %3 {offsets = [25, 0, 0], sizes = [1, 20, 20], strides = [1, 1, 1]} : vector<32x20x20xf32> to vector<1x20x20xf32>
    %614 = vector.shape_cast %613 : vector<1x20x20xf32> to vector<20x20xf32>
    %cst_212 = arith.constant dense<0.000000e+00> : vector<2x20xf32>
    %615 = tpu.matmul %612, %614, %cst_212 {dimension_numbers = #tpu.dot_dimension_numbers<[1], [0], [0], [1], [0, 0, 1, 1], [], []>} : vector<2x20xf32>, vector<20x20xf32>, vector<2x20xf32> -> vector<2x20xf32>
    %616 = vector.extract_strided_slice %4 {offsets = [25, 0, 0], sizes = [1, 2, 20], strides = [1, 1, 1]} : vector<32x2x20xf32> to vector<1x2x20xf32>
    %617 = vector.shape_cast %616 : vector<1x2x20xf32> to vector<2x20xf32>
    %618 = vector.extract_strided_slice %5 {offsets = [25, 0, 0], sizes = [1, 20, 20], strides = [1, 1, 1]} : vector<32x20x20xf32> to vector<1x20x20xf32>
    %619 = vector.shape_cast %618 : vector<1x20x20xf32> to vector<20x20xf32>
    %cst_213 = arith.constant dense<0.000000e+00> : vector<2x20xf32>
    %620 = tpu.matmul %617, %619, %cst_213 {dimension_numbers = #tpu.dot_dimension_numbers<[1], [0], [0], [1], [0, 0, 1, 1], [], []>} : vector<2x20xf32>, vector<20x20xf32>, vector<2x20xf32> -> vector<2x20xf32>
    %621 = arith.subf %610, %615 : vector<2x20xf32>
    %c25 = arith.constant 25 : index
    %c0_214 = arith.constant 0 : index
    %c0_215 = arith.constant 0 : index
    %622 = vector.load %arg4[%c25, %c0_214, %c0_215] : memref<32x2x20xf32, #tpu.memory_space<vmem>>, vector<1x2x20xf32>
    %623 = vector.shape_cast %622 : vector<1x2x20xf32> to vector<2x20xf32>
    %624 = vector.shape_cast %621 : vector<2x20xf32> to vector<1x2x20xf32>
    tpu.vector_store %arg4[%c25, %c0_214, %c0_215], %624 {strides = array<i32>} : memref<32x2x20xf32, #tpu.memory_space<vmem>>, vector<1x2x20xf32>,
    %625 = arith.subf %620, %610 : vector<2x20xf32>
    %626 = arith.subf %625, %615 : vector<2x20xf32>
    %c25_216 = arith.constant 25 : index
    %c0_217 = arith.constant 0 : index
    %c0_218 = arith.constant 0 : index
    %627 = vector.load %arg5[%c25_216, %c0_217, %c0_218] : memref<32x2x20xf32, #tpu.memory_space<vmem>>, vector<1x2x20xf32>
    %628 = vector.shape_cast %627 : vector<1x2x20xf32> to vector<2x20xf32>
    %629 = vector.shape_cast %626 : vector<2x20xf32> to vector<1x2x20xf32>
    tpu.vector_store %arg5[%c25_216, %c0_217, %c0_218], %629 {strides = array<i32>} : memref<32x2x20xf32, #tpu.memory_space<vmem>>, vector<1x2x20xf32>,
    %630 = vector.extract_strided_slice %0 {offsets = [26, 0, 0], sizes = [1, 2, 20], strides = [1, 1, 1]} : vector<32x2x20xf32> to vector<1x2x20xf32>
    %631 = vector.shape_cast %630 : vector<1x2x20xf32> to vector<2x20xf32>
    %632 = vector.extract_strided_slice %2 {offsets = [26, 0, 0], sizes = [1, 20, 20], strides = [1, 1, 1]} : vector<32x20x20xf32> to vector<1x20x20xf32>
    %633 = vector.shape_cast %632 : vector<1x20x20xf32> to vector<20x20xf32>
    %cst_219 = arith.constant dense<0.000000e+00> : vector<2x20xf32>
    %634 = tpu.matmul %631, %633, %cst_219 {dimension_numbers = #tpu.dot_dimension_numbers<[1], [0], [0], [1], [0, 0, 1, 1], [], []>} : vector<2x20xf32>, vector<20x20xf32>, vector<2x20xf32> -> vector<2x20xf32>
    %635 = vector.extract_strided_slice %1 {offsets = [26, 0, 0], sizes = [1, 2, 20], strides = [1, 1, 1]} : vector<32x2x20xf32> to vector<1x2x20xf32>
    %636 = vector.shape_cast %635 : vector<1x2x20xf32> to vector<2x20xf32>
    %637 = vector.extract_strided_slice %3 {offsets = [26, 0, 0], sizes = [1, 20, 20], strides = [1, 1, 1]} : vector<32x20x20xf32> to vector<1x20x20xf32>
    %638 = vector.shape_cast %637 : vector<1x20x20xf32> to vector<20x20xf32>
    %cst_220 = arith.constant dense<0.000000e+00> : vector<2x20xf32>
    %639 = tpu.matmul %636, %638, %cst_220 {dimension_numbers = #tpu.dot_dimension_numbers<[1], [0], [0], [1], [0, 0, 1, 1], [], []>} : vector<2x20xf32>, vector<20x20xf32>, vector<2x20xf32> -> vector<2x20xf32>
    %640 = vector.extract_strided_slice %4 {offsets = [26, 0, 0], sizes = [1, 2, 20], strides = [1, 1, 1]} : vector<32x2x20xf32> to vector<1x2x20xf32>
    %641 = vector.shape_cast %640 : vector<1x2x20xf32> to vector<2x20xf32>
    %642 = vector.extract_strided_slice %5 {offsets = [26, 0, 0], sizes = [1, 20, 20], strides = [1, 1, 1]} : vector<32x20x20xf32> to vector<1x20x20xf32>
    %643 = vector.shape_cast %642 : vector<1x20x20xf32> to vector<20x20xf32>
    %cst_221 = arith.constant dense<0.000000e+00> : vector<2x20xf32>
    %644 = tpu.matmul %641, %643, %cst_221 {dimension_numbers = #tpu.dot_dimension_numbers<[1], [0], [0], [1], [0, 0, 1, 1], [], []>} : vector<2x20xf32>, vector<20x20xf32>, vector<2x20xf32> -> vector<2x20xf32>
    %645 = arith.subf %634, %639 : vector<2x20xf32>
    %c26 = arith.constant 26 : index
    %c0_222 = arith.constant 0 : index
    %c0_223 = arith.constant 0 : index
    %646 = vector.load %arg4[%c26, %c0_222, %c0_223] : memref<32x2x20xf32, #tpu.memory_space<vmem>>, vector<1x2x20xf32>
    %647 = vector.shape_cast %646 : vector<1x2x20xf32> to vector<2x20xf32>
    %648 = vector.shape_cast %645 : vector<2x20xf32> to vector<1x2x20xf32>
    tpu.vector_store %arg4[%c26, %c0_222, %c0_223], %648 {strides = array<i32>} : memref<32x2x20xf32, #tpu.memory_space<vmem>>, vector<1x2x20xf32>,
    %649 = arith.subf %644, %634 : vector<2x20xf32>
    %650 = arith.subf %649, %639 : vector<2x20xf32>
    %c26_224 = arith.constant 26 : index
    %c0_225 = arith.constant 0 : index
    %c0_226 = arith.constant 0 : index
    %651 = vector.load %arg5[%c26_224, %c0_225, %c0_226] : memref<32x2x20xf32, #tpu.memory_space<vmem>>, vector<1x2x20xf32>
    %652 = vector.shape_cast %651 : vector<1x2x20xf32> to vector<2x20xf32>
    %653 = vector.shape_cast %650 : vector<2x20xf32> to vector<1x2x20xf32>
    tpu.vector_store %arg5[%c26_224, %c0_225, %c0_226], %653 {strides = array<i32>} : memref<32x2x20xf32, #tpu.memory_space<vmem>>, vector<1x2x20xf32>,
    %654 = vector.extract_strided_slice %0 {offsets = [27, 0, 0], sizes = [1, 2, 20], strides = [1, 1, 1]} : vector<32x2x20xf32> to vector<1x2x20xf32>
    %655 = vector.shape_cast %654 : vector<1x2x20xf32> to vector<2x20xf32>
    %656 = vector.extract_strided_slice %2 {offsets = [27, 0, 0], sizes = [1, 20, 20], strides = [1, 1, 1]} : vector<32x20x20xf32> to vector<1x20x20xf32>
    %657 = vector.shape_cast %656 : vector<1x20x20xf32> to vector<20x20xf32>
    %cst_227 = arith.constant dense<0.000000e+00> : vector<2x20xf32>
    %658 = tpu.matmul %655, %657, %cst_227 {dimension_numbers = #tpu.dot_dimension_numbers<[1], [0], [0], [1], [0, 0, 1, 1], [], []>} : vector<2x20xf32>, vector<20x20xf32>, vector<2x20xf32> -> vector<2x20xf32>
    %659 = vector.extract_strided_slice %1 {offsets = [27, 0, 0], sizes = [1, 2, 20], strides = [1, 1, 1]} : vector<32x2x20xf32> to vector<1x2x20xf32>
    %660 = vector.shape_cast %659 : vector<1x2x20xf32> to vector<2x20xf32>
    %661 = vector.extract_strided_slice %3 {offsets = [27, 0, 0], sizes = [1, 20, 20], strides = [1, 1, 1]} : vector<32x20x20xf32> to vector<1x20x20xf32>
    %662 = vector.shape_cast %661 : vector<1x20x20xf32> to vector<20x20xf32>
    %cst_228 = arith.constant dense<0.000000e+00> : vector<2x20xf32>
    %663 = tpu.matmul %660, %662, %cst_228 {dimension_numbers = #tpu.dot_dimension_numbers<[1], [0], [0], [1], [0, 0, 1, 1], [], []>} : vector<2x20xf32>, vector<20x20xf32>, vector<2x20xf32> -> vector<2x20xf32>
    %664 = vector.extract_strided_slice %4 {offsets = [27, 0, 0], sizes = [1, 2, 20], strides = [1, 1, 1]} : vector<32x2x20xf32> to vector<1x2x20xf32>
    %665 = vector.shape_cast %664 : vector<1x2x20xf32> to vector<2x20xf32>
    %666 = vector.extract_strided_slice %5 {offsets = [27, 0, 0], sizes = [1, 20, 20], strides = [1, 1, 1]} : vector<32x20x20xf32> to vector<1x20x20xf32>
    %667 = vector.shape_cast %666 : vector<1x20x20xf32> to vector<20x20xf32>
    %cst_229 = arith.constant dense<0.000000e+00> : vector<2x20xf32>
    %668 = tpu.matmul %665, %667, %cst_229 {dimension_numbers = #tpu.dot_dimension_numbers<[1], [0], [0], [1], [0, 0, 1, 1], [], []>} : vector<2x20xf32>, vector<20x20xf32>, vector<2x20xf32> -> vector<2x20xf32>
    %669 = arith.subf %658, %663 : vector<2x20xf32>
    %c27 = arith.constant 27 : index
    %c0_230 = arith.constant 0 : index
    %c0_231 = arith.constant 0 : index
    %670 = vector.load %arg4[%c27, %c0_230, %c0_231] : memref<32x2x20xf32, #tpu.memory_space<vmem>>, vector<1x2x20xf32>
    %671 = vector.shape_cast %670 : vector<1x2x20xf32> to vector<2x20xf32>
    %672 = vector.shape_cast %669 : vector<2x20xf32> to vector<1x2x20xf32>
    tpu.vector_store %arg4[%c27, %c0_230, %c0_231], %672 {strides = array<i32>} : memref<32x2x20xf32, #tpu.memory_space<vmem>>, vector<1x2x20xf32>,
    %673 = arith.subf %668, %658 : vector<2x20xf32>
    %674 = arith.subf %673, %663 : vector<2x20xf32>
    %c27_232 = arith.constant 27 : index
    %c0_233 = arith.constant 0 : index
    %c0_234 = arith.constant 0 : index
    %675 = vector.load %arg5[%c27_232, %c0_233, %c0_234] : memref<32x2x20xf32, #tpu.memory_space<vmem>>, vector<1x2x20xf32>
    %676 = vector.shape_cast %675 : vector<1x2x20xf32> to vector<2x20xf32>
    %677 = vector.shape_cast %674 : vector<2x20xf32> to vector<1x2x20xf32>
    tpu.vector_store %arg5[%c27_232, %c0_233, %c0_234], %677 {strides = array<i32>} : memref<32x2x20xf32, #tpu.memory_space<vmem>>, vector<1x2x20xf32>,
    %678 = vector.extract_strided_slice %0 {offsets = [28, 0, 0], sizes = [1, 2, 20], strides = [1, 1, 1]} : vector<32x2x20xf32> to vector<1x2x20xf32>
    %679 = vector.shape_cast %678 : vector<1x2x20xf32> to vector<2x20xf32>
    %680 = vector.extract_strided_slice %2 {offsets = [28, 0, 0], sizes = [1, 20, 20], strides = [1, 1, 1]} : vector<32x20x20xf32> to vector<1x20x20xf32>
    %681 = vector.shape_cast %680 : vector<1x20x20xf32> to vector<20x20xf32>
    %cst_235 = arith.constant dense<0.000000e+00> : vector<2x20xf32>
    %682 = tpu.matmul %679, %681, %cst_235 {dimension_numbers = #tpu.dot_dimension_numbers<[1], [0], [0], [1], [0, 0, 1, 1], [], []>} : vector<2x20xf32>, vector<20x20xf32>, vector<2x20xf32> -> vector<2x20xf32>
    %683 = vector.extract_strided_slice %1 {offsets = [28, 0, 0], sizes = [1, 2, 20], strides = [1, 1, 1]} : vector<32x2x20xf32> to vector<1x2x20xf32>
    %684 = vector.shape_cast %683 : vector<1x2x20xf32> to vector<2x20xf32>
    %685 = vector.extract_strided_slice %3 {offsets = [28, 0, 0], sizes = [1, 20, 20], strides = [1, 1, 1]} : vector<32x20x20xf32> to vector<1x20x20xf32>
    %686 = vector.shape_cast %685 : vector<1x20x20xf32> to vector<20x20xf32>
    %cst_236 = arith.constant dense<0.000000e+00> : vector<2x20xf32>
    %687 = tpu.matmul %684, %686, %cst_236 {dimension_numbers = #tpu.dot_dimension_numbers<[1], [0], [0], [1], [0, 0, 1, 1], [], []>} : vector<2x20xf32>, vector<20x20xf32>, vector<2x20xf32> -> vector<2x20xf32>
    %688 = vector.extract_strided_slice %4 {offsets = [28, 0, 0], sizes = [1, 2, 20], strides = [1, 1, 1]} : vector<32x2x20xf32> to vector<1x2x20xf32>
    %689 = vector.shape_cast %688 : vector<1x2x20xf32> to vector<2x20xf32>
    %690 = vector.extract_strided_slice %5 {offsets = [28, 0, 0], sizes = [1, 20, 20], strides = [1, 1, 1]} : vector<32x20x20xf32> to vector<1x20x20xf32>
    %691 = vector.shape_cast %690 : vector<1x20x20xf32> to vector<20x20xf32>
    %cst_237 = arith.constant dense<0.000000e+00> : vector<2x20xf32>
    %692 = tpu.matmul %689, %691, %cst_237 {dimension_numbers = #tpu.dot_dimension_numbers<[1], [0], [0], [1], [0, 0, 1, 1], [], []>} : vector<2x20xf32>, vector<20x20xf32>, vector<2x20xf32> -> vector<2x20xf32>
    %693 = arith.subf %682, %687 : vector<2x20xf32>
    %c28 = arith.constant 28 : index
    %c0_238 = arith.constant 0 : index
    %c0_239 = arith.constant 0 : index
    %694 = vector.load %arg4[%c28, %c0_238, %c0_239] : memref<32x2x20xf32, #tpu.memory_space<vmem>>, vector<1x2x20xf32>
    %695 = vector.shape_cast %694 : vector<1x2x20xf32> to vector<2x20xf32>
    %696 = vector.shape_cast %693 : vector<2x20xf32> to vector<1x2x20xf32>
    tpu.vector_store %arg4[%c28, %c0_238, %c0_239], %696 {strides = array<i32>} : memref<32x2x20xf32, #tpu.memory_space<vmem>>, vector<1x2x20xf32>,
    %697 = arith.subf %692, %682 : vector<2x20xf32>
    %698 = arith.subf %697, %687 : vector<2x20xf32>
    %c28_240 = arith.constant 28 : index
    %c0_241 = arith.constant 0 : index
    %c0_242 = arith.constant 0 : index
    %699 = vector.load %arg5[%c28_240, %c0_241, %c0_242] : memref<32x2x20xf32, #tpu.memory_space<vmem>>, vector<1x2x20xf32>
    %700 = vector.shape_cast %699 : vector<1x2x20xf32> to vector<2x20xf32>
    %701 = vector.shape_cast %698 : vector<2x20xf32> to vector<1x2x20xf32>
    tpu.vector_store %arg5[%c28_240, %c0_241, %c0_242], %701 {strides = array<i32>} : memref<32x2x20xf32, #tpu.memory_space<vmem>>, vector<1x2x20xf32>,
    %702 = vector.extract_strided_slice %0 {offsets = [29, 0, 0], sizes = [1, 2, 20], strides = [1, 1, 1]} : vector<32x2x20xf32> to vector<1x2x20xf32>
    %703 = vector.shape_cast %702 : vector<1x2x20xf32> to vector<2x20xf32>
    %704 = vector.extract_strided_slice %2 {offsets = [29, 0, 0], sizes = [1, 20, 20], strides = [1, 1, 1]} : vector<32x20x20xf32> to vector<1x20x20xf32>
    %705 = vector.shape_cast %704 : vector<1x20x20xf32> to vector<20x20xf32>
    %cst_243 = arith.constant dense<0.000000e+00> : vector<2x20xf32>
    %706 = tpu.matmul %703, %705, %cst_243 {dimension_numbers = #tpu.dot_dimension_numbers<[1], [0], [0], [1], [0, 0, 1, 1], [], []>} : vector<2x20xf32>, vector<20x20xf32>, vector<2x20xf32> -> vector<2x20xf32>
    %707 = vector.extract_strided_slice %1 {offsets = [29, 0, 0], sizes = [1, 2, 20], strides = [1, 1, 1]} : vector<32x2x20xf32> to vector<1x2x20xf32>
    %708 = vector.shape_cast %707 : vector<1x2x20xf32> to vector<2x20xf32>
    %709 = vector.extract_strided_slice %3 {offsets = [29, 0, 0], sizes = [1, 20, 20], strides = [1, 1, 1]} : vector<32x20x20xf32> to vector<1x20x20xf32>
    %710 = vector.shape_cast %709 : vector<1x20x20xf32> to vector<20x20xf32>
    %cst_244 = arith.constant dense<0.000000e+00> : vector<2x20xf32>
    %711 = tpu.matmul %708, %710, %cst_244 {dimension_numbers = #tpu.dot_dimension_numbers<[1], [0], [0], [1], [0, 0, 1, 1], [], []>} : vector<2x20xf32>, vector<20x20xf32>, vector<2x20xf32> -> vector<2x20xf32>
    %712 = vector.extract_strided_slice %4 {offsets = [29, 0, 0], sizes = [1, 2, 20], strides = [1, 1, 1]} : vector<32x2x20xf32> to vector<1x2x20xf32>
    %713 = vector.shape_cast %712 : vector<1x2x20xf32> to vector<2x20xf32>
    %714 = vector.extract_strided_slice %5 {offsets = [29, 0, 0], sizes = [1, 20, 20], strides = [1, 1, 1]} : vector<32x20x20xf32> to vector<1x20x20xf32>
    %715 = vector.shape_cast %714 : vector<1x20x20xf32> to vector<20x20xf32>
    %cst_245 = arith.constant dense<0.000000e+00> : vector<2x20xf32>
    %716 = tpu.matmul %713, %715, %cst_245 {dimension_numbers = #tpu.dot_dimension_numbers<[1], [0], [0], [1], [0, 0, 1, 1], [], []>} : vector<2x20xf32>, vector<20x20xf32>, vector<2x20xf32> -> vector<2x20xf32>
    %717 = arith.subf %706, %711 : vector<2x20xf32>
    %c29 = arith.constant 29 : index
    %c0_246 = arith.constant 0 : index
    %c0_247 = arith.constant 0 : index
    %718 = vector.load %arg4[%c29, %c0_246, %c0_247] : memref<32x2x20xf32, #tpu.memory_space<vmem>>, vector<1x2x20xf32>
    %719 = vector.shape_cast %718 : vector<1x2x20xf32> to vector<2x20xf32>
    %720 = vector.shape_cast %717 : vector<2x20xf32> to vector<1x2x20xf32>
    tpu.vector_store %arg4[%c29, %c0_246, %c0_247], %720 {strides = array<i32>} : memref<32x2x20xf32, #tpu.memory_space<vmem>>, vector<1x2x20xf32>,
    %721 = arith.subf %716, %706 : vector<2x20xf32>
    %722 = arith.subf %721, %711 : vector<2x20xf32>
    %c29_248 = arith.constant 29 : index
    %c0_249 = arith.constant 0 : index
    %c0_250 = arith.constant 0 : index
    %723 = vector.load %arg5[%c29_248, %c0_249, %c0_250] : memref<32x2x20xf32, #tpu.memory_space<vmem>>, vector<1x2x20xf32>
    %724 = vector.shape_cast %723 : vector<1x2x20xf32> to vector<2x20xf32>
    %725 = vector.shape_cast %722 : vector<2x20xf32> to vector<1x2x20xf32>
    tpu.vector_store %arg5[%c29_248, %c0_249, %c0_250], %725 {strides = array<i32>} : memref<32x2x20xf32, #tpu.memory_space<vmem>>, vector<1x2x20xf32>,
    %726 = vector.extract_strided_slice %0 {offsets = [30, 0, 0], sizes = [1, 2, 20], strides = [1, 1, 1]} : vector<32x2x20xf32> to vector<1x2x20xf32>
    %727 = vector.shape_cast %726 : vector<1x2x20xf32> to vector<2x20xf32>
    %728 = vector.extract_strided_slice %2 {offsets = [30, 0, 0], sizes = [1, 20, 20], strides = [1, 1, 1]} : vector<32x20x20xf32> to vector<1x20x20xf32>
    %729 = vector.shape_cast %728 : vector<1x20x20xf32> to vector<20x20xf32>
    %cst_251 = arith.constant dense<0.000000e+00> : vector<2x20xf32>
    %730 = tpu.matmul %727, %729, %cst_251 {dimension_numbers = #tpu.dot_dimension_numbers<[1], [0], [0], [1], [0, 0, 1, 1], [], []>} : vector<2x20xf32>, vector<20x20xf32>, vector<2x20xf32> -> vector<2x20xf32>
    %731 = vector.extract_strided_slice %1 {offsets = [30, 0, 0], sizes = [1, 2, 20], strides = [1, 1, 1]} : vector<32x2x20xf32> to vector<1x2x20xf32>
    %732 = vector.shape_cast %731 : vector<1x2x20xf32> to vector<2x20xf32>
    %733 = vector.extract_strided_slice %3 {offsets = [30, 0, 0], sizes = [1, 20, 20], strides = [1, 1, 1]} : vector<32x20x20xf32> to vector<1x20x20xf32>
    %734 = vector.shape_cast %733 : vector<1x20x20xf32> to vector<20x20xf32>
    %cst_252 = arith.constant dense<0.000000e+00> : vector<2x20xf32>
    %735 = tpu.matmul %732, %734, %cst_252 {dimension_numbers = #tpu.dot_dimension_numbers<[1], [0], [0], [1], [0, 0, 1, 1], [], []>} : vector<2x20xf32>, vector<20x20xf32>, vector<2x20xf32> -> vector<2x20xf32>
    %736 = vector.extract_strided_slice %4 {offsets = [30, 0, 0], sizes = [1, 2, 20], strides = [1, 1, 1]} : vector<32x2x20xf32> to vector<1x2x20xf32>
    %737 = vector.shape_cast %736 : vector<1x2x20xf32> to vector<2x20xf32>
    %738 = vector.extract_strided_slice %5 {offsets = [30, 0, 0], sizes = [1, 20, 20], strides = [1, 1, 1]} : vector<32x20x20xf32> to vector<1x20x20xf32>
    %739 = vector.shape_cast %738 : vector<1x20x20xf32> to vector<20x20xf32>
    %cst_253 = arith.constant dense<0.000000e+00> : vector<2x20xf32>
    %740 = tpu.matmul %737, %739, %cst_253 {dimension_numbers = #tpu.dot_dimension_numbers<[1], [0], [0], [1], [0, 0, 1, 1], [], []>} : vector<2x20xf32>, vector<20x20xf32>, vector<2x20xf32> -> vector<2x20xf32>
    %741 = arith.subf %730, %735 : vector<2x20xf32>
    %c30 = arith.constant 30 : index
    %c0_254 = arith.constant 0 : index
    %c0_255 = arith.constant 0 : index
    %742 = vector.load %arg4[%c30, %c0_254, %c0_255] : memref<32x2x20xf32, #tpu.memory_space<vmem>>, vector<1x2x20xf32>
    %743 = vector.shape_cast %742 : vector<1x2x20xf32> to vector<2x20xf32>
    %744 = vector.shape_cast %741 : vector<2x20xf32> to vector<1x2x20xf32>
    tpu.vector_store %arg4[%c30, %c0_254, %c0_255], %744 {strides = array<i32>} : memref<32x2x20xf32, #tpu.memory_space<vmem>>, vector<1x2x20xf32>,
    %745 = arith.subf %740, %730 : vector<2x20xf32>
    %746 = arith.subf %745, %735 : vector<2x20xf32>
    %c30_256 = arith.constant 30 : index
    %c0_257 = arith.constant 0 : index
    %c0_258 = arith.constant 0 : index
    %747 = vector.load %arg5[%c30_256, %c0_257, %c0_258] : memref<32x2x20xf32, #tpu.memory_space<vmem>>, vector<1x2x20xf32>
    %748 = vector.shape_cast %747 : vector<1x2x20xf32> to vector<2x20xf32>
    %749 = vector.shape_cast %746 : vector<2x20xf32> to vector<1x2x20xf32>
    tpu.vector_store %arg5[%c30_256, %c0_257, %c0_258], %749 {strides = array<i32>} : memref<32x2x20xf32, #tpu.memory_space<vmem>>, vector<1x2x20xf32>,
    %750 = vector.extract_strided_slice %0 {offsets = [31, 0, 0], sizes = [1, 2, 20], strides = [1, 1, 1]} : vector<32x2x20xf32> to vector<1x2x20xf32>
    %751 = vector.shape_cast %750 : vector<1x2x20xf32> to vector<2x20xf32>
    %752 = vector.extract_strided_slice %2 {offsets = [31, 0, 0], sizes = [1, 20, 20], strides = [1, 1, 1]} : vector<32x20x20xf32> to vector<1x20x20xf32>
    %753 = vector.shape_cast %752 : vector<1x20x20xf32> to vector<20x20xf32>
    %cst_259 = arith.constant dense<0.000000e+00> : vector<2x20xf32>
    %754 = tpu.matmul %751, %753, %cst_259 {dimension_numbers = #tpu.dot_dimension_numbers<[1], [0], [0], [1], [0, 0, 1, 1], [], []>} : vector<2x20xf32>, vector<20x20xf32>, vector<2x20xf32> -> vector<2x20xf32>
    %755 = vector.extract_strided_slice %1 {offsets = [31, 0, 0], sizes = [1, 2, 20], strides = [1, 1, 1]} : vector<32x2x20xf32> to vector<1x2x20xf32>
    %756 = vector.shape_cast %755 : vector<1x2x20xf32> to vector<2x20xf32>
    %757 = vector.extract_strided_slice %3 {offsets = [31, 0, 0], sizes = [1, 20, 20], strides = [1, 1, 1]} : vector<32x20x20xf32> to vector<1x20x20xf32>
    %758 = vector.shape_cast %757 : vector<1x20x20xf32> to vector<20x20xf32>
    %cst_260 = arith.constant dense<0.000000e+00> : vector<2x20xf32>
    %759 = tpu.matmul %756, %758, %cst_260 {dimension_numbers = #tpu.dot_dimension_numbers<[1], [0], [0], [1], [0, 0, 1, 1], [], []>} : vector<2x20xf32>, vector<20x20xf32>, vector<2x20xf32> -> vector<2x20xf32>
    %760 = vector.extract_strided_slice %4 {offsets = [31, 0, 0], sizes = [1, 2, 20], strides = [1, 1, 1]} : vector<32x2x20xf32> to vector<1x2x20xf32>
    %761 = vector.shape_cast %760 : vector<1x2x20xf32> to vector<2x20xf32>
    %762 = vector.extract_strided_slice %5 {offsets = [31, 0, 0], sizes = [1, 20, 20], strides = [1, 1, 1]} : vector<32x20x20xf32> to vector<1x20x20xf32>
    %763 = vector.shape_cast %762 : vector<1x20x20xf32> to vector<20x20xf32>
    %cst_261 = arith.constant dense<0.000000e+00> : vector<2x20xf32>
    %764 = tpu.matmul %761, %763, %cst_261 {dimension_numbers = #tpu.dot_dimension_numbers<[1], [0], [0], [1], [0, 0, 1, 1], [], []>} : vector<2x20xf32>, vector<20x20xf32>, vector<2x20xf32> -> vector<2x20xf32>
    %765 = arith.subf %754, %759 : vector<2x20xf32>
    %c31 = arith.constant 31 : index
    %c0_262 = arith.constant 0 : index
    %c0_263 = arith.constant 0 : index
    %766 = vector.load %arg4[%c31, %c0_262, %c0_263] : memref<32x2x20xf32, #tpu.memory_space<vmem>>, vector<1x2x20xf32>
    %767 = vector.shape_cast %766 : vector<1x2x20xf32> to vector<2x20xf32>
    %768 = vector.shape_cast %765 : vector<2x20xf32> to vector<1x2x20xf32>
    tpu.vector_store %arg4[%c31, %c0_262, %c0_263], %768 {strides = array<i32>} : memref<32x2x20xf32, #tpu.memory_space<vmem>>, vector<1x2x20xf32>,
    %769 = arith.subf %764, %754 : vector<2x20xf32>
    %770 = arith.subf %769, %759 : vector<2x20xf32>
    %c31_264 = arith.constant 31 : index
    %c0_265 = arith.constant 0 : index
    %c0_266 = arith.constant 0 : index
    %771 = vector.load %arg5[%c31_264, %c0_265, %c0_266] : memref<32x2x20xf32, #tpu.memory_space<vmem>>, vector<1x2x20xf32>
    %772 = vector.shape_cast %771 : vector<1x2x20xf32> to vector<2x20xf32>
    %773 = vector.shape_cast %770 : vector<2x20xf32> to vector<1x2x20xf32>
    tpu.vector_store %arg5[%c31_264, %c0_265, %c0_266], %773 {strides = array<i32>} : memref<32x2x20xf32, #tpu.memory_space<vmem>>, vector<1x2x20xf32>,
    return
  }
}

module attributes {stable_mosaic.version = 11 : i64} {
  func.func @_block_kernel(%arg0: i32, %arg1: memref<20x512xf32, #tpu.memory_space<vmem>>, %arg2: memref<20x20xf32, #tpu.memory_space<vmem>>, %arg3: memref<20x1xf32, #tpu.memory_space<vmem>>, %arg4: memref<20x512xf32, #tpu.memory_space<vmem>>, %arg5: memref<20x512xf32, #tpu.memory_space<vmem>>) attributes {dimension_semantics = [#tpu.dimension_semantics<parallel>], iteration_bounds = array<i64: 1>, scalar_prefetch = 0 : i64, scratch_operands = 0 : i64, tpu.core_type = #tpu.core_type<tc>, window_params = [{transform_indices = @transform_0, window_bounds = array<i64: 20, 512>}, {pipeline_mode = #tpu.pipeline_mode<synchronous>, transform_indices = @transform_1, window_bounds = array<i64: 20, 20>}, {pipeline_mode = #tpu.pipeline_mode<synchronous>, transform_indices = @transform_2, window_bounds = array<i64: 20, 1>}, {transform_indices = @transform_3, window_bounds = array<i64: 20, 512>}, {transform_indices = @transform_4, window_bounds = array<i64: 20, 512>}]} {
    %c0 = arith.constant 0 : index
    %c0_0 = arith.constant 0 : index
    %0 = vector.load %arg2[%c0, %c0_0] : memref<20x20xf32, #tpu.memory_space<vmem>>, vector<20x20xf32>
    %c0_1 = arith.constant 0 : index
    %c0_2 = arith.constant 0 : index
    %1 = vector.load %arg1[%c0_1, %c0_2] : memref<20x512xf32, #tpu.memory_space<vmem>>, vector<20x512xf32>
    %cst = arith.constant dense<0.000000e+00> : vector<20x512xf32>
    %2 = tpu.matmul %0, %1, %cst {dimension_numbers = #tpu.dot_dimension_numbers<[1], [0], [0], [1], [0, 0, 1, 1], [], []>} : vector<20x20xf32>, vector<20x512xf32>, vector<20x512xf32> -> vector<20x512xf32>
    %c0_3 = arith.constant 0 : index
    %c0_4 = arith.constant 0 : index
    %3 = vector.load %arg3[%c0_3, %c0_4] : memref<20x1xf32, #tpu.memory_space<vmem>>, vector<20x1xf32>
    %4 = vector.broadcast %3 : vector<20x1xf32> to vector<20x512xf32>
    %5 = arith.addf %2, %4 : vector<20x512xf32>
    %c0_5 = arith.constant 0 : index
    %c0_6 = arith.constant 0 : index
    %6 = vector.load %arg4[%c0_5, %c0_6] : memref<20x512xf32, #tpu.memory_space<vmem>>, vector<20x512xf32>
    %7 = arith.addf %5, %6 : vector<20x512xf32>
    %cst_7 = arith.constant 5.000000e-01 : f32
    %8 = vector.broadcast %cst_7 : f32 to vector<20x512xf32>
    %9 = arith.mulf %8, %7 : vector<20x512xf32>
    %cst_8 = arith.constant 0.707106769 : f32
    %10 = vector.broadcast %cst_8 : f32 to vector<20x512xf32>
    %11 = arith.mulf %7, %10 : vector<20x512xf32>
    %12 = math.erf %11 : vector<20x512xf32>
    %cst_9 = arith.constant 1.000000e+00 : f32
    %13 = vector.broadcast %cst_9 : f32 to vector<20x512xf32>
    %14 = arith.addf %13, %12 : vector<20x512xf32>
    %15 = arith.mulf %9, %14 : vector<20x512xf32>
    %c0_10 = arith.constant 0 : index
    %c0_11 = arith.constant 0 : index
    %16 = vector.load %arg5[%c0_10, %c0_11] : memref<20x512xf32, #tpu.memory_space<vmem>>, vector<20x512xf32>
    tpu.vector_store %arg5[%c0_10, %c0_11], %15 {strides = array<i32>} : memref<20x512xf32, #tpu.memory_space<vmem>>, vector<20x512xf32>,
    return
  }
  func.func @transform_0(%arg0: i32) -> (i32, i32) {
    %c0_i32 = arith.constant 0 : i32
    %c0_i32_0 = arith.constant 0 : i32
    return %c0_i32, %arg0 : i32, i32
  }
  func.func @transform_1(%arg0: i32) -> (i32, i32) {
    %c0_i32 = arith.constant 0 : i32
    %c0_i32_0 = arith.constant 0 : i32
    %c0_i32_1 = arith.constant 0 : i32
    return %c0_i32, %c0_i32_0 : i32, i32
  }
  func.func @transform_2(%arg0: i32) -> (i32, i32) {
    %c0_i32 = arith.constant 0 : i32
    %c0_i32_0 = arith.constant 0 : i32
    %c0_i32_1 = arith.constant 0 : i32
    return %c0_i32, %c0_i32_0 : i32, i32
  }
  func.func @transform_3(%arg0: i32) -> (i32, i32) {
    %c0_i32 = arith.constant 0 : i32
    %c0_i32_0 = arith.constant 0 : i32
    return %c0_i32, %arg0 : i32, i32
  }
  func.func @transform_4(%arg0: i32) -> (i32, i32) {
    %c0_i32 = arith.constant 0 : i32
    %c0_i32_0 = arith.constant 0 : i32
    return %c0_i32, %arg0 : i32, i32
  }
}

module attributes {stable_mosaic.version = 11 : i64} {
  func.func @_block_kernel(%arg0: i32, %arg1: memref<20x512xf32, #tpu.memory_space<vmem>>, %arg2: memref<20x20xf32, #tpu.memory_space<vmem>>, %arg3: memref<20x1xf32, #tpu.memory_space<vmem>>, %arg4: memref<20x512xf32, #tpu.memory_space<vmem>>, %arg5: memref<20x512xf32, #tpu.memory_space<vmem>>) attributes {dimension_semantics = [#tpu.dimension_semantics<parallel>], iteration_bounds = array<i64: 1>, scalar_prefetch = 0 : i64, scratch_operands = 0 : i64, tpu.core_type = #tpu.core_type<tc>, window_params = [{transform_indices = @transform_0, window_bounds = array<i64: 20, 512>}, {pipeline_mode = #tpu.pipeline_mode<synchronous>, transform_indices = @transform_1, window_bounds = array<i64: 20, 20>}, {pipeline_mode = #tpu.pipeline_mode<synchronous>, transform_indices = @transform_2, window_bounds = array<i64: 20, 1>}, {transform_indices = @transform_3, window_bounds = array<i64: 20, 512>}, {transform_indices = @transform_4, window_bounds = array<i64: 20, 512>}]} {
    %c0 = arith.constant 0 : index
    %c0_0 = arith.constant 0 : index
    %0 = vector.load %arg2[%c0, %c0_0] : memref<20x20xf32, #tpu.memory_space<vmem>>, vector<20x20xf32>
    %c0_1 = arith.constant 0 : index
    %c0_2 = arith.constant 0 : index
    %1 = vector.load %arg1[%c0_1, %c0_2] : memref<20x512xf32, #tpu.memory_space<vmem>>, vector<20x512xf32>
    %cst = arith.constant dense<0.000000e+00> : vector<20x512xf32>
    %2 = tpu.matmul %0, %1, %cst {dimension_numbers = #tpu.dot_dimension_numbers<[1], [0], [0], [1], [0, 0, 1, 1], [], []>} : vector<20x20xf32>, vector<20x512xf32>, vector<20x512xf32> -> vector<20x512xf32>
    %c0_3 = arith.constant 0 : index
    %c0_4 = arith.constant 0 : index
    %3 = vector.load %arg3[%c0_3, %c0_4] : memref<20x1xf32, #tpu.memory_space<vmem>>, vector<20x1xf32>
    %4 = vector.broadcast %3 : vector<20x1xf32> to vector<20x512xf32>
    %5 = arith.addf %2, %4 : vector<20x512xf32>
    %c0_5 = arith.constant 0 : index
    %c0_6 = arith.constant 0 : index
    %6 = vector.load %arg4[%c0_5, %c0_6] : memref<20x512xf32, #tpu.memory_space<vmem>>, vector<20x512xf32>
    %7 = arith.addf %5, %6 : vector<20x512xf32>
    %c0_7 = arith.constant 0 : index
    %c0_8 = arith.constant 0 : index
    %8 = vector.load %arg5[%c0_7, %c0_8] : memref<20x512xf32, #tpu.memory_space<vmem>>, vector<20x512xf32>
    tpu.vector_store %arg5[%c0_7, %c0_8], %7 {strides = array<i32>} : memref<20x512xf32, #tpu.memory_space<vmem>>, vector<20x512xf32>,
    return
  }
  func.func @transform_0(%arg0: i32) -> (i32, i32) {
    %c0_i32 = arith.constant 0 : i32
    %c0_i32_0 = arith.constant 0 : i32
    return %c0_i32, %arg0 : i32, i32
  }
  func.func @transform_1(%arg0: i32) -> (i32, i32) {
    %c0_i32 = arith.constant 0 : i32
    %c0_i32_0 = arith.constant 0 : i32
    %c0_i32_1 = arith.constant 0 : i32
    return %c0_i32, %c0_i32_0 : i32, i32
  }
  func.func @transform_2(%arg0: i32) -> (i32, i32) {
    %c0_i32 = arith.constant 0 : i32
    %c0_i32_0 = arith.constant 0 : i32
    %c0_i32_1 = arith.constant 0 : i32
    return %c0_i32, %c0_i32_0 : i32, i32
  }
  func.func @transform_3(%arg0: i32) -> (i32, i32) {
    %c0_i32 = arith.constant 0 : i32
    %c0_i32_0 = arith.constant 0 : i32
    return %c0_i32, %arg0 : i32, i32
  }
  func.func @transform_4(%arg0: i32) -> (i32, i32) {
    %c0_i32 = arith.constant 0 : i32
    %c0_i32_0 = arith.constant 0 : i32
    return %c0_i32, %arg0 : i32, i32
  }
}

module attributes {stable_mosaic.version = 11 : i64} {
  func.func @_head_kernel(%arg0: i32, %arg1: memref<20x512xf32, #tpu.memory_space<vmem>>, %arg2: memref<128x20xf32, #tpu.memory_space<vmem>>, %arg3: memref<128x1xf32, #tpu.memory_space<vmem>>, %arg4: memref<2x128xf32, #tpu.memory_space<vmem>>, %arg5: memref<2x1xf32, #tpu.memory_space<vmem>>, %arg6: memref<2x512xf32, #tpu.memory_space<vmem>>) attributes {dimension_semantics = [#tpu.dimension_semantics<parallel>], iteration_bounds = array<i64: 1>, scalar_prefetch = 0 : i64, scratch_operands = 0 : i64, tpu.core_type = #tpu.core_type<tc>, window_params = [{transform_indices = @transform_0, window_bounds = array<i64: 20, 512>}, {pipeline_mode = #tpu.pipeline_mode<synchronous>, transform_indices = @transform_1, window_bounds = array<i64: 128, 20>}, {pipeline_mode = #tpu.pipeline_mode<synchronous>, transform_indices = @transform_2, window_bounds = array<i64: 128, 1>}, {pipeline_mode = #tpu.pipeline_mode<synchronous>, transform_indices = @transform_3, window_bounds = array<i64: 2, 128>}, {pipeline_mode = #tpu.pipeline_mode<synchronous>, transform_indices = @transform_4, window_bounds = array<i64: 2, 1>}, {transform_indices = @transform_5, window_bounds = array<i64: 2, 512>}]} {
    %c0 = arith.constant 0 : index
    %c0_0 = arith.constant 0 : index
    %0 = vector.load %arg2[%c0, %c0_0] : memref<128x20xf32, #tpu.memory_space<vmem>>, vector<128x20xf32>
    %c0_1 = arith.constant 0 : index
    %c0_2 = arith.constant 0 : index
    %1 = vector.load %arg1[%c0_1, %c0_2] : memref<20x512xf32, #tpu.memory_space<vmem>>, vector<20x512xf32>
    %cst = arith.constant dense<0.000000e+00> : vector<128x512xf32>
    %2 = tpu.matmul %0, %1, %cst {dimension_numbers = #tpu.dot_dimension_numbers<[1], [0], [0], [1], [0, 0, 1, 1], [], []>} : vector<128x20xf32>, vector<20x512xf32>, vector<128x512xf32> -> vector<128x512xf32>
    %c0_3 = arith.constant 0 : index
    %c0_4 = arith.constant 0 : index
    %3 = vector.load %arg3[%c0_3, %c0_4] : memref<128x1xf32, #tpu.memory_space<vmem>>, vector<128x1xf32>
    %4 = vector.broadcast %3 : vector<128x1xf32> to vector<128x512xf32>
    %5 = arith.addf %2, %4 : vector<128x512xf32>
    %cst_5 = arith.constant 5.000000e-01 : f32
    %6 = vector.broadcast %cst_5 : f32 to vector<128x512xf32>
    %7 = arith.mulf %6, %5 : vector<128x512xf32>
    %cst_6 = arith.constant 0.707106769 : f32
    %8 = vector.broadcast %cst_6 : f32 to vector<128x512xf32>
    %9 = arith.mulf %5, %8 : vector<128x512xf32>
    %10 = math.erf %9 : vector<128x512xf32>
    %cst_7 = arith.constant 1.000000e+00 : f32
    %11 = vector.broadcast %cst_7 : f32 to vector<128x512xf32>
    %12 = arith.addf %11, %10 : vector<128x512xf32>
    %13 = arith.mulf %7, %12 : vector<128x512xf32>
    %c0_8 = arith.constant 0 : index
    %c0_9 = arith.constant 0 : index
    %14 = vector.load %arg4[%c0_8, %c0_9] : memref<2x128xf32, #tpu.memory_space<vmem>>, vector<2x128xf32>
    %cst_10 = arith.constant dense<0.000000e+00> : vector<2x512xf32>
    %15 = tpu.matmul %14, %13, %cst_10 {dimension_numbers = #tpu.dot_dimension_numbers<[1], [0], [0], [1], [0, 0, 1, 1], [], []>} : vector<2x128xf32>, vector<128x512xf32>, vector<2x512xf32> -> vector<2x512xf32>
    %c0_11 = arith.constant 0 : index
    %c0_12 = arith.constant 0 : index
    %16 = vector.load %arg5[%c0_11, %c0_12] : memref<2x1xf32, #tpu.memory_space<vmem>>, vector<2x1xf32>
    %17 = vector.broadcast %16 : vector<2x1xf32> to vector<2x512xf32>
    %18 = arith.addf %15, %17 : vector<2x512xf32>
    %c0_13 = arith.constant 0 : index
    %c0_14 = arith.constant 0 : index
    %19 = vector.load %arg6[%c0_13, %c0_14] : memref<2x512xf32, #tpu.memory_space<vmem>>, vector<2x512xf32>
    tpu.vector_store %arg6[%c0_13, %c0_14], %18 {strides = array<i32>} : memref<2x512xf32, #tpu.memory_space<vmem>>, vector<2x512xf32>,
    return
  }
  func.func @transform_0(%arg0: i32) -> (i32, i32) {
    %c0_i32 = arith.constant 0 : i32
    %c0_i32_0 = arith.constant 0 : i32
    return %c0_i32, %arg0 : i32, i32
  }
  func.func @transform_1(%arg0: i32) -> (i32, i32) {
    %c0_i32 = arith.constant 0 : i32
    %c0_i32_0 = arith.constant 0 : i32
    %c0_i32_1 = arith.constant 0 : i32
    return %c0_i32, %c0_i32_0 : i32, i32
  }
  func.func @transform_2(%arg0: i32) -> (i32, i32) {
    %c0_i32 = arith.constant 0 : i32
    %c0_i32_0 = arith.constant 0 : i32
    %c0_i32_1 = arith.constant 0 : i32
    return %c0_i32, %c0_i32_0 : i32, i32
  }
  func.func @transform_3(%arg0: i32) -> (i32, i32) {
    %c0_i32 = arith.constant 0 : i32
    %c0_i32_0 = arith.constant 0 : i32
    %c0_i32_1 = arith.constant 0 : i32
    return %c0_i32, %c0_i32_0 : i32, i32
  }
  func.func @transform_4(%arg0: i32) -> (i32, i32) {
    %c0_i32 = arith.constant 0 : i32
    %c0_i32_0 = arith.constant 0 : i32
    %c0_i32_1 = arith.constant 0 : i32
    return %c0_i32, %c0_i32_0 : i32, i32
  }
  func.func @transform_5(%arg0: i32) -> (i32, i32) {
    %c0_i32 = arith.constant 0 : i32
    %c0_i32_0 = arith.constant 0 : i32
    return %c0_i32, %arg0 : i32, i32
  }
}

</mosaic_0001>

<bundles_post_ra>
// kernel: fno2d_forward.10
= control target key start
LH: loop header
LB: loop body
LE: loop exit
PB: predicated region body
PF: predicated region fallthrough
CT: control target
= control target key end

     0   :  { %v214_v0 = vmov 2   ;;  %v215_v1 = vmov 0   ;;  %v216_v5 = vmov 1   ;;  %s318_s1 = inlined_call_operand.vmem [shape: f32[20,3], index: 1, kind: input, shape index: {}]   ;;  %s319_s2 = inlined_call_operand.vmem [shape: f32[20,1], index: 2, kind: input, shape index: {}]   ;;  %s320_s0 = inlined_call_operand.vmem [shape: f32[3,512], index: 0, kind: input, shape index: {}]   ;;  %s321_s3 = inlined_call_operand.vmem [shape: f32[20,512], index: 3, kind: output, shape index: {}]  }
   0x1   :  { %208 = vset.pattern.permute.xlu0 %v214_v0  ;;  %205 = vset.pattern.permute.xlu1 %v215_v1  ;;  %v18_v2 = vld [vmem:[%s318_s1 + $0x10] sm:$0xf]  ;;  %v16_v3 = vld [vmem:[%s318_s1] sm:$0xff]  ;;  %v17_v4 = vld [vmem:[%s318_s1 + $0x8] sm:$0xff] }
   0x2   :  { %31 = vperm.xlu1 %205, %v18_v2   ;;  %109 = vperm.xlu0 %208, %v16_v3   ;;  %v158_v6 = vld [vmem:[%s319_s2 + $0x10] sm:$0xf]  ;;  %v156_v7 = vld [vmem:[%s319_s2] sm:$0xff]  ;;  %v157_v8 = vld [vmem:[%s319_s2 + $0x8] sm:$0xff] }
   0x3   :  { %207 = vset.pattern.permute.xlu2 %v216_v5  ;;  %v14_v12 = vld [vmem:[%s320_s0] sm:$0x77]  ;;  %v15_v13 = vld [vmem:[%s320_s0 + $0x8] sm:$0x77] }
   0x4   :  { %65 = vperm.xlu2 %207, %v17_v4   ;;  %v72_v15 = vperm.slane %v14_v12, 1  ;;  %v36_v16 = vperm.slane %v14_v12, 0  ;;  %v73_v17 = vperm.slane %v14_v12, 5  ;;  %v74_v18 = vperm.slane %v15_v13, 1 }
   0x5   :  { %v37_v19 = vperm.slane %v14_v12, 4  ;;  %v38_v20 = vperm.slane %v15_v13, 0  ;;  %v75_v21 = vperm.slane %v15_v13, 5  ;;  %v39_v22 = vperm.slane %v15_v13, 4 }
   0x6   :  { %v120_v23 = vperm.slane %v14_v12, 2  ;;  %v121_v24 = vperm.slane %v14_v12, 6  ;;  %v80_v25 = vperm.slane %v72_v15, 1  ;;  %v44_v26 = vperm.slane %v36_v16, 0 }
   0x7   :  { %v122_v27 = vperm.slane %v15_v13, 2  ;;  %v123_v28 = vperm.slane %v15_v13, 6  ;;  %v81_v29 = vperm.slane %v73_v17, 1  ;;  %v82_v30 = vperm.slane %v74_v18, 1 }
   0x8   :  { %v45_v31 = vperm.slane %v37_v19, 0  ;;  %v46_v32 = vperm.slane %v38_v20, 0  ;;  %v83_v35 = vperm.slane %v75_v21, 1  ;;  %v47_v36 = vperm.slane %v39_v22, 0 }
   0x9   :  { %v128_v37 = vperm.slane %v120_v23, 2  ;;  %v263_v38 = vperm.slane %v121_v24, 2  ;;  %v265_v41 = vperm.slane %v122_v27, 2  ;;  %v267_v42 = vperm.slane %v123_v28, 2 }
   0xa   :  { %206 = vset.pattern.permute.xlu1 %v216_v5  ;;  %209 = vset.pattern.permute.xlu0 %v215_v1 }
   0xb   :  { %21 = vperm.xlu0 %209, %v16_v3   ;;  %61 = vperm.xlu1 %206, %v16_v3  }
   0xc   :  { %69 = vperm.xlu2 %207, %v18_v2  }
  0x13   :  { %26 = vperm.xlu0 %209, %v17_v4   ;;  %210 = vset.pattern.permute.xlu1 %v214_v0 }
  0x14   :  { %113 = vperm.xlu1 %210, %v17_v4   ;;  %211 = vset.pattern.permute.xlu2 %v214_v0 }
  0x15   :  { %117 = vperm.xlu2 %211, %v18_v2  }
  0x1b   :  { %171 = vperm.xlu0 %209, %v158_v6  }
  0x1c   :  { %212 = vset.pattern.permute.xlu1 %v215_v1 }
  0x1d   :  { %161 = vperm.xlu1 %212, %v156_v7   ;;  %213 = vset.pattern.permute.xlu2 %v215_v1 }
  0x1e   :  { %166 = vperm.xlu2 %213, %v157_v8  }
  0x5e   :  { %v66_v9 = vpop.permute.xlu2 %65 }
  0x5f   :  { %v88_v48 = vmul.f32 %v80_v25, %v66_v9  ;;  %v89_v49 = vmul.f32 %v81_v29, %v66_v9  ;;  %v90_v50 = vmul.f32 %v82_v30, %v66_v9  ;;  %v91_v51 = vmul.f32 %v83_v35, %v66_v9 }
  0x66   :  { %v70_v14 = vpop.permute.xlu2 %69 }
  0x67   :  { %v92_v39 = vmul.f32 %v80_v25, %v70_v14  ;;  %v93_v44 = vmul.f32 %v81_v29, %v70_v14  ;;  %v94_v45 = vmul.f32 %v82_v30, %v70_v14  ;;  %v95_v52 = vmul.f32 %v83_v35, %v70_v14 }
  0x6f   :  { %v118_v43 = vpop.permute.xlu2 %117 }
  0x70   :  { %v140_v53 = vmul.f32 %v128_v37, %v118_v43  ;;  %v141_v54 = vmul.f32 %v263_v38, %v118_v43  ;;  %v142_v56 = vmul.f32 %v265_v41, %v118_v43  ;;  %v143_v57 = vmul.f32 %v267_v42, %v118_v43 }
  0x74   :  { %v32_v10 = vpop.permute.xlu1 %31  ;;  %v255_v11 = vpop.permute.xlu0 %109 }
  0x75   :  { %v56_v40 = vmul.f32 %v44_v26, %v32_v10  ;;  %v57_v46 = vmul.f32 %v45_v31, %v32_v10  ;;  %v58_v47 = vmul.f32 %v46_v32, %v32_v10  ;;  %v59_v55 = vmul.f32 %v47_v36, %v32_v10 }
  0x77   :  { %v104_v58 = vadd.f32 %v92_v39, %v56_v40  ;;  %v105_v62 = vadd.f32 %v93_v44, %v57_v46  ;;  %v106_v63 = vadd.f32 %v94_v45, %v58_v47 }
  0x78   :  { %v167_v18 = vpop.permute.xlu2 %166 }
  0x79   :  { %v153_v45 = vadd.f32 %v141_v54, %v105_v62 }
  0x7d   :  { %v22_v33 = vpop.permute.xlu0 %21  ;;  %v62_v34 = vpop.permute.xlu1 %61 }
  0x7e   :  { %v48_v59 = vmul.f32 %v44_v26, %v22_v33  ;;  %v84_v60 = vmul.f32 %v80_v25, %v62_v34  ;;  %v49_v14 = vmul.f32 %v45_v31, %v22_v33  ;;  %v50_v15 = vmul.f32 %v46_v32, %v22_v33 }
  0x7f   :  { %v85_v16 = vmul.f32 %v81_v29, %v62_v34  ;;  %v86_v17 = vmul.f32 %v82_v30, %v62_v34  ;;  %v51_v23 = vmul.f32 %v47_v36, %v22_v33  ;;  %v87_v24 = vmul.f32 %v83_v35, %v62_v34 }
  0x80   :  { %v107_v25 = vadd.f32 %v95_v52, %v59_v55  ;;  %v96_v40 = vadd.f32 %v84_v60, %v48_v59  ;;  %v132_v29 = vmul.f32 %v128_v37, %v255_v11  ;;  %v154_v30 = vadd.f32 %v142_v56, %v106_v63 }
  0x81   :  { %v98_v33 = vadd.f32 %v86_v17, %v50_v15  ;;  %v133_v34 = vmul.f32 %v263_v38, %v255_v11  ;;  %v99_v47 = vadd.f32 %v87_v24, %v51_v23 }
  0x82   :  { %v155_v35 = vadd.f32 %v143_v57, %v107_v25 }
  0x85   :  { %v27_v61 = vpop.permute.xlu0 %26 }
  0x86   :  { %v52_v0 = vmul.f32 %v44_v26, %v27_v61  ;;  %v53_v1 = vmul.f32 %v45_v31, %v27_v61  ;;  %v54_v2 = vmul.f32 %v46_v32, %v27_v61  ;;  %v55_v3 = vmul.f32 %v47_v36, %v27_v61  ;;  %v114_v4 = vpop.permute.xlu1 %113 }
  0x87   :  { %v136_v5 = vmul.f32 %v128_v37, %v114_v4  ;;  %v137_v6 = vmul.f32 %v263_v38, %v114_v4  ;;  %v138_v7 = vmul.f32 %v265_v41, %v114_v4  ;;  %v139_v8 = vmul.f32 %v267_v42, %v114_v4 }
  0x88   :  { %v100_v9 = vadd.f32 %v88_v48, %v52_v0  ;;  %v101_v10 = vadd.f32 %v89_v49, %v53_v1  ;;  %v102_v12 = vadd.f32 %v90_v50, %v54_v2  ;;  %v103_v13 = vadd.f32 %v91_v51, %v55_v3 }
  0x89   :  { %v152_v26 = vadd.f32 %v140_v53, %v104_v58  ;;  %v97_v31 = vadd.f32 %v85_v16, %v49_v14  ;;  %v134_v37 = vmul.f32 %v265_v41, %v255_v11  ;;  %v144_v49 = vadd.f32 %v132_v29, %v96_v40 }
  0x8a   :  { %v148_v19 = vadd.f32 %v136_v5, %v100_v9  ;;  %v149_v20 = vadd.f32 %v137_v6, %v101_v10  ;;  %v150_v21 = vadd.f32 %v138_v7, %v102_v12  ;;  %v151_v22 = vadd.f32 %v139_v8, %v103_v13 }
  0x8b   :  { %v135_v38 = vmul.f32 %v267_v42, %v255_v11  ;;  %v145_v51 = vadd.f32 %v133_v34, %v97_v31  ;;  %v146_v41 = vadd.f32 %v134_v37, %v98_v33 }
  0x8c   :  { %v178_v27 = vadd.f32 %v167_v18, %v148_v19  ;;  %v179_v28 = vadd.f32 %v167_v18, %v149_v20  ;;  %v180_v39 = vadd.f32 %v167_v18, %v150_v21  ;;  %v181_v43 = vadd.f32 %v167_v18, %v151_v22 }
  0x8d   :  { %v172_v44 = vpop.permute.xlu0 %171  ;;  %v147_v53 = vadd.f32 %v135_v38, %v99_v47 }
  0x8e   :  { %190 = vst [vmem:[%s321_s3 + $0x20] sm:$0xff] %v178_v27  ;;  %v182_v32 = vadd.f32 %v172_v44, %v152_v26  ;;  %v183_v36 = vadd.f32 %v172_v44, %v153_v45  ;;  %v184_v48 = vadd.f32 %v172_v44, %v154_v30  ;;  %v185_v50 = vadd.f32 %v172_v44, %v155_v35 }
  0x8f   :  { %191 = vst [vmem:[%s321_s3 + $0x28] sm:$0xff] %v179_v28  ;;  %v162_v46 = vpop.permute.xlu1 %161 }
  0x90   :  { %192 = vst [vmem:[%s321_s3 + $0x30] sm:$0xff] %v180_v39  ;;  %v174_v52 = vadd.f32 %v162_v46, %v144_v49  ;;  %v175_v54 = vadd.f32 %v162_v46, %v145_v51  ;;  %v176_v11 = vadd.f32 %v162_v46, %v146_v41  ;;  %v177_v42 = vadd.f32 %v162_v46, %v147_v53 }
  0x91   :  { %193 = vst [vmem:[%s321_s3 + $0x38] sm:$0xff] %v181_v43 }
  0x92   :  { %194 = vst [vmem:[%s321_s3 + $0x40] sm:$0xf] %v182_v32 }
  0x93   :  { %195 = vst [vmem:[%s321_s3 + $0x48] sm:$0xf] %v183_v36 }
  0x94   :  { %196 = vst [vmem:[%s321_s3 + $0x50] sm:$0xf] %v184_v48 }
  0x95   :  { %197 = vst [vmem:[%s321_s3 + $0x58] sm:$0xf] %v185_v50 }
  0x96   :  { %186 = vst [vmem:[%s321_s3] sm:$0xff] %v174_v52 }
  0x97   :  { %187 = vst [vmem:[%s321_s3 + $0x8] sm:$0xff] %v175_v54 }
  0x98   :  { %188 = vst [vmem:[%s321_s3 + $0x10] sm:$0xff] %v176_v11 }
  0x99   :  { %189 = vst [vmem:[%s321_s3 + $0x18] sm:$0xff] %v177_v42 }

// kernel: reverse.8
= control target key start
LH: loop header
LB: loop body
LE: loop exit
PB: predicated region body
PF: predicated region fallthrough
CT: control target
= control target key end

     0   :  { %s344_s0 = inlined_call_operand.vmem [shape: f32[20,2,16,7], index: 0, kind: input, shape index: {}]   ;;  %s345_s1 = inlined_call_operand.vmem [shape: f32[20,2,16,7], index: 1, kind: output, shape index: {}]  }
   0x1   :  { %v112_v0 = vld [vmem:[%s344_s0 + $0x60] sm:$0xff]  ;;  %v113_v1 = vld [vmem:[%s344_s0 + $0xd0] sm:$0xff]  ;;  %v138_v14 = vld [vmem:[%s344_s0 + $0x68] sm:$0xff] }
   0x2   :  { %v115_v2 = vld [vmem:[%s344_s0 + $0x50] sm:$0xff]  ;;  %4 = vst [vmem:[%s345_s1] sm:$0xff] %v112_v0  ;;  %v117_v3 = vld [vmem:[%s344_s0 + $0xc0] sm:$0xff]  ;;  %v140_v15 = vld [vmem:[%s344_s0 + $0xd8] sm:$0xff] }
   0x3   :  { %114 = vst [vmem:[%s345_s1 + $0x70] sm:$0xff] %v113_v1  ;;  %v119_v4 = vld [vmem:[%s344_s0 + $0x40] sm:$0xff]  ;;  %v121_v5 = vld [vmem:[%s344_s0 + $0xb0] sm:$0xff]  ;;  %v142_v16 = vld [vmem:[%s344_s0 + $0x58] sm:$0xff] }
   0x4   :  { %116 = vst [vmem:[%s345_s1 + $0x10] sm:$0xff] %v115_v2  ;;  %v123_v6 = vld [vmem:[%s344_s0 + $0x30] sm:$0xff]  ;;  %v125_v7 = vld [vmem:[%s344_s0 + $0xa0] sm:$0xff]  ;;  %v144_v17 = vld [vmem:[%s344_s0 + $0xc8] sm:$0xff] }
   0x5   :  { %118 = vst [vmem:[%s345_s1 + $0x80] sm:$0xff] %v117_v3  ;;  %v127_v8 = vld [vmem:[%s344_s0 + $0x20] sm:$0xff]  ;;  %v129_v9 = vld [vmem:[%s344_s0 + $0x90] sm:$0xff]  ;;  %v146_v18 = vld [vmem:[%s344_s0 + $0x48] sm:$0xff] }
   0x6   :  { %120 = vst [vmem:[%s345_s1 + $0x20] sm:$0xff] %v119_v4  ;;  %v131_v10 = vld [vmem:[%s344_s0 + $0x10] sm:$0xff]  ;;  %v133_v11 = vld [vmem:[%s344_s0 + $0x80] sm:$0xff]  ;;  %v148_v19 = vld [vmem:[%s344_s0 + $0xb8] sm:$0xff] }
   0x7   :  { %122 = vst [vmem:[%s345_s1 + $0x90] sm:$0xff] %v121_v5  ;;  %v49_v12 = vld [vmem:[%s344_s0] sm:$0xff]  ;;  %v136_v13 = vld [vmem:[%s344_s0 + $0x70] sm:$0xff]  ;;  %v150_v20 = vld [vmem:[%s344_s0 + $0x38] sm:$0xff] }
   0x8   :  { %124 = vst [vmem:[%s345_s1 + $0x30] sm:$0xff] %v123_v6  ;;  %v152_v21 = vld [vmem:[%s344_s0 + $0xa8] sm:$0xff]  ;;  %v156_v23 = vld [vmem:[%s344_s0 + $0x98] sm:$0xff] }
   0x9   :  { %126 = vst [vmem:[%s345_s1 + $0xa0] sm:$0xff] %v125_v7  ;;  %v154_v22 = vld [vmem:[%s344_s0 + $0x28] sm:$0xff]  ;;  %v158_v24 = vld [vmem:[%s344_s0 + $0x18] sm:$0xff] }
   0xa   :  { %128 = vst [vmem:[%s345_s1 + $0x40] sm:$0xff] %v127_v8  ;;  %v160_v25 = vld [vmem:[%s344_s0 + $0x88] sm:$0xff]  ;;  %v164_v27 = vld [vmem:[%s344_s0 + $0x78] sm:$0xff] }
   0xb   :  { %130 = vst [vmem:[%s345_s1 + $0xb0] sm:$0xff] %v129_v9  ;;  %v162_v26 = vld [vmem:[%s344_s0 + $0x8] sm:$0xff] }
   0xc   :  { %132 = vst [vmem:[%s345_s1 + $0x50] sm:$0xff] %v131_v10 }
   0xd   :  { %134 = vst [vmem:[%s345_s1 + $0xc0] sm:$0xff] %v133_v11 }
   0xe   :  { %135 = vst [vmem:[%s345_s1 + $0x60] sm:$0xff] %v49_v12 }
   0xf   :  { %137 = vst [vmem:[%s345_s1 + $0xd0] sm:$0xff] %v136_v13 }
  0x10   :  { %139 = vst [vmem:[%s345_s1 + $0x8] sm:$0xff] %v138_v14 }
  0x11   :  { %141 = vst [vmem:[%s345_s1 + $0x78] sm:$0xff] %v140_v15 }
  0x12   :  { %143 = vst [vmem:[%s345_s1 + $0x18] sm:$0xff] %v142_v16 }
  0x13   :  { %145 = vst [vmem:[%s345_s1 + $0x88] sm:$0xff] %v144_v17 }
  0x14   :  { %147 = vst [vmem:[%s345_s1 + $0x28] sm:$0xff] %v146_v18 }
  0x15   :  { %149 = vst [vmem:[%s345_s1 + $0x98] sm:$0xff] %v148_v19 }
  0x16   :  { %151 = vst [vmem:[%s345_s1 + $0x38] sm:$0xff] %v150_v20 }
  0x17   :  { %153 = vst [vmem:[%s345_s1 + $0xa8] sm:$0xff] %v152_v21 }
  0x18   :  { %155 = vst [vmem:[%s345_s1 + $0x48] sm:$0xff] %v154_v22 }
  0x19   :  { %157 = vst [vmem:[%s345_s1 + $0xb8] sm:$0xff] %v156_v23 }
  0x1a   :  { %159 = vst [vmem:[%s345_s1 + $0x58] sm:$0xff] %v158_v24 }
  0x1b   :  { %161 = vst [vmem:[%s345_s1 + $0xc8] sm:$0xff] %v160_v25 }
  0x1c   :  { %163 = vst [vmem:[%s345_s1 + $0x68] sm:$0xff] %v162_v26 }
  0x1d   :  { %165 = vst [vmem:[%s345_s1 + $0xd8] sm:$0xff] %v164_v27 }

// kernel: fno2d_forward.11
= control target key start
LH: loop header
LB: loop body
LE: loop exit
PB: predicated region body
PF: predicated region fallthrough
CT: control target
= control target key end

     0   :  { %vm407_vm0 = vcmask 1043456   ;;  %vm403_vm1 = vcmask 162816   ;;  %vm484_vm2 = vcmask 156672   ;;  %s4632_s2 = inlined_call_operand.vmem [shape: f32[32,20,20], index: 2, kind: input, shape index: {}]   ;;  %s4633_s3 = inlined_call_operand.vmem [shape: f32[32,20,20], index: 3, kind: input, shape index: {}]   ;;  %s4634_s0 = inlined_call_operand.vmem [shape: f32[32,2,20], index: 0, kind: input, shape index: {}]   ;;  %s4635_s1 = inlined_call_operand.vmem [shape: f32[32,2,20], index: 1, kind: input, shape index: {}]   ;;  %s4636_s4 = inlined_call_operand.vmem [shape: f32[32,2,20], index: 4, kind: output, shape index: {0}]   ;;  %s4637_s5 = inlined_call_operand.vmem [shape: f32[32,2,20], index: 5, kind: output, shape index: {1}]  }
   0x1   :  { %v85_v0 = vld [vmem:[%s4632_s2 + $0x10] sm:$0xf]  ;;  %v88_v2 = vld [vmem:[%s4632_s2 + $0x28] sm:$0xf]  ;;  %v87_v6 = vld [vmem:[%s4632_s2 + $0x20] sm:$0xff] }
   0x2   :  { %v181_v1 = vld [vmem:[%s4633_s3 + $0x10] sm:$0xf]  ;;  %3132 = vmatpush.msk.msra.mxu0 %vm407_vm0, %v85_v0  ;;  %v84_v3 = vld [vmem:[%s4632_s2 + $0x8] sm:$0xff]  ;;  %3138 = vmatpush.msk.msra.mxu3 %vm407_vm0, %v88_v2  ;;  %v83_v7 = vld [vmem:[%s4632_s2] sm:$0xff] }
   0x3   :  { %3134 = vmatpush.msk.msra.mxu1 %vm407_vm0, %v181_v1  ;;  %v180_v4 = vld [vmem:[%s4633_s3 + $0x8] sm:$0xff]  ;;  %v309_v5 = vadd.f32 %v181_v1, %v85_v0  ;;  %v179_v8 = vld [vmem:[%s4633_s3] sm:$0xff]  ;;  %v86_v10 = vld [vmem:[%s4632_s2 + $0x18] sm:$0xff] }
   0x4   :  { %v308_v9 = vadd.f32 %v180_v4, %v84_v3  ;;  %425 = vmatpush.msra.mxu0 %v84_v3  ;;  %v19_v11 = vld [vmem:[%s4634_s0] sm:$0x3]  ;;  %v184_v13 = vld [vmem:[%s4633_s3 + $0x28] sm:$0xf]  ;;  %509 = vmatpush.msra.mxu3 %v87_v6  ;;  %v307_v14 = vadd.f32 %v179_v8, %v83_v7  ;;  %v20_v16 = vld [vmem:[%s4634_s0 + $0x2] sm:$0x3] }
   0x5   :  { %451 = vmatpush.msra.mxu1 %v180_v4  ;;  %v51_v12 = vld [vmem:[%s4635_s1] sm:$0x3]  ;;  %3136 = vmatpush.msk.msra.mxu2 %vm407_vm0, %v309_v5  ;;  %v312_v19 = vadd.f32 %v184_v13, %v88_v2  ;;  %v186_v21 = vld [vmem:[%s4633_s3 + $0x38] sm:$0xff]  ;;  %v52_v23 = vld [vmem:[%s4635_s1 + $0x2] sm:$0x3] }
   0x6   :  { %426 = vmatpush.msra.mxu0 %v83_v7  ;;  %v275_v15 = vadd.f32 %v51_v12, %v19_v11  ;;  %510 = vmatpush.msra.mxu3 %v86_v10  ;;  %v187_v17 = vld [vmem:[%s4633_s3 + $0x40] sm:$0xf]  ;;  %v182_v22 = vld [vmem:[%s4633_s3 + $0x18] sm:$0xff]  ;;  %v185_v26 = vld [vmem:[%s4633_s3 + $0x30] sm:$0xff]  ;;  %v276_v31 = vadd.f32 %v52_v23, %v20_v16 }
   0x7   :  { %452 = vmatpush.msra.mxu1 %v179_v8  ;;  %477 = vmatpush.msra.mxu2 %v308_v9  ;;  %v183_v18 = vld [vmem:[%s4633_s3 + $0x20] sm:$0xff]  ;;  %v90_v25 = vld [vmem:[%s4632_s2 + $0x38] sm:$0xff]  ;;  %v310_v29 = vadd.f32 %v182_v22, %v86_v10  ;;  %v89_v30 = vld [vmem:[%s4632_s2 + $0x30] sm:$0xff] }
   0x8   :  { %3133 = vmatmul.msk.f32.vlgmr.msra.gmra.mxu0 %vm403_vm1, %v19_v11  ;;  %3135 = vmatmul.msk.f32.vlgmr.msra.gmra.mxu1 %vm403_vm1, %v51_v12  ;;  %v91_v20 = vld [vmem:[%s4632_s2 + $0x40] sm:$0xf]  ;;  %v311_v24 = vadd.f32 %v183_v18, %v87_v6  ;;  %v94_v27 = vld [vmem:[%s4632_s2 + $0x58] sm:$0xf]  ;;  %v93_v32 = vld [vmem:[%s4632_s2 + $0x50] sm:$0xff]  ;;  %v314_v41 = vadd.f32 %v186_v21, %v90_v25  ;;  %v313_v45 = vadd.f32 %v185_v26, %v89_v30 }
   0x9   :  { %3139 = vmatmul.msk.f32.vlgmr.msra.gmra.mxu3 %vm403_vm1, %v20_v16  ;;  %478 = vmatpush.msra.mxu2 %v307_v14  ;;  %v190_v28 = vld [vmem:[%s4633_s3 + $0x58] sm:$0xf]  ;;  %v189_v33 = vld [vmem:[%s4633_s3 + $0x50] sm:$0xff]  ;;  %v53_v34 = vld [vmem:[%s4635_s1 + $0x4] sm:$0x3]  ;;  %v315_v36 = vadd.f32 %v187_v17, %v91_v20 }
   0xa   :  { %3148 = vmatpush.msk.msrb.mxu3 %vm407_vm0, %v187_v17  ;;  %3137 = vmatmul.msk.f32.vlgmr.msra.gmra.mxu2 %vm403_vm1, %v275_v15  ;;  %v318_v35 = vadd.f32 %v190_v28, %v94_v27  ;;  %v21_v37 = vld [vmem:[%s4634_s0 + $0x4] sm:$0x3]  ;;  %v92_v38 = vld [vmem:[%s4632_s2 + $0x48] sm:$0xff]  ;;  %v317_v40 = vadd.f32 %v189_v33, %v93_v32  ;;  %v22_v43 = vld [vmem:[%s4634_s0 + $0x6] sm:$0x3] }
   0xb   :  { %3146 = vmatpush.msk.msrb.mxu2 %vm407_vm0, %v91_v20  ;;  %3140 = vmatpush.msk.msrb.mxu0 %vm407_vm0, %v184_v13  ;;  %v188_v39 = vld [vmem:[%s4633_s3 + $0x48] sm:$0xff]  ;;  %v54_v44 = vld [vmem:[%s4635_s1 + $0x6] sm:$0x3]  ;;  %v277_v46 = vadd.f32 %v53_v34, %v21_v37  ;;  %v97_v47 = vld [vmem:[%s4632_s2 + $0x70] sm:$0xf] }
   0xc   :  { %3142 = vmatpush.msk.msrb.mxu1 %vm407_vm0, %v312_v19  ;;  %620 = vmatpush.msrb.mxu3 %v186_v21  ;;  %v316_v42 = vadd.f32 %v188_v39, %v92_v38  ;;  %v193_v48 = vld [vmem:[%s4633_s3 + $0x70] sm:$0xf]  ;;  %v278_v49 = vadd.f32 %v54_v44, %v22_v43  ;;  %v96_v50 = vld [vmem:[%s4632_s2 + $0x68] sm:$0xff]  ;;  %v95_v54 = vld [vmem:[%s4632_s2 + $0x60] sm:$0xff] }
   0xd   :  { %535 = vmatpush.msrb.mxu0 %v183_v18  ;;  %594 = vmatpush.msrb.mxu2 %v90_v25  ;;  %v192_v51 = vld [vmem:[%s4633_s3 + $0x68] sm:$0xff]  ;;  %v321_v53 = vadd.f32 %v193_v48, %v97_v47  ;;  %v191_v55 = vld [vmem:[%s4633_s3 + $0x60] sm:$0xff]  ;;  %v98_v58 = vld [vmem:[%s4632_s2 + $0x78] sm:$0xff] }
   0xe   :  { %561 = vmatpush.msrb.mxu1 %v311_v24  ;;  %621 = vmatpush.msrb.mxu3 %v185_v26  ;;  %v100_v52 = vld [vmem:[%s4632_s2 + $0x88] sm:$0xf]  ;;  %v99_v56 = vld [vmem:[%s4632_s2 + $0x80] sm:$0xff]  ;;  %v320_v57 = vadd.f32 %v192_v51, %v96_v50  ;;  %v319_v59 = vadd.f32 %v191_v55, %v95_v54  ;;  %v198_v5 = vld [vmem:[%s4633_s3 + $0x98] sm:$0xff] }
   0xf   :  { %536 = vmatpush.msrb.mxu0 %v182_v22  ;;  %595 = vmatpush.msrb.mxu2 %v89_v30  ;;  %v23_v60 = vld [vmem:[%s4634_s0 + $0x8] sm:$0x3]  ;;  %v24_v0 = vld [vmem:[%s4634_s0 + $0xa] sm:$0x3]  ;;  %v199_v1 = vld [vmem:[%s4633_s3 + $0xa0] sm:$0xf] }
  0x10   :  { %562 = vmatpush.msrb.mxu1 %v310_v29  ;;  %3141 = vmatmul.msk.f32.vlgmr.msrb.gmra.mxu0 %vm403_vm1, %v52_v23  ;;  %v55_v61 = vld [vmem:[%s4635_s1 + $0x8] sm:$0x3]  ;;  %v195_v2 = vld [vmem:[%s4633_s3 + $0x80] sm:$0xff]  ;;  %v194_v6 = vld [vmem:[%s4633_s3 + $0x78] sm:$0xff] }
  0x11   :  { %3143 = vmatmul.msk.f32.vlgmr.msrb.gmra.mxu1 %vm403_vm1, %v276_v31  ;;  %3149 = vmatmul.msk.f32.vlgmr.msrb.gmra.mxu3 %vm403_vm1, %v53_v34  ;;  %v196_v62 = vld [vmem:[%s4633_s3 + $0x88] sm:$0xf]  ;;  %v279_v63 = vadd.f32 %v55_v61, %v23_v60  ;;  %v103_v3 = vld [vmem:[%s4632_s2 + $0xa0] sm:$0xf]  ;;  %v323_v7 = vadd.f32 %v195_v2, %v99_v56  ;;  %v102_v8 = vld [vmem:[%s4632_s2 + $0x98] sm:$0xff]  ;;  %v322_v13 = vadd.f32 %v194_v6, %v98_v58 }
  0x12   :  { %3158 = vmatpush.msk.msra.mxu3 %vm407_vm0, %v318_v35  ;;  %3147 = vmatmul.msk.f32.vlgmr.msrb.gmra.mxu2 %vm403_vm1, %v21_v37  ;;  %v324_v4 = vadd.f32 %v196_v62, %v100_v52  ;;  %v56_v9 = vld [vmem:[%s4635_s1 + $0xa] sm:$0x3]  ;;  %v197_v10 = vld [vmem:[%s4633_s3 + $0x90] sm:$0xff]  ;;  %v106_v11 = vld [vmem:[%s4632_s2 + $0xb8] sm:$0xf]  ;;  %v327_v20 = vadd.f32 %v199_v1, %v103_v3  ;;  %v326_v25 = vadd.f32 %v198_v5, %v102_v8 }
  0x13   :  { %3156 = vmatpush.msk.msra.mxu2 %vm407_vm0, %v190_v28  ;;  %3150 = vmatpush.msk.msra.mxu0 %vm407_vm0, %v315_v36  ;;  %v202_v12 = vld [vmem:[%s4633_s3 + $0xb8] sm:$0xf]  ;;  %v101_v14 = vld [vmem:[%s4632_s2 + $0x90] sm:$0xff]  ;;  %v280_v15 = vadd.f32 %v56_v9, %v24_v0  ;;  %v57_v18 = vld [vmem:[%s4635_s1 + $0xc] sm:$0x3] }
  0x14   :  { %3154 = vmatpush.msk.msra.mxu1 %vm407_vm0, %v94_v27  ;;  %731 = vmatpush.msra.mxu3 %v317_v40  ;;  %v105_v16 = vld [vmem:[%s4632_s2 + $0xb0] sm:$0xff]  ;;  %v330_v19 = vadd.f32 %v202_v12, %v106_v11  ;;  %v25_v21 = vld [vmem:[%s4634_s0 + $0xc] sm:$0x3]  ;;  %v26_v27 = vld [vmem:[%s4634_s0 + $0xe] sm:$0x3]  ;;  %v325_v29 = vadd.f32 %v197_v10, %v101_v14 }
  0x15   :  { %646 = vmatpush.msra.mxu0 %v314_v41  ;;  %705 = vmatpush.msra.mxu2 %v189_v33  ;;  %v201_v17 = vld [vmem:[%s4633_s3 + $0xb0] sm:$0xff]  ;;  %v104_v22 = vld [vmem:[%s4632_s2 + $0xa8] sm:$0xff]  ;;  %v281_v30 = vadd.f32 %v57_v18, %v25_v21  ;;  %v111_v40 = vld [vmem:[%s4632_s2 + $0xe0] sm:$0xff] }
  0x16   :  { %679 = vmatpush.msra.mxu1 %v93_v32  ;;  %732 = vmatpush.msra.mxu3 %v316_v42  ;;  %v200_v23 = vld [vmem:[%s4633_s3 + $0xa8] sm:$0xff]  ;;  %v329_v24 = vadd.f32 %v201_v17, %v105_v16  ;;  %v109_v31 = vld [vmem:[%s4632_s2 + $0xd0] sm:$0xf]  ;;  %v110_v42 = vld [vmem:[%s4632_s2 + $0xd8] sm:$0xff] }
  0x17   :  { %647 = vmatpush.msra.mxu0 %v313_v45  ;;  %706 = vmatpush.msra.mxu2 %v188_v39  ;;  %v328_v26 = vadd.f32 %v200_v23, %v104_v22  ;;  %v58_v28 = vld [vmem:[%s4635_s1 + $0xe] sm:$0x3]  ;;  %v205_v32 = vld [vmem:[%s4633_s3 + $0xd0] sm:$0xf]  ;;  %v112_v36 = vld [vmem:[%s4632_s2 + $0xe8] sm:$0xf] }
  0x18   :  { %680 = vmatpush.msra.mxu1 %v92_v38  ;;  %3151 = vmatmul.msk.f32.vlgmr.msra.gmra.mxu0 %vm403_vm1, %v277_v46  ;;  %v282_v33 = vadd.f32 %v58_v28, %v26_v27  ;;  %v108_v34 = vld [vmem:[%s4632_s2 + $0xc8] sm:$0xff]  ;;  %v333_v37 = vadd.f32 %v205_v32, %v109_v31  ;;  %v107_v38 = vld [vmem:[%s4632_s2 + $0xc0] sm:$0xff]  ;;  %v59_v45 = vld [vmem:[%s4635_s1 + $0x10] sm:$0x3] }
  0x19   :  { %3155 = vmatmul.msk.f32.vlgmr.msra.gmra.mxu1 %vm403_vm1, %v22_v43  ;;  %3159 = vmatmul.msk.f32.vlgmr.msra.gmra.mxu3 %vm403_vm1, %v278_v49  ;;  %v204_v35 = vld [vmem:[%s4633_s3 + $0xc8] sm:$0xff]  ;;  %v203_v39 = vld [vmem:[%s4633_s3 + $0xc0] sm:$0xff] }
  0x1a   :  { %3170 = vmatpush.msk.msrb.mxu3 %vm407_vm0, %v100_v52  ;;  %3157 = vmatmul.msk.f32.vlgmr.msra.gmra.mxu2 %vm403_vm1, %v54_v44  ;;  %v332_v41 = vadd.f32 %v204_v35, %v108_v34  ;;  %v331_v43 = vadd.f32 %v203_v39, %v107_v38  ;;  %v27_v44 = vld [vmem:[%s4634_s0 + $0x10] sm:$0x3]  ;;  %v208_v46 = vld [vmem:[%s4633_s3 + $0xe8] sm:$0xf]  ;;  %v211_v49 = vld [vmem:[%s4633_s3 + $0x100] sm:$0xf] }
  0x1b   :  { %3166 = vmatpush.msk.msrb.mxu2 %vm407_vm0, %v321_v53  ;;  %3162 = vmatpush.msk.msrb.mxu0 %vm407_vm0, %v97_v47  ;;  %v283_v47 = vadd.f32 %v59_v45, %v27_v44  ;;  %v336_v52 = vadd.f32 %v208_v46, %v112_v36  ;;  %v210_v53 = vld [vmem:[%s4633_s3 + $0xf8] sm:$0xff] }
  0x1c   :  { %3164 = vmatpush.msk.msrb.mxu1 %vm407_vm0, %v193_v48  ;;  %849 = vmatpush.msrb.mxu3 %v99_v56  ;;  %v28_v48 = vld [vmem:[%s4634_s0 + $0x12] sm:$0x3]  ;;  %v114_v56 = vld [vmem:[%s4632_s2 + $0xf8] sm:$0xff] }
  0x1d   :  { %764 = vmatpush.msrb.mxu0 %v96_v50  ;;  %816 = vmatpush.msrb.mxu2 %v320_v57  ;;  %v207_v50 = vld [vmem:[%s4633_s3 + $0xe0] sm:$0xff]  ;;  %v60_v57 = vld [vmem:[%s4635_s1 + $0x12] sm:$0x3] }
  0x1e   :  { %790 = vmatpush.msrb.mxu1 %v192_v51  ;;  %850 = vmatpush.msrb.mxu3 %v98_v58  ;;  %v115_v51 = vld [vmem:[%s4632_s2 + $0x100] sm:$0xf]  ;;  %v209_v58 = vld [vmem:[%s4633_s3 + $0xf0] sm:$0xff] }
  0x1f   :  { %765 = vmatpush.msrb.mxu0 %v95_v54  ;;  %817 = vmatpush.msrb.mxu2 %v319_v59  ;;  %v206_v54 = vld [vmem:[%s4633_s3 + $0xd8] sm:$0xff] }
  0x20   :  { %791 = vmatpush.msrb.mxu1 %v191_v55  ;;  %3163 = vmatmul.msk.f32.vlgmr.msrb.gmra.mxu0 %vm403_vm1, %v23_v60  ;;  %v335_v55 = vadd.f32 %v207_v50, %v111_v40  ;;  %v118_v59 = vld [vmem:[%s4632_s2 + $0x118] sm:$0xf] }
  0x21   :  { %3165 = vmatmul.msk.f32.vlgmr.msrb.gmra.mxu1 %vm403_vm1, %v55_v61  ;;  %3171 = vmatmul.msk.f32.vlgmr.msrb.gmra.mxu3 %vm403_vm1, %v24_v0  ;;  %v214_v60 = vld [vmem:[%s4633_s3 + $0x118] sm:$0xf]  ;;  %v334_v61 = vadd.f32 %v206_v54, %v110_v42  ;;  %v117_v0 = vld [vmem:[%s4632_s2 + $0x110] sm:$0xff] }
  0x22   :  { %3180 = vmatpush.msk.msra.mxu3 %vm407_vm0, %v199_v1  ;;  %3167 = vmatmul.msk.f32.vlgmr.msrb.gmra.mxu2 %vm403_vm1, %v279_v63  ;;  %v284_v63 = vadd.f32 %v60_v57, %v28_v48  ;;  %v213_v1 = vld [vmem:[%s4633_s3 + $0x110] sm:$0xff] }
  0x23   :  { %3178 = vmatpush.msk.msra.mxu2 %vm407_vm0, %v103_v3  ;;  %3172 = vmatpush.msk.msra.mxu0 %vm407_vm0, %v196_v62  ;;  %v113_v62 = vld [vmem:[%s4632_s2 + $0xf0] sm:$0xff]  ;;  %v342_v3 = vadd.f32 %v214_v60, %v118_v59 }
  0x24   :  { %3174 = vmatpush.msk.msra.mxu1 %vm407_vm0, %v324_v4  ;;  %960 = vmatpush.msra.mxu3 %v198_v5  ;;  %v339_v4 = vadd.f32 %v211_v49, %v115_v51  ;;  %v29_v5 = vld [vmem:[%s4634_s0 + $0x14] sm:$0x3] }
  0x25   :  { %875 = vmatpush.msra.mxu0 %v195_v2  ;;  %934 = vmatpush.msra.mxu2 %v102_v8  ;;  %v61_v2 = vld [vmem:[%s4635_s1 + $0x14] sm:$0x3]  ;;  %v341_v8 = vadd.f32 %v213_v1, %v117_v0 }
  0x26   :  { %901 = vmatpush.msra.mxu1 %v323_v7  ;;  %961 = vmatpush.msra.mxu3 %v197_v10  ;;  %v212_v7 = vld [vmem:[%s4633_s3 + $0x108] sm:$0xff] }
  0x27   :  { %876 = vmatpush.msra.mxu0 %v194_v6  ;;  %935 = vmatpush.msra.mxu2 %v101_v14  ;;  %v116_v6 = vld [vmem:[%s4632_s2 + $0x108] sm:$0xff]  ;;  %v285_v14 = vadd.f32 %v61_v2, %v29_v5 }
  0x28   :  { %902 = vmatpush.msra.mxu1 %v322_v13  ;;  %3173 = vmatmul.msk.f32.vlgmr.msra.gmra.mxu0 %vm403_vm1, %v56_v9  ;;  %v338_v9 = vadd.f32 %v210_v53, %v114_v56  ;;  %v340_v10 = vadd.f32 %v212_v7, %v116_v6  ;;  %v337_v13 = vadd.f32 %v209_v58, %v113_v62 }
  0x29   :  { %3175 = vmatmul.msk.f32.vlgmr.msra.gmra.mxu1 %vm403_vm1, %v280_v15  ;;  %3181 = vmatmul.msk.f32.vlgmr.msra.gmra.mxu3 %vm403_vm1, %v57_v18  ;;  %v121_v15 = vld [vmem:[%s4632_s2 + $0x130] sm:$0xf]  ;;  %v120_v18 = vld [vmem:[%s4632_s2 + $0x128] sm:$0xff] }
  0x2a   :  { %3190 = vmatpush.msk.msrb.mxu3 %vm407_vm0, %v330_v19  ;;  %3179 = vmatmul.msk.f32.vlgmr.msra.gmra.mxu2 %vm403_vm1, %v25_v21  ;;  %v216_v19 = vld [vmem:[%s4633_s3 + $0x128] sm:$0xff] }
  0x2b   :  { %3188 = vmatpush.msk.msrb.mxu2 %vm407_vm0, %v202_v12  ;;  %3182 = vmatpush.msk.msrb.mxu0 %vm407_vm0, %v327_v20  ;;  %v62_v12 = vld [vmem:[%s4635_s1 + $0x16] sm:$0x3]  ;;  %v124_v20 = vld [vmem:[%s4632_s2 + $0x148] sm:$0xf] }
  0x2c   :  { %3186 = vmatpush.msk.msrb.mxu1 %vm407_vm0, %v106_v11  ;;  %1071 = vmatpush.msrb.mxu3 %v329_v24  ;;  %v30_v11 = vld [vmem:[%s4634_s0 + $0x16] sm:$0x3]  ;;  %v123_v24 = vld [vmem:[%s4632_s2 + $0x140] sm:$0xff] }
  0x2d   :  { %986 = vmatpush.msrb.mxu0 %v326_v25  ;;  %1045 = vmatpush.msrb.mxu2 %v201_v17  ;;  %v286_v17 = vadd.f32 %v62_v12, %v30_v11  ;;  %v344_v25 = vadd.f32 %v216_v19, %v120_v18 }
  0x2e   :  { %1019 = vmatpush.msrb.mxu1 %v105_v16  ;;  %1072 = vmatpush.msrb.mxu3 %v328_v26  ;;  %v217_v16 = vld [vmem:[%s4633_s3 + $0x130] sm:$0xf]  ;;  %v122_v26 = vld [vmem:[%s4632_s2 + $0x138] sm:$0xff] }
  0x2f   :  { %987 = vmatpush.msrb.mxu0 %v325_v29  ;;  %1046 = vmatpush.msrb.mxu2 %v200_v23  ;;  %v345_v21 = vadd.f32 %v217_v16, %v121_v15  ;;  %v215_v23 = vld [vmem:[%s4633_s3 + $0x120] sm:$0xff]  ;;  %v63_v29 = vld [vmem:[%s4635_s1 + $0x18] sm:$0x3] }
  0x30   :  { %1020 = vmatpush.msrb.mxu1 %v104_v22  ;;  %3183 = vmatmul.msk.f32.vlgmr.msrb.gmra.mxu0 %vm403_vm1, %v281_v30  ;;  %v119_v22 = vld [vmem:[%s4632_s2 + $0x120] sm:$0xff]  ;;  %v220_v30 = vld [vmem:[%s4633_s3 + $0x148] sm:$0xf] }
  0x31   :  { %3187 = vmatmul.msk.f32.vlgmr.msrb.gmra.mxu1 %vm403_vm1, %v26_v27  ;;  %3191 = vmatmul.msk.f32.vlgmr.msrb.gmra.mxu3 %vm403_vm1, %v282_v33  ;;  %v343_v27 = vadd.f32 %v215_v23, %v119_v22  ;;  %v223_v33 = vld [vmem:[%s4633_s3 + $0x160] sm:$0xf] }
  0x32   :  { %3202 = vmatpush.msk.msra.mxu3 %vm407_vm0, %v112_v36  ;;  %3189 = vmatmul.msk.f32.vlgmr.msrb.gmra.mxu2 %vm403_vm1, %v58_v28  ;;  %v31_v28 = vld [vmem:[%s4634_s0 + $0x18] sm:$0x3]  ;;  %v348_v36 = vadd.f32 %v220_v30, %v124_v20 }
  0x33   :  { %3198 = vmatpush.msk.msra.mxu2 %vm407_vm0, %v333_v37  ;;  %3194 = vmatpush.msk.msra.mxu0 %vm407_vm0, %v109_v31  ;;  %v287_v31 = vadd.f32 %v63_v29, %v31_v28  ;;  %v222_v37 = vld [vmem:[%s4633_s3 + $0x158] sm:$0xff] }
  0x34   :  { %3196 = vmatpush.msk.msra.mxu1 %vm407_vm0, %v205_v32  ;;  %1189 = vmatpush.msra.mxu3 %v111_v40  ;;  %v32_v32 = vld [vmem:[%s4634_s0 + $0x1a] sm:$0x3] }
  0x35   :  { %1104 = vmatpush.msra.mxu0 %v108_v34  ;;  %1156 = vmatpush.msra.mxu2 %v332_v41  ;;  %v219_v34 = vld [vmem:[%s4633_s3 + $0x140] sm:$0xff]  ;;  %v126_v40 = vld [vmem:[%s4632_s2 + $0x158] sm:$0xff] }
  0x36   :  { %1130 = vmatpush.msra.mxu1 %v204_v35  ;;  %1190 = vmatpush.msra.mxu3 %v110_v42  ;;  %v127_v35 = vld [vmem:[%s4632_s2 + $0x160] sm:$0xf]  ;;  %v64_v41 = vld [vmem:[%s4635_s1 + $0x1a] sm:$0x3]  ;;  %v221_v42 = vld [vmem:[%s4633_s3 + $0x150] sm:$0xff] }
  0x37   :  { %1105 = vmatpush.msra.mxu0 %v107_v38  ;;  %1157 = vmatpush.msra.mxu2 %v331_v43  ;;  %v218_v38 = vld [vmem:[%s4633_s3 + $0x138] sm:$0xff] }
  0x38   :  { %1131 = vmatpush.msra.mxu1 %v203_v39  ;;  %3195 = vmatmul.msk.f32.vlgmr.msra.gmra.mxu0 %vm403_vm1, %v27_v44  ;;  %v347_v39 = vadd.f32 %v219_v34, %v123_v24  ;;  %v130_v43 = vld [vmem:[%s4632_s2 + $0x178] sm:$0xf] }
  0x39   :  { %3197 = vmatmul.msk.f32.vlgmr.msra.gmra.mxu1 %vm403_vm1, %v59_v45  ;;  %3203 = vmatmul.msk.f32.vlgmr.msra.gmra.mxu3 %vm403_vm1, %v28_v48  ;;  %v226_v44 = vld [vmem:[%s4633_s3 + $0x178] sm:$0xf]  ;;  %v346_v45 = vadd.f32 %v218_v38, %v122_v26  ;;  %v129_v48 = vld [vmem:[%s4632_s2 + $0x170] sm:$0xff] }
  0x3a   :  { %3212 = vmatpush.msk.msrb.mxu3 %vm407_vm0, %v211_v49  ;;  %3199 = vmatmul.msk.f32.vlgmr.msra.gmra.mxu2 %vm403_vm1, %v283_v47  ;;  %v288_v47 = vadd.f32 %v64_v41, %v32_v32  ;;  %v225_v49 = vld [vmem:[%s4633_s3 + $0x170] sm:$0xff] }
  0x3b   :  { %3210 = vmatpush.msk.msrb.mxu2 %vm407_vm0, %v115_v51  ;;  %3204 = vmatpush.msk.msrb.mxu0 %vm407_vm0, %v208_v46  ;;  %v125_v46 = vld [vmem:[%s4632_s2 + $0x150] sm:$0xff]  ;;  %v354_v51 = vadd.f32 %v226_v44, %v130_v43 }
  0x3c   :  { %3206 = vmatpush.msk.msrb.mxu1 %vm407_vm0, %v336_v52  ;;  %1300 = vmatpush.msrb.mxu3 %v210_v53  ;;  %v351_v52 = vadd.f32 %v223_v33, %v127_v35  ;;  %v33_v53 = vld [vmem:[%s4634_s0 + $0x1c] sm:$0x3] }
  0x3d   :  { %1215 = vmatpush.msrb.mxu0 %v207_v50  ;;  %1274 = vmatpush.msrb.mxu2 %v114_v56  ;;  %v65_v50 = vld [vmem:[%s4635_s1 + $0x1c] sm:$0x3]  ;;  %v353_v56 = vadd.f32 %v225_v49, %v129_v48 }
  0x3e   :  { %1241 = vmatpush.msrb.mxu1 %v335_v55  ;;  %1301 = vmatpush.msrb.mxu3 %v209_v58  ;;  %v224_v55 = vld [vmem:[%s4633_s3 + $0x168] sm:$0xff] }
  0x3f   :  { %1216 = vmatpush.msrb.mxu0 %v206_v54  ;;  %1275 = vmatpush.msrb.mxu2 %v113_v62  ;;  %v128_v54 = vld [vmem:[%s4632_s2 + $0x168] sm:$0xff]  ;;  %v289_v62 = vadd.f32 %v65_v50, %v33_v53 }
  0x40   :  { %1242 = vmatpush.msrb.mxu1 %v334_v61  ;;  %3205 = vmatmul.msk.f32.vlgmr.msrb.gmra.mxu0 %vm403_vm1, %v60_v57  ;;  %v350_v57 = vadd.f32 %v222_v37, %v126_v40  ;;  %v352_v58 = vadd.f32 %v224_v55, %v128_v54  ;;  %v349_v61 = vadd.f32 %v221_v42, %v125_v46 }
  0x41   :  { %3207 = vmatmul.msk.f32.vlgmr.msrb.gmra.mxu1 %vm403_vm1, %v284_v63  ;;  %3213 = vmatmul.msk.f32.vlgmr.msrb.gmra.mxu3 %vm403_vm1, %v61_v2  ;;  %v133_v63 = vld [vmem:[%s4632_s2 + $0x190] sm:$0xf]  ;;  %v132_v2 = vld [vmem:[%s4632_s2 + $0x188] sm:$0xff] }
  0x42   :  { %3222 = vmatpush.msk.msra.mxu3 %vm407_vm0, %v342_v3  ;;  %3211 = vmatmul.msk.f32.vlgmr.msrb.gmra.mxu2 %vm403_vm1, %v29_v5  ;;  %v228_v3 = vld [vmem:[%s4633_s3 + $0x188] sm:$0xff] }
  0x43   :  { %3220 = vmatpush.msk.msra.mxu2 %vm407_vm0, %v214_v60  ;;  %3214 = vmatpush.msk.msra.mxu0 %vm407_vm0, %v339_v4  ;;  %v66_v60 = vld [vmem:[%s4635_s1 + $0x1e] sm:$0x3]  ;;  %v136_v4 = vld [vmem:[%s4632_s2 + $0x1a8] sm:$0xf] }
  0x44   :  { %3218 = vmatpush.msk.msra.mxu1 %vm407_vm0, %v118_v59  ;;  %1411 = vmatpush.msra.mxu3 %v341_v8  ;;  %v34_v59 = vld [vmem:[%s4634_s0 + $0x1e] sm:$0x3]  ;;  %v135_v8 = vld [vmem:[%s4632_s2 + $0x1a0] sm:$0xff] }
  0x45   :  { %1326 = vmatpush.msra.mxu0 %v338_v9  ;;  %1385 = vmatpush.msra.mxu2 %v213_v1  ;;  %v290_v1 = vadd.f32 %v66_v60, %v34_v59  ;;  %v356_v9 = vadd.f32 %v228_v3, %v132_v2 }
  0x46   :  { %1359 = vmatpush.msra.mxu1 %v117_v0  ;;  %1412 = vmatpush.msra.mxu3 %v340_v10  ;;  %v229_v0 = vld [vmem:[%s4633_s3 + $0x190] sm:$0xf]  ;;  %v134_v10 = vld [vmem:[%s4632_s2 + $0x198] sm:$0xff] }
  0x47   :  { %1327 = vmatpush.msra.mxu0 %v337_v13  ;;  %1386 = vmatpush.msra.mxu2 %v212_v7  ;;  %v357_v5 = vadd.f32 %v229_v0, %v133_v63  ;;  %v227_v7 = vld [vmem:[%s4633_s3 + $0x180] sm:$0xff] }
  0x48   :  { %1360 = vmatpush.msra.mxu1 %v116_v6  ;;  %3215 = vmatmul.msk.f32.vlgmr.msra.gmra.mxu0 %vm403_vm1, %v285_v14  ;;  %v131_v6 = vld [vmem:[%s4632_s2 + $0x180] sm:$0xff]  ;;  %v232_v14 = vld [vmem:[%s4633_s3 + $0x1a8] sm:$0xf] }
  0x49   :  { %3219 = vmatmul.msk.f32.vlgmr.msra.gmra.mxu1 %vm403_vm1, %v30_v11  ;;  %3223 = vmatmul.msk.f32.vlgmr.msra.gmra.mxu3 %vm403_vm1, %v286_v17  ;;  %v355_v11 = vadd.f32 %v227_v7, %v131_v6  ;;  %v67_v13 = vld [vmem:[%s4635_s1 + $0x20] sm:$0x3] }
  0x4a   :  { %3234 = vmatpush.msk.msrb.mxu3 %vm407_vm0, %v124_v20  ;;  %3221 = vmatmul.msk.f32.vlgmr.msra.gmra.mxu2 %vm403_vm1, %v62_v12  ;;  %v35_v12 = vld [vmem:[%s4634_s0 + $0x20] sm:$0x3]  ;;  %v360_v20 = vadd.f32 %v232_v14, %v136_v4 }
  0x4b   :  { %3230 = vmatpush.msk.msrb.mxu2 %vm407_vm0, %v345_v21  ;;  %3226 = vmatpush.msk.msrb.mxu0 %vm407_vm0, %v121_v15  ;;  %v291_v15 = vadd.f32 %v67_v13, %v35_v12  ;;  %v235_v17 = vld [vmem:[%s4633_s3 + $0x1c0] sm:$0xf]  ;;  %v234_v21 = vld [vmem:[%s4633_s3 + $0x1b8] sm:$0xff] }
  0x4c   :  { %3228 = vmatpush.msk.msrb.mxu1 %vm407_vm0, %v217_v16  ;;  %1529 = vmatpush.msrb.mxu3 %v123_v24  ;;  %v36_v16 = vld [vmem:[%s4634_s0 + $0x22] sm:$0x3]  ;;  %v138_v24 = vld [vmem:[%s4632_s2 + $0x1b8] sm:$0xff] }
  0x4d   :  { %1444 = vmatpush.msrb.mxu0 %v120_v18  ;;  %1496 = vmatpush.msrb.mxu2 %v344_v25  ;;  %v231_v18 = vld [vmem:[%s4633_s3 + $0x1a0] sm:$0xff] }
  0x4e   :  { %1470 = vmatpush.msrb.mxu1 %v216_v19  ;;  %1530 = vmatpush.msrb.mxu3 %v122_v26  ;;  %v139_v19 = vld [vmem:[%s4632_s2 + $0x1c0] sm:$0xf]  ;;  %v233_v26 = vld [vmem:[%s4633_s3 + $0x1b0] sm:$0xff] }
  0x4f   :  { %1445 = vmatpush.msrb.mxu0 %v119_v22  ;;  %1497 = vmatpush.msrb.mxu2 %v343_v27  ;;  %v230_v22 = vld [vmem:[%s4633_s3 + $0x198] sm:$0xff]  ;;  %v68_v25 = vld [vmem:[%s4635_s1 + $0x22] sm:$0x3] }
  0x50   :  { %1471 = vmatpush.msrb.mxu1 %v215_v23  ;;  %3227 = vmatmul.msk.f32.vlgmr.msrb.gmra.mxu0 %vm403_vm1, %v31_v28  ;;  %v359_v23 = vadd.f32 %v231_v18, %v135_v8  ;;  %v142_v27 = vld [vmem:[%s4632_s2 + $0x1d8] sm:$0xf] }
  0x51   :  { %3229 = vmatmul.msk.f32.vlgmr.msrb.gmra.mxu1 %vm403_vm1, %v63_v29  ;;  %3235 = vmatmul.msk.f32.vlgmr.msrb.gmra.mxu3 %vm403_vm1, %v32_v32  ;;  %v238_v28 = vld [vmem:[%s4633_s3 + $0x1d8] sm:$0xf]  ;;  %v358_v29 = vadd.f32 %v230_v22, %v134_v10  ;;  %v141_v32 = vld [vmem:[%s4632_s2 + $0x1d0] sm:$0xff] }
  0x52   :  { %3244 = vmatpush.msk.msra.mxu3 %vm407_vm0, %v223_v33  ;;  %3231 = vmatmul.msk.f32.vlgmr.msrb.gmra.mxu2 %vm403_vm1, %v287_v31  ;;  %v292_v31 = vadd.f32 %v68_v25, %v36_v16  ;;  %v237_v33 = vld [vmem:[%s4633_s3 + $0x1d0] sm:$0xff] }
  0x53   :  { %3242 = vmatpush.msk.msra.mxu2 %vm407_vm0, %v127_v35  ;;  %3236 = vmatpush.msk.msra.mxu0 %vm407_vm0, %v220_v30  ;;  %v137_v30 = vld [vmem:[%s4632_s2 + $0x1b0] sm:$0xff]  ;;  %v366_v35 = vadd.f32 %v238_v28, %v142_v27 }
  0x54   :  { %3238 = vmatpush.msk.msra.mxu1 %vm407_vm0, %v348_v36  ;;  %1640 = vmatpush.msra.mxu3 %v222_v37  ;;  %v363_v36 = vadd.f32 %v235_v17, %v139_v19  ;;  %v37_v37 = vld [vmem:[%s4634_s0 + $0x24] sm:$0x3] }
  0x55   :  { %1555 = vmatpush.msra.mxu0 %v219_v34  ;;  %1614 = vmatpush.msra.mxu2 %v126_v40  ;;  %v69_v34 = vld [vmem:[%s4635_s1 + $0x24] sm:$0x3]  ;;  %v365_v40 = vadd.f32 %v237_v33, %v141_v32 }
  0x56   :  { %1581 = vmatpush.msra.mxu1 %v347_v39  ;;  %1641 = vmatpush.msra.mxu3 %v221_v42  ;;  %v236_v39 = vld [vmem:[%s4633_s3 + $0x1c8] sm:$0xff] }
  0x57   :  { %1556 = vmatpush.msra.mxu0 %v218_v38  ;;  %1615 = vmatpush.msra.mxu2 %v125_v46  ;;  %v140_v38 = vld [vmem:[%s4632_s2 + $0x1c8] sm:$0xff]  ;;  %v293_v46 = vadd.f32 %v69_v34, %v37_v37 }
  0x58   :  { %1582 = vmatpush.msra.mxu1 %v346_v45  ;;  %3237 = vmatmul.msk.f32.vlgmr.msra.gmra.mxu0 %vm403_vm1, %v64_v41  ;;  %v362_v41 = vadd.f32 %v234_v21, %v138_v24  ;;  %v364_v42 = vadd.f32 %v236_v39, %v140_v38  ;;  %v361_v45 = vadd.f32 %v233_v26, %v137_v30 }
  0x59   :  { %3239 = vmatmul.msk.f32.vlgmr.msra.gmra.mxu1 %vm403_vm1, %v288_v47  ;;  %3245 = vmatmul.msk.f32.vlgmr.msra.gmra.mxu3 %vm403_vm1, %v65_v50  ;;  %v145_v47 = vld [vmem:[%s4632_s2 + $0x1f0] sm:$0xf]  ;;  %v144_v50 = vld [vmem:[%s4632_s2 + $0x1e8] sm:$0xff] }
  0x5a   :  { %3254 = vmatpush.msk.msrb.mxu3 %vm407_vm0, %v354_v51  ;;  %3243 = vmatmul.msk.f32.vlgmr.msra.gmra.mxu2 %vm403_vm1, %v33_v53  ;;  %v240_v51 = vld [vmem:[%s4633_s3 + $0x1e8] sm:$0xff] }
  0x5b   :  { %3252 = vmatpush.msk.msrb.mxu2 %vm407_vm0, %v226_v44  ;;  %3246 = vmatpush.msk.msrb.mxu0 %vm407_vm0, %v351_v52  ;;  %v70_v44 = vld [vmem:[%s4635_s1 + $0x26] sm:$0x3]  ;;  %v148_v52 = vld [vmem:[%s4632_s2 + $0x208] sm:$0xf] }
  0x5c   :  { %3250 = vmatpush.msk.msrb.mxu1 %vm407_vm0, %v130_v43  ;;  %1751 = vmatpush.msrb.mxu3 %v353_v56  ;;  %v38_v43 = vld [vmem:[%s4634_s0 + $0x26] sm:$0x3] }
  0x5d   :  { %1666 = vmatpush.msrb.mxu0 %v350_v57  ;;  %1725 = vmatpush.msrb.mxu2 %v225_v49  ;;  %v294_v49 = vadd.f32 %v70_v44, %v38_v43  ;;  %v147_v56 = vld [vmem:[%s4632_s2 + $0x200] sm:$0xff]  ;;  %v368_v57 = vadd.f32 %v240_v51, %v144_v50 }
  0x5e   :  { %1699 = vmatpush.msrb.mxu1 %v129_v48  ;;  %1752 = vmatpush.msrb.mxu3 %v352_v58  ;;  %v241_v48 = vld [vmem:[%s4633_s3 + $0x1f0] sm:$0xf]  ;;  %v146_v58 = vld [vmem:[%s4632_s2 + $0x1f8] sm:$0xff] }
  0x5f   :  { %1667 = vmatpush.msrb.mxu0 %v349_v61  ;;  %1726 = vmatpush.msrb.mxu2 %v224_v55  ;;  %v369_v53 = vadd.f32 %v241_v48, %v145_v47  ;;  %v239_v55 = vld [vmem:[%s4633_s3 + $0x1e0] sm:$0xff]  ;;  %v71_v61 = vld [vmem:[%s4635_s1 + $0x28] sm:$0x3] }
  0x60   :  { %1700 = vmatpush.msrb.mxu1 %v128_v54  ;;  %3247 = vmatmul.msk.f32.vlgmr.msrb.gmra.mxu0 %vm403_vm1, %v289_v62  ;;  %v143_v54 = vld [vmem:[%s4632_s2 + $0x1e0] sm:$0xff]  ;;  %v244_v62 = vld [vmem:[%s4633_s3 + $0x208] sm:$0xf] }
  0x61   :  { %3251 = vmatmul.msk.f32.vlgmr.msrb.gmra.mxu1 %vm403_vm1, %v34_v59  ;;  %3255 = vmatmul.msk.f32.vlgmr.msrb.gmra.mxu3 %vm403_vm1, %v290_v1  ;;  %v367_v59 = vadd.f32 %v239_v55, %v143_v54  ;;  %v247_v1 = vld [vmem:[%s4633_s3 + $0x220] sm:$0xf] }
  0x62   :  { %3266 = vmatpush.msk.msra.mxu3 %vm407_vm0, %v136_v4  ;;  %3253 = vmatmul.msk.f32.vlgmr.msrb.gmra.mxu2 %vm403_vm1, %v66_v60  ;;  %v39_v60 = vld [vmem:[%s4634_s0 + $0x28] sm:$0x3]  ;;  %v372_v4 = vadd.f32 %v244_v62, %v148_v52 }
  0x63   :  { %3262 = vmatpush.msk.msra.mxu2 %vm407_vm0, %v357_v5  ;;  %3258 = vmatpush.msk.msra.mxu0 %vm407_vm0, %v133_v63  ;;  %v295_v63 = vadd.f32 %v71_v61, %v39_v60  ;;  %v246_v5 = vld [vmem:[%s4633_s3 + $0x218] sm:$0xff] }
  0x64   :  { %3260 = vmatpush.msk.msra.mxu1 %vm407_vm0, %v229_v0  ;;  %1869 = vmatpush.msra.mxu3 %v135_v8  ;;  %v40_v0 = vld [vmem:[%s4634_s0 + $0x2a] sm:$0x3]  ;;  %v150_v8 = vld [vmem:[%s4632_s2 + $0x218] sm:$0xff] }
  0x65   :  { %1784 = vmatpush.msra.mxu0 %v132_v2  ;;  %1836 = vmatpush.msra.mxu2 %v356_v9  ;;  %v243_v2 = vld [vmem:[%s4633_s3 + $0x200] sm:$0xff]  ;;  %v72_v9 = vld [vmem:[%s4635_s1 + $0x2a] sm:$0x3] }
  0x66   :  { %1810 = vmatpush.msra.mxu1 %v228_v3  ;;  %1870 = vmatpush.msra.mxu3 %v134_v10  ;;  %v151_v3 = vld [vmem:[%s4632_s2 + $0x220] sm:$0xf]  ;;  %v245_v10 = vld [vmem:[%s4633_s3 + $0x210] sm:$0xff] }
  0x67   :  { %1785 = vmatpush.msra.mxu0 %v131_v6  ;;  %1837 = vmatpush.msra.mxu2 %v355_v11  ;;  %v242_v6 = vld [vmem:[%s4633_s3 + $0x1f8] sm:$0xff] }
  0x68   :  { %1811 = vmatpush.msra.mxu1 %v227_v7  ;;  %3259 = vmatmul.msk.f32.vlgmr.msra.gmra.mxu0 %vm403_vm1, %v35_v12  ;;  %v371_v7 = vadd.f32 %v243_v2, %v147_v56  ;;  %v154_v11 = vld [vmem:[%s4632_s2 + $0x238] sm:$0xf] }
  0x69   :  { %3261 = vmatmul.msk.f32.vlgmr.msra.gmra.mxu1 %vm403_vm1, %v67_v13  ;;  %3267 = vmatmul.msk.f32.vlgmr.msra.gmra.mxu3 %vm403_vm1, %v36_v16  ;;  %v250_v12 = vld [vmem:[%s4633_s3 + $0x238] sm:$0xf]  ;;  %v370_v13 = vadd.f32 %v242_v6, %v146_v58 }
  0x6a   :  { %3276 = vmatpush.msk.msrb.mxu3 %vm407_vm0, %v235_v17  ;;  %3263 = vmatmul.msk.f32.vlgmr.msra.gmra.mxu2 %vm403_vm1, %v291_v15  ;;  %v296_v17 = vadd.f32 %v72_v9, %v40_v0 }
  0x6b   :  { %3274 = vmatpush.msk.msrb.mxu2 %vm407_vm0, %v139_v19  ;;  %3268 = vmatpush.msk.msrb.mxu0 %vm407_vm0, %v232_v14  ;;  %v149_v14 = vld [vmem:[%s4632_s2 + $0x210] sm:$0xff] }
  0x6c   :  { %3270 = vmatpush.msk.msrb.mxu1 %vm407_vm0, %v360_v20  ;;  %1980 = vmatpush.msrb.mxu3 %v234_v21  ;;  %v249_v19 = vld [vmem:[%s4633_s3 + $0x230] sm:$0xff]  ;;  %v73_v21 = vld [vmem:[%s4635_s1 + $0x2c] sm:$0x3] }
  0x6d   :  { %1895 = vmatpush.msrb.mxu0 %v231_v18  ;;  %1954 = vmatpush.msrb.mxu2 %v138_v24  ;;  %v153_v18 = vld [vmem:[%s4632_s2 + $0x230] sm:$0xff]  ;;  %v41_v24 = vld [vmem:[%s4634_s0 + $0x2c] sm:$0x3] }
  0x6e   :  { %1921 = vmatpush.msrb.mxu1 %v359_v23  ;;  %1981 = vmatpush.msrb.mxu3 %v233_v26  ;;  %v375_v23 = vadd.f32 %v247_v1, %v151_v3  ;;  %v248_v26 = vld [vmem:[%s4633_s3 + $0x228] sm:$0xff] }
  0x6f   :  { %1896 = vmatpush.msrb.mxu0 %v230_v22  ;;  %1955 = vmatpush.msrb.mxu2 %v137_v30  ;;  %v378_v22 = vadd.f32 %v250_v12, %v154_v11  ;;  %v42_v30 = vld [vmem:[%s4634_s0 + $0x2e] sm:$0x3] }
  0x70   :  { %1922 = vmatpush.msrb.mxu1 %v358_v29  ;;  %3269 = vmatmul.msk.f32.vlgmr.msrb.gmra.mxu0 %vm403_vm1, %v68_v25  ;;  %v152_v25 = vld [vmem:[%s4632_s2 + $0x228] sm:$0xff] }
  0x71   :  { %3271 = vmatmul.msk.f32.vlgmr.msrb.gmra.mxu1 %vm403_vm1, %v292_v31  ;;  %3277 = vmatmul.msk.f32.vlgmr.msrb.gmra.mxu3 %vm403_vm1, %v69_v34  ;;  %v376_v29 = vadd.f32 %v248_v26, %v152_v25  ;;  %v74_v31 = vld [vmem:[%s4635_s1 + $0x2e] sm:$0x3] }
  0x72   :  { %3286 = vmatpush.msk.msra.mxu3 %vm407_vm0, %v366_v35  ;;  %3275 = vmatmul.msk.f32.vlgmr.msrb.gmra.mxu2 %vm403_vm1, %v37_v37  ;;  %v157_v35 = vld [vmem:[%s4632_s2 + $0x250] sm:$0xf] }
  0x73   :  { %3284 = vmatpush.msk.msra.mxu2 %vm407_vm0, %v238_v28  ;;  %3278 = vmatpush.msk.msra.mxu0 %vm407_vm0, %v363_v36  ;;  %v374_v28 = vadd.f32 %v246_v5, %v150_v8  ;;  %v253_v36 = vld [vmem:[%s4633_s3 + $0x250] sm:$0xf] }
  0x74   :  { %3282 = vmatpush.msk.msra.mxu1 %vm407_vm0, %v142_v27  ;;  %2091 = vmatpush.msra.mxu3 %v365_v40  ;;  %v377_v27 = vadd.f32 %v249_v19, %v153_v18 }
  0x75   :  { %2006 = vmatpush.msra.mxu0 %v362_v41  ;;  %2065 = vmatpush.msra.mxu2 %v237_v33  ;;  %v297_v33 = vadd.f32 %v73_v21, %v41_v24 }
  0x76   :  { %2039 = vmatpush.msra.mxu1 %v141_v32  ;;  %2092 = vmatpush.msra.mxu3 %v364_v42  ;;  %v373_v32 = vadd.f32 %v245_v10, %v149_v14 }
  0x77   :  { %2007 = vmatpush.msra.mxu0 %v361_v45  ;;  %2066 = vmatpush.msra.mxu2 %v236_v39  ;;  %v298_v39 = vadd.f32 %v74_v31, %v42_v30 }
  0x78   :  { %2040 = vmatpush.msra.mxu1 %v140_v38  ;;  %3279 = vmatmul.msk.f32.vlgmr.msra.gmra.mxu0 %vm403_vm1, %v293_v46  ;;  %v160_v46 = vld [vmem:[%s4632_s2 + $0x268] sm:$0xf] }
  0x79   :  { %3283 = vmatmul.msk.f32.vlgmr.msra.gmra.mxu1 %vm403_vm1, %v38_v43  ;;  %3287 = vmatmul.msk.f32.vlgmr.msra.gmra.mxu3 %vm403_vm1, %v294_v49  ;;  %v156_v43 = vld [vmem:[%s4632_s2 + $0x248] sm:$0xff]  ;;  %v155_v49 = vld [vmem:[%s4632_s2 + $0x240] sm:$0xff] }
  0x7a   :  { %3298 = vmatpush.msk.msrb.mxu3 %vm407_vm0, %v148_v52  ;;  %3285 = vmatmul.msk.f32.vlgmr.msra.gmra.mxu2 %vm403_vm1, %v70_v44  ;;  %v252_v44 = vld [vmem:[%s4633_s3 + $0x248] sm:$0xff]  ;;  %v159_v52 = vld [vmem:[%s4632_s2 + $0x260] sm:$0xff] }
  0x7b   :  { %3294 = vmatpush.msk.msrb.mxu2 %vm407_vm0, %v369_v53  ;;  %3290 = vmatpush.msk.msrb.mxu0 %vm407_vm0, %v145_v47  ;;  %v381_v47 = vadd.f32 %v253_v36, %v157_v35  ;;  %v380_v53 = vadd.f32 %v252_v44, %v156_v43 }
  0x7c   :  { %3292 = vmatpush.msk.msrb.mxu1 %vm407_vm0, %v241_v48  ;;  %2209 = vmatpush.msrb.mxu3 %v147_v56  ;;  %v43_v56 = vld [vmem:[%s4634_s0 + $0x30] sm:$0x3] }
  0x7d   :  { %2124 = vmatpush.msrb.mxu0 %v144_v50  ;;  %2176 = vmatpush.msrb.mxu2 %v368_v57  ;;  %v251_v50 = vld [vmem:[%s4633_s3 + $0x240] sm:$0xff]  ;;  %v75_v57 = vld [vmem:[%s4635_s1 + $0x30] sm:$0x3] }
  0x7e   :  { %2150 = vmatpush.msrb.mxu1 %v240_v51  ;;  %2210 = vmatpush.msrb.mxu3 %v146_v58 }
  0x7f   :  { %2125 = vmatpush.msrb.mxu0 %v143_v54  ;;  %2177 = vmatpush.msrb.mxu2 %v367_v59  ;;  %v158_v54 = vld [vmem:[%s4632_s2 + $0x258] sm:$0xff] }
  0x80   :  { %2151 = vmatpush.msrb.mxu1 %v239_v55  ;;  %3291 = vmatmul.msk.f32.vlgmr.msrb.gmra.mxu0 %vm403_vm1, %v39_v60  ;;  %v379_v55 = vadd.f32 %v251_v50, %v155_v49 }
  0x81   :  { %3293 = vmatmul.msk.f32.vlgmr.msrb.gmra.mxu1 %vm403_vm1, %v71_v61  ;;  %3299 = vmatmul.msk.f32.vlgmr.msrb.gmra.mxu3 %vm403_vm1, %v40_v0  ;;  %v256_v61 = vld [vmem:[%s4633_s3 + $0x268] sm:$0xf] }
  0x82   :  { %3308 = vmatpush.msk.msra.mxu3 %vm407_vm0, %v247_v1  ;;  %3295 = vmatmul.msk.f32.vlgmr.msrb.gmra.mxu2 %vm403_vm1, %v295_v63  ;;  %v299_v1 = vadd.f32 %v75_v57, %v43_v56 }
  0x83   :  { %3306 = vmatpush.msk.msra.mxu2 %vm407_vm0, %v151_v3  ;;  %3300 = vmatpush.msk.msra.mxu0 %vm407_vm0, %v244_v62  ;;  %v259_v3 = vld [vmem:[%s4633_s3 + $0x280] sm:$0xf] }
  0x84   :  { %3302 = vmatpush.msk.msra.mxu1 %vm407_vm0, %v372_v4  ;;  %2320 = vmatpush.msra.mxu3 %v246_v5  ;;  %v255_v4 = vld [vmem:[%s4633_s3 + $0x260] sm:$0xff] }
  0x85   :  { %v428_v15 = vpop.f32.mrf.mxu0  ;;  %v454_v16 = vpop.f32.mrf.mxu1  ;;  %2235 = vmatpush.msra.mxu0 %v243_v2  ;;  %2294 = vmatpush.msra.mxu2 %v150_v8  ;;  %v44_v2 = vld [vmem:[%s4634_s0 + $0x32] sm:$0x3]  ;;  %v258_v8 = vld [vmem:[%s4633_s3 + $0x278] sm:$0xff] }
  0x86   :  { %v483_v20 = vsub.f32 %v428_v15, %v454_v16  ;;  %2261 = vmatpush.msra.mxu1 %v371_v7  ;;  %2321 = vmatpush.msra.mxu3 %v245_v10  ;;  %v384_v7 = vadd.f32 %v256_v61, %v160_v46  ;;  %v383_v10 = vadd.f32 %v255_v4, %v159_v52 }
  0x87   :  { %2236 = vmatpush.msra.mxu0 %v242_v6  ;;  %2295 = vmatpush.msra.mxu2 %v149_v14  ;;  %v163_v6 = vld [vmem:[%s4632_s2 + $0x280] sm:$0xf]  ;;  %v166_v14 = vld [vmem:[%s4632_s2 + $0x298] sm:$0xf] }
  0x88   :  { %485 = vst.msk [vmem:[%s4636_s4] sm:$0x3] %vm484_vm2, %v483_v20  ;;  %2262 = vmatpush.msra.mxu1 %v370_v13  ;;  %3301 = vmatmul.msk.f32.vlgmr.msra.gmra.mxu0 %vm403_vm1, %v72_v9  ;;  %v254_v9 = vld [vmem:[%s4633_s3 + $0x258] sm:$0xff]  ;;  %v257_v13 = vld [vmem:[%s4633_s3 + $0x270] sm:$0xff] }
  0x89   :  { %3303 = vmatmul.msk.f32.vlgmr.msra.gmra.mxu1 %vm403_vm1, %v296_v17  ;;  %3309 = vmatmul.msk.f32.vlgmr.msra.gmra.mxu3 %vm403_vm1, %v73_v21  ;;  %v382_v17 = vadd.f32 %v254_v9, %v158_v54 }
  0x8a   :  { %3318 = vmatpush.msk.msrb.mxu3 %vm407_vm0, %v378_v22  ;;  %3307 = vmatmul.msk.f32.vlgmr.msra.gmra.mxu2 %vm403_vm1, %v41_v24  ;;  %v261_v24 = vld [vmem:[%s4633_s3 + $0x290] sm:$0xff] }
  0x8b   :  { %3316 = vmatpush.msk.msrb.mxu2 %vm407_vm0, %v250_v12  ;;  %3310 = vmatpush.msk.msrb.mxu0 %vm407_vm0, %v375_v23  ;;  %v76_v12 = vld [vmem:[%s4635_s1 + $0x32] sm:$0x3] }
  0x8c   :  { %v512_v34 = vpop.f32.mrf.mxu3  ;;  %3314 = vmatpush.msk.msrb.mxu1 %vm407_vm0, %v154_v11  ;;  %2431 = vmatpush.msrb.mxu3 %v377_v27  ;;  %v162_v11 = vld [vmem:[%s4632_s2 + $0x278] sm:$0xff]  ;;  %v300_v22 = vadd.f32 %v76_v12, %v44_v2  ;;  %v165_v23 = vld [vmem:[%s4632_s2 + $0x290] sm:$0xff] }
  0x8d   :  { %v480_v37 = vpop.f32.mrf.mxu2  ;;  %v538_v38 = vpop.f32.mrf.mxu0  ;;  %2346 = vmatpush.msrb.mxu0 %v374_v28  ;;  %2405 = vmatpush.msrb.mxu2 %v249_v19  ;;  %v77_v27 = vld [vmem:[%s4635_s1 + $0x34] sm:$0x3] }
  0x8e   :  { %v486_v40 = vsub.f32 %v480_v37, %v428_v15  ;;  %v567_v41 = vsub.f32 %v512_v34, %v538_v38  ;;  %v564_v42 = vpop.f32.mrf.mxu1  ;;  %2379 = vmatpush.msrb.mxu1 %v153_v18  ;;  %2432 = vmatpush.msrb.mxu3 %v376_v29  ;;  %v262_v15 = vld [vmem:[%s4633_s3 + $0x298] sm:$0xf]  ;;  %v161_v18 = vld [vmem:[%s4632_s2 + $0x270] sm:$0xff]  ;;  %v387_v29 = vadd.f32 %v259_v3, %v163_v6 }
  0x8f   :  { %v570_v45 = vsub.f32 %v564_v42, %v512_v34  ;;  %2347 = vmatpush.msrb.mxu0 %v373_v32  ;;  %2406 = vmatpush.msrb.mxu2 %v248_v26  ;;  %v390_v28 = vadd.f32 %v262_v15, %v166_v14  ;;  %v45_v32 = vld [vmem:[%s4634_s0 + $0x34] sm:$0x3]  ;;  %v260_v34 = vld [vmem:[%s4633_s3 + $0x288] sm:$0xff] }
  0x90   :  { %v487_v48 = vsub.f32 %v486_v40, %v454_v16  ;;  %3144 = vst.msk [vmem:[%s4636_s4 + $0x2] sm:$0x3] %vm484_vm2, %v567_v41  ;;  %2380 = vmatpush.msrb.mxu1 %v152_v25  ;;  %3311 = vmatmul.msk.f32.vlgmr.msrb.gmra.mxu0 %vm403_vm1, %v297_v33  ;;  %v164_v33 = vld [vmem:[%s4632_s2 + $0x288] sm:$0xff]  ;;  %v385_v40 = vadd.f32 %v257_v13, %v161_v18 }
  0x91   :  { %v571_v51 = vsub.f32 %v570_v45, %v538_v38  ;;  %3315 = vmatmul.msk.f32.vlgmr.msrb.gmra.mxu1 %vm403_vm1, %v42_v30  ;;  %3319 = vmatmul.msk.f32.vlgmr.msrb.gmra.mxu3 %vm403_vm1, %v298_v39  ;;  %v388_v37 = vadd.f32 %v260_v34, %v164_v33  ;;  %v46_v38 = vld [vmem:[%s4634_s0 + $0x36] sm:$0x3]  ;;  %v301_v41 = vadd.f32 %v77_v27, %v45_v32 }
  0x92   :  { %488 = vst.msk [vmem:[%s4637_s5] sm:$0x3] %vm484_vm2, %v487_v48  ;;  %3330 = vmatpush.msk.msra.mxu3 %vm407_vm0, %v160_v46  ;;  %3317 = vmatmul.msk.f32.vlgmr.msrb.gmra.mxu2 %vm403_vm1, %v74_v31  ;;  %v78_v39 = vld [vmem:[%s4635_s1 + $0x36] sm:$0x3] }
  0x93   :  { %3145 = vst.msk [vmem:[%s4637_s5 + $0x2] sm:$0x3] %vm484_vm2, %v571_v51  ;;  %3326 = vmatpush.msk.msra.mxu2 %vm407_vm0, %v381_v47  ;;  %3322 = vmatpush.msk.msra.mxu0 %vm407_vm0, %v157_v35  ;;  %v389_v35 = vadd.f32 %v261_v24, %v165_v23  ;;  %v302_v47 = vadd.f32 %v78_v39, %v46_v38  ;;  %v168_v51 = vld [vmem:[%s4632_s2 + $0x2a8] sm:$0xff] }
  0x94   :  { %v623_v58 = vpop.f32.mrf.mxu3  ;;  %3324 = vmatpush.msk.msra.mxu1 %vm407_vm0, %v253_v36  ;;  %2549 = vmatpush.msra.mxu3 %v159_v52  ;;  %v386_v36 = vadd.f32 %v258_v8, %v162_v11  ;;  %v264_v52 = vld [vmem:[%s4633_s3 + $0x2a8] sm:$0xff] }
  0x95   :  { %v597_v59 = vpop.f32.mrf.mxu2  ;;  %v649_v60 = vpop.f32.mrf.mxu0  ;;  %2464 = vmatpush.msra.mxu0 %v156_v43  ;;  %2516 = vmatpush.msra.mxu2 %v380_v53  ;;  %v169_v43 = vld [vmem:[%s4632_s2 + $0x2b0] sm:$0xf] }
  0x96   :  { %v652_v62 = vsub.f32 %v597_v59, %v623_v58  ;;  %v655_v63 = vsub.f32 %v649_v60, %v597_v59  ;;  %v682_v0 = vpop.f32.mrf.mxu1  ;;  %2490 = vmatpush.msra.mxu1 %v252_v44  ;;  %2550 = vmatpush.msra.mxu3 %v158_v54  ;;  %v265_v44 = vld [vmem:[%s4633_s3 + $0x2b0] sm:$0xf]  ;;  %v172_v54 = vld [vmem:[%s4632_s2 + $0x2c8] sm:$0xf]  ;;  %v171_v60 = vld [vmem:[%s4632_s2 + $0x2c0] sm:$0xff] }
  0x97   :  { %2465 = vmatpush.msra.mxu0 %v155_v49  ;;  %2517 = vmatpush.msra.mxu2 %v379_v55  ;;  %v393_v55 = vadd.f32 %v265_v44, %v169_v43 }
  0x98   :  { %3152 = vst.msk [vmem:[%s4636_s4 + $0x4] sm:$0x3] %vm484_vm2, %v652_v62  ;;  %v656_v5 = vsub.f32 %v655_v63, %v623_v58  ;;  %2491 = vmatpush.msra.mxu1 %v251_v50  ;;  %3323 = vmatmul.msk.f32.vlgmr.msra.gmra.mxu0 %vm403_vm1, %v43_v56  ;;  %v263_v58 = vld [vmem:[%s4633_s3 + $0x2a0] sm:$0xff]  ;;  %v170_v62 = vld [vmem:[%s4632_s2 + $0x2b8] sm:$0xff] }
  0x99   :  { %3325 = vmatmul.msk.f32.vlgmr.msra.gmra.mxu1 %vm403_vm1, %v75_v57  ;;  %3331 = vmatmul.msk.f32.vlgmr.msra.gmra.mxu3 %vm403_vm1, %v44_v2  ;;  %v167_v57 = vld [vmem:[%s4632_s2 + $0x2a0] sm:$0xff] }
  0x9a   :  { %3153 = vst.msk [vmem:[%s4637_s5 + $0x4] sm:$0x3] %vm484_vm2, %v656_v5  ;;  %3340 = vmatpush.msk.msrb.mxu3 %vm407_vm0, %v259_v3  ;;  %3327 = vmatmul.msk.f32.vlgmr.msra.gmra.mxu2 %vm403_vm1, %v299_v1  ;;  %v391_v63 = vadd.f32 %v263_v58, %v167_v57  ;;  %v79_v1 = vld [vmem:[%s4635_s1 + $0x38] sm:$0x3]  ;;  %v268_v5 = vld [vmem:[%s4633_s3 + $0x2c8] sm:$0xf] }
  0x9b   :  { %3338 = vmatpush.msk.msrb.mxu2 %vm407_vm0, %v163_v6  ;;  %3332 = vmatpush.msk.msrb.mxu0 %vm407_vm0, %v256_v61  ;;  %v392_v61 = vadd.f32 %v264_v52, %v168_v51 }
  0x9c   :  { %v734_v16 = vpop.f32.mrf.mxu3  ;;  %3334 = vmatpush.msk.msrb.mxu1 %vm407_vm0, %v384_v7  ;;  %2660 = vmatpush.msrb.mxu3 %v258_v8 }
  0x9d   :  { %v740_v19 = vsub.f32 %v734_v16, %v682_v0  ;;  %v708_v20 = vpop.f32.mrf.mxu2  ;;  %v767_v21 = vpop.f32.mrf.mxu0  ;;  %2575 = vmatpush.msrb.mxu0 %v255_v4  ;;  %2634 = vmatpush.msrb.mxu2 %v162_v11  ;;  %v271_v11 = vld [vmem:[%s4633_s3 + $0x2e0] sm:$0xf]  ;;  %v270_v16 = vld [vmem:[%s4633_s3 + $0x2d8] sm:$0xff] }
  0x9e   :  { %v737_v25 = vsub.f32 %v682_v0, %v708_v20  ;;  %v793_v26 = vpop.f32.mrf.mxu1  ;;  %2601 = vmatpush.msrb.mxu1 %v383_v10  ;;  %2661 = vmatpush.msrb.mxu3 %v257_v13  ;;  %v47_v0 = vld [vmem:[%s4634_s0 + $0x38] sm:$0x3]  ;;  %v48_v10 = vld [vmem:[%s4634_s0 + $0x3a] sm:$0x3] }
  0x9f   :  { %v741_v30 = vsub.f32 %v740_v19, %v708_v20  ;;  %v822_v31 = vsub.f32 %v767_v21, %v793_v26  ;;  %2576 = vmatpush.msrb.mxu0 %v254_v9  ;;  %2635 = vmatpush.msrb.mxu2 %v161_v18  ;;  %v303_v9 = vadd.f32 %v79_v1, %v47_v0  ;;  %v174_v19 = vld [vmem:[%s4632_s2 + $0x2d8] sm:$0xff] }
  0xa0   :  { %3160 = vst.msk [vmem:[%s4636_s4 + $0x6] sm:$0x3] %vm484_vm2, %v737_v25  ;;  %2602 = vmatpush.msrb.mxu1 %v382_v17  ;;  %3333 = vmatmul.msk.f32.vlgmr.msrb.gmra.mxu0 %vm403_vm1, %v76_v12  ;;  %v267_v12 = vld [vmem:[%s4633_s3 + $0x2c0] sm:$0xff]  ;;  %v266_v17 = vld [vmem:[%s4633_s3 + $0x2b8] sm:$0xff] }
  0xa1   :  { %3161 = vst.msk [vmem:[%s4637_s5 + $0x6] sm:$0x3] %vm484_vm2, %v741_v30  ;;  %3335 = vmatmul.msk.f32.vlgmr.msrb.gmra.mxu1 %vm403_vm1, %v300_v22  ;;  %3341 = vmatmul.msk.f32.vlgmr.msrb.gmra.mxu3 %vm403_vm1, %v77_v27  ;;  %v395_v18 = vadd.f32 %v267_v12, %v171_v60  ;;  %v80_v20 = vld [vmem:[%s4635_s1 + $0x3a] sm:$0x3]  ;;  %v394_v25 = vadd.f32 %v266_v17, %v170_v62 }
  0xa2   :  { %3168 = vst.msk [vmem:[%s4636_s4 + $0x8] sm:$0x3] %vm484_vm2, %v822_v31  ;;  %3350 = vmatpush.msk.msra.mxu3 %vm407_vm0, %v390_v28  ;;  %3339 = vmatmul.msk.f32.vlgmr.msrb.gmra.mxu2 %vm403_vm1, %v45_v32  ;;  %v178_v22 = vld [vmem:[%s4632_s2 + $0x2f8] sm:$0xf]  ;;  %v304_v30 = vadd.f32 %v80_v20, %v48_v10  ;;  %v177_v31 = vld [vmem:[%s4632_s2 + $0x2f0] sm:$0xff] }
  0xa3   :  { %3348 = vmatpush.msk.msra.mxu2 %vm407_vm0, %v262_v15  ;;  %3342 = vmatpush.msk.msra.mxu0 %vm407_vm0, %v387_v29  ;;  %v396_v15 = vadd.f32 %v268_v5, %v172_v54  ;;  %v273_v32 = vld [vmem:[%s4633_s3 + $0x2f0] sm:$0xff] }
  0xa4   :  { %v852_v42 = vpop.f32.mrf.mxu3  ;;  %3346 = vmatpush.msk.msra.mxu1 %vm407_vm0, %v166_v14  ;;  %2771 = vmatpush.msra.mxu3 %v389_v35  ;;  %v175_v14 = vld [vmem:[%s4632_s2 + $0x2e0] sm:$0xf]  ;;  %v81_v35 = vld [vmem:[%s4635_s1 + $0x3c] sm:$0x3] }
  0xa5   :  { %v819_v45 = vpop.f32.mrf.mxu2  ;;  %v878_v46 = vpop.f32.mrf.mxu0  ;;  %2686 = vmatpush.msra.mxu0 %v386_v36  ;;  %2745 = vmatpush.msra.mxu2 %v261_v24 }
  0xa6   :  { %v825_v48 = vsub.f32 %v819_v45, %v767_v21  ;;  %v907_v49 = vsub.f32 %v852_v42, %v878_v46  ;;  %v904_v50 = vpop.f32.mrf.mxu1  ;;  %2719 = vmatpush.msra.mxu1 %v165_v23  ;;  %2772 = vmatpush.msra.mxu3 %v388_v37  ;;  %v269_v21 = vld [vmem:[%s4633_s3 + $0x2d0] sm:$0xff]  ;;  %v274_v23 = vld [vmem:[%s4633_s3 + $0x2f8] sm:$0xf]  ;;  %v399_v37 = vadd.f32 %v271_v11, %v175_v14 }
  0xa7   :  { %v910_v53 = vsub.f32 %v904_v50, %v852_v42  ;;  %2687 = vmatpush.msra.mxu0 %v385_v40  ;;  %2746 = vmatpush.msra.mxu2 %v260_v34  ;;  %v402_v36 = vadd.f32 %v274_v23, %v178_v22  ;;  %v49_v40 = vld [vmem:[%s4634_s0 + $0x3c] sm:$0x3]  ;;  %v272_v42 = vld [vmem:[%s4633_s3 + $0x2e8] sm:$0xff] }
  0xa8   :  { %v826_v56 = vsub.f32 %v825_v48, %v793_v26  ;;  %3176 = vst.msk [vmem:[%s4636_s4 + $0xa] sm:$0x3] %vm484_vm2, %v907_v49  ;;  %2720 = vmatpush.msra.mxu1 %v164_v33  ;;  %3343 = vmatmul.msk.f32.vlgmr.msra.gmra.mxu0 %vm403_vm1, %v301_v41  ;;  %v173_v26 = vld [vmem:[%s4632_s2 + $0x2d0] sm:$0xff]  ;;  %v176_v41 = vld [vmem:[%s4632_s2 + $0x2e8] sm:$0xff]  ;;  %v305_v49 = vadd.f32 %v81_v35, %v49_v40 }
  0xa9   :  { %v911_v59 = vsub.f32 %v910_v53, %v878_v46  ;;  %3347 = vmatmul.msk.f32.vlgmr.msra.gmra.mxu1 %vm403_vm1, %v46_v38  ;;  %3351 = vmatmul.msk.f32.vlgmr.msra.gmra.mxu3 %vm403_vm1, %v302_v47  ;;  %v400_v45 = vadd.f32 %v272_v42, %v176_v41  ;;  %v50_v46 = vld [vmem:[%s4634_s0 + $0x3e] sm:$0x3]  ;;  %v397_v48 = vadd.f32 %v269_v21, %v173_v26 }
  0xaa   :  { %3169 = vst.msk [vmem:[%s4637_s5 + $0x8] sm:$0x3] %vm484_vm2, %v826_v56  ;;  %3362 = vmatpush.msk.msrb.mxu3 %vm407_vm0, %v172_v54  ;;  %3349 = vmatmul.msk.f32.vlgmr.msra.gmra.mxu2 %vm403_vm1, %v78_v39  ;;  %v82_v47 = vld [vmem:[%s4635_s1 + $0x3e] sm:$0x3] }
  0xab   :  { %3177 = vst.msk [vmem:[%s4637_s5 + $0xa] sm:$0x3] %vm484_vm2, %v911_v59  ;;  %3358 = vmatpush.msk.msrb.mxu2 %vm407_vm0, %v393_v55  ;;  %3354 = vmatpush.msk.msrb.mxu0 %vm407_vm0, %v169_v43  ;;  %v401_v43 = vadd.f32 %v273_v32, %v177_v31  ;;  %v306_v53 = vadd.f32 %v82_v47, %v50_v46 }
  0xac   :  { %v963_v2 = vpop.f32.mrf.mxu3  ;;  %3356 = vmatpush.msk.msrb.mxu1 %vm407_vm0, %v265_v44  ;;  %2889 = vmatpush.msrb.mxu3 %v171_v60  ;;  %v398_v44 = vadd.f32 %v270_v16, %v174_v19 }
  0xad   :  { %v937_v3 = vpop.f32.mrf.mxu2  ;;  %v989_v4 = vpop.f32.mrf.mxu0  ;;  %2804 = vmatpush.msrb.mxu0 %v168_v51  ;;  %2856 = vmatpush.msrb.mxu2 %v392_v61 }
  0xae   :  { %v992_v6 = vsub.f32 %v937_v3, %v963_v2  ;;  %v995_v7 = vsub.f32 %v989_v4, %v937_v3  ;;  %v1022_v8 = vpop.f32.mrf.mxu1  ;;  %2830 = vmatpush.msrb.mxu1 %v264_v52  ;;  %2890 = vmatpush.msrb.mxu3 %v170_v62 }
  0xaf   :  { %2805 = vmatpush.msrb.mxu0 %v167_v57  ;;  %2857 = vmatpush.msrb.mxu2 %v391_v63 }
  0xb0   :  { %3184 = vst.msk [vmem:[%s4636_s4 + $0xc] sm:$0x3] %vm484_vm2, %v992_v6  ;;  %v996_v13 = vsub.f32 %v995_v7, %v963_v2  ;;  %2831 = vmatpush.msrb.mxu1 %v263_v58  ;;  %3355 = vmatmul.msk.f32.vlgmr.msrb.gmra.mxu0 %vm403_vm1, %v47_v0 }
  0xb1   :  { %3357 = vmatmul.msk.f32.vlgmr.msrb.gmra.mxu1 %vm403_vm1, %v79_v1  ;;  %3363 = vmatmul.msk.f32.vlgmr.msrb.gmra.mxu3 %vm403_vm1, %v48_v10 }
  0xb2   :  { %3185 = vst.msk [vmem:[%s4637_s5 + $0xc] sm:$0x3] %vm484_vm2, %v996_v13  ;;  %3372 = vmatpush.msk.msra.mxu3 %vm407_vm0, %v271_v11  ;;  %3359 = vmatmul.msk.f32.vlgmr.msrb.gmra.mxu2 %vm403_vm1, %v303_v9 }
  0xb3   :  { %3370 = vmatpush.msk.msra.mxu2 %vm407_vm0, %v175_v14  ;;  %3364 = vmatpush.msk.msra.mxu0 %vm407_vm0, %v268_v5 }
  0xb4   :  { %v1074_v24 = vpop.f32.mrf.mxu3  ;;  %3366 = vmatpush.msk.msra.mxu1 %vm407_vm0, %v396_v15  ;;  %3000 = vmatpush.msra.mxu3 %v270_v16 }
  0xb5   :  { %v1080_v27 = vsub.f32 %v1074_v24, %v1022_v8  ;;  %v1048_v28 = vpop.f32.mrf.mxu2  ;;  %v1107_v29 = vpop.f32.mrf.mxu0  ;;  %2915 = vmatpush.msra.mxu0 %v267_v12  ;;  %2974 = vmatpush.msra.mxu2 %v174_v19 }
  0xb6   :  { %v1077_v33 = vsub.f32 %v1022_v8, %v1048_v28  ;;  %v1133_v34 = vpop.f32.mrf.mxu1  ;;  %2941 = vmatpush.msra.mxu1 %v395_v18  ;;  %3001 = vmatpush.msra.mxu3 %v269_v21 }
  0xb7   :  { %v1081_v38 = vsub.f32 %v1080_v27, %v1048_v28  ;;  %v1162_v39 = vsub.f32 %v1107_v29, %v1133_v34  ;;  %2916 = vmatpush.msra.mxu0 %v266_v17  ;;  %2975 = vmatpush.msra.mxu2 %v173_v26 }
  0xb8   :  { %3192 = vst.msk [vmem:[%s4636_s4 + $0xe] sm:$0x3] %vm484_vm2, %v1077_v33  ;;  %2942 = vmatpush.msra.mxu1 %v394_v25  ;;  %3365 = vmatmul.msk.f32.vlgmr.msra.gmra.mxu0 %vm403_vm1, %v80_v20 }
  0xb9   :  { %3193 = vst.msk [vmem:[%s4637_s5 + $0xe] sm:$0x3] %vm484_vm2, %v1081_v38  ;;  %3367 = vmatmul.msk.f32.vlgmr.msra.gmra.mxu1 %vm403_vm1, %v304_v30  ;;  %3373 = vmatmul.msk.f32.vlgmr.msra.gmra.mxu3 %vm403_vm1, %v81_v35 }
  0xba   :  { %3200 = vst.msk [vmem:[%s4636_s4 + $0x10] sm:$0x3] %vm484_vm2, %v1162_v39  ;;  %3382 = vmatpush.msk.msrb.mxu3 %vm407_vm0, %v402_v36  ;;  %3371 = vmatmul.msk.f32.vlgmr.msra.gmra.mxu2 %vm403_vm1, %v49_v40 }
  0xbb   :  { %3380 = vmatpush.msk.msrb.mxu2 %vm407_vm0, %v274_v23  ;;  %3374 = vmatpush.msk.msrb.mxu0 %vm407_vm0, %v399_v37 }
  0xbc   :  { %v1192_v50 = vpop.f32.mrf.mxu3  ;;  %3111 = vmatpush.msrb.mxu3 %v401_v43  ;;  %3378 = vmatpush.msk.msrb.mxu1 %vm407_vm0, %v178_v22 }
  0xbd   :  { %v1159_v51 = vpop.f32.mrf.mxu2  ;;  %v1218_v52 = vpop.f32.mrf.mxu0  ;;  %3026 = vmatpush.msrb.mxu0 %v398_v44  ;;  %3085 = vmatpush.msrb.mxu2 %v273_v32 }
  0xbe   :  { %v1165_v54 = vsub.f32 %v1159_v51, %v1107_v29  ;;  %v1247_v55 = vsub.f32 %v1192_v50, %v1218_v52  ;;  %v1244_v56 = vpop.f32.mrf.mxu1  ;;  %3112 = vmatpush.msrb.mxu3 %v400_v45  ;;  %3059 = vmatpush.msrb.mxu1 %v177_v31 }
  0xbf   :  { %v1250_v57 = vsub.f32 %v1244_v56, %v1192_v50  ;;  %3027 = vmatpush.msrb.mxu0 %v397_v48  ;;  %3086 = vmatpush.msrb.mxu2 %v272_v42 }
  0xc0   :  { %v1166_v58 = vsub.f32 %v1165_v54, %v1133_v34  ;;  %3208 = vst.msk [vmem:[%s4636_s4 + $0x12] sm:$0x3] %vm484_vm2, %v1247_v55  ;;  %3375 = vmatmul.msk.f32.vlgmr.msrb.gmra.mxu0 %vm403_vm1, %v305_v49  ;;  %3060 = vmatpush.msrb.mxu1 %v176_v41 }
  0xc1   :  { %v1251_v59 = vsub.f32 %v1250_v57, %v1218_v52  ;;  %3383 = vmatmul.msk.f32.vlgmr.msrb.gmra.mxu3 %vm403_vm1, %v306_v53  ;;  %3379 = vmatmul.msk.f32.vlgmr.msrb.gmra.mxu1 %vm403_vm1, %v50_v46 }
  0xc2   :  { %3201 = vst.msk [vmem:[%s4637_s5 + $0x10] sm:$0x3] %vm484_vm2, %v1166_v58  ;;  %3381 = vmatmul.msk.f32.vlgmr.msrb.gmra.mxu2 %vm403_vm1, %v82_v47 }
  0xc3   :  { %3209 = vst.msk [vmem:[%s4637_s5 + $0x12] sm:$0x3] %vm484_vm2, %v1251_v59 }
  0xc4   :  { %v1303_v60 = vpop.f32.mrf.mxu3 }
  0xc5   :  { %v1277_v61 = vpop.f32.mrf.mxu2  ;;  %v1329_v62 = vpop.f32.mrf.mxu0 }
  0xc6   :  { %v1332_v63 = vsub.f32 %v1277_v61, %v1303_v60  ;;  %v1335_v0 = vsub.f32 %v1329_v62, %v1277_v61  ;;  %v1362_v1 = vpop.f32.mrf.mxu1 }
  0xc8   :  { %3216 = vst.msk [vmem:[%s4636_s4 + $0x14] sm:$0x3] %vm484_vm2, %v1332_v63  ;;  %v1336_v2 = vsub.f32 %v1335_v0, %v1303_v60 }
  0xca   :  { %3217 = vst.msk [vmem:[%s4637_s5 + $0x14] sm:$0x3] %vm484_vm2, %v1336_v2 }
  0xcc   :  { %v1414_v3 = vpop.f32.mrf.mxu3 }
  0xcd   :  { %v1420_v4 = vsub.f32 %v1414_v3, %v1362_v1  ;;  %v1388_v5 = vpop.f32.mrf.mxu2  ;;  %v1447_v6 = vpop.f32.mrf.mxu0 }
  0xce   :  { %v1417_v7 = vsub.f32 %v1362_v1, %v1388_v5  ;;  %v1473_v8 = vpop.f32.mrf.mxu1 }
  0xcf   :  { %v1421_v9 = vsub.f32 %v1420_v4, %v1388_v5  ;;  %v1502_v10 = vsub.f32 %v1447_v6, %v1473_v8 }
  0xd0   :  { %3224 = vst.msk [vmem:[%s4636_s4 + $0x16] sm:$0x3] %vm484_vm2, %v1417_v7 }
  0xd1   :  { %3225 = vst.msk [vmem:[%s4637_s5 + $0x16] sm:$0x3] %vm484_vm2, %v1421_v9 }
  0xd2   :  { %3232 = vst.msk [vmem:[%s4636_s4 + $0x18] sm:$0x3] %vm484_vm2, %v1502_v10 }
  0xd4   :  { %v1532_v11 = vpop.f32.mrf.mxu3 }
  0xd5   :  { %v1499_v12 = vpop.f32.mrf.mxu2  ;;  %v1558_v13 = vpop.f32.mrf.mxu0 }
  0xd6   :  { %v1505_v14 = vsub.f32 %v1499_v12, %v1447_v6  ;;  %v1587_v15 = vsub.f32 %v1532_v11, %v1558_v13  ;;  %v1584_v16 = vpop.f32.mrf.mxu1 }
  0xd7   :  { %v1590_v17 = vsub.f32 %v1584_v16, %v1532_v11 }
  0xd8   :  { %v1506_v18 = vsub.f32 %v1505_v14, %v1473_v8  ;;  %3240 = vst.msk [vmem:[%s4636_s4 + $0x1a] sm:$0x3] %vm484_vm2, %v1587_v15 }
  0xd9   :  { %v1591_v19 = vsub.f32 %v1590_v17, %v1558_v13 }
  0xda   :  { %3233 = vst.msk [vmem:[%s4637_s5 + $0x18] sm:$0x3] %vm484_vm2, %v1506_v18 }
  0xdb   :  { %3241 = vst.msk [vmem:[%s4637_s5 + $0x1a] sm:$0x3] %vm484_vm2, %v1591_v19 }
  0xdc   :  { %v1643_v20 = vpop.f32.mrf.mxu3 }
  0xdd   :  { %v1617_v21 = vpop.f32.mrf.mxu2  ;;  %v1669_v22 = vpop.f32.mrf.mxu0 }
  0xde   :  { %v1672_v23 = vsub.f32 %v1617_v21, %v1643_v20  ;;  %v1675_v24 = vsub.f32 %v1669_v22, %v1617_v21  ;;  %v1702_v25 = vpop.f32.mrf.mxu1 }
  0xe0   :  { %3248 = vst.msk [vmem:[%s4636_s4 + $0x1c] sm:$0x3] %vm484_vm2, %v1672_v23  ;;  %v1676_v26 = vsub.f32 %v1675_v24, %v1643_v20 }
  0xe2   :  { %3249 = vst.msk [vmem:[%s4637_s5 + $0x1c] sm:$0x3] %vm484_vm2, %v1676_v26 }
  0xe4   :  { %v1754_v27 = vpop.f32.mrf.mxu3 }
  0xe5   :  { %v1760_v28 = vsub.f32 %v1754_v27, %v1702_v25  ;;  %v1728_v29 = vpop.f32.mrf.mxu2  ;;  %v1787_v30 = vpop.f32.mrf.mxu0 }
  0xe6   :  { %v1757_v31 = vsub.f32 %v1702_v25, %v1728_v29  ;;  %v1813_v32 = vpop.f32.mrf.mxu1 }
  0xe7   :  { %v1761_v33 = vsub.f32 %v1760_v28, %v1728_v29  ;;  %v1842_v34 = vsub.f32 %v1787_v30, %v1813_v32 }
  0xe8   :  { %3256 = vst.msk [vmem:[%s4636_s4 + $0x1e] sm:$0x3] %vm484_vm2, %v1757_v31 }
  0xe9   :  { %3257 = vst.msk [vmem:[%s4637_s5 + $0x1e] sm:$0x3] %vm484_vm2, %v1761_v33 }
  0xea   :  { %3264 = vst.msk [vmem:[%s4636_s4 + $0x20] sm:$0x3] %vm484_vm2, %v1842_v34 }
  0xec   :  { %v1872_v35 = vpop.f32.mrf.mxu3 }
  0xed   :  { %v1839_v36 = vpop.f32.mrf.mxu2  ;;  %v1898_v37 = vpop.f32.mrf.mxu0 }
  0xee   :  { %v1845_v38 = vsub.f32 %v1839_v36, %v1787_v30  ;;  %v1927_v39 = vsub.f32 %v1872_v35, %v1898_v37  ;;  %v1924_v40 = vpop.f32.mrf.mxu1 }
  0xef   :  { %v1930_v41 = vsub.f32 %v1924_v40, %v1872_v35 }
  0xf0   :  { %v1846_v42 = vsub.f32 %v1845_v38, %v1813_v32  ;;  %3272 = vst.msk [vmem:[%s4636_s4 + $0x22] sm:$0x3] %vm484_vm2, %v1927_v39 }
  0xf1   :  { %v1931_v43 = vsub.f32 %v1930_v41, %v1898_v37 }
  0xf2   :  { %3265 = vst.msk [vmem:[%s4637_s5 + $0x20] sm:$0x3] %vm484_vm2, %v1846_v42 }
  0xf3   :  { %3273 = vst.msk [vmem:[%s4637_s5 + $0x22] sm:$0x3] %vm484_vm2, %v1931_v43 }
  0xf4   :  { %v1983_v44 = vpop.f32.mrf.mxu3 }
  0xf5   :  { %v1957_v45 = vpop.f32.mrf.mxu2  ;;  %v2009_v46 = vpop.f32.mrf.mxu0 }
  0xf6   :  { %v2012_v47 = vsub.f32 %v1957_v45, %v1983_v44  ;;  %v2015_v48 = vsub.f32 %v2009_v46, %v1957_v45  ;;  %v2042_v49 = vpop.f32.mrf.mxu1 }
  0xf8   :  { %3280 = vst.msk [vmem:[%s4636_s4 + $0x24] sm:$0x3] %vm484_vm2, %v2012_v47  ;;  %v2016_v50 = vsub.f32 %v2015_v48, %v1983_v44 }
  0xfa   :  { %3281 = vst.msk [vmem:[%s4637_s5 + $0x24] sm:$0x3] %vm484_vm2, %v2016_v50 }
  0xfc   :  { %v2094_v51 = vpop.f32.mrf.mxu3 }
  0xfd   :  { %v2100_v52 = vsub.f32 %v2094_v51, %v2042_v49  ;;  %v2068_v53 = vpop.f32.mrf.mxu2  ;;  %v2127_v54 = vpop.f32.mrf.mxu0 }
  0xfe   :  { %v2097_v55 = vsub.f32 %v2042_v49, %v2068_v53  ;;  %v2153_v56 = vpop.f32.mrf.mxu1 }
  0xff   :  { %v2101_v57 = vsub.f32 %v2100_v52, %v2068_v53  ;;  %v2182_v58 = vsub.f32 %v2127_v54, %v2153_v56 }
 0x100   :  { %3288 = vst.msk [vmem:[%s4636_s4 + $0x26] sm:$0x3] %vm484_vm2, %v2097_v55 }
 0x101   :  { %3289 = vst.msk [vmem:[%s4637_s5 + $0x26] sm:$0x3] %vm484_vm2, %v2101_v57 }
 0x102   :  { %3296 = vst.msk [vmem:[%s4636_s4 + $0x28] sm:$0x3] %vm484_vm2, %v2182_v58 }
 0x104   :  { %v2212_v59 = vpop.f32.mrf.mxu3 }
 0x105   :  { %v2179_v60 = vpop.f32.mrf.mxu2  ;;  %v2238_v61 = vpop.f32.mrf.mxu0 }
 0x106   :  { %v2185_v62 = vsub.f32 %v2179_v60, %v2127_v54  ;;  %v2267_v63 = vsub.f32 %v2212_v59, %v2238_v61  ;;  %v2264_v0 = vpop.f32.mrf.mxu1 }
 0x107   :  { %v2270_v1 = vsub.f32 %v2264_v0, %v2212_v59 }
 0x108   :  { %v2186_v2 = vsub.f32 %v2185_v62, %v2153_v56  ;;  %3304 = vst.msk [vmem:[%s4636_s4 + $0x2a] sm:$0x3] %vm484_vm2, %v2267_v63 }
 0x109   :  { %v2271_v3 = vsub.f32 %v2270_v1, %v2238_v61 }
 0x10a   :  { %3297 = vst.msk [vmem:[%s4637_s5 + $0x28] sm:$0x3] %vm484_vm2, %v2186_v2 }
 0x10b   :  { %3305 = vst.msk [vmem:[%s4637_s5 + $0x2a] sm:$0x3] %vm484_vm2, %v2271_v3 }
 0x10c   :  { %v2323_v4 = vpop.f32.mrf.mxu3 }
 0x10d   :  { %v2297_v5 = vpop.f32.mrf.mxu2  ;;  %v2349_v6 = vpop.f32.mrf.mxu0 }
 0x10e   :  { %v2352_v7 = vsub.f32 %v2297_v5, %v2323_v4  ;;  %v2355_v8 = vsub.f32 %v2349_v6, %v2297_v5  ;;  %v2382_v9 = vpop.f32.mrf.mxu1 }
 0x110   :  { %3312 = vst.msk [vmem:[%s4636_s4 + $0x2c] sm:$0x3] %vm484_vm2, %v2352_v7  ;;  %v2356_v10 = vsub.f32 %v2355_v8, %v2323_v4 }
 0x112   :  { %3313 = vst.msk [vmem:[%s4637_s5 + $0x2c] sm:$0x3] %vm484_vm2, %v2356_v10 }
 0x114   :  { %v2434_v11 = vpop.f32.mrf.mxu3 }
 0x115   :  { %v2440_v12 = vsub.f32 %v2434_v11, %v2382_v9  ;;  %v2408_v13 = vpop.f32.mrf.mxu2  ;;  %v2467_v14 = vpop.f32.mrf.mxu0 }
 0x116   :  { %v2437_v15 = vsub.f32 %v2382_v9, %v2408_v13  ;;  %v2493_v16 = vpop.f32.mrf.mxu1 }
 0x117   :  { %v2441_v17 = vsub.f32 %v2440_v12, %v2408_v13  ;;  %v2522_v18 = vsub.f32 %v2467_v14, %v2493_v16 }
 0x118   :  { %3320 = vst.msk [vmem:[%s4636_s4 + $0x2e] sm:$0x3] %vm484_vm2, %v2437_v15 }
 0x119   :  { %3321 = vst.msk [vmem:[%s4637_s5 + $0x2e] sm:$0x3] %vm484_vm2, %v2441_v17 }
 0x11a   :  { %3328 = vst.msk [vmem:[%s4636_s4 + $0x30] sm:$0x3] %vm484_vm2, %v2522_v18 }
 0x11c   :  { %v2552_v19 = vpop.f32.mrf.mxu3 }
 0x11d   :  { %v2519_v20 = vpop.f32.mrf.mxu2  ;;  %v2578_v21 = vpop.f32.mrf.mxu0 }
 0x11e   :  { %v2525_v22 = vsub.f32 %v2519_v20, %v2467_v14  ;;  %v2607_v23 = vsub.f32 %v2552_v19, %v2578_v21  ;;  %v2604_v24 = vpop.f32.mrf.mxu1 }
 0x11f   :  { %v2610_v25 = vsub.f32 %v2604_v24, %v2552_v19 }
 0x120   :  { %v2526_v26 = vsub.f32 %v2525_v22, %v2493_v16  ;;  %3336 = vst.msk [vmem:[%s4636_s4 + $0x32] sm:$0x3] %vm484_vm2, %v2607_v23 }
 0x121   :  { %v2611_v27 = vsub.f32 %v2610_v25, %v2578_v21 }
 0x122   :  { %3329 = vst.msk [vmem:[%s4637_s5 + $0x30] sm:$0x3] %vm484_vm2, %v2526_v26 }
 0x123   :  { %3337 = vst.msk [vmem:[%s4637_s5 + $0x32] sm:$0x3] %vm484_vm2, %v2611_v27 }
 0x124   :  { %v2663_v28 = vpop.f32.mrf.mxu3 }
 0x125   :  { %v2637_v29 = vpop.f32.mrf.mxu2  ;;  %v2689_v30 = vpop.f32.mrf.mxu0 }
 0x126   :  { %v2692_v31 = vsub.f32 %v2637_v29, %v2663_v28  ;;  %v2695_v32 = vsub.f32 %v2689_v30, %v2637_v29  ;;  %v2722_v33 = vpop.f32.mrf.mxu1 }
 0x128   :  { %3344 = vst.msk [vmem:[%s4636_s4 + $0x34] sm:$0x3] %vm484_vm2, %v2692_v31  ;;  %v2696_v34 = vsub.f32 %v2695_v32, %v2663_v28 }
 0x12a   :  { %3345 = vst.msk [vmem:[%s4637_s5 + $0x34] sm:$0x3] %vm484_vm2, %v2696_v34 }
 0x12c   :  { %v2774_v35 = vpop.f32.mrf.mxu3 }
 0x12d   :  { %v2780_v36 = vsub.f32 %v2774_v35, %v2722_v33  ;;  %v2748_v37 = vpop.f32.mrf.mxu2  ;;  %v2807_v38 = vpop.f32.mrf.mxu0 }
 0x12e   :  { %v2777_v39 = vsub.f32 %v2722_v33, %v2748_v37  ;;  %v2833_v40 = vpop.f32.mrf.mxu1 }
 0x12f   :  { %v2781_v41 = vsub.f32 %v2780_v36, %v2748_v37  ;;  %v2862_v42 = vsub.f32 %v2807_v38, %v2833_v40 }
 0x130   :  { %3352 = vst.msk [vmem:[%s4636_s4 + $0x36] sm:$0x3] %vm484_vm2, %v2777_v39 }
 0x131   :  { %3353 = vst.msk [vmem:[%s4637_s5 + $0x36] sm:$0x3] %vm484_vm2, %v2781_v41 }
 0x132   :  { %3360 = vst.msk [vmem:[%s4636_s4 + $0x38] sm:$0x3] %vm484_vm2, %v2862_v42 }
 0x134   :  { %v2892_v43 = vpop.f32.mrf.mxu3 }
 0x135   :  { %v2859_v44 = vpop.f32.mrf.mxu2  ;;  %v2918_v45 = vpop.f32.mrf.mxu0 }
 0x136   :  { %v2865_v46 = vsub.f32 %v2859_v44, %v2807_v38  ;;  %v2947_v47 = vsub.f32 %v2892_v43, %v2918_v45  ;;  %v2944_v48 = vpop.f32.mrf.mxu1 }
 0x137   :  { %v2950_v49 = vsub.f32 %v2944_v48, %v2892_v43 }
 0x138   :  { %v2866_v50 = vsub.f32 %v2865_v46, %v2833_v40  ;;  %3368 = vst.msk [vmem:[%s4636_s4 + $0x3a] sm:$0x3] %vm484_vm2, %v2947_v47 }
 0x139   :  { %v2951_v51 = vsub.f32 %v2950_v49, %v2918_v45 }
 0x13a   :  { %3361 = vst.msk [vmem:[%s4637_s5 + $0x38] sm:$0x3] %vm484_vm2, %v2866_v50 }
 0x13b   :  { %3369 = vst.msk [vmem:[%s4637_s5 + $0x3a] sm:$0x3] %vm484_vm2, %v2951_v51 }
 0x13c   :  { %v3003_v52 = vpop.f32.mrf.mxu3 }
 0x13d   :  { %v2977_v53 = vpop.f32.mrf.mxu2  ;;  %v3029_v54 = vpop.f32.mrf.mxu0 }
 0x13e   :  { %v3032_v55 = vsub.f32 %v2977_v53, %v3003_v52  ;;  %v3035_v56 = vsub.f32 %v3029_v54, %v2977_v53  ;;  %v3062_v58 = vpop.f32.mrf.mxu1 }
 0x140   :  { %3376 = vst.msk [vmem:[%s4636_s4 + $0x3c] sm:$0x3] %vm484_vm2, %v3032_v55  ;;  %v3036_v57 = vsub.f32 %v3035_v56, %v3003_v52 }
 0x142   :  { %3377 = vst.msk [vmem:[%s4637_s5 + $0x3c] sm:$0x3] %vm484_vm2, %v3036_v57 }
 0x144   :  { %v3114_v59 = vpop.f32.mrf.mxu3 }
 0x145   :  { %v3120_v60 = vsub.f32 %v3114_v59, %v3062_v58  ;;  %v3088_v61 = vpop.f32.mrf.mxu2 }
 0x146   :  { %v3117_v62 = vsub.f32 %v3062_v58, %v3088_v61 }
 0x147   :  { %v3121_v63 = vsub.f32 %v3120_v60, %v3088_v61 }
 0x148   :  { %3384 = vst.msk [vmem:[%s4636_s4 + $0x3e] sm:$0x3] %vm484_vm2, %v3117_v62 }
 0x149   :  { %3385 = vst.msk [vmem:[%s4637_s5 + $0x3e] sm:$0x3] %vm484_vm2, %v3121_v63 }

// kernel: fno2d_forward.12
= control target key start
LH: loop header
LB: loop body
LE: loop exit
PB: predicated region body
PF: predicated region fallthrough
CT: control target
= control target key end

     0   :  { %vm60_vm0 = vcmask 1043456   ;;  %v800_v3 = vmov 0   ;;  %vm50_vm1 = vcmask 162816   ;;  %s1338_s0 = inlined_call_operand.vmem [shape: f32[20,512], index: 0, kind: input, shape index: {}]   ;;  %s1339_s1 = inlined_call_operand.vmem [shape: f32[20,20], index: 1, kind: input, shape index: {}]   ;;  %s1340_s2 = inlined_call_operand.vmem [shape: f32[20,1], index: 2, kind: input, shape index: {}]   ;;  %s1341_s3 = inlined_call_operand.vmem [shape: f32[20,512], index: 3, kind: input, shape index: {}]   ;;  %s1342_s4 = inlined_call_operand.vmem [shape: f32[20,512], index: 4, kind: output, shape index: {}]  }
   0x1   :  { %v28_v0 = vld [vmem:[%s1338_s0 + $0x40] sm:$0xf]  ;;  %v29_v1 = vld [vmem:[%s1338_s0 + $0x48] sm:$0xf]  ;;  %v30_v2 = vld [vmem:[%s1338_s0 + $0x50] sm:$0xf]  ;;  %774 = vset.pattern.permute.xlu0 %v800_v3  ;;  %775 = vset.pattern.permute.xlu1 %v800_v3 }
   0x2   :  { %745 = vmatpush.msk.msra.mxu0 %vm60_vm0, %v28_v0  ;;  %749 = vmatpush.msk.msra.mxu1 %vm60_vm0, %v29_v1  ;;  %v31_v4 = vld [vmem:[%s1338_s0 + $0x58] sm:$0xf]  ;;  %v24_v5 = vld [vmem:[%s1338_s0 + $0x20] sm:$0xff]  ;;  %v25_v6 = vld [vmem:[%s1338_s0 + $0x28] sm:$0xff] }
   0x3   :  { %753 = vmatpush.msk.msra.mxu2 %vm60_vm0, %v30_v2  ;;  %757 = vmatpush.msk.msra.mxu3 %vm60_vm0, %v31_v4  ;;  %v26_v7 = vld [vmem:[%s1338_s0 + $0x30] sm:$0xff]  ;;  %v27_v8 = vld [vmem:[%s1338_s0 + $0x38] sm:$0xff]  ;;  %v20_v9 = vld [vmem:[%s1338_s0] sm:$0xff] }
   0x4   :  { %87 = vmatpush.msra.mxu0 %v24_v5  ;;  %113 = vmatpush.msra.mxu1 %v25_v6  ;;  %v21_v10 = vld [vmem:[%s1338_s0 + $0x8] sm:$0xff]  ;;  %v22_v11 = vld [vmem:[%s1338_s0 + $0x10] sm:$0xff]  ;;  %v23_v12 = vld [vmem:[%s1338_s0 + $0x18] sm:$0xff] }
   0x5   :  { %139 = vmatpush.msra.mxu2 %v26_v7  ;;  %165 = vmatpush.msra.mxu3 %v27_v8  ;;  %v17_v13 = vld [vmem:[%s1339_s1] sm:$0xff]  ;;  %v34_v15 = vld [vmem:[%s1340_s2 + $0x10] sm:$0xf]  ;;  %v18_v16 = vld [vmem:[%s1339_s1 + $0x8] sm:$0xff] }
   0x6   :  { %88 = vmatpush.msra.mxu0 %v20_v9  ;;  %114 = vmatpush.msra.mxu1 %v21_v10  ;;  %v32_v14 = vld [vmem:[%s1340_s2] sm:$0xff]  ;;  %v33_v17 = vld [vmem:[%s1340_s2 + $0x8] sm:$0xff]  ;;  %v19_v18 = vld [vmem:[%s1339_s1 + $0x10] sm:$0xf] }
   0x7   :  { %140 = vmatpush.msra.mxu2 %v22_v11  ;;  %166 = vmatpush.msra.mxu3 %v23_v12  ;;  %v177_v21 = vld [vmem:[%s1341_s3] sm:$0xff]  ;;  %v178_v23 = vld [vmem:[%s1341_s3 + $0x8] sm:$0xff]  ;;  %v179_v33 = vld [vmem:[%s1341_s3 + $0x10] sm:$0xff] }
   0x8   :  { %746 = vmatmul.msk.f32.vlgmr.msra.gmra.mxu0 %vm50_vm1, %v17_v13  ;;  %750 = vmatmul.msk.f32.vlgmr.msra.gmra.mxu1 %vm50_vm1, %v17_v13  ;;  %v180_v35 = vld [vmem:[%s1341_s3 + $0x18] sm:$0xff]  ;;  %v181_v50 = vld [vmem:[%s1341_s3 + $0x20] sm:$0xff] }
   0x9   :  { %754 = vmatmul.msk.f32.vlgmr.msra.gmra.mxu2 %vm50_vm1, %v17_v13  ;;  %758 = vmatmul.msk.f32.vlgmr.msra.gmra.mxu3 %vm50_vm1, %v17_v13 }
   0xa   :  { %37 = vperm.xlu0 %774, %v32_v14   ;;  %47 = vperm.xlu1 %775, %v34_v15  }
  0x10   :  { %747 = vmatmul.msk.f32.gmra.mxu0 %vm50_vm1, %v18_v16  ;;  %751 = vmatmul.msk.f32.gmra.mxu1 %vm50_vm1, %v18_v16 }
  0x11   :  { %755 = vmatmul.msk.f32.gmra.mxu2 %vm50_vm1, %v18_v16  ;;  %759 = vmatmul.msk.f32.gmra.mxu3 %vm50_vm1, %v18_v16 }
  0x12   :  { %42 = vperm.xlu0 %774, %v33_v17  }
  0x18   :  { %748 = vmatmul.msk.f32.gmra.mxu0 %vm50_vm1, %v19_v18  ;;  %752 = vmatmul.msk.f32.gmra.mxu1 %vm50_vm1, %v19_v18 }
  0x19   :  { %756 = vmatmul.msk.f32.gmra.mxu2 %vm50_vm1, %v19_v18  ;;  %760 = vmatmul.msk.f32.gmra.mxu3 %vm50_vm1, %v19_v18 }
  0x7c   :  { %v38_v19 = vpop.permute.xlu0 %37 }
  0x84   :  { %v922_v40 = vpop.permute.xlu0 %42 }
  0x85   :  { %v90_v20 = vpop.f32.mrf.mxu0  ;;  %v116_v22 = vpop.f32.mrf.mxu1 }
  0x86   :  { %v91_v24 = vadd.f32 %v90_v20, %v38_v19  ;;  %v117_v25 = vadd.f32 %v116_v22, %v38_v19 }
  0x88   :  { %v898_v26 = vadd.f32 %v177_v21, %v91_v24  ;;  %v900_v27 = vadd.f32 %v178_v23, %v117_v25 }
  0x8a   :  { %v903_v28 = vmul.f32 0.70710677, %v898_v26  ;;  %v906_v29 = vmul.f32 0.70710677, %v900_v27 }
  0x8c   :  { %v225_v30 = vmul.f32 %v903_v28, %v903_v28  ;;  %v265_v31 = vmul.f32 %v906_v29, %v906_v29  ;;  %v142_v32 = vpop.f32.mrf.mxu2  ;;  %v168_v34 = vpop.f32.mrf.mxu3 }
  0x8d   :  { %v143_v36 = vadd.f32 %v142_v32, %v38_v19  ;;  %v169_v37 = vadd.f32 %v168_v34, %v38_v19  ;;  %v93_v41 = vpop.f32.mrf.mxu0 }
  0x8e   :  { %v918_v38 = vmin.f32 %v225_v30, 16.0  ;;  %v920_v39 = vmin.f32 %v265_v31, 16.0  ;;  %v94_v49 = vadd.f32 %v93_v41, %v922_v40 }
  0x8f   :  { %v924_v42 = vadd.f32 %v179_v33, %v143_v36  ;;  %v926_v43 = vadd.f32 %v180_v35, %v169_v37 }
  0x90   :  { %v227_v44 = vmul.f32 2.1237322e-06, %v918_v38  ;;  %v238_v45 = vmul.f32 3.8918573e-05, %v918_v38  ;;  %v267_v46 = vmul.f32 2.1237322e-06, %v920_v39  ;;  %v952_v63 = vadd.f32 %v181_v50, %v94_v49 }
  0x91   :  { %v278_v47 = vmul.f32 3.8918573e-05, %v920_v39  ;;  %v933_v48 = vmul.f32 0.70710677, %v924_v42  ;;  %v942_v56 = vmul.f32 0.70710677, %v926_v43 }
  0x92   :  { %v228_v51 = vadd.f32 0.00028619796, %v227_v44  ;;  %v239_v52 = vadd.f32 0.001143296, %v238_v45  ;;  %v268_v53 = vadd.f32 0.00028619796, %v267_v46  ;;  %v119_v45 = vpop.f32.mrf.mxu1 }
  0x93   :  { %v279_v54 = vadd.f32 0.001143296, %v278_v47  ;;  %v305_v55 = vmul.f32 %v933_v48, %v933_v48  ;;  %v345_v62 = vmul.f32 %v942_v56, %v942_v56  ;;  %v963_v13 = vmul.f32 0.70710677, %v952_v63 }
  0x94   :  { %v229_v57 = vmul.f32 %v228_v51, %v918_v38  ;;  %v240_v58 = vmul.f32 %v239_v52, %v918_v38  ;;  %v269_v59 = vmul.f32 %v268_v53, %v920_v39  ;;  %v145_v51 = vpop.f32.mrf.mxu2 }
  0x95   :  { %v280_v60 = vmul.f32 %v279_v54, %v920_v39  ;;  %v948_v61 = vmin.f32 %v305_v55, 16.0  ;;  %v959_v9 = vmin.f32 %v345_v62, 16.0 }
  0x96   :  { %v230_v0 = vadd.f32 0.0036580483, %v229_v57  ;;  %v241_v1 = vadd.f32 0.014752088, %v240_v58  ;;  %v270_v2 = vadd.f32 0.0036580483, %v269_v59  ;;  %v385_v58 = vmul.f32 %v963_v13, %v963_v13 }
  0x97   :  { %v281_v3 = vadd.f32 0.014752088, %v280_v60  ;;  %v307_v4 = vmul.f32 2.1237322e-06, %v948_v61  ;;  %v318_v5 = vmul.f32 3.8918573e-05, %v948_v61  ;;  %v120_v59 = vadd.f32 %v119_v45, %v922_v40 }
  0x98   :  { %v231_v6 = vmul.f32 %v230_v0, %v918_v38  ;;  %v242_v7 = vmul.f32 %v241_v1, %v918_v38  ;;  %v271_v8 = vmul.f32 %v270_v2, %v920_v39  ;;  %v347_v20 = vmul.f32 2.1237322e-06, %v959_v9 }
  0x99   :  { %v282_v10 = vmul.f32 %v281_v3, %v920_v39  ;;  %v308_v11 = vadd.f32 0.00028619796, %v307_v4  ;;  %v319_v12 = vadd.f32 0.001143296, %v318_v5  ;;  %v358_v24 = vmul.f32 3.8918573e-05, %v959_v9 }
  0x9a   :  { %v232_v14 = vadd.f32 0.05243302, %v231_v6  ;;  %v243_v15 = vadd.f32 0.112945676, %v242_v7  ;;  %v272_v16 = vadd.f32 0.05243302, %v271_v8  ;;  %v146_v0 = vadd.f32 %v145_v51, %v922_v40 }
  0x9b   :  { %v283_v17 = vadd.f32 0.112945676, %v282_v10  ;;  %v309_v18 = vmul.f32 %v308_v11, %v948_v61  ;;  %v320_v19 = vmul.f32 %v319_v12, %v948_v61  ;;  %v348_v32 = vadd.f32 0.00028619796, %v347_v20  ;;  %v183_v4 = vld [vmem:[%s1341_s3 + $0x30] sm:$0xff] }
  0x9c   :  { %v233_v21 = vmul.f32 %v232_v14, %v918_v38  ;;  %v244_v22 = vmul.f32 %v243_v15, %v918_v38  ;;  %v273_v23 = vmul.f32 %v272_v16, %v920_v39  ;;  %v359_v50 = vadd.f32 0.001143296, %v358_v24 }
  0x9d   :  { %v284_v25 = vmul.f32 %v283_v17, %v920_v39  ;;  %v310_v30 = vadd.f32 0.0036580483, %v309_v18  ;;  %v321_v31 = vadd.f32 0.014752088, %v320_v19  ;;  %v349_v44 = vmul.f32 %v348_v32, %v959_v9 }
  0x9e   :  { %v234_v33 = vadd.f32 0.18741608, %v233_v21  ;;  %v245_v34 = vadd.f32 0.4994258, %v244_v22  ;;  %v274_v35 = vadd.f32 0.18741608, %v273_v23  ;;  %v360_v3 = vmul.f32 %v359_v50, %v959_v9 }
  0x9f   :  { %v285_v36 = vadd.f32 0.4994258, %v284_v25  ;;  %v311_v37 = vmul.f32 %v310_v30, %v948_v61  ;;  %v322_v41 = vmul.f32 %v321_v31, %v948_v61  ;;  %v350_v55 = vadd.f32 0.0036580483, %v349_v44 }
  0xa0   :  { %v235_v46 = vmul.f32 %v234_v33, %v918_v38  ;;  %v246_v47 = vmul.f32 %v245_v34, %v918_v38  ;;  %v275_v49 = vmul.f32 %v274_v35, %v920_v39  ;;  %v1000_v5 = vmul.f32 0.5, %v898_v26 }
  0xa1   :  { %v286_v52 = vmul.f32 %v285_v36, %v920_v39  ;;  %v312_v53 = vadd.f32 0.05243302, %v311_v37  ;;  %v323_v54 = vadd.f32 0.112945676, %v322_v41  ;;  %v182_v39 = vld [vmem:[%s1341_s3 + $0x28] sm:$0xff]  ;;  %v351_v2 = vmul.f32 %v350_v55, %v959_v9 }
  0xa2   :  { %v980_v57 = vadd.f32 1.0, %v246_v47  ;;  %v236_v1 = vadd.f32 1.1283791, %v235_v46  ;;  %v1003_v6 = vmul.f32 0.5, %v900_v27  ;;  %v276_v7 = vadd.f32 1.1283791, %v275_v49 }
  0xa3   :  { %v985_v60 = vadd.f32 1.0, %v286_v52  ;;  %v313_v38 = vmul.f32 %v312_v53, %v948_v61  ;;  %v324_v62 = vmul.f32 %v323_v54, %v948_v61  ;;  %v1008_v10 = vmul.f32 0.5, %v924_v42 }
  0xa4   :  { %776 = vrcp.f32 %v980_v57  ;;  %v259_v8 = vand.u32 2147483648, %v980_v57  ;;  %v1010_v12 = vadd.f32 %v182_v39, %v120_v59  ;;  %v257_v14 = vand.u32 2147483647, %v980_v57 }
  0xa5   :  { %778 = vrcp.f32 %v985_v60  ;;  %v314_v11 = vadd.f32 0.18741608, %v313_v38  ;;  %v325_v15 = vadd.f32 0.4994258, %v324_v62  ;;  %v1013_v16 = vmin.f32 %v385_v58, 16.0 }
  0xa6   :  { %v1015_v26 = vadd.f32 %v183_v4, %v146_v0  ;;  %v237_v27 = vmul.f32 %v236_v1, %v903_v28  ;;  %v297_v17 = vand.u32 2147483647, %v985_v60  ;;  %v352_v18 = vadd.f32 0.05243302, %v351_v2 }
  0xa7   :  { %v361_v19 = vadd.f32 0.014752088, %v360_v3  ;;  %vm253_vm2 = vweird.f32 %v980_v57  ;;  %v277_v42 = vmul.f32 %v276_v7, %v906_v29  ;;  %v299_v20 = vand.u32 2147483648, %v985_v60 }
  0xa8   :  { %v326_v21 = vmul.f32 %v325_v15, %v948_v61  ;;  %v260_v23 = vor.u32 1.1754944e-38, %v259_v8  ;;  %vm293_vm3 = vweird.f32 %v985_v60  ;;  %v315_v24 = vmul.f32 %v314_v11, %v948_v61 }
  0xa9   :  { %v362_v28 = vmul.f32 %v361_v19, %v959_v9  ;;  %vm1027_vm4 = vcmp.eq.f32.partialorder %v257_v14, 8.507059e+37  ;;  %v387_v32 = vmul.f32 2.1237322e-06, %v1013_v16  ;;  %v398_v33 = vmul.f32 3.8918573e-05, %v1013_v16 }
  0xaa   :  { %v777_v22 = vpop.eup %776  ;;  %v1031_v29 = vadd.f32 1.0, %v326_v21  ;;  %vm1036_vm5 = vcmp.eq.f32.partialorder %v297_v17, 8.507059e+37  ;;  %v353_v61 = vmul.f32 %v352_v18, %v959_v9  ;;  %v300_v41 = vor.u32 1.1754944e-38, %v299_v20 }
  0xab   :  { %v779_v25 = vpop.eup %778  ;;  %v249_v30 = vmul.f32 %v777_v22, %v980_v57  ;;  %v363_v36 = vadd.f32 0.112945676, %v362_v28  ;;  %v1043_v44 = vmul.f32 0.70710677, %v1010_v12  ;;  %v316_v46 = vadd.f32 1.1283791, %v315_v24 }
  0xac   :  { %v289_v34 = vmul.f32 %v779_v25, %v985_v60  ;;  %780 = vrcp.f32 %v1031_v29  ;;  %v1047_v49 = vmul.f32 0.70710677, %v1015_v26  ;;  %vm254_vm6 = vweird.f32 %v777_v22 }
  0xad   :  { %v250_v37 = vsub.f32 1.0, %v249_v30  ;;  %v364_v47 = vmul.f32 %v363_v36, %v959_v9  ;;  %v388_v51 = vadd.f32 0.00028619796, %v387_v32  ;;  %v399_v52 = vadd.f32 0.001143296, %v398_v33  ;;  %vm255_vm8 = vmor %vm253_vm2, %vm254_vm6 }
  0xae   :  { %v290_v45 = vsub.f32 1.0, %v289_v34  ;;  %vm294_vm7 = vweird.f32 %v779_v25  ;;  %v354_v54 = vadd.f32 0.18741608, %v353_v61  ;;  %v425_v62 = vmul.f32 %v1043_v44, %v1043_v44 }
  0xaf   :  { %v251_v50 = vmul.f32 %v777_v22, %v250_v37  ;;  %v365_v55 = vadd.f32 0.4994258, %v364_v47  ;;  %v389_v59 = vmul.f32 %v388_v51, %v1013_v16  ;;  %v400_v38 = vmul.f32 %v399_v52, %v1013_v16  ;;  %vm295_vm10 = vmor %vm293_vm3, %vm294_vm7 }
  0xb0   :  { %v291_v53 = vmul.f32 %v779_v25, %v290_v45  ;;  %v317_v0 = vmul.f32 %v316_v46, %v933_v48  ;;  %vm333_vm9 = vweird.f32 %v1031_v29  ;;  %v1060_v8 = vmin.f32 %v425_v62, 16.0 }
  0xb1   :  { %v252_v58 = vadd.f32 %v777_v22, %v251_v50  ;;  %v366_v1 = vmul.f32 %v365_v55, %v959_v9  ;;  %v390_v4 = vadd.f32 0.0036580483, %v389_v59  ;;  %v401_v7 = vadd.f32 0.014752088, %v400_v38 }
  0xb2   :  { %v292_v39 = vadd.f32 %v779_v25, %v291_v53  ;;  %v781_v2 = vpop.eup %780  ;;  %v337_v48 = vand.u32 2147483647, %v1031_v29  ;;  %v339_v24 = vand.u32 2147483648, %v1031_v29  ;;  %v438_v45 = vmul.f32 3.8918573e-05, %v1060_v8 }
  0xb3   :  { %v256_v3 = vsel %vm255_vm8, %v777_v22, %v252_v58  ;;  %v329_v14 = vmul.f32 %v781_v2, %v1031_v29  ;;  %v1068_v18 = vadd.f32 1.0, %v366_v1  ;;  %v391_v60 = vmul.f32 %v390_v4, %v1013_v16  ;;  %v171_v1 = vpop.f32.mrf.mxu3 }
  0xb4   :  { %v261_v57 = vsel %vm1027_vm4, %v260_v23, %v256_v3  ;;  %v296_v11 = vsel %vm295_vm10, %v779_v25, %v292_v39  ;;  %v402_v21 = vmul.f32 %v401_v7, %v1013_v16  ;;  %v427_v22 = vmul.f32 2.1237322e-06, %v1060_v8 }
  0xb5   :  { %v262_v15 = vmul.f32 %v261_v57, %v237_v27  ;;  %v301_v17 = vsel %vm1036_vm5, %v300_v41, %v296_v11  ;;  %v330_v20 = vsub.f32 1.0, %v329_v14  ;;  %782 = vrcp.f32 %v1068_v18 }
  0xb6   :  { %v302_v19 = vmul.f32 %v301_v17, %v277_v42  ;;  %v465_v27 = vmul.f32 %v1047_v49, %v1047_v49  ;;  %vm334_vm11 = vweird.f32 %v781_v2  ;;  %v392_v30 = vadd.f32 0.05243302, %v391_v60 }
  0xb7   :  { %v761_v23 = vclamps-f32 %v262_v15, 1.0  ;;  %v331_v25 = vmul.f32 %v781_v2, %v330_v20  ;;  %v355_v42 = vmul.f32 %v354_v54, %v959_v9  ;;  %v403_v32 = vadd.f32 0.112945676, %v402_v21  ;;  %vm335_vm13 = vmor %vm333_vm9, %vm334_vm11 }
  0xb8   :  { %v762_v28 = vclamps-f32 %v302_v19, 1.0  ;;  %v428_v33 = vadd.f32 0.00028619796, %v427_v22  ;;  %vm338_vm12 = vcmp.eq.f32.partialorder %v337_v48, 8.507059e+37  ;;  %v393_v61 = vmul.f32 %v392_v30, %v1013_v16 }
  0xb9   :  { %v705_v31 = vadd.f32 1.0, %v761_v23  ;;  %v332_v35 = vadd.f32 %v781_v2, %v331_v25  ;;  %v340_v37 = vor.u32 1.1754944e-38, %v339_v24  ;;  %v404_v41 = vmul.f32 %v403_v32, %v1013_v16  ;;  %v1114_v23 = vpop.permute.xlu1 %47 }
  0xba   :  { %v706_v34 = vadd.f32 1.0, %v762_v28  ;;  %v429_v47 = vmul.f32 %v428_v33, %v1060_v8  ;;  %v1086_v50 = vmin.f32 %v465_v27, 16.0  ;;  %v394_v29 = vadd.f32 0.18741608, %v393_v61  ;;  %v185_v33 = vld [vmem:[%s1341_s3 + $0x40] sm:$0xf] }
  0xbb   :  { %v717_v36 = vmul.f32 %v705_v31, %v1000_v5  ;;  %v336_v9 = vsel %vm335_vm13, %v781_v2, %v332_v35  ;;  %v783_v51 = vpop.eup %782  ;;  %v405_v52 = vadd.f32 0.4994258, %v404_v41  ;;  %v439_v53 = vadd.f32 0.001143296, %v438_v45 }
  0xbc   :  { %v718_v46 = vmul.f32 %v706_v34, %v1003_v6  ;;  %v341_v5 = vsel %vm338_vm12, %v340_v37, %v336_v9  ;;  %v356_v6 = vadd.f32 1.1283791, %v355_v42  ;;  %v369_v55 = vmul.f32 %v783_v51, %v1068_v18 }
  0xbd   :  { %729 = vst [vmem:[%s1342_s4] sm:$0xff] %v717_v36  ;;  %v342_v54 = vmul.f32 %v341_v5, %v317_v0  ;;  %v377_v58 = vand.u32 2147483647, %v1068_v18  ;;  %v379_v59 = vand.u32 2147483648, %v1068_v18  ;;  %v406_v38 = vmul.f32 %v405_v52, %v1013_v16 }
  0xbe   :  { %730 = vst [vmem:[%s1342_s4 + $0x8] sm:$0xff] %v718_v46  ;;  %v440_v62 = vmul.f32 %v439_v53, %v1060_v8  ;;  %v467_v39 = vmul.f32 2.1237322e-06, %v1086_v50  ;;  %v370_v3 = vsub.f32 1.0, %v369_v55  ;;  %vm374_vm14 = vweird.f32 %v783_v51 }
  0xbf   :  { %v763_v2 = vclamps-f32 %v342_v54, 1.0  ;;  %v430_v4 = vadd.f32 0.0036580483, %v429_v47  ;;  %v395_v0 = vmul.f32 %v394_v29, %v1013_v16  ;;  %v1101_v7 = vadd.f32 1.0, %v406_v38  ;;  %v184_v16 = vld [vmem:[%s1341_s3 + $0x38] sm:$0xff]  ;;  %v122_v54 = vpop.f32.mrf.mxu1 }
  0xc0   :  { %v441_v57 = vadd.f32 0.014752088, %v440_v62  ;;  %v478_v11 = vmul.f32 3.8918573e-05, %v1086_v50  ;;  %v371_v48 = vmul.f32 %v783_v51, %v370_v3  ;;  %v468_v15 = vadd.f32 0.00028619796, %v467_v39 }
  0xc1   :  { %v707_v14 = vadd.f32 1.0, %v763_v2  ;;  %v172_v17 = vadd.f32 %v171_v1, %v922_v40  ;;  %v357_v60 = vmul.f32 %v356_v6, %v942_v56  ;;  %vm373_vm15 = vweird.f32 %v1068_v18  ;;  %v96_v40 = vpop.f32.mrf.mxu0 }
  0xc2   :  { %784 = vrcp.f32 %v1101_v7  ;;  %v372_v20 = vadd.f32 %v783_v51, %v371_v48  ;;  %v431_v21 = vmul.f32 %v430_v4, %v1060_v8  ;;  %v442_v22 = vmul.f32 %v441_v57, %v1060_v8  ;;  %vm375_vm0 = vmor %vm373_vm15, %vm374_vm14 }
  0xc3   :  { %v719_v19 = vmul.f32 %v707_v14, %v1008_v10  ;;  %v380_v56 = vor.u32 1.1754944e-38, %v379_v59  ;;  %v396_v18 = vadd.f32 1.1283791, %v395_v0  ;;  %v469_v24 = vmul.f32 %v468_v15, %v1086_v50  ;;  %v186_v0 = vld [vmem:[%s1341_s3 + $0x48] sm:$0xf] }
  0xc4   :  { %v479_v27 = vadd.f32 0.001143296, %v478_v11  ;;  %v376_v10 = vsel %vm375_vm0, %v783_v51, %v372_v20  ;;  %vm378_vm1 = vcmp.eq.f32.partialorder %v377_v58, 8.507059e+37  ;;  %v443_v28 = vadd.f32 0.112945676, %v442_v22 }
  0xc5   :  { %731 = vst [vmem:[%s1342_s4 + $0x10] sm:$0xff] %v719_v19  ;;  %v1121_v25 = vadd.f32 %v184_v16, %v172_v17  ;;  %v381_v30 = vsel %vm378_vm1, %v380_v56, %v376_v10  ;;  %v470_v31 = vadd.f32 0.0036580483, %v469_v24  ;;  %v97_v32 = vadd.f32 %v96_v40, %v1114_v23 }
  0xc6   :  { %v480_v42 = vmul.f32 %v479_v27, %v1086_v50  ;;  %v204_v34 = vmul.f32 0.5, %v926_v43  ;;  %v382_v35 = vmul.f32 %v381_v30, %v357_v60  ;;  %v432_v61 = vadd.f32 0.05243302, %v431_v21 }
  0xc7   :  { %v444_v36 = vmul.f32 %v443_v28, %v1060_v8  ;;  %v397_v41 = vmul.f32 %v396_v18, %v963_v13  ;;  %v471_v45 = vmul.f32 %v470_v31, %v1086_v50  ;;  %v1133_v9 = vmul.f32 0.70710677, %v1121_v25 }
  0xc8   :  { %v785_v37 = vpop.eup %784  ;;  %v481_v46 = vadd.f32 0.014752088, %v480_v42  ;;  %v764_v47 = vclamps-f32 %v382_v35, 1.0  ;;  %v417_v5 = vand.u32 2147483647, %v1101_v7  ;;  %v1137_v29 = vadd.f32 %v185_v33, %v97_v32 }
  0xc9   :  { %v409_v51 = vmul.f32 %v785_v37, %v1101_v7  ;;  %v445_v43 = vadd.f32 0.4994258, %v444_v36  ;;  %v472_v52 = vadd.f32 0.05243302, %v471_v45  ;;  %v505_v13 = vmul.f32 %v1133_v9, %v1133_v9 }
  0xca   :  { %v482_v53 = vmul.f32 %v481_v46, %v1086_v50  ;;  %v708_v6 = vadd.f32 1.0, %v764_v47  ;;  %v419_v58 = vand.u32 2147483648, %v1101_v7  ;;  %v433_v59 = vmul.f32 %v432_v61, %v1060_v8 }
  0xcb   :  { %v410_v55 = vsub.f32 1.0, %v409_v51  ;;  %vm414_vm2 = vweird.f32 %v785_v37  ;;  %v446_v38 = vmul.f32 %v445_v43, %v1060_v8  ;;  %v1145_v39 = vmin.f32 %v505_v13, 16.0 }
  0xcc   :  { %v483_v62 = vadd.f32 0.112945676, %v482_v53  ;;  %v720_v1 = vmul.f32 %v708_v6, %v204_v34  ;;  %v1148_v3 = vmul.f32 0.70710677, %v1137_v29  ;;  %v123_v4 = vadd.f32 %v122_v54, %v1114_v23 }
  0xcd   :  { %v411_v2 = vmul.f32 %v785_v37, %v410_v55  ;;  %v1154_v57 = vadd.f32 1.0, %v446_v38  ;;  %v473_v11 = vmul.f32 %v472_v52, %v1086_v50  ;;  %v507_v48 = vmul.f32 2.1237322e-06, %v1145_v39 }
  0xce   :  { %v484_v14 = vmul.f32 %v483_v62, %v1086_v50  ;;  %732 = vst [vmem:[%s1342_s4 + $0x18] sm:$0xff] %v720_v1  ;;  %vm413_vm3 = vweird.f32 %v1101_v7  ;;  %v420_v17 = vor.u32 1.1754944e-38, %v419_v58  ;;  %v518_v60 = vmul.f32 3.8918573e-05, %v1145_v39 }
  0xcf   :  { %v412_v15 = vadd.f32 %v785_v37, %v411_v2  ;;  %vm415_vm4 = vmor %vm413_vm3, %vm414_vm2  ;;  %v434_v16 = vadd.f32 0.18741608, %v433_v59  ;;  %786 = vrcp.f32 %v1154_v57  ;;  %v545_v19 = vmul.f32 %v1148_v3, %v1148_v3 }
  0xd0   :  { %v1168_v20 = vadd.f32 %v186_v0, %v123_v4  ;;  %vm418_vm5 = vcmp.eq.f32.partialorder %v417_v5, 8.507059e+37  ;;  %v485_v22 = vadd.f32 0.4994258, %v484_v14  ;;  %v508_v40 = vadd.f32 0.00028619796, %v507_v48 }
  0xd1   :  { %v416_v21 = vsel %vm415_vm4, %v785_v37, %v412_v15  ;;  %v474_v18 = vadd.f32 0.18741608, %v473_v11  ;;  %v519_v7 = vadd.f32 0.001143296, %v518_v60  ;;  %v435_v28 = vmul.f32 %v434_v16, %v1060_v8 }
  0xd2   :  { %v421_v56 = vsel %vm418_vm5, %v420_v17, %v416_v21  ;;  %v486_v27 = vmul.f32 %v485_v22, %v1086_v50  ;;  %v509_v10 = vmul.f32 %v508_v40, %v1145_v39  ;;  %v1174_v31 = vmin.f32 %v545_v19, 16.0 }
  0xd3   :  { %v422_v24 = vmul.f32 %v421_v56, %v397_v41  ;;  %v520_v30 = vmul.f32 %v519_v7, %v1145_v39  ;;  %v1177_v42 = vmul.f32 0.70710677, %v1168_v20  ;;  %v205_v32 = vmul.f32 0.5, %v952_v63 }
  0xd4   :  { %v1180_v34 = vadd.f32 1.0, %v486_v27  ;;  %v510_v35 = vadd.f32 0.0036580483, %v509_v10  ;;  %v475_v36 = vmul.f32 %v474_v18, %v1086_v50  ;;  %v547_v41 = vmul.f32 2.1237322e-06, %v1174_v31 }
  0xd5   :  { %v765_v33 = vclamps-f32 %v422_v24, 1.0  ;;  %v787_v61 = vpop.eup %786  ;;  %v521_v37 = vadd.f32 0.014752088, %v520_v30  ;;  %v558_v8 = vmul.f32 3.8918573e-05, %v1174_v31  ;;  %v585_v63 = vmul.f32 %v1177_v42, %v1177_v42 }
  0xd6   :  { %v449_v46 = vmul.f32 %v787_v61, %v1154_v57  ;;  %788 = vrcp.f32 %v1180_v34  ;;  %v1190_v47 = vmul.f32 0.5, %v1010_v12  ;;  %v436_v51 = vadd.f32 1.1283791, %v435_v28 }
  0xd7   :  { %v709_v45 = vadd.f32 1.0, %v765_v33  ;;  %v457_v5 = vand.u32 2147483647, %v1154_v57  ;;  %v459_v50 = vand.u32 2147483648, %v1154_v57  ;;  %v522_v53 = vmul.f32 %v521_v37, %v1145_v39 }
  0xd8   :  { %v450_v52 = vsub.f32 1.0, %v449_v46  ;;  %v548_v13 = vadd.f32 0.00028619796, %v547_v41  ;;  %vm454_vm6 = vweird.f32 %v787_v61  ;;  %v476_v54 = vadd.f32 1.1283791, %v475_v36 }
  0xd9   :  { %v721_v43 = vmul.f32 %v709_v45, %v205_v32  ;;  %v511_v6 = vmul.f32 %v510_v35, %v1145_v39  ;;  %v559_v55 = vadd.f32 0.001143296, %v558_v8  ;;  %v523_v58 = vadd.f32 0.112945676, %v522_v53  ;;  %v148_v32 = vpop.f32.mrf.mxu2 }
  0xda   :  { %v451_v12 = vmul.f32 %v787_v61, %v450_v52  ;;  %v549_v59 = vmul.f32 %v548_v13, %v1174_v31  ;;  %v1200_v38 = vmin.f32 %v585_v63, 16.0  ;;  %v437_v62 = vmul.f32 %v436_v51, %v1043_v44  ;;  %v174_v51 = vpop.f32.mrf.mxu3 }
  0xdb   :  { %733 = vst [vmem:[%s1342_s4 + $0x20] sm:$0xff] %v721_v43  ;;  %vm453_vm7 = vweird.f32 %v1154_v57  ;;  %vm1204_vm8 = vcmp.eq.f32.partialorder %v457_v5, 8.507059e+37  ;;  %v560_v2 = vmul.f32 %v559_v55, %v1174_v31  ;;  %v460_v11 = vor.u32 1.1754944e-38, %v459_v50 }
  0xdc   :  { %v789_v4 = vpop.eup %788  ;;  %v452_v0 = vadd.f32 %v787_v61, %v451_v12  ;;  %v524_v14 = vmul.f32 %v523_v58, %v1145_v39  ;;  %v550_v48 = vadd.f32 0.0036580483, %v549_v59  ;;  %vm455_vm9 = vmor %vm453_vm7, %vm454_vm6  ;;  %v477_v15 = vmul.f32 %v476_v54, %v1047_v49 }
  0xdd   :  { %v489_v44 = vmul.f32 %v789_v4, %v1180_v34  ;;  %v561_v17 = vadd.f32 0.014752088, %v560_v2  ;;  %v587_v57 = vmul.f32 2.1237322e-06, %v1200_v38  ;;  %v512_v16 = vadd.f32 0.05243302, %v511_v6 }
  0xde   :  { %v456_v60 = vsel %vm455_vm9, %v787_v61, %v452_v0  ;;  %v525_v19 = vadd.f32 0.4994258, %v524_v14  ;;  %v551_v21 = vmul.f32 %v550_v48, %v1174_v31  ;;  %v499_v56 = vand.u32 2147483648, %v1180_v34 }
  0xdf   :  { %v461_v22 = vsel %vm1204_vm8, %v460_v11, %v456_v60  ;;  %v490_v40 = vsub.f32 1.0, %v489_v44  ;;  %v562_v18 = vmul.f32 %v561_v17, %v1174_v31  ;;  %vm494_vm10 = vweird.f32 %v789_v4 }
  0xe0   :  { %v462_v7 = vmul.f32 %v461_v22, %v437_v62  ;;  %v497_v49 = vand.u32 2147483647, %v1180_v34  ;;  %v526_v24 = vmul.f32 %v525_v19, %v1145_v39  ;;  %v588_v28 = vadd.f32 0.00028619796, %v587_v57 }
  0xe1   :  { %v491_v27 = vmul.f32 %v789_v4, %v490_v40  ;;  %v563_v10 = vadd.f32 0.112945676, %v562_v18  ;;  %v598_v30 = vmul.f32 3.8918573e-05, %v1200_v38  ;;  %v513_v35 = vmul.f32 %v512_v16, %v1145_v39 }
  0xe2   :  { %v766_v33 = vclamps-f32 %v462_v7, 1.0  ;;  %v1223_v61 = vadd.f32 1.0, %v526_v24  ;;  %v552_v36 = vadd.f32 0.05243302, %v551_v21  ;;  %vm493_vm11 = vweird.f32 %v1180_v34  ;;  %v187_v34 = vld [vmem:[%s1341_s3 + $0x50] sm:$0xf] }
  0xe3   :  { %v492_v37 = vadd.f32 %v789_v4, %v491_v27  ;;  %v500_v41 = vor.u32 1.1754944e-38, %v499_v56  ;;  %v564_v8 = vmul.f32 %v563_v10, %v1174_v31  ;;  %vm495_vm12 = vmor %vm493_vm11, %vm494_vm10  ;;  %v599_v46 = vadd.f32 0.001143296, %v598_v30 }
  0xe4   :  { %v710_v45 = vadd.f32 1.0, %v766_v33  ;;  %790 = vrcp.f32 %v1223_v61  ;;  %v149_v63 = vadd.f32 %v148_v32, %v1114_v23  ;;  %vm498_vm13 = vcmp.eq.f32.partialorder %v497_v49, 8.507059e+37 }
  0xe5   :  { %v496_v5 = vsel %vm495_vm12, %v789_v4, %v492_v37  ;;  %v565_v50 = vadd.f32 0.4994258, %v564_v8  ;;  %v589_v43 = vmul.f32 %v588_v28, %v1200_v38  ;;  %v514_v13 = vadd.f32 0.18741608, %v513_v35 }
  0xe6   :  { %v722_v52 = vmul.f32 %v710_v45, %v1190_v47  ;;  %v501_v53 = vsel %vm498_vm13, %v500_v41, %v496_v5  ;;  %v553_v54 = vmul.f32 %v552_v36, %v1174_v31  ;;  %v175_v12 = vadd.f32 %v174_v51, %v1114_v23  ;;  %v188_v47 = vld [vmem:[%s1341_s3 + $0x58] sm:$0xf] }
  0xe7   :  { %v502_v6 = vmul.f32 %v501_v53, %v477_v15  ;;  %v566_v55 = vmul.f32 %v565_v50, %v1174_v31  ;;  %v600_v58 = vmul.f32 %v599_v46, %v1200_v38  ;;  %v1242_v59 = vadd.f32 %v187_v34, %v149_v63 }
  0xe8   :  { %734 = vst [vmem:[%s1342_s4 + $0x28] sm:$0xff] %v722_v52  ;;  %v590_v2 = vadd.f32 0.0036580483, %v589_v43  ;;  %v515_v0 = vmul.f32 %v514_v13, %v1145_v39  ;;  %v554_v23 = vadd.f32 0.18741608, %v553_v54  ;;  %v207_v48 = vmul.f32 0.5, %v1015_v26 }
  0xe9   :  { %v767_v62 = vclamps-f32 %v502_v6, 1.0  ;;  %v1247_v1 = vadd.f32 1.0, %v566_v55  ;;  %v601_v11 = vadd.f32 0.014752088, %v600_v58  ;;  %v1251_v14 = vmul.f32 0.70710677, %v1242_v59 }
  0xea   :  { %v791_v4 = vpop.eup %790  ;;  %v1255_v17 = vadd.f32 %v188_v47, %v175_v12  ;;  %v537_v57 = vand.u32 2147483647, %v1223_v61  ;;  %v539_v39 = vand.u32 2147483648, %v1223_v61  ;;  %v516_v21 = vadd.f32 1.1283791, %v515_v0 }
  0xeb   :  { %v711_v15 = vadd.f32 1.0, %v767_v62  ;;  %v529_v44 = vmul.f32 %v791_v4, %v1223_v61  ;;  %792 = vrcp.f32 %v1247_v1  ;;  %v602_v19 = vmul.f32 %v601_v11, %v1200_v38 }
  0xec   :  { %v555_v22 = vmul.f32 %v554_v23, %v1174_v31  ;;  %v591_v26 = vmul.f32 %v590_v2, %v1200_v38  ;;  %v625_v40 = vmul.f32 %v1251_v14, %v1251_v14  ;;  %vm534_vm14 = vweird.f32 %v791_v4 }
  0xed   :  { %v723_v60 = vmul.f32 %v711_v15, %v207_v48  ;;  %v530_v16 = vsub.f32 1.0, %v529_v44  ;;  %v603_v18 = vadd.f32 0.112945676, %v602_v19  ;;  %v1269_v7 = vmul.f32 0.70710677, %v1255_v17 }
  0xee   :  { %v208_v49 = vmul.f32 0.5, %v1121_v25  ;;  %vm533_vm15 = vweird.f32 %v1223_v61  ;;  %vm1273_vm0 = vcmp.eq.f32.partialorder %v537_v57, 8.507059e+37  ;;  %v1277_v24 = vmin.f32 %v625_v40, 16.0 }
  0xef   :  { %735 = vst [vmem:[%s1342_s4 + $0x30] sm:$0xff] %v723_v60  ;;  %v531_v56 = vmul.f32 %v791_v4, %v530_v16  ;;  %v540_v10 = vor.u32 1.1754944e-38, %v539_v39  ;;  %v604_v28 = vmul.f32 %v603_v18, %v1200_v38  ;;  %v665_v30 = vmul.f32 %v1269_v7, %v1269_v7  ;;  %vm535_vm1 = vmor %vm533_vm15, %vm534_vm14 }
  0xf0   :  { %v517_v33 = vmul.f32 %v516_v21, %v1133_v9  ;;  %v592_v25 = vadd.f32 0.05243302, %v591_v26  ;;  %v627_v35 = vmul.f32 2.1237322e-06, %v1277_v24  ;;  %v638_v61 = vmul.f32 3.8918573e-05, %v1277_v24 }
  0xf1   :  { %v532_v27 = vadd.f32 %v791_v4, %v531_v56  ;;  %v793_v32 = vpop.eup %792  ;;  %v556_v37 = vadd.f32 1.1283791, %v555_v22  ;;  %v577_v8 = vand.u32 2147483647, %v1247_v1  ;;  %v605_v46 = vadd.f32 0.4994258, %v604_v28 }
  0xf2   :  { %v569_v41 = vmul.f32 %v793_v32, %v1247_v1  ;;  %v628_v63 = vadd.f32 0.00028619796, %v627_v35  ;;  %v639_v51 = vadd.f32 0.001143296, %v638_v61  ;;  %v579_v50 = vand.u32 2147483648, %v1247_v1 }
  0xf3   :  { %v536_v36 = vsel %vm535_vm1, %v791_v4, %v532_v27  ;;  %v1290_v43 = vmin.f32 %v665_v30, 16.0  ;;  %vm574_vm2 = vweird.f32 %v793_v32  ;;  %v606_v34 = vmul.f32 %v605_v46, %v1200_v38 }
  0xf4   :  { %v541_v45 = vsel %vm1273_vm0, %v540_v10, %v536_v36  ;;  %v570_v9 = vsub.f32 1.0, %v569_v41  ;;  %v629_v52 = vmul.f32 %v628_v63, %v1277_v24  ;;  %v640_v53 = vmul.f32 %v639_v51, %v1277_v24 }
  0xf5   :  { %v542_v5 = vmul.f32 %v541_v45, %v517_v33  ;;  %v667_v6 = vmul.f32 2.1237322e-06, %v1290_v43  ;;  %v678_v55 = vmul.f32 3.8918573e-05, %v1290_v43  ;;  %v557_v12 = vmul.f32 %v556_v37, %v1148_v3 }
  0xf6   :  { %v571_v54 = vmul.f32 %v793_v32, %v570_v9  ;;  %v593_v58 = vmul.f32 %v592_v25, %v1200_v38  ;;  %v607_v47 = vadd.f32 1.0, %v606_v34  ;;  %v641_v62 = vadd.f32 0.014752088, %v640_v53 }
  0xf7   :  { %v768_v13 = vclamps-f32 %v542_v5, 1.0  ;;  %vm573_vm3 = vweird.f32 %v1247_v1  ;;  %v679_v0 = vadd.f32 0.001143296, %v678_v55  ;;  %vm578_vm5 = vcmp.eq.f32.partialorder %v577_v8, 8.507059e+37 }
  0xf8   :  { %v572_v4 = vadd.f32 %v793_v32, %v571_v54  ;;  %vm575_vm4 = vmor %vm573_vm3, %vm574_vm2  ;;  %v580_v23 = vor.u32 1.1754944e-38, %v579_v50  ;;  %794 = vrcp.f32 %v607_v47  ;;  %v668_v11 = vadd.f32 0.00028619796, %v667_v6 }
  0xf9   :  { %v712_v2 = vadd.f32 1.0, %v768_v13  ;;  %v630_v44 = vadd.f32 0.0036580483, %v629_v52  ;;  %v642_v3 = vmul.f32 %v641_v62, %v1277_v24  ;;  %v594_v16 = vadd.f32 0.18741608, %v593_v58 }
  0xfa   :  { %v576_v15 = vsel %vm575_vm4, %v793_v32, %v572_v4  ;;  %v680_v39 = vmul.f32 %v679_v0, %v1290_v43  ;;  %v669_v19 = vmul.f32 %v668_v11, %v1290_v43  ;;  %v209_v18 = vmul.f32 0.5, %v1137_v29 }
  0xfb   :  { %v724_v48 = vmul.f32 %v712_v2, %v208_v49  ;;  %v581_v57 = vsel %vm578_vm5, %v580_v23, %v576_v15  ;;  %v643_v1 = vadd.f32 0.112945676, %v642_v3  ;;  %v631_v22 = vmul.f32 %v630_v44, %v1277_v24 }
  0xfc   :  { %v582_v60 = vmul.f32 %v581_v57, %v557_v12  ;;  %v681_v40 = vadd.f32 0.014752088, %v680_v39  ;;  %v595_v31 = vmul.f32 %v594_v16, %v1200_v38  ;;  %v670_v28 = vadd.f32 0.0036580483, %v669_v19 }
  0xfd   :  { %736 = vst [vmem:[%s1342_s4 + $0x38] sm:$0xff] %v724_v48  ;;  %v644_v26 = vmul.f32 %v643_v1, %v1277_v24  ;;  %v632_v25 = vadd.f32 0.05243302, %v631_v22  ;;  %v619_v35 = vand.u32 2147483648, %v607_v47  ;;  %v617_v38 = vand.u32 2147483647, %v607_v47 }
  0xfe   :  { %v769_v21 = vclamps-f32 %v582_v60, 1.0  ;;  %v795_v56 = vpop.eup %794  ;;  %v682_v30 = vmul.f32 %v681_v40, %v1290_v43  ;;  %v596_v29 = vadd.f32 1.1283791, %v595_v31  ;;  %v671_v8 = vmul.f32 %v670_v28, %v1290_v43 }
  0xff   :  { %v609_v27 = vmul.f32 %v795_v56, %v607_v47  ;;  %v645_v10 = vadd.f32 0.4994258, %v644_v26  ;;  %vm614_vm6 = vweird.f32 %v795_v56  ;;  %vm613_vm7 = vweird.f32 %v607_v47 }
 0x100   :  { %v713_v49 = vadd.f32 1.0, %v769_v21  ;;  %v683_v36 = vadd.f32 0.112945676, %v682_v30  ;;  %v633_v63 = vmul.f32 %v632_v25, %v1277_v24  ;;  %vm615_vm8 = vmor %vm613_vm7, %vm614_vm6  ;;  %v620_v51 = vor.u32 1.1754944e-38, %v619_v35 }
 0x101   :  { %v610_v33 = vsub.f32 1.0, %v609_v27  ;;  %v646_v61 = vmul.f32 %v645_v10, %v1277_v24  ;;  %v597_v5 = vmul.f32 %v596_v29, %v1177_v42  ;;  %vm618_vm9 = vcmp.eq.f32.partialorder %v617_v38, 8.507059e+37 }
 0x102   :  { %v725_v32 = vmul.f32 %v713_v49, %v209_v18  ;;  %v684_v45 = vmul.f32 %v683_v36, %v1290_v43  ;;  %v672_v52 = vadd.f32 0.05243302, %v671_v8  ;;  %v634_v13 = vadd.f32 0.18741608, %v633_v63 }
 0x103   :  { %v611_v37 = vmul.f32 %v795_v56, %v610_v33  ;;  %v647_v41 = vadd.f32 1.0, %v646_v61  ;;  %v210_v58 = vmul.f32 0.5, %v1168_v20  ;;  %v211_v31 = vmul.f32 0.5, %v1242_v59 }
 0x104   :  { %737 = vst [vmem:[%s1342_s4 + $0x40] sm:$0xf] %v725_v32  ;;  %v685_v50 = vadd.f32 0.4994258, %v684_v45  ;;  %v673_v47 = vmul.f32 %v672_v52, %v1290_v43  ;;  %v635_v2 = vmul.f32 %v634_v13, %v1277_v24  ;;  %v212_v25 = vmul.f32 0.5, %v1255_v17 }
 0x105   :  { %v612_v46 = vadd.f32 %v795_v56, %v611_v37  ;;  %796 = vrcp.f32 %v647_v41  ;;  %v659_v23 = vand.u32 2147483648, %v647_v41  ;;  %v657_v44 = vand.u32 2147483647, %v647_v41 }
 0x106   :  { %v686_v54 = vmul.f32 %v685_v50, %v1290_v43  ;;  %v674_v11 = vadd.f32 0.18741608, %v673_v47  ;;  %v636_v48 = vadd.f32 1.1283791, %v635_v2  ;;  %vm653_vm11 = vweird.f32 %v647_v41 }
 0x107   :  { %v616_v9 = vsel %vm615_vm8, %v795_v56, %v612_v46  ;;  %v660_v57 = vor.u32 1.1754944e-38, %v659_v23  ;;  %vm658_vm13 = vcmp.eq.f32.partialorder %v657_v44, 8.507059e+37 }
 0x108   :  { %v621_v34 = vsel %vm618_vm9, %v620_v51, %v616_v9  ;;  %v687_v55 = vadd.f32 1.0, %v686_v54  ;;  %v675_v24 = vmul.f32 %v674_v11, %v1290_v43  ;;  %v637_v16 = vmul.f32 %v636_v48, %v1251_v14 }
 0x109   :  { %v622_v53 = vmul.f32 %v621_v34, %v597_v5 }
 0x10a   :  { %798 = vrcp.f32 %v687_v55  ;;  %v699_v22 = vand.u32 2147483648, %v687_v55  ;;  %v676_v26 = vadd.f32 1.1283791, %v675_v24  ;;  %v697_v56 = vand.u32 2147483647, %v687_v55 }
 0x10b   :  { %v770_v6 = vclamps-f32 %v622_v53, 1.0  ;;  %v797_v12 = vpop.eup %796  ;;  %vm693_vm15 = vweird.f32 %v687_v55 }
 0x10c   :  { %v649_v42 = vmul.f32 %v797_v12, %v647_v41  ;;  %vm654_vm10 = vweird.f32 %v797_v12  ;;  %v700_v43 = vor.u32 1.1754944e-38, %v699_v22  ;;  %v677_v14 = vmul.f32 %v676_v26, %v1269_v7 }
 0x10d   :  { %v714_v62 = vadd.f32 1.0, %v770_v6  ;;  %vm655_vm12 = vmor %vm653_vm11, %vm654_vm10  ;;  %vm698_vm1 = vcmp.eq.f32.partialorder %v697_v56, 8.507059e+37 }
 0x10e   :  { %v650_v0 = vsub.f32 1.0, %v649_v42 }
 0x10f   :  { %v726_v4 = vmul.f32 %v714_v62, %v210_v58 }
 0x110   :  { %v651_v15 = vmul.f32 %v797_v12, %v650_v0  ;;  %v799_v20 = vpop.eup %798 }
 0x111   :  { %738 = vst [vmem:[%s1342_s4 + $0x48] sm:$0xf] %v726_v4  ;;  %v689_v60 = vmul.f32 %v799_v20, %v687_v55  ;;  %vm694_vm14 = vweird.f32 %v799_v20 }
 0x112   :  { %v652_v3 = vadd.f32 %v797_v12, %v651_v15  ;;  %vm695_vm0 = vmor %vm693_vm15, %vm694_vm14 }
 0x113   :  { %v690_v19 = vsub.f32 1.0, %v689_v60 }
 0x114   :  { %v656_v1 = vsel %vm655_vm12, %v797_v12, %v652_v3 }
 0x115   :  { %v661_v39 = vsel %vm658_vm13, %v660_v57, %v656_v1  ;;  %v691_v40 = vmul.f32 %v799_v20, %v690_v19 }
 0x116   :  { %v662_v21 = vmul.f32 %v661_v39, %v637_v16 }
 0x117   :  { %v692_v49 = vadd.f32 %v799_v20, %v691_v40 }
 0x118   :  { %v771_v18 = vclamps-f32 %v662_v21, 1.0 }
 0x119   :  { %v696_v10 = vsel %vm695_vm0, %v799_v20, %v692_v49 }
 0x11a   :  { %v715_v27 = vadd.f32 1.0, %v771_v18  ;;  %v701_v30 = vsel %vm698_vm1, %v700_v43, %v696_v10 }
 0x11b   :  { %v702_v32 = vmul.f32 %v701_v30, %v677_v14 }
 0x11c   :  { %v727_v28 = vmul.f32 %v715_v27, %v211_v31 }
 0x11d   :  { %v772_v33 = vclamps-f32 %v702_v32, 1.0 }
 0x11e   :  { %739 = vst [vmem:[%s1342_s4 + $0x50] sm:$0xf] %v727_v28 }
 0x11f   :  { %v716_v35 = vadd.f32 1.0, %v772_v33 }
 0x121   :  { %v728_v61 = vmul.f32 %v716_v35, %v212_v25 }
 0x123   :  { %740 = vst [vmem:[%s1342_s4 + $0x58] sm:$0xf] %v728_v61 }

// kernel: fno2d_forward.18
= control target key start
LH: loop header
LB: loop body
LE: loop exit
PB: predicated region body
PF: predicated region fallthrough
CT: control target
= control target key end

     0   :  { %vm60_vm0 = vcmask 1043456   ;;  %v236_v3 = vmov 0   ;;  %vm50_vm1 = vcmask 162816   ;;  %s404_s0 = inlined_call_operand.vmem [shape: f32[20,512], index: 0, kind: input, shape index: {}]   ;;  %s405_s1 = inlined_call_operand.vmem [shape: f32[20,20], index: 1, kind: input, shape index: {}]   ;;  %s406_s2 = inlined_call_operand.vmem [shape: f32[20,1], index: 2, kind: input, shape index: {}]   ;;  %s407_s3 = inlined_call_operand.vmem [shape: f32[20,512], index: 3, kind: input, shape index: {}]   ;;  %s408_s4 = inlined_call_operand.vmem [shape: f32[20,512], index: 4, kind: output, shape index: {}]  }
   0x1   :  { %v30_v0 = vld [vmem:[%s404_s0 + $0x50] sm:$0xf]  ;;  %v31_v1 = vld [vmem:[%s404_s0 + $0x58] sm:$0xf]  ;;  %234 = vset.pattern.permute.xlu0 %v236_v3  ;;  %235 = vset.pattern.permute.xlu1 %v236_v3  ;;  %v28_v7 = vld [vmem:[%s404_s0 + $0x40] sm:$0xf] }
   0x2   :  { %v26_v2 = vld [vmem:[%s404_s0 + $0x30] sm:$0xff]  ;;  %225 = vmatpush.msk.msra.mxu2 %vm60_vm0, %v30_v0  ;;  %229 = vmatpush.msk.msra.mxu3 %vm60_vm0, %v31_v1  ;;  %v27_v4 = vld [vmem:[%s404_s0 + $0x38] sm:$0xff]  ;;  %v29_v8 = vld [vmem:[%s404_s0 + $0x48] sm:$0xf] }
   0x3   :  { %v22_v5 = vld [vmem:[%s404_s0 + $0x10] sm:$0xff]  ;;  %v23_v6 = vld [vmem:[%s404_s0 + $0x18] sm:$0xff]  ;;  %v17_v9 = vld [vmem:[%s405_s1] sm:$0xff]  ;;  %217 = vmatpush.msk.msra.mxu0 %vm60_vm0, %v28_v7  ;;  %221 = vmatpush.msk.msra.mxu1 %vm60_vm0, %v29_v8 }
   0x4   :  { %139 = vmatpush.msra.mxu2 %v26_v2  ;;  %165 = vmatpush.msra.mxu3 %v27_v4  ;;  %v24_v10 = vld [vmem:[%s404_s0 + $0x20] sm:$0xff]  ;;  %v25_v11 = vld [vmem:[%s404_s0 + $0x28] sm:$0xff]  ;;  %v34_v13 = vld [vmem:[%s406_s2 + $0x10] sm:$0xf] }
   0x5   :  { %v32_v12 = vld [vmem:[%s406_s2] sm:$0xff]  ;;  %v21_v15 = vld [vmem:[%s404_s0 + $0x8] sm:$0xff]  ;;  %87 = vmatpush.msra.mxu0 %v24_v10  ;;  %113 = vmatpush.msra.mxu1 %v25_v11  ;;  %v19_v18 = vld [vmem:[%s405_s1 + $0x10] sm:$0xf] }
   0x6   :  { %140 = vmatpush.msra.mxu2 %v22_v5  ;;  %166 = vmatpush.msra.mxu3 %v23_v6  ;;  %v20_v14 = vld [vmem:[%s404_s0] sm:$0xff]  ;;  %v18_v16 = vld [vmem:[%s405_s1 + $0x8] sm:$0xff]  ;;  %v179_v27 = vld [vmem:[%s407_s3 + $0x10] sm:$0xff] }
   0x7   :  { %226 = vmatmul.msk.f32.vlgmr.msra.gmra.mxu2 %vm50_vm1, %v17_v9  ;;  %230 = vmatmul.msk.f32.vlgmr.msra.gmra.mxu3 %vm50_vm1, %v17_v9  ;;  %v33_v17 = vld [vmem:[%s406_s2 + $0x8] sm:$0xff]  ;;  %v177_v21 = vld [vmem:[%s407_s3] sm:$0xff]  ;;  %v180_v29 = vld [vmem:[%s407_s3 + $0x18] sm:$0xff] }
   0x8   :  { %37 = vperm.xlu0 %234, %v32_v12   ;;  %47 = vperm.xlu1 %235, %v34_v13   ;;  %v178_v23 = vld [vmem:[%s407_s3 + $0x8] sm:$0xff]  ;;  %v181_v38 = vld [vmem:[%s407_s3 + $0x20] sm:$0xff]  ;;  %v183_v44 = vld [vmem:[%s407_s3 + $0x30] sm:$0xff] }
   0x9   :  { %88 = vmatpush.msra.mxu0 %v20_v14  ;;  %114 = vmatpush.msra.mxu1 %v21_v15  ;;  %v182_v40 = vld [vmem:[%s407_s3 + $0x28] sm:$0xff]  ;;  %v184_v46 = vld [vmem:[%s407_s3 + $0x38] sm:$0xff]  ;;  %v185_v55 = vld [vmem:[%s407_s3 + $0x40] sm:$0xf] }
   0xa   :  { %218 = vmatmul.msk.f32.vlgmr.msra.gmra.mxu0 %vm50_vm1, %v17_v9  ;;  %222 = vmatmul.msk.f32.vlgmr.msra.gmra.mxu1 %vm50_vm1, %v17_v9  ;;  %v186_v57 = vld [vmem:[%s407_s3 + $0x48] sm:$0xf]  ;;  %v187_v61 = vld [vmem:[%s407_s3 + $0x50] sm:$0xf]  ;;  %v188_v63 = vld [vmem:[%s407_s3 + $0x58] sm:$0xf] }
   0xf   :  { %227 = vmatmul.msk.f32.gmra.mxu2 %vm50_vm1, %v18_v16  ;;  %231 = vmatmul.msk.f32.gmra.mxu3 %vm50_vm1, %v18_v16 }
  0x10   :  { %42 = vperm.xlu0 %234, %v33_v17  }
  0x12   :  { %219 = vmatmul.msk.f32.gmra.mxu0 %vm50_vm1, %v18_v16  ;;  %223 = vmatmul.msk.f32.gmra.mxu1 %vm50_vm1, %v18_v16 }
  0x17   :  { %228 = vmatmul.msk.f32.gmra.mxu2 %vm50_vm1, %v19_v18  ;;  %232 = vmatmul.msk.f32.gmra.mxu3 %vm50_vm1, %v19_v18 }
  0x1a   :  { %220 = vmatmul.msk.f32.gmra.mxu0 %vm50_vm1, %v19_v18  ;;  %224 = vmatmul.msk.f32.gmra.mxu1 %vm50_vm1, %v19_v18 }
  0x7a   :  { %v38_v19 = vpop.permute.xlu0 %37  ;;  %v48_v53 = vpop.permute.xlu1 %47 }
  0x82   :  { %v43_v36 = vpop.permute.xlu0 %42 }
  0x87   :  { %v90_v20 = vpop.f32.mrf.mxu0  ;;  %v116_v22 = vpop.f32.mrf.mxu1 }
  0x88   :  { %v91_v24 = vadd.f32 %v90_v20, %v38_v19  ;;  %v117_v25 = vadd.f32 %v116_v22, %v38_v19 }
  0x8a   :  { %v142_v26 = vpop.f32.mrf.mxu2  ;;  %v168_v28 = vpop.f32.mrf.mxu3  ;;  %v189_v30 = vadd.f32 %v177_v21, %v91_v24  ;;  %v190_v31 = vadd.f32 %v178_v23, %v117_v25 }
  0x8b   :  { %v143_v32 = vadd.f32 %v142_v26, %v38_v19  ;;  %v169_v33 = vadd.f32 %v168_v28, %v38_v19 }
  0x8c   :  { %201 = vst [vmem:[%s408_s4] sm:$0xff] %v189_v30 }
  0x8d   :  { %v191_v34 = vadd.f32 %v179_v27, %v143_v32  ;;  %v192_v35 = vadd.f32 %v180_v29, %v169_v33  ;;  %202 = vst [vmem:[%s408_s4 + $0x8] sm:$0xff] %v190_v31 }
  0x8f   :  { %203 = vst [vmem:[%s408_s4 + $0x10] sm:$0xff] %v191_v34  ;;  %v93_v37 = vpop.f32.mrf.mxu0  ;;  %v119_v39 = vpop.f32.mrf.mxu1 }
  0x90   :  { %204 = vst [vmem:[%s408_s4 + $0x18] sm:$0xff] %v192_v35  ;;  %v94_v41 = vadd.f32 %v93_v37, %v43_v36  ;;  %v120_v42 = vadd.f32 %v119_v39, %v43_v36 }
  0x92   :  { %v145_v43 = vpop.f32.mrf.mxu2  ;;  %v171_v45 = vpop.f32.mrf.mxu3  ;;  %v193_v47 = vadd.f32 %v181_v38, %v94_v41  ;;  %v194_v48 = vadd.f32 %v182_v40, %v120_v42 }
  0x93   :  { %v146_v49 = vadd.f32 %v145_v43, %v43_v36  ;;  %v172_v50 = vadd.f32 %v171_v45, %v43_v36 }
  0x94   :  { %205 = vst [vmem:[%s408_s4 + $0x20] sm:$0xff] %v193_v47 }
  0x95   :  { %v195_v51 = vadd.f32 %v183_v44, %v146_v49  ;;  %v196_v52 = vadd.f32 %v184_v46, %v172_v50  ;;  %206 = vst [vmem:[%s408_s4 + $0x28] sm:$0xff] %v194_v48 }
  0x97   :  { %207 = vst [vmem:[%s408_s4 + $0x30] sm:$0xff] %v195_v51  ;;  %v96_v54 = vpop.f32.mrf.mxu0  ;;  %v122_v56 = vpop.f32.mrf.mxu1 }
  0x98   :  { %208 = vst [vmem:[%s408_s4 + $0x38] sm:$0xff] %v196_v52  ;;  %v97_v58 = vadd.f32 %v96_v54, %v48_v53  ;;  %v123_v59 = vadd.f32 %v122_v56, %v48_v53 }
  0x9a   :  { %v148_v60 = vpop.f32.mrf.mxu2  ;;  %v174_v62 = vpop.f32.mrf.mxu3  ;;  %v197_v0 = vadd.f32 %v185_v55, %v97_v58  ;;  %v198_v1 = vadd.f32 %v186_v57, %v123_v59 }
  0x9b   :  { %v149_v2 = vadd.f32 %v148_v60, %v48_v53  ;;  %v175_v3 = vadd.f32 %v174_v62, %v48_v53 }
  0x9c   :  { %209 = vst [vmem:[%s408_s4 + $0x40] sm:$0xf] %v197_v0 }
  0x9d   :  { %v199_v4 = vadd.f32 %v187_v61, %v149_v2  ;;  %v200_v5 = vadd.f32 %v188_v63, %v175_v3  ;;  %210 = vst [vmem:[%s408_s4 + $0x48] sm:$0xf] %v198_v1 }
  0x9f   :  { %211 = vst [vmem:[%s408_s4 + $0x50] sm:$0xf] %v199_v4 }
  0xa0   :  { %212 = vst [vmem:[%s408_s4 + $0x58] sm:$0xf] %v200_v5 }

// kernel: fno2d_forward.19
= control target key start
LH: loop header
LB: loop body
LE: loop exit
PB: predicated region body
PF: predicated region fallthrough
CT: control target
= control target key end

     0   :  { %vm193_vm0 = vcmask 1043456   ;;  %v3651_v0 = vmov 0   ;;  %vm144_vm1 = vcmask 162816   ;;  %s6589_s2 = inlined_call_operand.vmem [shape: f32[128,1], index: 2, kind: input, shape index: {}]   ;;  %s6590_s0 = inlined_call_operand.vmem [shape: f32[20,512], index: 0, kind: input, shape index: {}]   ;;  %s6591_s1 = inlined_call_operand.vmem [shape: f32[128,20], index: 1, kind: input, shape index: {}]   ;;  %s6592_s4 = inlined_call_operand.vmem [shape: f32[2,1], index: 4, kind: input, shape index: {}]   ;;  %s6593_s3 = inlined_call_operand.vmem [shape: f32[2,128], index: 3, kind: input, shape index: {}]   ;;  %s6594_s5 = inlined_call_operand.vmem [shape: f32[2,512], index: 5, kind: output, shape index: {}]  }
   0x1   :  { %3521 = vset.pattern.permute.xlu1 %v3651_v0  ;;  %3520 = vset.pattern.permute.xlu0 %v3651_v0  ;;  %v63_v1 = vld [vmem:[%s6589_s2 + $0x78] sm:$0xff]  ;;  %v61_v2 = vld [vmem:[%s6589_s2 + $0x68] sm:$0xff]  ;;  %v44_v3 = vld [vmem:[%s6590_s0 + $0x40] sm:$0xf] }
   0x2   :  { %141 = vperm.xlu0 %3520, %v63_v1   ;;  %131 = vperm.xlu1 %3521, %v61_v2   ;;  %v45_v4 = vld [vmem:[%s6590_s0 + $0x48] sm:$0xf]  ;;  %v46_v5 = vld [vmem:[%s6590_s0 + $0x50] sm:$0xf]  ;;  %v47_v6 = vld [vmem:[%s6590_s0 + $0x58] sm:$0xf] }
   0x3   :  { %3387 = vmatpush.msk.msra.mxu0 %vm193_vm0, %v44_v3  ;;  %3404 = vmatpush.msk.msra.mxu1 %vm193_vm0, %v45_v4  ;;  %v40_v7 = vld [vmem:[%s6590_s0 + $0x20] sm:$0xff]  ;;  %v41_v8 = vld [vmem:[%s6590_s0 + $0x28] sm:$0xff]  ;;  %v42_v9 = vld [vmem:[%s6590_s0 + $0x30] sm:$0xff] }
   0x4   :  { %3421 = vmatpush.msk.msra.mxu2 %vm193_vm0, %v46_v5  ;;  %3438 = vmatpush.msk.msra.mxu3 %vm193_vm0, %v47_v6  ;;  %v43_v10 = vld [vmem:[%s6590_s0 + $0x38] sm:$0xff]  ;;  %v36_v11 = vld [vmem:[%s6590_s0] sm:$0xff]  ;;  %v37_v12 = vld [vmem:[%s6590_s0 + $0x8] sm:$0xff] }
   0x5   :  { %220 = vmatpush.msra.mxu0 %v40_v7  ;;  %285 = vmatpush.msra.mxu1 %v41_v8  ;;  %v38_v13 = vld [vmem:[%s6590_s0 + $0x10] sm:$0xff]  ;;  %v39_v14 = vld [vmem:[%s6590_s0 + $0x18] sm:$0xff]  ;;  %v20_v15 = vld [vmem:[%s6591_s1] sm:$0xff] }
   0x6   :  { %350 = vmatpush.msra.mxu2 %v42_v9  ;;  %415 = vmatpush.msra.mxu3 %v43_v10  ;;  %v62_v16 = vld [vmem:[%s6589_s2 + $0x70] sm:$0xff]  ;;  %v60_v17 = vld [vmem:[%s6589_s2 + $0x60] sm:$0xff]  ;;  %v59_v18 = vld [vmem:[%s6589_s2 + $0x58] sm:$0xff] }
   0x7   :  { %221 = vmatpush.msra.mxu0 %v36_v11  ;;  %286 = vmatpush.msra.mxu1 %v37_v12  ;;  %v21_v19 = vld [vmem:[%s6591_s1 + $0x8] sm:$0xff]  ;;  %v56_v21 = vld [vmem:[%s6589_s2 + $0x40] sm:$0xff]  ;;  %v58_v22 = vld [vmem:[%s6589_s2 + $0x50] sm:$0xff] }
   0x8   :  { %351 = vmatpush.msra.mxu2 %v38_v13  ;;  %416 = vmatpush.msra.mxu3 %v39_v14  ;;  %v57_v20 = vld [vmem:[%s6589_s2 + $0x48] sm:$0xff]  ;;  %v22_v23 = vld [vmem:[%s6591_s1 + $0x10] sm:$0xff]  ;;  %v55_v26 = vld [vmem:[%s6589_s2 + $0x38] sm:$0xff] }
   0x9   :  { %3388 = vmatmul.msk.f32.vlgmr.msra.gmra.mxu0 %vm144_vm1, %v20_v15  ;;  %3405 = vmatmul.msk.f32.vlgmr.msra.gmra.mxu1 %vm144_vm1, %v20_v15  ;;  %v54_v24 = vld [vmem:[%s6589_s2 + $0x30] sm:$0xff]  ;;  %v53_v25 = vld [vmem:[%s6589_s2 + $0x28] sm:$0xff]  ;;  %v23_v27 = vld [vmem:[%s6591_s1 + $0x18] sm:$0xff] }
   0xa   :  { %3422 = vmatmul.msk.f32.vlgmr.msra.gmra.mxu2 %vm144_vm1, %v20_v15  ;;  %3439 = vmatmul.msk.f32.vlgmr.msra.gmra.mxu3 %vm144_vm1, %v20_v15  ;;  %v51_v28 = vld [vmem:[%s6589_s2 + $0x18] sm:$0xff]  ;;  %v50_v29 = vld [vmem:[%s6589_s2 + $0x10] sm:$0xff]  ;;  %v52_v30 = vld [vmem:[%s6589_s2 + $0x20] sm:$0xff] }
   0xb   :  { %136 = vperm.xlu0 %3520, %v62_v16   ;;  %126 = vperm.xlu1 %3521, %v60_v17   ;;  %v24_v31 = vld [vmem:[%s6591_s1 + $0x20] sm:$0xff]  ;;  %v49_v33 = vld [vmem:[%s6589_s2 + $0x8] sm:$0xff]  ;;  %v26_v35 = vld [vmem:[%s6591_s1 + $0x30] sm:$0xff] }
   0xc   :  { %3522 = vset.pattern.permute.xlu2 %v3651_v0  ;;  %v48_v32 = vld [vmem:[%s6589_s2] sm:$0xff]  ;;  %v25_v34 = vld [vmem:[%s6591_s1 + $0x28] sm:$0xff]  ;;  %v27_v36 = vld [vmem:[%s6591_s1 + $0x38] sm:$0xff] }
   0xd   :  { %121 = vperm.xlu2 %3522, %v59_v18   ;;  %v28_v37 = vld [vmem:[%s6591_s1 + $0x40] sm:$0xff]  ;;  %v29_v38 = vld [vmem:[%s6591_s1 + $0x48] sm:$0xff]  ;;  %v30_v39 = vld [vmem:[%s6591_s1 + $0x50] sm:$0xff] }
   0xe   :  { %v31_v40 = vld [vmem:[%s6591_s1 + $0x58] sm:$0xff]  ;;  %v32_v41 = vld [vmem:[%s6591_s1 + $0x60] sm:$0xff]  ;;  %v33_v43 = vld [vmem:[%s6591_s1 + $0x68] sm:$0xff] }
   0xf   :  { %v34_v46 = vld [vmem:[%s6591_s1 + $0x70] sm:$0xff]  ;;  %v35_v50 = vld [vmem:[%s6591_s1 + $0x78] sm:$0xff]  ;;  %v3283_v53 = vld [vmem:[%s6592_s4] sm:$0x3] }
  0x11   :  { %3389 = vmatmul.msk.f32.gmra.mxu0 %vm144_vm1, %v21_v19  ;;  %3406 = vmatmul.msk.f32.gmra.mxu1 %vm144_vm1, %v21_v19 }
  0x12   :  { %3423 = vmatmul.msk.f32.gmra.mxu2 %vm144_vm1, %v21_v19  ;;  %3440 = vmatmul.msk.f32.gmra.mxu3 %vm144_vm1, %v21_v19 }
  0x13   :  { %111 = vperm.xlu0 %3520, %v57_v20   ;;  %106 = vperm.xlu1 %3521, %v56_v21  }
  0x15   :  { %116 = vperm.xlu2 %3522, %v58_v22  }
  0x19   :  { %3390 = vmatmul.msk.f32.gmra.mxu0 %vm144_vm1, %v22_v23  ;;  %3407 = vmatmul.msk.f32.gmra.mxu1 %vm144_vm1, %v22_v23 }
  0x1a   :  { %3424 = vmatmul.msk.f32.gmra.mxu2 %vm144_vm1, %v22_v23  ;;  %3441 = vmatmul.msk.f32.gmra.mxu3 %vm144_vm1, %v22_v23 }
  0x1b   :  { %96 = vperm.xlu0 %3520, %v54_v24   ;;  %91 = vperm.xlu1 %3521, %v53_v25  }
  0x1d   :  { %101 = vperm.xlu2 %3522, %v55_v26  }
  0x21   :  { %3391 = vmatmul.msk.f32.gmra.mxu0 %vm144_vm1, %v23_v27  ;;  %3408 = vmatmul.msk.f32.gmra.mxu1 %vm144_vm1, %v23_v27 }
  0x22   :  { %3425 = vmatmul.msk.f32.gmra.mxu2 %vm144_vm1, %v23_v27  ;;  %3442 = vmatmul.msk.f32.gmra.mxu3 %vm144_vm1, %v23_v27 }
  0x23   :  { %81 = vperm.xlu0 %3520, %v51_v28   ;;  %76 = vperm.xlu1 %3521, %v50_v29  }
  0x25   :  { %86 = vperm.xlu2 %3522, %v52_v30  }
  0x29   :  { %3392 = vmatmul.msk.f32.gmra.mxu0 %vm144_vm1, %v24_v31  ;;  %3409 = vmatmul.msk.f32.gmra.mxu1 %vm144_vm1, %v24_v31 }
  0x2a   :  { %3426 = vmatmul.msk.f32.gmra.mxu2 %vm144_vm1, %v24_v31  ;;  %3443 = vmatmul.msk.f32.gmra.mxu3 %vm144_vm1, %v24_v31 }
  0x2b   :  { %66 = vperm.xlu0 %3520, %v48_v32   ;;  %3286 = vperm.xlu1 %3521, %v3283_v53  }
  0x2d   :  { %71 = vperm.xlu2 %3522, %v49_v33  }
  0x31   :  { %3393 = vmatmul.msk.f32.gmra.mxu0 %vm144_vm1, %v25_v34  ;;  %3410 = vmatmul.msk.f32.gmra.mxu1 %vm144_vm1, %v25_v34 }
  0x32   :  { %3427 = vmatmul.msk.f32.gmra.mxu2 %vm144_vm1, %v25_v34  ;;  %3444 = vmatmul.msk.f32.gmra.mxu3 %vm144_vm1, %v25_v34 }
  0x39   :  { %3394 = vmatmul.msk.f32.gmra.mxu0 %vm144_vm1, %v26_v35  ;;  %3411 = vmatmul.msk.f32.gmra.mxu1 %vm144_vm1, %v26_v35 }
  0x3a   :  { %3428 = vmatmul.msk.f32.gmra.mxu2 %vm144_vm1, %v26_v35  ;;  %3445 = vmatmul.msk.f32.gmra.mxu3 %vm144_vm1, %v26_v35 }
  0x41   :  { %3395 = vmatmul.msk.f32.gmra.mxu0 %vm144_vm1, %v27_v36  ;;  %3412 = vmatmul.msk.f32.gmra.mxu1 %vm144_vm1, %v27_v36 }
  0x42   :  { %3429 = vmatmul.msk.f32.gmra.mxu2 %vm144_vm1, %v27_v36  ;;  %3446 = vmatmul.msk.f32.gmra.mxu3 %vm144_vm1, %v27_v36 }
  0x49   :  { %3396 = vmatmul.msk.f32.gmra.mxu0 %vm144_vm1, %v28_v37  ;;  %3413 = vmatmul.msk.f32.gmra.mxu1 %vm144_vm1, %v28_v37 }
  0x4a   :  { %3430 = vmatmul.msk.f32.gmra.mxu2 %vm144_vm1, %v28_v37  ;;  %3447 = vmatmul.msk.f32.gmra.mxu3 %vm144_vm1, %v28_v37 }
  0x51   :  { %3397 = vmatmul.msk.f32.gmra.mxu0 %vm144_vm1, %v29_v38  ;;  %3414 = vmatmul.msk.f32.gmra.mxu1 %vm144_vm1, %v29_v38 }
  0x52   :  { %3431 = vmatmul.msk.f32.gmra.mxu2 %vm144_vm1, %v29_v38  ;;  %3448 = vmatmul.msk.f32.gmra.mxu3 %vm144_vm1, %v29_v38 }
  0x59   :  { %3398 = vmatmul.msk.f32.gmra.mxu0 %vm144_vm1, %v30_v39  ;;  %3415 = vmatmul.msk.f32.gmra.mxu1 %vm144_vm1, %v30_v39 }
  0x5a   :  { %3432 = vmatmul.msk.f32.gmra.mxu2 %vm144_vm1, %v30_v39  ;;  %3449 = vmatmul.msk.f32.gmra.mxu3 %vm144_vm1, %v30_v39 }
  0x61   :  { %3399 = vmatmul.msk.f32.gmra.mxu0 %vm144_vm1, %v31_v40  ;;  %3416 = vmatmul.msk.f32.gmra.mxu1 %vm144_vm1, %v31_v40 }
  0x62   :  { %3433 = vmatmul.msk.f32.gmra.mxu2 %vm144_vm1, %v31_v40  ;;  %3450 = vmatmul.msk.f32.gmra.mxu3 %vm144_vm1, %v31_v40 }
  0x67   :  { %v3857_v42 = vpop.permute.xlu2 %121 }
  0x69   :  { %3400 = vmatmul.msk.f32.gmra.mxu0 %vm144_vm1, %v32_v41  ;;  %3417 = vmatmul.msk.f32.gmra.mxu1 %vm144_vm1, %v32_v41 }
  0x6a   :  { %3434 = vmatmul.msk.f32.gmra.mxu2 %vm144_vm1, %v32_v41  ;;  %3451 = vmatmul.msk.f32.gmra.mxu3 %vm144_vm1, %v32_v41 }
  0x6f   :  { %v3866_v44 = vpop.permute.xlu2 %116 }
  0x71   :  { %3401 = vmatmul.msk.f32.gmra.mxu0 %vm144_vm1, %v33_v43  ;;  %3418 = vmatmul.msk.f32.gmra.mxu1 %vm144_vm1, %v33_v43 }
  0x72   :  { %3435 = vmatmul.msk.f32.gmra.mxu2 %vm144_vm1, %v33_v43  ;;  %3452 = vmatmul.msk.f32.gmra.mxu3 %vm144_vm1, %v33_v43 }
  0x74   :  { %v3872_v45 = vpop.permute.xlu1 %131  ;;  %v3877_v47 = vpop.permute.xlu0 %141 }
  0x77   :  { %v3879_v48 = vpop.permute.xlu2 %101 }
  0x79   :  { %3402 = vmatmul.msk.f32.gmra.mxu0 %vm144_vm1, %v34_v46  ;;  %3419 = vmatmul.msk.f32.gmra.mxu1 %vm144_vm1, %v34_v46 }
  0x7a   :  { %3436 = vmatmul.msk.f32.gmra.mxu2 %vm144_vm1, %v34_v46  ;;  %3453 = vmatmul.msk.f32.gmra.mxu3 %vm144_vm1, %v34_v46 }
  0x7d   :  { %v3885_v49 = vpop.permute.xlu1 %126  ;;  %v3892_v51 = vpop.permute.xlu0 %136 }
  0x7f   :  { %v3896_v52 = vpop.permute.xlu2 %86 }
  0x81   :  { %3403 = vmatmul.msk.f32.gmra.mxu0 %vm144_vm1, %v35_v50  ;;  %3420 = vmatmul.msk.f32.gmra.mxu1 %vm144_vm1, %v35_v50 }
  0x82   :  { %3437 = vmatmul.msk.f32.gmra.mxu2 %vm144_vm1, %v35_v50  ;;  %3454 = vmatmul.msk.f32.gmra.mxu3 %vm144_vm1, %v35_v50 }
  0x85   :  { %v3901_v54 = vpop.permute.xlu1 %106  ;;  %v3907_v57 = vpop.permute.xlu0 %111 }
  0x86   :  { %v3903_v55 = vpop.f32.mrf.mxu0  ;;  %v3905_v56 = vpop.f32.mrf.mxu1 }
  0x87   :  { %v72_v58 = vpop.permute.xlu2 %71 }
  0x8d   :  { %v3909_v59 = vpop.f32.mrf.mxu2  ;;  %v3911_v60 = vpop.f32.mrf.mxu3 }
  0x8e   :  { %v3913_v61 = vpop.permute.xlu1 %91  ;;  %v226_v62 = vpop.f32.mrf.mxu0 }
  0x8f   :  { %v291_v63 = vpop.f32.mrf.mxu1  ;;  %v3915_v0 = vadd.f32 %v226_v62, %v72_v58  ;;  %v3929_v8 = vpop.permute.xlu0 %96 }
  0x90   :  { %v3917_v1 = vadd.f32 %v291_v63, %v72_v58 }
  0x91   :  { %v3920_v2 = vmul.f32 0.70710677, %v3915_v0 }
  0x92   :  { %v3923_v3 = vmul.f32 0.70710677, %v3917_v1 }
  0x93   :  { %v754_v4 = vmul.f32 %v3920_v2, %v3920_v2 }
  0x94   :  { %v794_v5 = vmul.f32 %v3923_v3, %v3923_v3 }
  0x95   :  { %v356_v6 = vpop.f32.mrf.mxu2  ;;  %v421_v7 = vpop.f32.mrf.mxu3  ;;  %v3931_v9 = vmin.f32 %v754_v4, 16.0 }
  0x96   :  { %v3933_v10 = vmin.f32 %v794_v5, 16.0  ;;  %v3935_v11 = vadd.f32 %v356_v6, %v72_v58  ;;  %v3937_v12 = vadd.f32 %v421_v7, %v72_v58  ;;  %v77_v13 = vpop.permute.xlu1 %76  ;;  %v229_v14 = vpop.f32.mrf.mxu0 }
  0x97   :  { %6722 = vst [vmem:[#allocation2_spill] sm:$0xff] %v3931_v9  ;;  %v294_v15 = vpop.f32.mrf.mxu1  ;;  %v756_v16 = vmul.f32 2.1237322e-06, %v3931_v9  ;;  %v3946_v19 = vadd.f32 %v229_v14, %v77_v13  ;;  %v3970_v35 = vpop.permute.xlu0 %81 }
  0x98   :  { %6723 = vst [vmem:[#allocation3_spill] sm:$0xff] %v3933_v10  ;;  %v3941_v17 = vmul.f32 0.70710677, %v3935_v11  ;;  %v3944_v18 = vmul.f32 0.70710677, %v3937_v12  ;;  %v3948_v20 = vadd.f32 %v294_v15, %v77_v13 }
  0x99   :  { %6724 = vst [vmem:[#allocation4_spill] sm:$0xff] %v3937_v12  ;;  %v796_v21 = vmul.f32 2.1237322e-06, %v3933_v10  ;;  %v757_v22 = vadd.f32 0.00028619796, %v756_v16 }
  0x9a   :  { %6725 = vst [vmem:[#allocation5_spill] sm:$0xff] %v3941_v17  ;;  %v834_v23 = vmul.f32 %v3941_v17, %v3941_v17  ;;  %v874_v24 = vmul.f32 %v3944_v18, %v3944_v18  ;;  %v3956_v25 = vmul.f32 0.70710677, %v3946_v19  ;;  %v3959_v26 = vmul.f32 0.70710677, %v3948_v20 }
  0x9b   :  { %6726 = vst [vmem:[#allocation6_spill] sm:$0xff] %v3944_v18  ;;  %v797_v29 = vadd.f32 0.00028619796, %v796_v21  ;;  %v758_v31 = vmul.f32 %v757_v22, %v3931_v9 }
  0x9c   :  { %v914_v27 = vmul.f32 %v3956_v25, %v3956_v25  ;;  %v954_v30 = vmul.f32 %v3959_v26, %v3959_v26  ;;  %v3966_v32 = vmin.f32 %v834_v23, 16.0  ;;  %v3968_v33 = vmin.f32 %v874_v24, 16.0 }
  0x9d   :  { %v359_v28 = vpop.f32.mrf.mxu2  ;;  %v798_v37 = vmul.f32 %v797_v29, %v3933_v10  ;;  %v424_v39 = vpop.f32.mrf.mxu3  ;;  %v759_v40 = vadd.f32 0.0036580483, %v758_v31 }
  0x9e   :  { %6727 = vst [vmem:[#allocation7_spill] sm:$0xff] %v3966_v32  ;;  %v360_v34 = vadd.f32 %v359_v28, %v77_v13  ;;  %v3972_v36 = vmin.f32 %v914_v27, 16.0  ;;  %v3975_v38 = vmin.f32 %v954_v30, 16.0  ;;  %v836_v41 = vmul.f32 2.1237322e-06, %v3966_v32  ;;  %v232_v27 = vpop.f32.mrf.mxu0 }
  0x9f   :  { %6728 = vst [vmem:[#allocation8_spill] sm:$0xff] %v3968_v33  ;;  %v876_v43 = vmul.f32 2.1237322e-06, %v3968_v33  ;;  %v3982_v53 = vadd.f32 %v424_v39, %v77_v13  ;;  %v799_v58 = vadd.f32 0.0036580483, %v798_v37  ;;  %v760_v63 = vmul.f32 %v759_v40, %v3931_v9  ;;  %v3994_v23 = vpop.permute.xlu0 %66 }
  0xa0   :  { %6729 = vst [vmem:[#allocation9_spill] sm:$0xff] %v3972_v36  ;;  %v3979_v46 = vmul.f32 0.70710677, %v360_v34  ;;  %v916_v50 = vmul.f32 2.1237322e-06, %v3972_v36  ;;  %v4004_v37 = vadd.f32 %v3911_v60, %v3994_v23 }
  0xa1   :  { %6730 = vst [vmem:[#allocation10_spill] sm:$0xff] %v3975_v38  ;;  %v956_v62 = vmul.f32 2.1237322e-06, %v3975_v38  ;;  %v837_v4 = vadd.f32 0.00028619796, %v836_v41  ;;  %v800_v15 = vmul.f32 %v799_v58, %v3933_v10 }
  0xa2   :  { %6731 = vst [vmem:[#allocation11_spill] sm:$0xff] %v3979_v46  ;;  %v877_v5 = vadd.f32 0.00028619796, %v876_v43  ;;  %v994_v6 = vmul.f32 %v3979_v46, %v3979_v46  ;;  %v917_v7 = vadd.f32 0.00028619796, %v916_v50 }
  0xa3   :  { %6732 = vst [vmem:[#allocation12_spill] sm:$0xff] %v3982_v53  ;;  %v3989_v14 = vmul.f32 0.70710677, %v3982_v53  ;;  %v957_v16 = vadd.f32 0.00028619796, %v956_v62  ;;  %v838_v13 = vmul.f32 %v837_v4, %v3966_v32  ;;  %v297_v62 = vpop.f32.mrf.mxu1 }
  0xa4   :  { %v761_v21 = vadd.f32 0.05243302, %v760_v63  ;;  %v878_v22 = vmul.f32 %v877_v5, %v3968_v33  ;;  %v3996_v24 = vmin.f32 %v994_v6, 16.0  ;;  %v918_v28 = vmul.f32 %v917_v7, %v3972_v36  ;;  %6735 = vst [vmem:[#allocation15_spill] sm:$0xff] %v4004_v37 }
  0xa5   :  { %6733 = vst [vmem:[#allocation13_spill] sm:$0xff] %v3989_v14  ;;  %v1034_v29 = vmul.f32 %v3989_v14, %v3989_v14  ;;  %v801_v30 = vadd.f32 0.05243302, %v800_v15  ;;  %v958_v31 = vmul.f32 %v957_v16, %v3975_v38  ;;  %v839_v40 = vadd.f32 0.0036580483, %v838_v13  ;;  %v362_v5 = vpop.f32.mrf.mxu2 }
  0xa6   :  { %6734 = vst [vmem:[#allocation14_spill] sm:$0xff] %v3996_v24  ;;  %v762_v39 = vmul.f32 %v761_v21, %v3931_v9  ;;  %v879_v41 = vadd.f32 0.0036580483, %v878_v22  ;;  %v996_v43 = vmul.f32 2.1237322e-06, %v3996_v24  ;;  %v4014_v15 = vmul.f32 0.5, %v3915_v0 }
  0xa7   :  { %v919_v50 = vadd.f32 0.0036580483, %v918_v28  ;;  %v4008_v58 = vmin.f32 %v1034_v29, 16.0  ;;  %v802_v63 = vmul.f32 %v801_v30, %v3933_v10  ;;  %v959_v4 = vadd.f32 0.0036580483, %v958_v31  ;;  %v427_v30 = vpop.f32.mrf.mxu3 }
  0xa8   :  { %v763_v6 = vadd.f32 0.18741608, %v762_v39  ;;  %v840_v7 = vmul.f32 %v839_v40, %v3966_v32  ;;  %v880_v60 = vmul.f32 %v879_v41, %v3968_v33  ;;  %6737 = vst [vmem:[#allocation17_spill] sm:$0xff] %v4014_v15  ;;  %v4017_v16 = vmul.f32 0.5, %v3917_v1  ;;  %v235_v40 = vpop.f32.mrf.mxu0 }
  0xa9   :  { %6736 = vst [vmem:[#allocation16_spill] sm:$0xff] %v4008_v58  ;;  %v997_v21 = vadd.f32 0.00028619796, %v996_v43  ;;  %v4020_v13 = vmul.f32 0.5, %v3935_v11  ;;  %v4023_v22 = vmul.f32 0.5, %v3946_v19  ;;  %v920_v28 = vmul.f32 %v919_v50, %v3972_v36 }
  0xaa   :  { %6738 = vst [vmem:[#allocation18_spill] sm:$0xff] %v4017_v16  ;;  %v1036_v29 = vmul.f32 2.1237322e-06, %v4008_v58  ;;  %v803_v31 = vadd.f32 0.18741608, %v802_v63  ;;  %v4028_v39 = vmul.f32 0.5, %v3948_v20  ;;  %v960_v0 = vmul.f32 %v959_v4, %v3975_v38 }
  0xab   :  { %6739 = vst [vmem:[#allocation19_spill] sm:$0xff] %v4020_v13  ;;  %v4031_v1 = vmul.f32 0.5, %v360_v34  ;;  %v764_v11 = vmul.f32 %v763_v6, %v3931_v9  ;;  %v841_v41 = vadd.f32 0.05243302, %v840_v7  ;;  %v881_v43 = vadd.f32 0.05243302, %v880_v60 }
  0xac   :  { %6740 = vst [vmem:[#allocation20_spill] sm:$0xff] %v4023_v22  ;;  %v4035_v19 = vadd.f32 %v232_v27, %v3970_v35  ;;  %v998_v50 = vmul.f32 %v997_v21, %v3996_v24  ;;  %v4039_v12 = vadd.f32 %v297_v62, %v3970_v35  ;;  %v4042_v20 = vadd.f32 %v362_v5, %v3970_v35 }
  0xad   :  { %6741 = vst [vmem:[#allocation21_spill] sm:$0xff] %v4028_v39  ;;  %v4045_v63 = vadd.f32 %v427_v30, %v3970_v35  ;;  %v921_v34 = vadd.f32 0.05243302, %v920_v28  ;;  %v1037_v4 = vadd.f32 0.00028619796, %v1036_v29  ;;  %v4051_v7 = vadd.f32 %v235_v40, %v3896_v52  ;;  %v300_v30 = vpop.f32.mrf.mxu1  ;;  %v365_v18 = vpop.f32.mrf.mxu2 }
  0xae   :  { %6742 = vst [vmem:[#allocation22_spill] sm:$0xff] %v4031_v1  ;;  %v4048_v6 = vmul.f32 0.70710677, %v4035_v19  ;;  %v804_v27 = vmul.f32 %v803_v31, %v3933_v10  ;;  %v961_v60 = vadd.f32 0.05243302, %v960_v0  ;;  %v4056_v62 = vadd.f32 %v3903_v55, %v3994_v23 }
  0xaf   :  { %6743 = vst [vmem:[#allocation23_spill] sm:$0xff] %v4045_v63  ;;  %v4059_v5 = vmul.f32 0.70710677, %v4039_v12  ;;  %v765_v35 = vadd.f32 1.1283791, %v764_v11  ;;  %v842_v21 = vmul.f32 %v841_v41, %v3966_v32  ;;  %v882_v31 = vmul.f32 %v881_v43, %v3968_v33  ;;  %v430_v17 = vpop.f32.mrf.mxu3 }
  0xb0   :  { %6744 = vst [vmem:[#allocation24_spill] sm:$0xff] %v4056_v62  ;;  %v1074_v28 = vmul.f32 %v4048_v6, %v4048_v6  ;;  %v4065_v29 = vmul.f32 0.70710677, %v4042_v20  ;;  %v999_v0 = vadd.f32 0.0036580483, %v998_v50  ;;  %v922_v11 = vmul.f32 %v921_v34, %v3972_v36 }
  0xb1   :  { %v1114_v55 = vmul.f32 %v4059_v5, %v4059_v5  ;;  %v4071_v40 = vmul.f32 0.70710677, %v4045_v63  ;;  %v1038_v41 = vmul.f32 %v1037_v4, %v4008_v58  ;;  %v4078_v53 = vmul.f32 0.70710677, %v4051_v7 }
  0xb2   :  { %6745 = vst [vmem:[#allocation25_spill] sm:$0xff] %v4065_v29  ;;  %v1154_v13 = vmul.f32 %v4065_v29, %v4065_v29  ;;  %v962_v43 = vmul.f32 %v961_v60, %v3975_v38  ;;  %v4083_v50 = vadd.f32 %v3905_v56, %v3994_v23  ;;  %v4085_v1 = vmin.f32 %v1074_v28, 16.0 }
  0xb3   :  { %6746 = vst [vmem:[#allocation26_spill] sm:$0xff] %v4071_v40  ;;  %v4088_v14 = vadd.f32 %v300_v30, %v3896_v52  ;;  %v805_v34 = vadd.f32 1.1283791, %v804_v27  ;;  %v843_v63 = vadd.f32 0.18741608, %v842_v21  ;;  %v1234_v4 = vmul.f32 %v4078_v53, %v4078_v53 }
  0xb4   :  { %6747 = vst [vmem:[#allocation27_spill] sm:$0xff] %v4083_v50  ;;  %v4093_v46 = vadd.f32 %v365_v18, %v3896_v52  ;;  %v883_v29 = vadd.f32 0.18741608, %v882_v31  ;;  %v1000_v60 = vmul.f32 %v999_v0, %v3996_v24  ;;  %v4096_v16 = vmin.f32 %v1114_v55, 16.0 }
  0xb5   :  { %6748 = vst [vmem:[#allocation28_spill] sm:$0xff] %v4085_v1  ;;  %v1194_v56 = vmul.f32 %v4071_v40, %v4071_v40  ;;  %v4101_v28 = vmul.f32 %v765_v35, %v3920_v2  ;;  %v923_v27 = vadd.f32 0.18741608, %v922_v11  ;;  %v1039_v21 = vadd.f32 0.0036580483, %v1038_v41 }
  0xb6   :  { %6749 = vst [vmem:[#allocation29_spill] sm:$0xff] %v4096_v16  ;;  %v4103_v30 = vmin.f32 %v1154_v13, 16.0  ;;  %v963_v15 = vadd.f32 0.18741608, %v962_v43  ;;  %v1076_v18 = vmul.f32 2.1237322e-06, %v4085_v1  ;;  %v4110_v31 = vadd.f32 %v430_v17, %v3896_v52 }
  0xb7   :  { %6750 = vst [vmem:[#allocation30_spill] sm:$0xff] %v4101_v28  ;;  %v4107_v39 = vmul.f32 0.70710677, %v4088_v14  ;;  %v844_v0 = vmul.f32 %v843_v63, %v3966_v32  ;;  %v4114_v55 = vmul.f32 0.70710677, %v4056_v62  ;;  %v4116_v2 = vmin.f32 %v1234_v4, 16.0 }
  0xb8   :  { %6751 = vst [vmem:[#allocation31_spill] sm:$0xff] %v4103_v30  ;;  %v4119_v35 = vmul.f32 0.70710677, %v4093_v46  ;;  %v1001_v13 = vadd.f32 0.05243302, %v1000_v60  ;;  %v4122_v41 = vmin.f32 %v1194_v56, 16.0  ;;  %v1040_v52 = vmul.f32 %v1039_v21, %v4008_v58 }
  0xb9   :  { %6752 = vst [vmem:[#allocation32_spill] sm:$0xff] %v4110_v31  ;;  %v1116_v11 = vmul.f32 2.1237322e-06, %v4096_v16  ;;  %v1274_v43 = vmul.f32 %v4107_v39, %v4107_v39  ;;  %v4128_v17 = vmul.f32 0.70710677, %v4083_v50  ;;  %v4135_v60 = vadd.f32 %v3909_v59, %v3994_v23 }
  0xba   :  { %6753 = vst [vmem:[#allocation33_spill] sm:$0xff] %v4114_v55  ;;  %v1156_v63 = vmul.f32 2.1237322e-06, %v4103_v30  ;;  %v1314_v4 = vmul.f32 %v4119_v35, %v4119_v35  ;;  %v1077_v62 = vadd.f32 0.00028619796, %v1076_v18  ;;  %v924_v21 = vmul.f32 %v923_v27, %v3972_v36 }
  0xbb   :  { %6754 = vst [vmem:[#allocation34_spill] sm:$0xff] %v4116_v2  ;;  %v4137_v56 = vmin.f32 %v1274_v43, 16.0  ;;  %v4140_v40 = vmul.f32 0.70710677, %v4110_v31  ;;  %v4142_v32 = vadd.f32 1.1283791, %v844_v0  ;;  %v964_v50 = vmul.f32 %v963_v15, %v3975_v38 }
  0xbc   :  { %6755 = vst [vmem:[#allocation35_spill] sm:$0xff] %v4122_v41  ;;  %v1236_v28 = vmul.f32 2.1237322e-06, %v4116_v2  ;;  %v1002_v22 = vmul.f32 %v1001_v13, %v3996_v24  ;;  %v1117_v10 = vadd.f32 0.00028619796, %v1116_v11  ;;  %v4149_v23 = vmin.f32 %v1314_v4, 16.0 }
  0xbd   :  { %6756 = vst [vmem:[#allocation36_spill] sm:$0xff] %v4128_v17  ;;  %v1196_v59 = vmul.f32 2.1237322e-06, %v4122_v41  ;;  %v4152_v18 = vmul.f32 %v805_v34, %v3923_v3  ;;  %v1041_v43 = vadd.f32 0.05243302, %v1040_v52  ;;  %v1078_v13 = vmul.f32 %v1077_v62, %v4085_v1 }
  0xbe   :  { %6757 = vst [vmem:[#allocation37_spill] sm:$0xff] %v4135_v60  ;;  %v1157_v31 = vadd.f32 0.00028619796, %v1156_v63  ;;  %v1276_v0 = vmul.f32 2.1237322e-06, %v4137_v56  ;;  %v1354_v11 = vmul.f32 %v4140_v40, %v4140_v40  ;;  %v4165_v4 = vmul.f32 %v883_v29, %v3968_v33 }
  0xbf   :  { %6758 = vst [vmem:[#allocation38_spill] sm:$0xff] %v4137_v56  ;;  %v4156_v27 = vmul.f32 0.70710677, %v4135_v60  ;;  %v4159_v15 = vmul.f32 0.70710677, %v4004_v37  ;;  %v1042_v37 = vmul.f32 %v1041_v43, %v4008_v58  ;;  %v594_v62 = vmul.f32 %v4114_v55, %v4114_v55 }
  0xc0   :  { %6759 = vst [vmem:[#allocation39_spill] sm:$0xff] %v4140_v40  ;;  %v925_v3 = vadd.f32 1.1283791, %v924_v21  ;;  %v965_v34 = vadd.f32 1.1283791, %v964_v50  ;;  %v1158_v9 = vmul.f32 %v1157_v31, %v4103_v30  ;;  %v634_v29 = vmul.f32 %v4128_v17, %v4128_v17 }
  0xc1   :  { %6760 = vst [vmem:[#allocation40_spill] sm:$0xff] %v4142_v32  ;;  %v1237_v52 = vadd.f32 0.00028619796, %v1236_v28  ;;  %v1003_v63 = vadd.f32 0.18741608, %v1002_v22  ;;  %v1118_v32 = vmul.f32 %v1117_v10, %v4096_v16  ;;  %v674_v50 = vmul.f32 %v4156_v27, %v4156_v27  ;;  %v238_v10 = vpop.f32.mrf.mxu0 }
  0xc2   :  { %6761 = vst [vmem:[#allocation41_spill] sm:$0xff] %v4149_v23  ;;  %v1316_v60 = vmul.f32 2.1237322e-06, %v4149_v23  ;;  %v1277_v40 = vadd.f32 0.00028619796, %v1276_v0  ;;  %v4177_v28 = vmin.f32 %v1354_v11, 16.0  ;;  %v4180_v21 = vmul.f32 %v925_v3, %v3956_v25 }
  0xc3   :  { %6762 = vst [vmem:[#allocation42_spill] sm:$0xff] %v4152_v18  ;;  %v1197_v18 = vadd.f32 0.00028619796, %v1196_v59  ;;  %v1079_v22 = vadd.f32 0.0036580483, %v1078_v13  ;;  %v4183_v59 = vmul.f32 %v965_v34, %v3959_v26  ;;  %v4187_v31 = vmul.f32 %v4159_v15, %v4159_v15  ;;  %v303_v26 = vpop.f32.mrf.mxu1 }
  0xc4   :  { %6763 = vst [vmem:[#allocation43_spill] sm:$0xff] %v4156_v27  ;;  %v1238_v43 = vmul.f32 %v1237_v52, %v4116_v2  ;;  %v1004_v0 = vmul.f32 %v1003_v63, %v3996_v24  ;;  %v1317_v11 = vadd.f32 0.00028619796, %v1316_v60  ;;  %v1043_v27 = vadd.f32 0.18741608, %v1042_v37 }
  0xc5   :  { %6764 = vst [vmem:[#allocation44_spill] sm:$0xff] %v4159_v15  ;;  %v1198_v13 = vmul.f32 %v1197_v18, %v4122_v41  ;;  %v4192_v33 = vmin.f32 %v594_v62, 16.0  ;;  %v1159_v25 = vadd.f32 0.0036580483, %v1158_v9  ;;  %v1278_v3 = vmul.f32 %v1277_v40, %v4137_v56 }
  0xc6   :  { %6765 = vst [vmem:[#allocation45_spill] sm:$0xff] %v4165_v4  ;;  %v1119_v4 = vadd.f32 0.0036580483, %v1118_v32  ;;  %v4195_v34 = vmin.f32 %v634_v29, 16.0  ;;  %v4197_v17 = vmin.f32 %v674_v50, 16.0  ;;  %v1080_v15 = vmul.f32 %v1079_v22, %v4085_v1  ;;  %v368_v22 = vpop.f32.mrf.mxu2 }
  0xc7   :  { %6766 = vst [vmem:[#allocation46_spill] sm:$0xff] %v4177_v28  ;;  %v1356_v52 = vmul.f32 2.1237322e-06, %v4177_v28  ;;  %v4202_v32 = vmul.f32 0.5, %v4035_v19  ;;  %v4205_v60 = vmul.f32 0.5, %v4039_v12  ;;  %v4208_v37 = vmul.f32 0.5, %v4042_v20 }
  0xc8   :  { %6767 = vst [vmem:[#allocation47_spill] sm:$0xff] %v4180_v21  ;;  %v1239_v9 = vadd.f32 0.0036580483, %v1238_v43  ;;  %v4210_v40 = vadd.f32 1.1283791, %v1004_v0  ;;  %v1120_v18 = vmul.f32 %v1119_v4, %v4096_v16  ;;  %v1318_v62 = vmul.f32 %v1317_v11, %v4149_v23 }
  0xc9   :  { %6768 = vst [vmem:[#allocation48_spill] sm:$0xff] %v4183_v59  ;;  %v1199_v63 = vadd.f32 0.0036580483, %v1198_v13  ;;  %v4215_v29 = vmul.f32 %v1043_v27, %v4008_v58  ;;  %v1160_v19 = vmul.f32 %v1159_v25, %v4103_v30  ;;  %v1279_v50 = vadd.f32 0.0036580483, %v1278_v3  ;;  %v433_v25 = vpop.f32.mrf.mxu3 }
  0xca   :  { %6769 = vst [vmem:[#allocation49_spill] sm:$0xff] %v4187_v31  ;;  %v4219_v12 = vadd.f32 %v238_v10, %v3913_v61  ;;  %v1081_v20 = vadd.f32 0.05243302, %v1080_v15  ;;  %v4222_v43 = vmul.f32 0.5, %v4051_v7  ;;  %v1357_v0 = vadd.f32 0.00028619796, %v1356_v52 }
  0xcb   :  { %6770 = vst [vmem:[#allocation50_spill] sm:$0xff] %v4192_v33  ;;  %v4225_v4 = vadd.f32 %v303_v26, %v3913_v61  ;;  %v1240_v13 = vmul.f32 %v1239_v9, %v4116_v2  ;;  %v4229_v27 = vmul.f32 0.5, %v4088_v14  ;;  %v4232_v11 = vmul.f32 0.5, %v4093_v46  ;;  %v241_v26 = vpop.f32.mrf.mxu0 }
  0xcc   :  { %6771 = vst [vmem:[#allocation51_spill] sm:$0xff] %v4195_v34  ;;  %v4235_v10 = vmul.f32 0.70710677, %v4219_v12  ;;  %v1121_v15 = vadd.f32 0.05243302, %v1120_v18  ;;  %v1200_v7 = vmul.f32 %v1199_v63, %v4122_v41  ;;  %v1280_v9 = vmul.f32 %v1279_v50, %v4137_v56 }
  0xcd   :  { %6772 = vst [vmem:[#allocation52_spill] sm:$0xff] %v4197_v17  ;;  %v1319_v3 = vadd.f32 0.0036580483, %v1318_v62  ;;  %v4239_v52 = vmul.f32 0.70710677, %v4225_v4  ;;  %v4245_v46 = vadd.f32 %v368_v22, %v3913_v61  ;;  %v1358_v18 = vmul.f32 %v1357_v0, %v4177_v28  ;;  %v306_v22 = vpop.f32.mrf.mxu1 }
  0xce   :  { %6773 = vst [vmem:[#allocation53_spill] sm:$0xff] %v4202_v32  ;;  %v1161_v31 = vadd.f32 0.05243302, %v1160_v19  ;;  %v1394_v14 = vmul.f32 %v4235_v10, %v4235_v10  ;;  %v4252_v62 = vadd.f32 %v433_v25, %v3913_v61  ;;  %v1201_v17 = vadd.f32 0.05243302, %v1200_v7 }
  0xcf   :  { %6774 = vst [vmem:[#allocation54_spill] sm:$0xff] %v4205_v60  ;;  %v1434_v63 = vmul.f32 %v4239_v52, %v4239_v52  ;;  %v4257_v50 = vmul.f32 0.70710677, %v4245_v46  ;;  %v1320_v0 = vmul.f32 %v1319_v3, %v4149_v23  ;;  %v1281_v25 = vadd.f32 0.05243302, %v1280_v9  ;;  %v371_v9 = vpop.f32.mrf.mxu2 }
  0xd0   :  { %6775 = vst [vmem:[#allocation55_spill] sm:$0xff] %v4208_v37  ;;  %v1241_v37 = vadd.f32 0.05243302, %v1240_v13  ;;  %v4254_v19 = vmin.f32 %v1394_v14, 16.0  ;;  %v1162_v61 = vmul.f32 %v1161_v31, %v4103_v30 }
  0xd1   :  { %6776 = vst [vmem:[#allocation56_spill] sm:$0xff] %v4210_v40  ;;  %v1082_v40 = vmul.f32 %v1081_v20, %v4085_v1  ;;  %v1122_v20 = vmul.f32 %v1121_v15, %v4096_v16  ;;  %v4264_v55 = vmin.f32 %v1434_v63, 16.0  ;;  %v1474_v14 = vmul.f32 %v4257_v50, %v4257_v50 }
  0xd2   :  { %6777 = vst [vmem:[#allocation57_spill] sm:$0xff] %v4215_v29  ;;  %v4260_v29 = vadd.f32 %v241_v26, %v3929_v8  ;;  %v1396_v13 = vmul.f32 2.1237322e-06, %v4254_v19  ;;  %v4271_v26 = vmul.f32 0.70710677, %v4252_v62  ;;  %v4274_v15 = vadd.f32 %v306_v22, %v3929_v8 }
  0xd3   :  { %6778 = vst [vmem:[#allocation58_spill] sm:$0xff] %v4222_v43  ;;  %v1083_v58 = vadd.f32 0.18741608, %v1082_v40  ;;  %v1242_v7 = vmul.f32 %v1241_v37, %v4116_v2  ;;  %v1436_v3 = vmul.f32 2.1237322e-06, %v4264_v55  ;;  %v4278_v63 = vmin.f32 %v1474_v14, 16.0 }
  0xd4   :  { %6779 = vst [vmem:[#allocation59_spill] sm:$0xff] %v4229_v27  ;;  %v4281_v31 = vmul.f32 0.70710677, %v4260_v29  ;;  %v1123_v24 = vadd.f32 0.18741608, %v1122_v20  ;;  %v1202_v40 = vmul.f32 %v1201_v17, %v4122_v41  ;;  %v1282_v22 = vmul.f32 %v1281_v25, %v4137_v56 }
  0xd5   :  { %6780 = vst [vmem:[#allocation60_spill] sm:$0xff] %v4232_v11  ;;  %v1359_v11 = vadd.f32 0.0036580483, %v1358_v18  ;;  %v1321_v18 = vadd.f32 0.05243302, %v1320_v0  ;;  %v1514_v59 = vmul.f32 %v4271_v26, %v4271_v26  ;;  %v4296_v17 = vadd.f32 %v371_v9, %v3929_v8 }
  0xd6   :  { %6781 = vst [vmem:[#allocation61_spill] sm:$0xff] %v4254_v19  ;;  %v4285_v34 = vmul.f32 0.70710677, %v4274_v15  ;;  %v1163_v33 = vadd.f32 0.18741608, %v1162_v61  ;;  %v1554_v37 = vmul.f32 %v4281_v31, %v4281_v31  ;;  %v1084_v0 = vmul.f32 %v1083_v58, %v4085_v1 }
  0xd7   :  { %6782 = vst [vmem:[#allocation62_spill] sm:$0xff] %v4257_v50  ;;  %v1397_v50 = vadd.f32 0.00028619796, %v1396_v13  ;;  %v1360_v14 = vmul.f32 %v1359_v11, %v4177_v28  ;;  %v1243_v61 = vadd.f32 0.18741608, %v1242_v7  ;;  %v436_v13 = vpop.f32.mrf.mxu3  ;;  %v1124_v60 = vmul.f32 %v1123_v24, %v4096_v16 }
  0xd8   :  { %6783 = vst [vmem:[#allocation63_spill] sm:$0xff] %v4264_v55  ;;  %v1594_v20 = vmul.f32 %v4285_v34, %v4285_v34  ;;  %v1437_v21 = vadd.f32 0.00028619796, %v1436_v3  ;;  %v1476_v25 = vmul.f32 2.1237322e-06, %v4278_v63  ;;  %v1322_v11 = vmul.f32 %v1321_v18, %v4149_v23 }
  0xd9   :  { %6784 = vst [vmem:[#allocation64_spill] sm:$0xff] %v4271_v26  ;;  %v4302_v32 = vmin.f32 %v1554_v37, 16.0  ;;  %v1203_v27 = vadd.f32 0.18741608, %v1202_v40  ;;  %v1283_v43 = vadd.f32 0.18741608, %v1282_v22  ;;  %v1398_v9 = vmul.f32 %v1397_v50, %v4254_v19 }
  0xda   :  { %6785 = vst [vmem:[#allocation65_spill] sm:$0xff] %v4278_v63  ;;  %v4304_v26 = vmin.f32 %v1594_v20, 16.0  ;;  %v4308_v38 = vmul.f32 0.70710677, %v4296_v17  ;;  %v1361_v58 = vadd.f32 0.05243302, %v1360_v14  ;;  %v4314_v24 = vadd.f32 %v436_v13, %v3929_v8 }
  0xdb   :  { %6786 = vst [vmem:[#allocation66_spill] sm:$0xff] %v4302_v32  ;;  %v4310_v7 = vmin.f32 %v1514_v59, 16.0  ;;  %v1556_v3 = vmul.f32 2.1237322e-06, %v4302_v32  ;;  %v1085_v18 = vadd.f32 1.1283791, %v1084_v0  ;;  %v1244_v37 = vmul.f32 %v1243_v61, %v4116_v2 }
  0xdc   :  { %6787 = vst [vmem:[#allocation67_spill] sm:$0xff] %v4304_v26  ;;  %v1438_v20 = vmul.f32 %v1437_v21, %v4264_v55  ;;  %v1477_v40 = vadd.f32 0.00028619796, %v1476_v25  ;;  %v1164_v22 = vmul.f32 %v1163_v33, %v4103_v30  ;;  %v1323_v50 = vadd.f32 0.18741608, %v1322_v11 }
  0xdd   :  { %6788 = vst [vmem:[#allocation68_spill] sm:$0xff] %v4308_v38  ;;  %v1596_v36 = vmul.f32 2.1237322e-06, %v4304_v26  ;;  %v1634_v59 = vmul.f32 %v4308_v38, %v4308_v38  ;;  %v1125_v14 = vadd.f32 1.1283791, %v1124_v60  ;;  %v1284_v16 = vmul.f32 %v1283_v43, %v4137_v56 }
  0xde   :  { %6789 = vst [vmem:[#allocation69_spill] sm:$0xff] %v4310_v7  ;;  %v1399_v1 = vadd.f32 0.0036580483, %v1398_v9  ;;  %v1557_v8 = vadd.f32 0.00028619796, %v1556_v3  ;;  %v4324_v0 = vmul.f32 %v1203_v27, %v4122_v41  ;;  %v1362_v61 = vmul.f32 %v1361_v58, %v4177_v28 }
  0xdf   :  { %v1516_v21 = vmul.f32 2.1237322e-06, %v4310_v7  ;;  %v4329_v33 = vmul.f32 0.70710677, %v4314_v24  ;;  %v4332_v25 = vmul.f32 %v1085_v18, %v4048_v6  ;;  %v1245_v13 = vadd.f32 1.1283791, %v1244_v37  ;;  %v244_v18 = vpop.f32.mrf.mxu0 }
  0xe0   :  { %6790 = vst [vmem:[#allocation70_spill] sm:$0xff] %v4324_v0  ;;  %v1439_v11 = vadd.f32 0.0036580483, %v1438_v20  ;;  %v1478_v60 = vmul.f32 %v1477_v40, %v4278_v63  ;;  %v1324_v43 = vmul.f32 %v1323_v50, %v4149_v23  ;;  %v1597_v9 = vadd.f32 0.00028619796, %v1596_v36 }
  0xe1   :  { %6791 = vst [vmem:[#allocation71_spill] sm:$0xff] %v4329_v33  ;;  %v4336_v3 = vmin.f32 %v1634_v59, 16.0  ;;  %v1674_v27 = vmul.f32 %v4329_v33, %v4329_v33  ;;  %v4340_v58 = vadd.f32 1.1283791, %v1164_v22  ;;  %v1285_v0 = vadd.f32 1.1283791, %v1284_v16 }
  0xe2   :  { %6792 = vst [vmem:[#allocation72_spill] sm:$0xff] %v4332_v25  ;;  %v1400_v41 = vmul.f32 %v1399_v1, %v4254_v19  ;;  %v1558_v6 = vmul.f32 %v1557_v8, %v4302_v32  ;;  %v4345_v37 = vmul.f32 %v1125_v14, %v4059_v5  ;;  %v1363_v20 = vadd.f32 0.18741608, %v1362_v61  ;;  %v309_v61 = vpop.f32.mrf.mxu1 }
  0xe3   :  { %6793 = vst [vmem:[#allocation73_spill] sm:$0xff] %v4336_v3  ;;  %v1517_v40 = vadd.f32 0.00028619796, %v1516_v21  ;;  %v4347_v50 = vmin.f32 %v1674_v27, 16.0  ;;  %v4350_v36 = vmul.f32 %v1245_v13, %v4078_v53  ;;  %v4353_v59 = vmul.f32 0.5, %v4219_v12 }
  0xe4   :  { %6794 = vst [vmem:[#allocation74_spill] sm:$0xff] %v4340_v58  ;;  %v1440_v16 = vmul.f32 %v1439_v11, %v4264_v55  ;;  %v1479_v22 = vadd.f32 0.0036580483, %v1478_v60  ;;  %v1325_v1 = vadd.f32 1.1283791, %v1324_v43  ;;  %v4357_v8 = vmul.f32 0.5, %v4225_v4 }
  0xe5   :  { %6795 = vst [vmem:[#allocation75_spill] sm:$0xff] %v4345_v37  ;;  %v1598_v5 = vmul.f32 %v1597_v9, %v4304_v26  ;;  %v1636_v14 = vmul.f32 2.1237322e-06, %v4336_v3  ;;  %v1401_v21 = vadd.f32 0.05243302, %v1400_v41  ;;  %v4362_v27 = vmul.f32 0.5, %v4245_v46 }
  0xe6   :  { %6796 = vst [vmem:[#allocation76_spill] sm:$0xff] %v4347_v50  ;;  %v1559_v53 = vadd.f32 0.0036580483, %v1558_v6  ;;  %v4365_v12 = vadd.f32 %v244_v18, %v3879_v48  ;;  %v4368_v13 = vmul.f32 %v1285_v0, %v4107_v39  ;;  %v4371_v11 = vmul.f32 %v1363_v20, %v4177_v28  ;;  %v374_v6 = vpop.f32.mrf.mxu2 }
  0xe7   :  { %6797 = vst [vmem:[#allocation77_spill] sm:$0xff] %v4350_v36  ;;  %v1518_v4 = vmul.f32 %v1517_v40, %v4310_v7  ;;  %v1676_v60 = vmul.f32 2.1237322e-06, %v4347_v50  ;;  %v1441_v43 = vadd.f32 0.05243302, %v1440_v16  ;;  %v1480_v41 = vmul.f32 %v1479_v22, %v4278_v63 }
  0xe8   :  { %6798 = vst [vmem:[#allocation78_spill] sm:$0xff] %v4353_v59  ;;  %v4377_v46 = vmul.f32 0.5, %v4252_v62  ;;  %v4380_v9 = vadd.f32 %v309_v61, %v3879_v48  ;;  %v4383_v39 = vmul.f32 %v1325_v1, %v4119_v35  ;;  %v4386_v0 = vmul.f32 0.5, %v4260_v29  ;;  %v439_v61 = vpop.f32.mrf.mxu3 }
  0xe9   :  { %6799 = vst [vmem:[#allocation79_spill] sm:$0xff] %v4357_v8  ;;  %v1599_v18 = vadd.f32 0.0036580483, %v1598_v5  ;;  %v1637_v20 = vadd.f32 0.00028619796, %v1636_v14  ;;  %v1402_v40 = vmul.f32 %v1401_v21, %v4254_v19  ;;  %v1560_v16 = vmul.f32 %v1559_v53, %v4302_v32  ;;  %v247_v53 = vpop.f32.mrf.mxu0 }
  0xea   :  { %6800 = vst [vmem:[#allocation80_spill] sm:$0xff] %v4362_v27  ;;  %v4391_v22 = vmul.f32 0.5, %v4274_v15  ;;  %v4394_v62 = vmul.f32 0.70710677, %v4365_v12  ;;  %v1519_v58 = vadd.f32 0.0036580483, %v1518_v4  ;;  %v4400_v29 = vadd.f32 %v374_v6, %v3879_v48 }
  0xeb   :  { %6801 = vst [vmem:[#allocation81_spill] sm:$0xff] %v4368_v13  ;;  %v4397_v35 = vmul.f32 0.5, %v4296_v17  ;;  %v1677_v1 = vadd.f32 0.00028619796, %v1676_v60  ;;  %v1442_v5 = vmul.f32 %v1441_v43, %v4264_v55  ;;  %v1481_v14 = vadd.f32 0.05243302, %v1480_v41 }
  0xec   :  { %6802 = vst [vmem:[#allocation82_spill] sm:$0xff] %v4371_v11  ;;  %v1714_v21 = vmul.f32 %v4394_v62, %v4394_v62  ;;  %v4406_v15 = vmul.f32 0.70710677, %v4380_v9  ;;  %v1638_v4 = vmul.f32 %v1637_v20, %v4336_v3  ;;  %v4411_v17 = vmul.f32 0.5, %v4314_v24  ;;  %v312_v20 = vpop.f32.mrf.mxu1 }
  0xed   :  { %6803 = vst [vmem:[#allocation83_spill] sm:$0xff] %v4377_v46  ;;  %v4414_v60 = vadd.f32 %v439_v61, %v3879_v48  ;;  %v1403_v6 = vadd.f32 0.18741608, %v1402_v40  ;;  %v1561_v43 = vadd.f32 0.05243302, %v1560_v16  ;;  %v1520_v46 = vmul.f32 %v1519_v58, %v4310_v7 }
  0xee   :  { %6804 = vst [vmem:[#allocation84_spill] sm:$0xff] %v4383_v39  ;;  %v1600_v39 = vmul.f32 %v1599_v18, %v4304_v26  ;;  %v4416_v41 = vmin.f32 %v1714_v21, 16.0  ;;  %v1754_v30 = vmul.f32 %v4406_v15, %v4406_v15  ;;  %v1678_v27 = vmul.f32 %v1677_v1, %v4347_v50 }
  0xef   :  { %6805 = vst [vmem:[#allocation85_spill] sm:$0xff] %v4386_v0  ;;  %v4423_v18 = vmul.f32 0.70710677, %v4400_v29  ;;  %v4426_v24 = vadd.f32 %v247_v53, %v3901_v54  ;;  %v1443_v48 = vadd.f32 0.18741608, %v1442_v5  ;;  %v1482_v40 = vmul.f32 %v1481_v14, %v4278_v63 }
  0xf0   :  { %6806 = vst [vmem:[#allocation86_spill] sm:$0xff] %v4391_v22  ;;  %v1716_v16 = vmul.f32 2.1237322e-06, %v4416_v41  ;;  %v4430_v61 = vmin.f32 %v1754_v30, 16.0  ;;  %v1601_v21 = vadd.f32 0.05243302, %v1600_v39  ;;  %v1562_v28 = vmul.f32 %v1561_v43, %v4302_v32 }
  0xf1   :  { %6807 = vst [vmem:[#allocation87_spill] sm:$0xff] %v4397_v35  ;;  %v1639_v11 = vadd.f32 0.0036580483, %v1638_v4  ;;  %v1794_v58 = vmul.f32 %v4423_v18, %v4423_v18  ;;  %v4435_v1 = vmul.f32 0.70710677, %v4414_v60  ;;  %v4440_v5 = vadd.f32 %v312_v20, %v3901_v54  ;;  %v377_v4 = vpop.f32.mrf.mxu2 }
  0xf2   :  { %6808 = vst [vmem:[#allocation88_spill] sm:$0xff] %v4411_v17  ;;  %v1717_v53 = vadd.f32 0.00028619796, %v1716_v16  ;;  %v1756_v23 = vmul.f32 2.1237322e-06, %v4430_v61  ;;  %v1404_v35 = vmul.f32 %v1403_v6, %v4254_v19  ;;  %v1602_v25 = vmul.f32 %v1601_v21, %v4304_v26 }
  0xf3   :  { %6809 = vst [vmem:[#allocation89_spill] sm:$0xff] %v4416_v41  ;;  %v1679_v14 = vadd.f32 0.0036580483, %v1678_v27  ;;  %v4442_v17 = vmin.f32 %v1794_v58, 16.0  ;;  %v1834_v30 = vmul.f32 %v4435_v1, %v4435_v1  ;;  %v4447_v39 = vmul.f32 0.70710677, %v4426_v24 }
  0xf4   :  { %6810 = vst [vmem:[#allocation90_spill] sm:$0xff] %v4423_v18  ;;  %v1521_v37 = vadd.f32 0.05243302, %v1520_v46  ;;  %v1718_v43 = vmul.f32 %v1717_v53, %v4416_v41  ;;  %v1757_v16 = vadd.f32 0.00028619796, %v1756_v23  ;;  %v1640_v33 = vmul.f32 %v1639_v11, %v4336_v3 }
  0xf5   :  { %6811 = vst [vmem:[#allocation91_spill] sm:$0xff] %v4430_v61  ;;  %v1796_v20 = vmul.f32 2.1237322e-06, %v4442_v17  ;;  %v4453_v27 = vmin.f32 %v1834_v30, 16.0  ;;  %v1874_v58 = vmul.f32 %v4447_v39, %v4447_v39  ;;  %v4459_v13 = vmul.f32 0.70710677, %v4440_v5 }
  0xf6   :  { %6812 = vst [vmem:[#allocation92_spill] sm:$0xff] %v4435_v1  ;;  %v1719_v38 = vadd.f32 0.0036580483, %v1718_v43  ;;  %v4462_v46 = vadd.f32 %v377_v4, %v3901_v54  ;;  %v1444_v23 = vmul.f32 %v1443_v48, %v4264_v55  ;;  %v1483_v6 = vadd.f32 0.18741608, %v1482_v40 }
  0xf7   :  { %6813 = vst [vmem:[#allocation93_spill] sm:$0xff] %v4442_v17  ;;  %v1563_v11 = vadd.f32 0.18741608, %v1562_v28  ;;  %v1680_v53 = vmul.f32 %v1679_v14, %v4347_v50  ;;  %v1758_v30 = vmul.f32 %v1757_v16, %v4430_v61  ;;  %v1797_v36 = vadd.f32 0.00028619796, %v1796_v20  ;;  %v442_v16 = vpop.f32.mrf.mxu3 }
  0xf8   :  { %6814 = vst [vmem:[#allocation94_spill] sm:$0xff] %v4453_v27  ;;  %v1836_v1 = vmul.f32 2.1237322e-06, %v4453_v27  ;;  %v1914_v21 = vmul.f32 %v4459_v13, %v4459_v13  ;;  %v1405_v43 = vadd.f32 1.1283791, %v1404_v35  ;;  %v1720_v8 = vmul.f32 %v1719_v38, %v4416_v41 }
  0xf9   :  { %v1641_v18 = vadd.f32 0.05243302, %v1640_v33  ;;  %v4471_v4 = vmin.f32 %v1874_v58, 16.0  ;;  %v1522_v48 = vmul.f32 %v1521_v37, %v4310_v7  ;;  %v1603_v40 = vadd.f32 0.18741608, %v1602_v25 }
  0xfa   :  { %v4474_v28 = vmin.f32 %v1914_v21, 16.0  ;;  %v4477_v14 = vmul.f32 0.70710677, %v4462_v46  ;;  %v1445_v20 = vadd.f32 1.1283791, %v1444_v23  ;;  %v1484_v59 = vmul.f32 %v1483_v6, %v4278_v63 }
  0xfb   :  { %6815 = vst [vmem:[#allocation95_spill] sm:$0xff] %v4471_v4  ;;  %v1564_v56 = vmul.f32 %v1563_v11, %v4302_v32  ;;  %v1681_v35 = vadd.f32 0.05243302, %v1680_v53  ;;  %v1759_v33 = vadd.f32 0.0036580483, %v1758_v30  ;;  %v1798_v38 = vmul.f32 %v1797_v36, %v4442_v17 }
  0xfc   :  { %6816 = vst [vmem:[#allocation96_spill] sm:$0xff] %v4474_v28  ;;  %v1837_v58 = vadd.f32 0.00028619796, %v1836_v1  ;;  %v1954_v37 = vmul.f32 %v4477_v14, %v4477_v14  ;;  %v1642_v25 = vmul.f32 %v1641_v18, %v4336_v3  ;;  %v1721_v21 = vadd.f32 0.05243302, %v1720_v8 }
  0xfd   :  { %6817 = vst [vmem:[#allocation97_spill] sm:$0xff] %v4477_v14  ;;  %v1876_v22 = vmul.f32 2.1237322e-06, %v4471_v4  ;;  %v4487_v2 = vadd.f32 %v442_v16, %v3901_v54  ;;  %v1523_v23 = vadd.f32 0.18741608, %v1522_v48  ;;  %v1604_v6 = vmul.f32 %v1603_v40, %v4304_v26 }
  0xfe   :  { %v1916_v11 = vmul.f32 2.1237322e-06, %v4474_v28  ;;  %v4491_v53 = vmin.f32 %v1954_v37, 16.0  ;;  %v4494_v36 = vmul.f32 %v1405_v43, %v4235_v10  ;;  %v4497_v1 = vmul.f32 %v1445_v20, %v4239_v52 }
  0xff   :  { %v4499_v18 = vadd.f32 1.1283791, %v1484_v59  ;;  %v1682_v8 = vmul.f32 %v1681_v35, %v4347_v50  ;;  %v1565_v30 = vadd.f32 1.1283791, %v1564_v56  ;;  %v1760_v54 = vmul.f32 %v1759_v33, %v4430_v61  ;;  %v250_v56 = vpop.f32.mrf.mxu0 }
 0x100   :  { %6818 = vst [vmem:[#allocation98_spill] sm:$0xff] %v4491_v53  ;;  %v1799_v48 = vadd.f32 0.0036580483, %v1798_v38  ;;  %v1838_v40 = vmul.f32 %v1837_v58, %v4453_v27  ;;  %v1643_v16 = vadd.f32 0.18741608, %v1642_v25  ;;  %v1722_v37 = vmul.f32 %v1721_v21, %v4416_v41 }
 0x101   :  { %6819 = vst [vmem:[#allocation99_spill] sm:$0xff] %v4494_v36  ;;  %v1877_v63 = vadd.f32 0.00028619796, %v1876_v22  ;;  %v4506_v10 = vmul.f32 0.70710677, %v4487_v2  ;;  %v4509_v52 = vmul.f32 %v1523_v23, %v4310_v7  ;;  %v4513_v33 = vmul.f32 0.5, %v4365_v12 }
 0x102   :  { %6820 = vst [vmem:[#allocation100_spill] sm:$0xff] %v4497_v1  ;;  %v1605_v59 = vadd.f32 1.1283791, %v1604_v6  ;;  %v1917_v43 = vadd.f32 0.00028619796, %v1916_v11  ;;  %v4516_v38 = vmul.f32 0.5, %v4380_v9  ;;  %v1800_v21 = vmul.f32 %v1799_v48, %v4442_v17 }
 0x103   :  { %6821 = vst [vmem:[#allocation101_spill] sm:$0xff] %v4499_v18  ;;  %v1956_v20 = vmul.f32 2.1237322e-06, %v4491_v53  ;;  %v1683_v35 = vadd.f32 0.18741608, %v1682_v8  ;;  %v1994_v22 = vmul.f32 %v4506_v10, %v4506_v10  ;;  %v4521_v25 = vmul.f32 0.5, %v4400_v29 }
 0x104   :  { %6822 = vst [vmem:[#allocation102_spill] sm:$0xff] %v4506_v10  ;;  %v1761_v58 = vadd.f32 0.05243302, %v1760_v54  ;;  %v1839_v23 = vadd.f32 0.0036580483, %v1838_v40  ;;  %v4525_v6 = vmul.f32 %v1565_v30, %v4281_v31  ;;  %v1644_v11 = vmul.f32 %v1643_v16, %v4336_v3 }
 0x105   :  { %6823 = vst [vmem:[#allocation103_spill] sm:$0xff] %v4509_v52  ;;  %v1723_v12 = vadd.f32 0.18741608, %v1722_v37  ;;  %v1878_v8 = vmul.f32 %v1877_v63, %v4471_v4  ;;  %v4530_v9 = vmul.f32 %v1605_v59, %v4285_v34  ;;  %v1918_v18 = vmul.f32 %v1917_v43, %v4474_v28  ;;  %v315_v63 = vpop.f32.mrf.mxu1  ;;  %v380_v43 = vpop.f32.mrf.mxu2 }
 0x106   :  { %6824 = vst [vmem:[#allocation104_spill] sm:$0xff] %v4513_v33  ;;  %v1957_v54 = vadd.f32 0.00028619796, %v1956_v20  ;;  %v4534_v29 = vadd.f32 %v250_v56, %v3907_v57  ;;  %v1684_v48 = vmul.f32 %v1683_v35, %v4347_v50  ;;  %v4538_v40 = vmul.f32 0.5, %v4414_v60 }
 0x107   :  { %6825 = vst [vmem:[#allocation105_spill] sm:$0xff] %v4516_v38  ;;  %v4541_v31 = vmul.f32 0.5, %v4426_v24  ;;  %v4543_v30 = vmin.f32 %v1994_v22, 16.0  ;;  %v1762_v34 = vmul.f32 %v1761_v58, %v4430_v61  ;;  %v1801_v16 = vadd.f32 0.05243302, %v1800_v21 }
 0x108   :  { %6826 = vst [vmem:[#allocation106_spill] sm:$0xff] %v4521_v25  ;;  %v1840_v37 = vmul.f32 %v1839_v23, %v4453_v27  ;;  %v4548_v59 = vmul.f32 0.70710677, %v4534_v29  ;;  %v4550_v20 = vadd.f32 1.1283791, %v1644_v11  ;;  %v1724_v60 = vmul.f32 %v1723_v12, %v4416_v41 }
 0x109   :  { %6827 = vst [vmem:[#allocation107_spill] sm:$0xff] %v4525_v6  ;;  %v1879_v56 = vadd.f32 0.0036580483, %v1878_v8  ;;  %v4554_v24 = vmul.f32 0.5, %v4440_v5  ;;  %v1919_v35 = vadd.f32 0.0036580483, %v1918_v18  ;;  %v1958_v22 = vmul.f32 %v1957_v54, %v4491_v53  ;;  %v445_v5 = vpop.f32.mrf.mxu3 }
 0x10a   :  { %6828 = vst [vmem:[#allocation108_spill] sm:$0xff] %v4530_v9  ;;  %v2034_v58 = vmul.f32 %v4548_v59, %v4548_v59  ;;  %v4560_v21 = vadd.f32 %v315_v63, %v3907_v57  ;;  %v4562_v23 = vadd.f32 1.1283791, %v1684_v48  ;;  %v4565_v11 = vmul.f32 0.5, %v4462_v46 }
 0x10b   :  { %6829 = vst [vmem:[#allocation109_spill] sm:$0xff] %v4538_v40  ;;  %v1996_v12 = vmul.f32 2.1237322e-06, %v4543_v30  ;;  %v4569_v8 = vadd.f32 %v380_v43, %v3907_v57  ;;  %v1763_v18 = vadd.f32 0.18741608, %v1762_v34  ;;  %v1802_v54 = vmul.f32 %v1801_v16, %v4442_v17 }
 0x10c   :  { %6830 = vst [vmem:[#allocation110_spill] sm:$0xff] %v4541_v31  ;;  %v1841_v52 = vadd.f32 0.05243302, %v1840_v37  ;;  %v4572_v7 = vmin.f32 %v2034_v58, 16.0  ;;  %v1725_v63 = vadd.f32 1.1283791, %v1724_v60  ;;  %v1880_v48 = vmul.f32 %v1879_v56, %v4471_v4 }
 0x10d   :  { %6831 = vst [vmem:[#allocation111_spill] sm:$0xff] %v4543_v30  ;;  %v4579_v46 = vmul.f32 0.70710677, %v4560_v21  ;;  %v1920_v43 = vmul.f32 %v1919_v35, %v4474_v28  ;;  %v1959_v40 = vadd.f32 0.0036580483, %v1958_v22  ;;  %v4584_v16 = vadd.f32 %v445_v5, %v3907_v57  ;;  %v318_v5 = vpop.f32.mrf.mxu1  ;;  %v383_v36 = vpop.f32.mrf.mxu2 }
 0x10e   :  { %6832 = vst [vmem:[#allocation112_spill] sm:$0xff] %v4550_v20  ;;  %v253_v20 = vpop.f32.mrf.mxu0  ;;  %v2036_v34 = vmul.f32 2.1237322e-06, %v4572_v7  ;;  %v1997_v37 = vadd.f32 0.00028619796, %v1996_v12  ;;  %v1764_v58 = vmul.f32 %v1763_v18, %v4430_v61  ;;  %v1842_v35 = vmul.f32 %v1841_v52, %v4453_v27 }
 0x10f   :  { %6833 = vst [vmem:[#allocation113_spill] sm:$0xff] %v4554_v24  ;;  %v2074_v60 = vmul.f32 %v4579_v46, %v4579_v46  ;;  %v4589_v56 = vmul.f32 0.70710677, %v4569_v8  ;;  %v1803_v25 = vadd.f32 0.18741608, %v1802_v54 }
 0x110   :  { %6834 = vst [vmem:[#allocation114_spill] sm:$0xff] %v4562_v23  ;;  %v4576_v23 = vmul.f32 0.5, %v4487_v2  ;;  %v4592_v2 = vadd.f32 %v253_v20, %v3866_v44  ;;  %v2037_v22 = vadd.f32 0.00028619796, %v2036_v34  ;;  %v1881_v50 = vadd.f32 0.05243302, %v1880_v48 }
 0x111   :  { %6835 = vst [vmem:[#allocation115_spill] sm:$0xff] %v4565_v11  ;;  %v4596_v3 = vmin.f32 %v2074_v60, 16.0  ;;  %v2114_v57 = vmul.f32 %v4589_v56, %v4589_v56  ;;  %v4601_v12 = vmul.f32 0.70710677, %v4584_v16  ;;  %v1960_v20 = vmul.f32 %v1959_v40, %v4491_v53 }
 0x112   :  { %6836 = vst [vmem:[#allocation116_spill] sm:$0xff] %v4572_v7  ;;  %v2038_v11 = vmul.f32 %v2037_v22, %v4572_v7  ;;  %v4606_v18 = vmul.f32 0.70710677, %v4592_v2  ;;  %v1998_v52 = vmul.f32 %v1997_v37, %v4543_v30  ;;  %v4615_v60 = vmul.f32 %v1725_v63, %v4394_v62 }
 0x113   :  { %6837 = vst [vmem:[#allocation117_spill] sm:$0xff] %v4576_v23  ;;  %v1921_v23 = vadd.f32 0.05243302, %v1920_v43  ;;  %v2076_v54 = vmul.f32 2.1237322e-06, %v4596_v3  ;;  %v4610_v48 = vmin.f32 %v2114_v57, 16.0  ;;  %v2154_v34 = vmul.f32 %v4601_v12, %v4601_v12 }
 0x114   :  { %6838 = vst [vmem:[#allocation118_spill] sm:$0xff] %v4589_v56  ;;  %v2039_v43 = vadd.f32 0.0036580483, %v2038_v11  ;;  %v2194_v40 = vmul.f32 %v4606_v18, %v4606_v18  ;;  %v4620_v22 = vadd.f32 %v318_v5, %v3866_v44  ;;  %v1765_v10 = vadd.f32 1.1283791, %v1764_v58 }
 0x115   :  { %6839 = vst [vmem:[#allocation119_spill] sm:$0xff] %v4596_v3  ;;  %v1882_v37 = vmul.f32 %v1881_v50, %v4471_v4  ;;  %v2077_v1 = vadd.f32 0.00028619796, %v2076_v54  ;;  %v2116_v57 = vmul.f32 2.1237322e-06, %v4610_v48  ;;  %v1922_v9 = vmul.f32 %v1921_v23, %v4474_v28 }
 0x116   :  { %6840 = vst [vmem:[#allocation120_spill] sm:$0xff] %v4601_v12  ;;  %v1961_v12 = vadd.f32 0.05243302, %v1960_v20  ;;  %v4625_v56 = vmin.f32 %v2154_v34, 16.0  ;;  %v4627_v62 = vmin.f32 %v2194_v40, 16.0  ;;  %v2040_v63 = vmul.f32 %v2039_v43, %v4572_v7  ;;  %v448_v20 = vpop.f32.mrf.mxu3 }
 0x117   :  { %6841 = vst [vmem:[#allocation121_spill] sm:$0xff] %v4610_v48  ;;  %v1999_v11 = vadd.f32 0.0036580483, %v1998_v52  ;;  %v2078_v5 = vmul.f32 %v2077_v1, %v4596_v3  ;;  %v4632_v58 = vmul.f32 0.70710677, %v4620_v22  ;;  %v1804_v50 = vmul.f32 %v1803_v25, %v4442_v17 }
 0x118   :  { %6842 = vst [vmem:[#allocation122_spill] sm:$0xff] %v4615_v60  ;;  %v2117_v54 = vadd.f32 0.00028619796, %v2116_v57  ;;  %v2156_v0 = vmul.f32 2.1237322e-06, %v4625_v56  ;;  %v4637_v23 = vadd.f32 %v383_v36, %v3866_v44  ;;  %v4643_v1 = vmul.f32 %v1765_v10, %v4406_v15 }
 0x119   :  { %6843 = vst [vmem:[#allocation123_spill] sm:$0xff] %v4625_v56  ;;  %v1883_v34 = vadd.f32 0.18741608, %v1882_v37  ;;  %v2079_v40 = vadd.f32 0.0036580483, %v2078_v5  ;;  %v2234_v43 = vmul.f32 %v4632_v58, %v4632_v58  ;;  %v1962_v25 = vmul.f32 %v1961_v12, %v4491_v53 }
 0x11a   :  { %v2196_v52 = vmul.f32 2.1237322e-06, %v4627_v62  ;;  %6844 = vst [vmem:[#allocation124_spill] sm:$0xff] %v4643_v1  ;;  %v1843_v6 = vadd.f32 0.18741608, %v1842_v35  ;;  %v2000_v57 = vmul.f32 %v1999_v11, %v4543_v30  ;;  %v4650_v37 = vadd.f32 %v448_v20, %v3866_v44 }
 0x11b   :  { %v1923_v14 = vadd.f32 0.18741608, %v1922_v9  ;;  %v2041_v17 = vadd.f32 0.05243302, %v2040_v63  ;;  %v4647_v36 = vmin.f32 %v2234_v43, 16.0  ;;  %v2118_v38 = vmul.f32 %v2117_v54, %v4610_v48 }
 0x11c   :  { %6845 = vst [vmem:[#allocation125_spill] sm:$0xff] %v4650_v37  ;;  %v4652_v5 = vadd.f32 1.1283791, %v1804_v50  ;;  %v2157_v33 = vadd.f32 0.00028619796, %v2156_v0  ;;  %v1884_v10 = vmul.f32 %v1883_v34, %v4471_v4  ;;  %v2080_v9 = vmul.f32 %v2079_v40, %v4596_v3 }
 0x11d   :  { %v4656_v15 = vmul.f32 0.70710677, %v4637_v23  ;;  %v2197_v35 = vadd.f32 0.00028619796, %v2196_v52  ;;  %v2236_v12 = vmul.f32 2.1237322e-06, %v4647_v36  ;;  %v4662_v11 = vmul.f32 %v1843_v6, %v4453_v27 }
 0x11e   :  { %6846 = vst [vmem:[#allocation126_spill] sm:$0xff] %v4652_v5  ;;  %v1924_v44 = vmul.f32 %v1923_v14, %v4474_v28  ;;  %v1963_v63 = vadd.f32 0.18741608, %v1962_v25  ;;  %v2001_v0 = vadd.f32 0.05243302, %v2000_v57  ;;  %v2042_v54 = vmul.f32 %v2041_v17, %v4572_v7  ;;  %v256_v17 = vpop.f32.mrf.mxu0 }
 0x11f   :  { %6847 = vst [vmem:[#allocation127_spill] sm:$0xff] %v4662_v11  ;;  %v2274_v50 = vmul.f32 %v4656_v15, %v4656_v15  ;;  %v2237_v20 = vadd.f32 0.00028619796, %v2236_v12  ;;  %v4669_v34 = vmul.f32 0.70710677, %v4650_v37  ;;  %v4672_v40 = vmul.f32 0.5, %v4534_v29 }
 0x120   :  { %v2119_v52 = vadd.f32 0.0036580483, %v2118_v38  ;;  %v2158_v6 = vmul.f32 %v2157_v33, %v4625_v56  ;;  %v1885_v14 = vadd.f32 1.1283791, %v1884_v10  ;;  %v2081_v25 = vadd.f32 0.05243302, %v2080_v9 }
 0x121   :  { %6848 = vst [vmem:[#allocation128_spill] sm:$0xff] %v4672_v40  ;;  %v4675_v43 = vmin.f32 %v2274_v50, 16.0  ;;  %v2198_v5 = vmul.f32 %v2197_v35, %v4627_v62  ;;  %v2314_v57 = vmul.f32 %v4669_v34, %v4669_v34  ;;  %v1925_v12 = vadd.f32 1.1283791, %v1924_v44 }
 0x122   :  { %v1964_v11 = vmul.f32 %v1963_v63, %v4491_v53  ;;  %v4682_v27 = vmul.f32 0.5, %v4560_v21  ;;  %v2002_v33 = vmul.f32 %v2001_v0, %v4543_v30  ;;  %v2043_v29 = vadd.f32 0.18741608, %v2042_v54 }
 0x123   :  { %6849 = vst [vmem:[#allocation129_spill] sm:$0xff] %v4675_v43  ;;  %v2276_v38 = vmul.f32 2.1237322e-06, %v4675_v43  ;;  %v2238_v10 = vmul.f32 %v2237_v20, %v4647_v36  ;;  %v4687_v9 = vmin.f32 %v2314_v57, 16.0  ;;  %v2120_v35 = vmul.f32 %v2119_v52, %v4610_v48  ;;  %v321_v57 = vpop.f32.mrf.mxu1 }
 0x124   :  { %6850 = vst [vmem:[#allocation130_spill] sm:$0xff] %v4682_v27  ;;  %v2159_v50 = vadd.f32 0.0036580483, %v2158_v6  ;;  %v4691_v44 = vadd.f32 %v256_v17, %v3857_v42  ;;  %v4694_v63 = vmul.f32 %v1885_v14, %v4447_v39  ;;  %v2082_v21 = vmul.f32 %v2081_v25, %v4596_v3 }
 0x125   :  { %6851 = vst [vmem:[#allocation131_spill] sm:$0xff] %v4687_v9  ;;  %v2277_v37 = vadd.f32 0.00028619796, %v2276_v38  ;;  %v2199_v53 = vadd.f32 0.0036580483, %v2198_v5  ;;  %v4699_v54 = vmul.f32 %v1925_v12, %v4459_v13  ;;  %v4702_v20 = vmul.f32 0.5, %v4569_v8  ;;  %v386_v8 = vpop.f32.mrf.mxu2 }
 0x126   :  { %6852 = vst [vmem:[#allocation132_spill] sm:$0xff] %v4694_v63  ;;  %v2316_v0 = vmul.f32 2.1237322e-06, %v4687_v9  ;;  %v4705_v52 = vmul.f32 0.5, %v4584_v16  ;;  %v2003_v17 = vadd.f32 0.18741608, %v2002_v33  ;;  %v2044_v39 = vmul.f32 %v2043_v29, %v4572_v7 }
 0x127   :  { %6853 = vst [vmem:[#allocation133_spill] sm:$0xff] %v4699_v54  ;;  %v2278_v6 = vmul.f32 %v2277_v37, %v4675_v43  ;;  %v2239_v14 = vadd.f32 0.0036580483, %v2238_v10  ;;  %v4709_v5 = vadd.f32 1.1283791, %v1964_v11  ;;  %v2160_v13 = vmul.f32 %v2159_v50, %v4625_v56 }
 0x128   :  { %6854 = vst [vmem:[#allocation134_spill] sm:$0xff] %v4702_v20  ;;  %v2317_v25 = vadd.f32 0.00028619796, %v2316_v0  ;;  %v2121_v38 = vadd.f32 0.05243302, %v2120_v35  ;;  %v2200_v16 = vmul.f32 %v2199_v53, %v4627_v62  ;;  %v4717_v37 = vadd.f32 %v321_v57, %v3857_v42  ;;  %v451_v0 = vpop.f32.mrf.mxu3 }
 0x129   :  { %6855 = vst [vmem:[#allocation135_spill] sm:$0xff] %v4705_v52  ;;  %v4713_v12 = vmul.f32 0.70710677, %v4691_v44  ;;  %v2083_v20 = vadd.f32 0.18741608, %v2082_v21  ;;  %v4720_v33 = vmul.f32 0.5, %v4592_v2  ;;  %v4729_v35 = vmul.f32 %v2003_v17, %v4543_v30 }
 0x12a   :  { %6856 = vst [vmem:[#allocation136_spill] sm:$0xff] %v4709_v5  ;;  %v2279_v52 = vadd.f32 0.0036580483, %v2278_v6  ;;  %v4723_v11 = vmul.f32 0.5, %v4620_v22  ;;  %v2318_v29 = vmul.f32 %v2317_v25, %v4687_v9  ;;  %v2045_v50 = vadd.f32 1.1283791, %v2044_v39  ;;  %v259_v25 = vpop.f32.mrf.mxu0 }
 0x12b   :  { %6857 = vst [vmem:[#allocation137_spill] sm:$0xff] %v4720_v33  ;;  %v2354_v10 = vmul.f32 %v4713_v12, %v4713_v12  ;;  %v2240_v53 = vmul.f32 %v2239_v14, %v4647_v36  ;;  %v4733_v21 = vadd.f32 %v386_v8, %v3857_v42  ;;  %v2122_v2 = vmul.f32 %v2121_v38, %v4610_v48 }
 0x12c   :  { %6858 = vst [vmem:[#allocation138_spill] sm:$0xff] %v4723_v11  ;;  %v2161_v6 = vadd.f32 0.05243302, %v2160_v13  ;;  %v4737_v22 = vmul.f32 0.5, %v4637_v23  ;;  %v2084_v5 = vmul.f32 %v2083_v20, %v4596_v3  ;;  %v2201_v17 = vadd.f32 0.05243302, %v2200_v16 }
 0x12d   :  { %6859 = vst [vmem:[#allocation139_spill] sm:$0xff] %v4729_v35  ;;  %v4739_v57 = vmin.f32 %v2354_v10, 16.0  ;;  %v2280_v39 = vmul.f32 %v2279_v52, %v4675_v43  ;;  %v4744_v14 = vmul.f32 0.70710677, %v4717_v37  ;;  %v2319_v8 = vadd.f32 0.0036580483, %v2318_v29  ;;  %v389_v19 = vpop.f32.mrf.mxu2 }
 0x12e   :  { %6860 = vst [vmem:[#allocation140_spill] sm:$0xff] %v4737_v22  ;;  %v4748_v38 = vmul.f32 0.70710677, %v4733_v21  ;;  %v4751_v23 = vadd.f32 %v451_v0, %v3857_v42  ;;  %v4754_v13 = vmul.f32 %v2045_v50, %v4548_v59  ;;  %v2241_v10 = vadd.f32 0.05243302, %v2240_v53  ;;  %v324_v53 = vpop.f32.mrf.mxu1 }
 0x12f   :  { %v2356_v30 = vmul.f32 2.1237322e-06, %v4739_v57  ;;  %v2394_v20 = vmul.f32 %v4744_v14, %v4744_v14  ;;  %v4759_v52 = vadd.f32 %v259_v25, %v3885_v49  ;;  %v2123_v16 = vadd.f32 0.18741608, %v2122_v2 }
 0x130   :  { %6861 = vst [vmem:[#allocation141_spill] sm:$0xff] %v4754_v13  ;;  %v2162_v29 = vmul.f32 %v2161_v6, %v4625_v56  ;;  %v2434_v35 = vmul.f32 %v4748_v38, %v4748_v38  ;;  %v4764_v1 = vadd.f32 1.1283791, %v2084_v5  ;;  %v2202_v42 = vmul.f32 %v2201_v17, %v4627_v62 }
 0x131   :  { %v2357_v22 = vadd.f32 0.00028619796, %v2356_v30  ;;  %v4767_v59 = vmin.f32 %v2394_v20, 16.0  ;;  %v4770_v50 = vmul.f32 0.70710677, %v4751_v23  ;;  %v2320_v25 = vmul.f32 %v2319_v8, %v4687_v9 }
 0x132   :  { %v2281_v0 = vadd.f32 0.05243302, %v2280_v39  ;;  %v4774_v6 = vmin.f32 %v2434_v35, 16.0  ;;  %v2242_v30 = vmul.f32 %v2241_v10, %v4647_v36  ;;  %v4781_v20 = vmul.f32 0.70710677, %v4759_v52 }
 0x133   :  { %v2358_v2 = vmul.f32 %v2357_v22, %v4739_v57  ;;  %v2396_v5 = vmul.f32 2.1237322e-06, %v4767_v59  ;;  %v2474_v17 = vmul.f32 %v4770_v50, %v4770_v50  ;;  %v4784_v56 = vmul.f32 %v2123_v16, %v4610_v48 }
 0x134   :  { %6862 = vst [vmem:[#allocation142_spill] sm:$0xff] %v4774_v6  ;;  %v2436_v8 = vmul.f32 2.1237322e-06, %v4774_v6  ;;  %v4788_v22 = vadd.f32 %v324_v53, %v3885_v49  ;;  %v2203_v35 = vadd.f32 0.18741608, %v2202_v42  ;;  %v2514_v55 = vmul.f32 %v4781_v20, %v4781_v20 }
 0x135   :  { %6863 = vst [vmem:[#allocation143_spill] sm:$0xff] %v4784_v56  ;;  %v2359_v39 = vadd.f32 0.0036580483, %v2358_v2  ;;  %v2397_v60 = vadd.f32 0.00028619796, %v2396_v5  ;;  %v4790_v10 = vmin.f32 %v2474_v17, 16.0  ;;  %v2282_v26 = vmul.f32 %v2281_v0, %v4675_v43 }
 0x136   :  { %v2321_v24 = vadd.f32 0.05243302, %v2320_v25  ;;  %v2437_v56 = vadd.f32 0.00028619796, %v2436_v8  ;;  %v2243_v2 = vadd.f32 0.18741608, %v2242_v30  ;;  %v4805_v31 = vadd.f32 %v389_v19, %v3885_v49 }
 0x137   :  { %6864 = vst [vmem:[#allocation144_spill] sm:$0xff] %v4790_v10  ;;  %v2360_v16 = vmul.f32 %v2359_v39, %v4739_v57  ;;  %v2398_v48 = vmul.f32 %v2397_v60, %v4767_v59  ;;  %v2476_v53 = vmul.f32 2.1237322e-06, %v4790_v10  ;;  %v4798_v54 = vmin.f32 %v2514_v55, 16.0  ;;  %v454_v60 = vpop.f32.mrf.mxu3 }
 0x138   :  { %v2438_v5 = vmul.f32 %v2437_v56, %v4774_v6  ;;  %v4802_v17 = vmul.f32 0.70710677, %v4788_v22  ;;  %v2204_v0 = vmul.f32 %v2203_v35, %v4627_v62  ;;  %v2283_v8 = vadd.f32 0.18741608, %v2282_v26 }
 0x139   :  { %v2361_v42 = vadd.f32 0.05243302, %v2360_v16  ;;  %v2399_v25 = vadd.f32 0.0036580483, %v2398_v48  ;;  %v2477_v39 = vadd.f32 0.00028619796, %v2476_v53  ;;  %v2322_v55 = vmul.f32 %v2321_v24, %v4687_v9 }
 0x13a   :  { %v2516_v30 = vmul.f32 2.1237322e-06, %v4798_v54  ;;  %v2439_v63 = vadd.f32 0.0036580483, %v2438_v5  ;;  %v2554_v56 = vmul.f32 %v4802_v17, %v4802_v17  ;;  %v4815_v61 = vmul.f32 0.70710677, %v4805_v31 }
 0x13b   :  { %v2400_v16 = vmul.f32 %v2399_v25, %v4767_v59  ;;  %v2478_v32 = vmul.f32 %v2477_v39, %v4790_v10  ;;  %v2362_v48 = vmul.f32 %v2361_v42, %v4739_v57  ;;  %v4822_v26 = vadd.f32 %v454_v60, %v3885_v49 }
 0x13c   :  { %v2517_v19 = vadd.f32 0.00028619796, %v2516_v30  ;;  %v2440_v35 = vmul.f32 %v2439_v63, %v4774_v6  ;;  %v4819_v53 = vmin.f32 %v2554_v56, 16.0  ;;  %v2594_v25 = vmul.f32 %v4815_v61, %v4815_v61 }
 0x13d   :  { %v2401_v24 = vadd.f32 0.05243302, %v2400_v16  ;;  %v2479_v5 = vadd.f32 0.0036580483, %v2478_v32  ;;  %v4827_v39 = vadd.f32 0.18741608, %v2162_v29  ;;  %v2244_v30 = vmul.f32 %v2243_v2, %v4647_v36 }
 0x13e   :  { %v2518_v27 = vmul.f32 %v2517_v19, %v4798_v54  ;;  %v2284_v42 = vmul.f32 %v2283_v8, %v4675_v43  ;;  %v2556_v63 = vmul.f32 2.1237322e-06, %v4819_v53  ;;  %v2323_v56 = vadd.f32 0.18741608, %v2322_v55 }
 0x13f   :  { %6865 = vst [vmem:[#allocation145_spill] sm:$0xff] %v4827_v39  ;;  %v2402_v41 = vmul.f32 %v2401_v24, %v4767_v59  ;;  %v2441_v49 = vadd.f32 0.05243302, %v2440_v35  ;;  %v4833_v60 = vmin.f32 %v2594_v25, 16.0  ;;  %v2205_v32 = vadd.f32 1.1283791, %v2204_v0  ;;  %v262_v35 = vpop.f32.mrf.mxu0 }
 0x140   :  { %v4836_v16 = vmul.f32 0.5, %v4691_v44  ;;  %v2480_v19 = vmul.f32 %v2479_v5, %v4790_v10  ;;  %v4840_v29 = vmul.f32 0.70710677, %v4822_v26  ;;  %v4844_v2 = vmul.f32 %v4764_v1, %v4579_v46 }
 0x141   :  { %6866 = vst [vmem:[#allocation146_spill] sm:$0xff] %v4833_v60  ;;  %v2363_v8 = vadd.f32 0.18741608, %v2362_v48  ;;  %v2519_v55 = vadd.f32 0.0036580483, %v2518_v27  ;;  %v4848_v0 = vmul.f32 0.5, %v4717_v37  ;;  %v2324_v43 = vmul.f32 %v2323_v56, %v4687_v9 }
 0x142   :  { %6867 = vst [vmem:[#allocation147_spill] sm:$0xff] %v4836_v16  ;;  %v2596_v24 = vmul.f32 2.1237322e-06, %v4833_v60  ;;  %v2245_v25 = vadd.f32 1.1283791, %v2244_v30  ;;  %v2634_v5 = vmul.f32 %v4840_v29, %v4840_v29  ;;  %v2442_v46 = vmul.f32 %v2441_v49, %v4774_v6 }
 0x143   :  { %6868 = vst [vmem:[#allocation148_spill] sm:$0xff] %v4840_v29  ;;  %v2557_v44 = vadd.f32 0.00028619796, %v2556_v63  ;;  %v2285_v39 = vadd.f32 1.1283791, %v2284_v42  ;;  %v4858_v30 = vmul.f32 %v2205_v32, %v4606_v18  ;;  %v2364_v37 = vmul.f32 %v2363_v8, %v4739_v57 }
 0x144   :  { %6869 = vst [vmem:[#allocation149_spill] sm:$0xff] %v4844_v2  ;;  %v2403_v40 = vadd.f32 0.18741608, %v2402_v41  ;;  %v2481_v1 = vadd.f32 0.05243302, %v2480_v19  ;;  %v4854_v27 = vmin.f32 %v2634_v5, 16.0  ;;  %v263_v2 = vadd.f32 %v262_v35, %v3872_v45  ;;  %v392_v35 = vpop.f32.mrf.mxu2 }
 0x145   :  { %6870 = vst [vmem:[#allocation150_spill] sm:$0xff] %v4848_v0  ;;  %v2597_v48 = vadd.f32 0.00028619796, %v2596_v24  ;;  %v4862_v63 = vmul.f32 0.5, %v4733_v21  ;;  %v2520_v42 = vmul.f32 %v2519_v55, %v4798_v54  ;;  %v4866_v41 = vmul.f32 %v2245_v25, %v4632_v58  ;;  %v327_v24 = vpop.f32.mrf.mxu1 }
 0x146   :  { %6871 = vst [vmem:[#allocation151_spill] sm:$0xff] %v4854_v27  ;;  %v4869_v56 = vmul.f32 0.5, %v4751_v23  ;;  %v2558_v49 = vmul.f32 %v2557_v44, %v4819_v53  ;;  %v2636_v19 = vmul.f32 2.1237322e-06, %v4854_v27  ;;  %v2325_v18 = vadd.f32 1.1283791, %v2324_v43 }
 0x147   :  { %6872 = vst [vmem:[#allocation152_spill] sm:$0xff] %v4858_v30  ;;  %v2404_v32 = vmul.f32 %v2403_v40, %v4767_v59  ;;  %v2443_v8 = vadd.f32 0.18741608, %v2442_v46  ;;  %v4875_v21 = vmul.f32 0.5, %v4759_v52  ;;  %v4878_v55 = vmul.f32 %v2285_v39, %v4656_v15 }
 0x148   :  { %6873 = vst [vmem:[#allocation153_spill] sm:$0xff] %v4862_v63  ;;  %v2482_v58 = vmul.f32 %v2481_v1, %v4790_v10  ;;  %v2598_v23 = vmul.f32 %v2597_v48, %v4833_v60  ;;  %v4882_v25 = vmul.f32 0.70710677, %v263_v2  ;;  %v2365_v44 = vadd.f32 1.1283791, %v2364_v37 }
 0x149   :  { %6874 = vst [vmem:[#allocation154_spill] sm:$0xff] %v4866_v41  ;;  %v2521_v5 = vadd.f32 0.05243302, %v2520_v42  ;;  %v4885_v43 = vmul.f32 0.5, %v4788_v22  ;;  %v4888_v40 = vadd.f32 %v327_v24, %v3872_v45  ;;  %v2559_v52 = vadd.f32 0.0036580483, %v2558_v49  ;;  %v457_v42 = vpop.f32.mrf.mxu3 }
 0x14a   :  { %6875 = vst [vmem:[#allocation155_spill] sm:$0xff] %v4869_v56  ;;  %v2637_v46 = vadd.f32 0.00028619796, %v2636_v19  ;;  %v2674_v15 = vmul.f32 %v4882_v25, %v4882_v25  ;;  %v4893_v39 = vadd.f32 %v392_v35, %v3872_v45  ;;  %v4896_v1 = vmul.f32 %v2325_v18, %v4669_v34 }
 0x14b   :  { %6876 = vst [vmem:[#allocation156_spill] sm:$0xff] %v4878_v55  ;;  %v2405_v48 = vadd.f32 1.1283791, %v2404_v32  ;;  %v2444_v37 = vmul.f32 %v2443_v8, %v4774_v6  ;;  %v4900_v22 = vmul.f32 0.5, %v4805_v31  ;;  %v2483_v24 = vadd.f32 0.18741608, %v2482_v58 }
 0x14c   :  { %6877 = vst [vmem:[#allocation157_spill] sm:$0xff] %v4896_v1  ;;  %v2599_v55 = vadd.f32 0.0036580483, %v2598_v23  ;;  %v4903_v49 = vmul.f32 0.5, %v4822_v26  ;;  %v4905_v19 = vmin.f32 %v2674_v15, 16.0  ;;  %v4908_v35 = vmul.f32 %v2365_v44, %v4713_v12  ;;  %v265_v23 = vpop.f32.mrf.mxu0 }
 0x14d   :  { %6878 = vst [vmem:[#allocation158_spill] sm:$0xff] %v4900_v22  ;;  %v2522_v34 = vmul.f32 %v2521_v5, %v4798_v54  ;;  %v4912_v18 = vmul.f32 0.70710677, %v4888_v40  ;;  %v4915_v32 = vmul.f32 0.70710677, %v4893_v39  ;;  %v2560_v31 = vmul.f32 %v2559_v52, %v4819_v53 }
 0x14e   :  { %6879 = vst [vmem:[#allocation159_spill] sm:$0xff] %v4903_v49  ;;  %v2638_v8 = vmul.f32 %v2637_v46, %v4854_v27  ;;  %v2676_v26 = vmul.f32 2.1237322e-06, %v4905_v19  ;;  %v4921_v58 = vadd.f32 %v457_v42, %v3872_v45  ;;  %v2445_v12 = vadd.f32 1.1283791, %v2444_v37  ;;  %v330_v45 = vpop.f32.mrf.mxu1 }
 0x14f   :  { %6880 = vst [vmem:[#allocation160_spill] sm:$0xff] %v4908_v35  ;;  %v4923_v44 = vmul.f32 0.5, %v263_v2  ;;  %v2714_v5 = vmul.f32 %v4912_v18, %v4912_v18  ;;  %v2754_v15 = vmul.f32 %v4915_v32, %v4915_v32  ;;  %v4930_v1 = vmul.f32 %v2405_v48, %v4744_v14 }
 0x150   :  { %6881 = vst [vmem:[#allocation161_spill] sm:$0xff] %v4915_v32  ;;  %v2484_v52 = vmul.f32 %v2483_v24, %v4790_v10  ;;  %v2600_v46 = vmul.f32 %v2599_v55, %v4833_v60  ;;  %v2677_v56 = vadd.f32 0.00028619796, %v2676_v26  ;;  %v2523_v42 = vadd.f32 0.18741608, %v2522_v34 }
 0x151   :  { %6882 = vst [vmem:[#allocation162_spill] sm:$0xff] %v4930_v1  ;;  %v4934_v63 = vmin.f32 %v2714_v5, 16.0  ;;  %v4936_v2 = vmin.f32 %v2754_v15, 16.0  ;;  %v4939_v37 = vadd.f32 %v265_v23, %v3892_v51  ;;  %v2561_v9 = vadd.f32 0.05243302, %v2560_v31 }
 0x152   :  { %v2639_v49 = vadd.f32 0.0036580483, %v2638_v8  ;;  %v2678_v22 = vmul.f32 %v2677_v56, %v4905_v19  ;;  %v4943_v14 = vmul.f32 0.70710677, %v4921_v58  ;;  %v4946_v48 = vmul.f32 %v2445_v12, %v4748_v38  ;;  %v395_v12 = vpop.f32.mrf.mxu2 }
 0x153   :  { %6883 = vst [vmem:[#allocation163_spill] sm:$0xff] %v4936_v2  ;;  %v2716_v55 = vmul.f32 2.1237322e-06, %v4934_v63  ;;  %v2756_v24 = vmul.f32 2.1237322e-06, %v4936_v2  ;;  %v4951_v34 = vadd.f32 %v330_v45, %v3892_v51  ;;  %v2524_v56 = vmul.f32 %v2523_v42, %v4798_v54 }
 0x154   :  { %6884 = vst [vmem:[#allocation164_spill] sm:$0xff] %v4943_v14  ;;  %v2485_v26 = vadd.f32 1.1283791, %v2484_v52  ;;  %v2601_v23 = vadd.f32 0.05243302, %v2600_v46  ;;  %v2794_v31 = vmul.f32 %v4943_v14, %v4943_v14  ;;  %v2640_v13 = vmul.f32 %v2639_v49, %v4854_v27 }
 0x155   :  { %6885 = vst [vmem:[#allocation165_spill] sm:$0xff] %v4946_v48  ;;  %v2679_v5 = vadd.f32 0.0036580483, %v2678_v22  ;;  %v2717_v8 = vadd.f32 0.00028619796, %v2716_v55  ;;  %v2562_v48 = vmul.f32 %v2561_v9, %v4819_v53  ;;  %v4974_v49 = vadd.f32 %v395_v12, %v3892_v51 }
 0x156   :  { %v2757_v15 = vadd.f32 0.00028619796, %v2756_v24  ;;  %v4957_v38 = vmul.f32 0.70710677, %v4939_v37  ;;  %v4962_v52 = vmin.f32 %v2794_v31, 16.0  ;;  %v2602_v24 = vmul.f32 %v2601_v23, %v4833_v60  ;;  %v333_v3 = vpop.f32.mrf.mxu1 }
 0x157   :  { %v2680_v45 = vmul.f32 %v2679_v5, %v4905_v19  ;;  %v2718_v22 = vmul.f32 %v2717_v8, %v4934_v63  ;;  %v4969_v55 = vmul.f32 0.70710677, %v4951_v34  ;;  %v460_v5 = vpop.f32.mrf.mxu3  ;;  %v4981_v29 = vmul.f32 %v2485_v26, %v4770_v50 }
 0x158   :  { %6886 = vst [vmem:[#allocation166_spill] sm:$0xff] %v4962_v52  ;;  %v2758_v46 = vmul.f32 %v2757_v15, %v4936_v2  ;;  %v2834_v42 = vmul.f32 %v4957_v38, %v4957_v38  ;;  %v2796_v9 = vmul.f32 2.1237322e-06, %v4962_v52  ;;  %v2563_v28 = vadd.f32 0.18741608, %v2562_v48 }
 0x159   :  { %v2681_v10 = vadd.f32 0.05243302, %v2680_v45  ;;  %v2719_v31 = vadd.f32 0.0036580483, %v2718_v22  ;;  %v2874_v15 = vmul.f32 %v4969_v55, %v4969_v55  ;;  %6887 = vst [vmem:[#allocation167_spill] sm:$0xff] %v4981_v29  ;;  %v4988_v22 = vadd.f32 %v460_v5, %v3892_v51 }
 0x15a   :  { %v2759_v6 = vadd.f32 0.0036580483, %v2758_v46  ;;  %v4976_v8 = vmin.f32 %v2834_v42, 16.0  ;;  %v2641_v11 = vadd.f32 0.05243302, %v2640_v13  ;;  %v4996_v13 = vmul.f32 0.5, %v4888_v40 }
 0x15b   :  { %v2797_v23 = vadd.f32 0.00028619796, %v2796_v9  ;;  %v2720_v45 = vmul.f32 %v2719_v31, %v4934_v63  ;;  %v4985_v12 = vmin.f32 %v2874_v15, 16.0  ;;  %6888 = vst [vmem:[#allocation168_spill] sm:$0xff] %v4988_v22  ;;  %v2525_v46 = vadd.f32 1.1283791, %v2524_v56 }
 0x15c   :  { %v2836_v14 = vmul.f32 2.1237322e-06, %v4976_v8  ;;  %v2603_v42 = vadd.f32 0.18741608, %v2602_v24  ;;  %v2760_v33 = vmul.f32 %v2759_v6, %v4936_v2  ;;  %v4992_v4 = vmul.f32 0.70710677, %v4974_v49 }
 0x15d   :  { %v2682_v50 = vmul.f32 %v2681_v10, %v4905_v19  ;;  %v2798_v48 = vmul.f32 %v2797_v23, %v4962_v52  ;;  %v2564_v9 = vmul.f32 %v2563_v28, %v4819_v53  ;;  %v2642_v51 = vmul.f32 %v2641_v11, %v4854_v27  ;;  %v268_v11 = vpop.f32.mrf.mxu0 }
 0x15e   :  { %6889 = vst [vmem:[#allocation169_spill] sm:$0xff] %v4992_v4  ;;  %v2837_v26 = vadd.f32 0.00028619796, %v2836_v14  ;;  %v2876_v56 = vmul.f32 2.1237322e-06, %v4985_v12  ;;  %v2914_v6 = vmul.f32 %v4992_v4, %v4992_v4  ;;  %v5005_v5 = vmul.f32 0.5, %v4893_v39 }
 0x15f   :  { %v2721_v24 = vadd.f32 0.05243302, %v2720_v45  ;;  %v5009_v40 = vmul.f32 0.70710677, %v4988_v22  ;;  %v2604_v14 = vmul.f32 %v2603_v42, %v4833_v60  ;;  %v2761_v31 = vadd.f32 0.05243302, %v2760_v33 }
 0x160   :  { %6890 = vst [vmem:[#allocation170_spill] sm:$0xff] %v5005_v5  ;;  %v2838_v10 = vmul.f32 %v2837_v26, %v4976_v8  ;;  %v2877_v28 = vadd.f32 0.00028619796, %v2876_v56  ;;  %v5012_v15 = vmin.f32 %v2914_v6, 16.0  ;;  %v2683_v23 = vadd.f32 0.18741608, %v2682_v50 }
 0x161   :  { %6891 = vst [vmem:[#allocation171_spill] sm:$0xff] %v5009_v40  ;;  %v2799_v29 = vadd.f32 0.0036580483, %v2798_v48  ;;  %v2954_v45 = vmul.f32 %v5009_v40, %v5009_v40  ;;  %v2565_v39 = vadd.f32 1.1283791, %v2564_v9  ;;  %v2722_v42 = vmul.f32 %v2721_v24, %v4934_v63 }
 0x162   :  { %v2839_v41 = vadd.f32 0.0036580483, %v2838_v10  ;;  %v2643_v5 = vadd.f32 0.18741608, %v2642_v51  ;;  %v2878_v26 = vmul.f32 %v2877_v28, %v4985_v12  ;;  %v2916_v30 = vmul.f32 2.1237322e-06, %v5012_v15 }
 0x163   :  { %v5020_v56 = vmin.f32 %v2954_v45, 16.0  ;;  %v269_v50 = vadd.f32 %v268_v11, %v3877_v47  ;;  %v2605_v48 = vadd.f32 1.1283791, %v2604_v14  ;;  %v2762_v6 = vmul.f32 %v2761_v31, %v4936_v2 }
 0x164   :  { %v2840_v33 = vmul.f32 %v2839_v41, %v4976_v8  ;;  %v2879_v10 = vadd.f32 0.0036580483, %v2878_v26  ;;  %v2917_v60 = vadd.f32 0.00028619796, %v2916_v30  ;;  %v5025_v9 = vmul.f32 %v2525_v46, %v4781_v20 }
 0x165   :  { %v2684_v51 = vmul.f32 %v2683_v23, %v4905_v19  ;;  %v2800_v28 = vmul.f32 %v2799_v29, %v4962_v52  ;;  %v334_v24 = vadd.f32 %v333_v3, %v3877_v47  ;;  %v2644_v41 = vmul.f32 %v2643_v5, %v4854_v27  ;;  %v398_v23 = vpop.f32.mrf.mxu2 }
 0x166   :  { %v5032_v45 = vmul.f32 0.5, %v4921_v58  ;;  %v2841_v11 = vadd.f32 0.05243302, %v2840_v33  ;;  %v2956_v14 = vmul.f32 2.1237322e-06, %v5020_v56  ;;  %v5036_v31 = vmul.f32 %v2565_v39, %v4802_v17 }
 0x167   :  { %v2723_v30 = vadd.f32 0.18741608, %v2722_v42  ;;  %v5039_v20 = vmul.f32 0.5, %v4939_v37  ;;  %v5041_v46 = vmul.f32 0.70710677, %v269_v50  ;;  %v5044_v29 = vmul.f32 %v2605_v48, %v4815_v61 }
 0x168   :  { %6892 = vst [vmem:[#allocation172_spill] sm:$0xff] %v5032_v45  ;;  %v2763_v3 = vadd.f32 0.18741608, %v2762_v6  ;;  %v2880_v5 = vmul.f32 %v2879_v10, %v4985_v12  ;;  %v2918_v58 = vmul.f32 %v2917_v60, %v5012_v15  ;;  %v2685_v26 = vadd.f32 1.1283791, %v2684_v51  ;;  %v463_v45 = vpop.f32.mrf.mxu3 }
 0x169   :  { %6893 = vst [vmem:[#allocation173_spill] sm:$0xff] %v5044_v29  ;;  %v2801_v33 = vadd.f32 0.05243302, %v2800_v28  ;;  %v2994_v17 = vmul.f32 %v5041_v46, %v5041_v46  ;;  %v5050_v39 = vmul.f32 0.70710677, %v334_v24  ;;  %v2842_v42 = vmul.f32 %v2841_v11, %v4976_v8 }
 0x16a   :  { %v5052_v37 = vadd.f32 1.1283791, %v2644_v41  ;;  %v5056_v61 = vmul.f32 0.5, %v4951_v34  ;;  %v2957_v48 = vadd.f32 0.00028619796, %v2956_v14  ;;  %v2724_v6 = vmul.f32 %v2723_v30, %v4934_v63 }
 0x16b   :  { %v5059_v10 = vmin.f32 %v2994_v17, 16.0  ;;  %v3034_v60 = vmul.f32 %v5050_v39, %v5050_v39  ;;  %v399_v51 = vadd.f32 %v398_v23, %v3877_v47  ;;  %v2764_v28 = vmul.f32 %v2763_v3, %v4936_v2 }
 0x16c   :  { %6894 = vst [vmem:[#allocation174_spill] sm:$0xff] %v5052_v37  ;;  %v2881_v29 = vadd.f32 0.05243302, %v2880_v5  ;;  %v5066_v41 = vmul.f32 0.5, %v4974_v49  ;;  %v2919_v11 = vadd.f32 0.0036580483, %v2918_v58  ;;  %v5069_v34 = vmul.f32 %v2685_v26, %v4882_v25 }
 0x16d   :  { %v2802_v14 = vmul.f32 %v2801_v33, %v4962_v52  ;;  %v2996_v30 = vmul.f32 2.1237322e-06, %v5059_v10  ;;  %v5073_v17 = vmin.f32 %v3034_v60, 16.0  ;;  %v2843_v37 = vadd.f32 0.18741608, %v2842_v42 }
 0x16e   :  { %6895 = vst [vmem:[#allocation175_spill] sm:$0xff] %v5066_v41  ;;  %v2958_v23 = vmul.f32 %v2957_v48, %v5020_v56  ;;  %v5076_v27 = vmul.f32 0.5, %v269_v50  ;;  %v5078_v3 = vmul.f32 0.70710677, %v399_v51  ;;  %v2725_v49 = vadd.f32 1.1283791, %v2724_v6 }
 0x16f   :  { %v2997_v5 = vadd.f32 0.00028619796, %v2996_v30  ;;  %v3036_v58 = vmul.f32 2.1237322e-06, %v5073_v17  ;;  %v5082_v25 = vadd.f32 %v463_v45, %v3877_v47  ;;  %v5084_v26 = vadd.f32 1.1283791, %v2764_v28 }
 0x170   :  { %v2882_v33 = vmul.f32 %v2881_v29, %v4985_v12  ;;  %v2920_v60 = vmul.f32 %v2919_v11, %v5012_v15  ;;  %v3074_v42 = vmul.f32 %v5078_v3, %v5078_v3  ;;  %v5090_v50 = vadd.f32 0.18741608, %v2802_v14 }
 0x171   :  { %6896 = vst [vmem:[#allocation176_spill] sm:$0xff] %v5084_v26  ;;  %v2998_v48 = vmul.f32 %v2997_v5, %v5059_v10  ;;  %v3037_v6 = vadd.f32 0.00028619796, %v3036_v58  ;;  %v5094_v30 = vmul.f32 0.70710677, %v5082_v25  ;;  %v2844_v47 = vmul.f32 %v2843_v37, %v4976_v8 }
 0x172   :  { %v2959_v45 = vadd.f32 0.0036580483, %v2958_v23  ;;  %v5097_v28 = vmul.f32 0.5, %v334_v24  ;;  %v5099_v41 = vmin.f32 %v3074_v42, 16.0  ;;  %v3007_v7 = vmul.f32 3.8918573e-05, %v5059_v10 }
 0x173   :  { %v2999_v29 = vadd.f32 0.0036580483, %v2998_v48  ;;  %v3038_v11 = vmul.f32 %v3037_v6, %v5073_v17  ;;  %v3114_v14 = vmul.f32 %v5094_v30, %v5094_v30  ;;  %v5106_v5 = vmul.f32 %v2725_v49, %v4912_v18 }
 0x174   :  { %v2883_v58 = vadd.f32 0.18741608, %v2882_v33  ;;  %v2921_v0 = vadd.f32 0.05243302, %v2920_v60  ;;  %v3076_v37 = vmul.f32 2.1237322e-06, %v5099_v41  ;;  %v2960_v6 = vmul.f32 %v2959_v45, %v5020_v56 }
 0x175   :  { %v3000_v24 = vmul.f32 %v2999_v29, %v5059_v10  ;;  %v3039_v23 = vadd.f32 0.0036580483, %v3038_v11  ;;  %v5110_v42 = vmin.f32 %v3114_v14, 16.0  ;;  %v3008_v48 = vadd.f32 0.001143296, %v3007_v7 }
 0x176   :  { %v5112_v40 = vadd.f32 1.1283791, %v2844_v47  ;;  %v3077_v4 = vadd.f32 0.00028619796, %v3076_v37  ;;  %v3047_v1 = vmul.f32 3.8918573e-05, %v5073_v17  ;;  %v2884_v47 = vmul.f32 %v2883_v58, %v4985_v12 }
 0x177   :  { %v3001_v22 = vadd.f32 0.05243302, %v3000_v24  ;;  %v3040_v18 = vmul.f32 %v3039_v23, %v5073_v17  ;;  %v3116_v49 = vmul.f32 2.1237322e-06, %v5110_v42  ;;  %v3009_v33 = vmul.f32 %v3008_v48, %v5059_v10 }
 0x178   :  { %v5119_v60 = vmul.f32 0.5, %v399_v51  ;;  %v3078_v29 = vmul.f32 %v3077_v4, %v5099_v41  ;;  %v3048_v11 = vadd.f32 0.001143296, %v3047_v1  ;;  %v2847_v7 = vmul.f32 3.8918573e-05, %v4976_v8 }
 0x179   :  { %v3041_v45 = vadd.f32 0.05243302, %v3040_v18  ;;  %v3117_v14 = vadd.f32 0.00028619796, %v3116_v49  ;;  %v3010_v37 = vadd.f32 0.014752088, %v3009_v33  ;;  %v3002_v16 = vmul.f32 %v3001_v22, %v5059_v10 }
 0x17a   :  { %6897 = vst [vmem:[#allocation177_spill] sm:$0xff] %v5119_v60  ;;  %v2961_v26 = vadd.f32 0.05243302, %v2960_v6  ;;  %v3079_v24 = vadd.f32 0.0036580483, %v3078_v29  ;;  %v3049_v23 = vmul.f32 %v3048_v11, %v5073_v17  ;;  %v2922_v49 = vmul.f32 %v2921_v0, %v5012_v15 }
 0x17b   :  { %v2848_v32 = vadd.f32 0.001143296, %v2847_v7  ;;  %v3042_v51 = vmul.f32 %v3041_v45, %v5073_v17  ;;  %v3118_v48 = vmul.f32 %v3117_v14, %v5110_v42  ;;  %v3011_v4 = vmul.f32 %v3010_v37, %v5059_v10 }
 0x17c   :  { %v3080_v1 = vmul.f32 %v3079_v24, %v5099_v41  ;;  %v3050_v35 = vadd.f32 0.014752088, %v3049_v23  ;;  %v2887_v18 = vmul.f32 3.8918573e-05, %v4985_v12  ;;  %v2885_v6 = vadd.f32 1.1283791, %v2884_v47 }
 0x17d   :  { %v2849_v58 = vmul.f32 %v2848_v32, %v4976_v8  ;;  %v3119_v33 = vadd.f32 0.0036580483, %v3118_v48  ;;  %v3012_v29 = vadd.f32 0.112945676, %v3011_v4  ;;  %v2962_v22 = vmul.f32 %v2961_v26, %v5020_v56 }
 0x17e   :  { %v3051_v11 = vmul.f32 %v3050_v35, %v5073_v17  ;;  %v2888_v45 = vadd.f32 0.001143296, %v2887_v18  ;;  %v3003_v14 = vadd.f32 0.18741608, %v3002_v16  ;;  %v3043_v37 = vadd.f32 0.18741608, %v3042_v51 }
 0x17f   :  { %v2850_v7 = vadd.f32 0.014752088, %v2849_v58  ;;  %v3120_v24 = vmul.f32 %v3119_v33, %v5110_v42  ;;  %v3013_v23 = vmul.f32 %v3012_v29, %v5059_v10  ;;  %v3081_v32 = vadd.f32 0.05243302, %v3080_v1 }
 0x180   :  { %v3052_v2 = vadd.f32 0.112945676, %v3051_v11  ;;  %v2889_v0 = vmul.f32 %v2888_v45, %v4985_v12  ;;  %v5141_v48 = vmul.f32 %v5090_v50, %v4962_v52  ;;  %v2923_v26 = vadd.f32 0.18741608, %v2922_v49 }
 0x181   :  { %v2851_v47 = vmul.f32 %v2850_v7, %v4976_v8  ;;  %v3121_v35 = vadd.f32 0.05243302, %v3120_v24  ;;  %v3014_v4 = vadd.f32 0.4994258, %v3013_v23  ;;  %v2963_v58 = vadd.f32 0.18741608, %v2962_v22 }
 0x182   :  { %6898 = vst [vmem:[#allocation178_spill] sm:$0xff] %v5141_v48  ;;  %v3053_v16 = vmul.f32 %v3052_v2, %v5073_v17  ;;  %v2890_v18 = vadd.f32 0.014752088, %v2889_v0  ;;  %v3004_v33 = vmul.f32 %v3003_v14, %v5059_v10  ;;  %v3044_v1 = vmul.f32 %v3043_v37, %v5073_v17 }
 0x183   :  { %v2852_v51 = vadd.f32 0.112945676, %v2851_v47  ;;  %v3015_v29 = vmul.f32 %v3014_v4, %v5059_v10  ;;  %v2687_v11 = vmul.f32 3.8918573e-05, %v4905_v19  ;;  %v3082_v7 = vmul.f32 %v3081_v32, %v5099_v41 }
 0x184   :  { %v3054_v50 = vadd.f32 0.4994258, %v3053_v16  ;;  %v2891_v45 = vmul.f32 %v2890_v18, %v4985_v12  ;;  %v2924_v22 = vmul.f32 %v2923_v26, %v5012_v15  ;;  %v3122_v2 = vmul.f32 %v3121_v35, %v5110_v42 }
 0x185   :  { %v2853_v49 = vmul.f32 %v2852_v51, %v4976_v8  ;;  %v5153_v24 = vadd.f32 1.0, %v3015_v29  ;;  %v2688_v14 = vadd.f32 0.001143296, %v2687_v11  ;;  %v2964_v37 = vmul.f32 %v2963_v58, %v5020_v56 }
 0x186   :  { %v3055_v10 = vmul.f32 %v3054_v50, %v5073_v17  ;;  %v2892_v47 = vadd.f32 0.112945676, %v2891_v45  ;;  %v5159_v32 = vmul.f32 %v5112_v40, %v4957_v38  ;;  %v3005_v0 = vadd.f32 1.1283791, %v3004_v33 }
 0x187   :  { %v2854_v23 = vadd.f32 0.4994258, %v2853_v49  ;;  %v5162_v4 = vmul.f32 0.5, %v5082_v25  ;;  %3523 = vrcp.f32 %v5153_v24  ;;  %v3045_v26 = vadd.f32 1.1283791, %v3044_v1 }
 0x188   :  { %v3083_v35 = vadd.f32 0.18741608, %v3082_v7  ;;  %v5165_v16 = vadd.f32 1.0, %v3055_v10  ;;  %v5169_v17 = vmul.f32 %v2885_v6, %v4969_v55  ;;  %v3123_v51 = vadd.f32 0.18741608, %v3122_v2 }
 0x189   :  { %6899 = vst [vmem:[#allocation179_spill] sm:$0xff] %v5162_v4  ;;  %v2855_v58 = vmul.f32 %v2854_v23, %v4976_v8  ;;  %v2893_v18 = vmul.f32 %v2892_v47, %v4985_v12  ;;  %v2689_v38 = vmul.f32 %v2688_v14, %v4905_v19  ;;  %v5173_v40 = vadd.f32 1.1283791, %v2924_v22 }
 0x18a   :  { %v5175_v25 = vadd.f32 1.1283791, %v2964_v37  ;;  %v3026_v33 = vand.u32 2147483647, %v5153_v24  ;;  %3525 = vrcp.f32 %v5165_v16  ;;  %v3006_v1 = vmul.f32 %v3005_v0, %v5041_v46 }
 0x18b   :  { %6900 = vst [vmem:[#allocation180_spill] sm:$0xff] %v5173_v40  ;;  %v3028_v8 = vand.u32 2147483648, %v5153_v24  ;;  %v5181_v29 = vadd.f32 1.0, %v2855_v58  ;;  %v2894_v55 = vadd.f32 0.4994258, %v2893_v18  ;;  %v5184_v6 = vmul.f32 %v3045_v26, %v5050_v39 }
 0x18c   :  { %6901 = vst [vmem:[#allocation181_spill] sm:$0xff] %v5175_v25  ;;  %v5187_v11 = vmul.f32 %v3083_v35, %v5099_v41  ;;  %v2690_v7 = vadd.f32 0.014752088, %v2689_v38  ;;  %v2727_v50 = vmul.f32 3.8918573e-05, %v4934_v63  ;;  %v5191_v45 = vmul.f32 %v3123_v51, %v5110_v42 }
 0x18d   :  { %v3524_v49 = vpop.eup %3523  ;;  %v3066_v46 = vand.u32 2147483647, %v5165_v16  ;;  %v3068_v22 = vand.u32 2147483648, %v5165_v16  ;;  %3527 = vrcp.f32 %v5181_v29  ;;  %vm3022_vm2 = vweird.f32 %v5153_v24 }
 0x18e   :  { %v3018_v2 = vmul.f32 %v3524_v49, %v5153_v24  ;;  %vm5198_vm3 = vcmp.eq.f32.partialorder %v3026_v33, 8.507059e+37  ;;  %v2895_v14 = vmul.f32 %v2894_v55, %v4985_v12  ;;  %v3029_v37 = vor.u32 1.1754944e-38, %v3028_v8 }
 0x18f   :  { %v2868_v10 = vand.u32 2147483648, %v5181_v29  ;;  %v2691_v23 = vmul.f32 %v2690_v7, %v4905_v19  ;;  %v2728_v47 = vadd.f32 0.001143296, %v2727_v50  ;;  %vm3062_vm4 = vweird.f32 %v5165_v16 }
 0x190   :  { %v3526_v0 = vpop.eup %3525  ;;  %v3019_v26 = vsub.f32 1.0, %v3018_v2  ;;  %v2866_v35 = vand.u32 2147483647, %v5181_v29  ;;  %v5207_v58 = vadd.f32 1.0, %v2895_v14  ;;  %vm5210_vm5 = vcmp.eq.f32.partialorder %v3066_v46, 8.507059e+37 }
 0x191   :  { %v3058_v51 = vmul.f32 %v3526_v0, %v5165_v16  ;;  %v3069_v12 = vor.u32 1.1754944e-38, %v3068_v22  ;;  %v2692_v38 = vadd.f32 0.112945676, %v2691_v23  ;;  %v2729_v33 = vmul.f32 %v2728_v47, %v4934_v63 }
 0x192   :  { %v3020_v8 = vmul.f32 %v3524_v49, %v3019_v26  ;;  %vm3023_vm6 = vweird.f32 %v3524_v49  ;;  %vm2862_vm7 = vweird.f32 %v5181_v29  ;;  %3529 = vrcp.f32 %v5207_v58 }
 0x193   :  { %v2527_v55 = vmul.f32 3.8918573e-05, %v4798_v54  ;;  %v3528_v7 = vpop.eup %3527  ;;  %v3059_v50 = vsub.f32 1.0, %v3058_v51  ;;  %v2869_v2 = vor.u32 1.1754944e-38, %v2868_v10  ;;  %v2693_v46 = vmul.f32 %v2692_v38, %v4905_v19  ;;  %vm3024_vm10 = vmor %vm3022_vm2, %vm3023_vm6 }
 0x194   :  { %v2730_v14 = vadd.f32 0.014752088, %v2729_v33  ;;  %v3021_v25 = vadd.f32 %v3524_v49, %v3020_v8  ;;  %vm3063_vm8 = vweird.f32 %v3526_v0  ;;  %v2858_v22 = vmul.f32 %v3528_v7, %v5181_v29 }
 0x195   :  { %vm5220_vm9 = vcmp.eq.f32.partialorder %v2866_v35, 8.507059e+37  ;;  %v2567_v47 = vmul.f32 3.8918573e-05, %v4819_v53  ;;  %v3060_v26 = vmul.f32 %v3526_v0, %v3059_v50  ;;  %v2906_v51 = vand.u32 2147483647, %v5207_v58  ;;  %vm3064_vm12 = vmor %vm3062_vm4, %vm3063_vm8 }
 0x196   :  { %v2694_v10 = vadd.f32 0.4994258, %v2693_v46  ;;  %v2731_v38 = vmul.f32 %v2730_v14, %v4934_v63  ;;  %v3025_v33 = vsel %vm3024_vm10, %v3524_v49, %v3021_v25  ;;  %v2859_v8 = vsub.f32 1.0, %v2858_v22 }
 0x197   :  { %v2908_v40 = vand.u32 2147483648, %v5207_v58  ;;  %v2528_v48 = vadd.f32 0.001143296, %v2527_v55  ;;  %v3030_v35 = vsel %vm5198_vm3, %v3029_v37, %v3025_v33  ;;  %v3061_v52 = vadd.f32 %v3526_v0, %v3060_v26 }
 0x198   :  { %vm2902_vm11 = vweird.f32 %v5207_v58  ;;  %v2695_v24 = vmul.f32 %v2694_v10, %v4905_v19  ;;  %v2732_v4 = vadd.f32 0.112945676, %v2731_v38  ;;  %v3530_v50 = vpop.eup %3529  ;;  %v3031_v60 = vmul.f32 %v3030_v35, %v3006_v1 }
 0x199   :  { %v2860_v25 = vmul.f32 %v3528_v7, %v2859_v8  ;;  %vm2863_vm13 = vweird.f32 %v3528_v7  ;;  %v2568_v49 = vadd.f32 0.001143296, %v2567_v47  ;;  %v3065_v46 = vsel %vm3064_vm12, %v3526_v0, %v3061_v52 }
 0x19a   :  { %v2898_v55 = vmul.f32 %v3530_v50, %v5207_v58  ;;  %vm5238_vm14 = vcmp.eq.f32.partialorder %v2906_v51, 8.507059e+37  ;;  %v5242_v37 = vadd.f32 1.0, %v2695_v24  ;;  %v3515_v19 = vclamps-f32 %v3031_v60, 1.0  ;;  %vm2864_vm15 = vmor %vm2862_vm7, %vm2863_vm13 }
 0x19b   :  { %v3070_v1 = vsel %vm5210_vm5, %v3069_v12, %v3065_v46  ;;  %v2861_v14 = vadd.f32 %v3528_v7, %v2860_v25  ;;  %v2733_v16 = vmul.f32 %v2732_v4, %v4934_v63  ;;  %v2529_v0 = vmul.f32 %v2528_v48, %v4798_v54 }
 0x19c   :  { %v3071_v22 = vmul.f32 %v3070_v1, %v5184_v6  ;;  %v2899_v52 = vsub.f32 1.0, %v2898_v55  ;;  %3531 = vrcp.f32 %v5242_v37  ;;  %v3214_v47 = vadd.f32 1.0, %v3515_v19 }
 0x19d   :  { %v2865_v26 = vsel %vm2864_vm15, %v3528_v7, %v2861_v14  ;;  %vm2903_vm1 = vweird.f32 %v3530_v50  ;;  %v2569_v60 = vmul.f32 %v2568_v49, %v4819_v53  ;;  %v2734_v51 = vadd.f32 0.4994258, %v2733_v16 }
 0x19e   :  { %v3516_v18 = vclamps-f32 %v3071_v22, 1.0  ;;  %v2870_v12 = vsel %vm5220_vm9, %v2869_v2, %v2865_v26  ;;  %v2900_v4 = vmul.f32 %v3530_v50, %v2899_v52  ;;  %v3278_v6 = vmul.f32 %v3214_v47, %v5076_v27  ;;  %vm2904_vm2 = vmor %vm2902_vm11, %vm2903_vm1 }
 0x19f   :  { %v2871_v29 = vmul.f32 %v2870_v12, %v5159_v32  ;;  %v2909_v10 = vor.u32 1.1754944e-38, %v2908_v40  ;;  %v2706_v38 = vand.u32 2147483647, %v5242_v37  ;;  %v2735_v7 = vmul.f32 %v2734_v51, %v4934_v63 }
 0x1a0   :  { %v3215_v33 = vadd.f32 1.0, %v3516_v18  ;;  %v2901_v48 = vadd.f32 %v3530_v50, %v2900_v4  ;;  %v2530_v8 = vadd.f32 0.014752088, %v2529_v0  ;;  %3289 = vmatpush.msrb.mxu0 %v3278_v6  ;;  %v2708_v2 = vand.u32 2147483648, %v5242_v37 }
 0x1a1   :  { %v3511_v35 = vclamps-f32 %v2871_v29, 1.0  ;;  %v2570_v23 = vadd.f32 0.014752088, %v2569_v60  ;;  %v3087_v27 = vmul.f32 3.8918573e-05, %v5099_v41  ;;  %v5265_v25 = vadd.f32 1.0, %v2735_v7 }
 0x1a2   :  { %v3532_v32 = vpop.eup %3531  ;;  %v3279_v40 = vmul.f32 %v3215_v33, %v5097_v28  ;;  %v2905_v24 = vsel %vm2904_vm2, %v3530_v50, %v2901_v48  ;;  %v2531_v63 = vmul.f32 %v2530_v8, %v4798_v54  ;;  %v5269_v49 = vadd.f32 1.1283791, %v5187_v11 }
 0x1a3   :  { %v3210_v46 = vadd.f32 1.0, %v3511_v35  ;;  %v2910_v58 = vsel %vm5238_vm14, %v2909_v10, %v2905_v24  ;;  %v2698_v55 = vmul.f32 %v3532_v32, %v5242_v37  ;;  %v5275_v19 = vadd.f32 1.1283791, %v5191_v45 }
 0x1a4   :  { %3309 = vmatpush.msrb.mxu1 %v3279_v40  ;;  %v2911_v28 = vmul.f32 %v2910_v58, %v5169_v17  ;;  %vm2702_vm3 = vweird.f32 %v5242_v37  ;;  %3533 = vrcp.f32 %v5265_v25  ;;  %vm5281_vm4 = vcmp.eq.f32.partialorder %v2706_v38, 8.507059e+37 }
 0x1a5   :  { %v3274_v50 = vmul.f32 %v3210_v46, %v5039_v20  ;;  %v2699_v11 = vsub.f32 1.0, %v2698_v55  ;;  %v2532_v39 = vadd.f32 0.112945676, %v2531_v63  ;;  %v2709_v16 = vor.u32 1.1754944e-38, %v2708_v2 }
 0x1a6   :  { %v3512_v14 = vclamps-f32 %v2911_v28, 1.0  ;;  %v2571_v45 = vmul.f32 %v2570_v23, %v4819_v53  ;;  %v3088_v22 = vadd.f32 0.001143296, %v3087_v27  ;;  %vm2703_vm5 = vweird.f32 %v3532_v32 }
 0x1a7   :  { %3290 = vmatpush.msrb.mxu0 %v3274_v50  ;;  %v2700_v52 = vmul.f32 %v3532_v32, %v2699_v11  ;;  %v2533_v17 = vmul.f32 %v2532_v39, %v4798_v54  ;;  %v3127_v0 = vmul.f32 3.8918573e-05, %v5110_v42  ;;  %v2367_v60 = vmul.f32 3.8918573e-05, %v4739_v57  ;;  %vm2704_vm6 = vmor %vm2702_vm3, %vm2703_vm5 }
 0x1a8   :  { %v3211_v47 = vadd.f32 1.0, %v3512_v14  ;;  %v2572_v20 = vadd.f32 0.112945676, %v2571_v45  ;;  %v3089_v26 = vmul.f32 %v3088_v22, %v5099_v41  ;;  %v2746_v12 = vand.u32 2147483647, %v5265_v25 }
 0x1a9   :  { %v2701_v18 = vadd.f32 %v3532_v32, %v2700_v52  ;;  %v2534_v4 = vadd.f32 0.4994258, %v2533_v17  ;;  %v3128_v51 = vadd.f32 0.001143296, %v3127_v0  ;;  %v2368_v33 = vadd.f32 0.001143296, %v2367_v60 }
 0x1aa   :  { %v3534_v6 = vpop.eup %3533  ;;  %v3275_v29 = vmul.f32 %v3211_v47, %v5056_v61  ;;  %v2573_v10 = vmul.f32 %v2572_v20, %v4819_v53  ;;  %v3090_v38 = vadd.f32 0.014752088, %v3089_v26  ;;  %v2407_v35 = vmul.f32 3.8918573e-05, %v4767_v59 }
 0x1ab   :  { %v2705_v48 = vsel %vm2704_vm6, %v3532_v32, %v2701_v18  ;;  %v2738_v7 = vmul.f32 %v3534_v6, %v5265_v25  ;;  %v2535_v8 = vmul.f32 %v2534_v4, %v4798_v54  ;;  %v3129_v37 = vmul.f32 %v3128_v51, %v5110_v42 }
 0x1ac   :  { %3310 = vmatpush.msrb.mxu1 %v3275_v29  ;;  %v2710_v2 = vsel %vm5281_vm4, %v2709_v16, %v2705_v48  ;;  %v2574_v23 = vadd.f32 0.4994258, %v2573_v10  ;;  %v3091_v61 = vmul.f32 %v3090_v38, %v5099_v41  ;;  %v2369_v32 = vmul.f32 %v2368_v33, %v4739_v57 }
 0x1ad   :  { %v2711_v27 = vmul.f32 %v2710_v2, %v5069_v34  ;;  %v2739_v40 = vsub.f32 1.0, %v2738_v7  ;;  %v5303_v24 = vadd.f32 1.0, %v2535_v8  ;;  %v2748_v54 = vand.u32 2147483648, %v5265_v25 }
 0x1ae   :  { %v2575_v63 = vmul.f32 %v2574_v23, %v4819_v53  ;;  %v3092_v46 = vadd.f32 0.112945676, %v3091_v61  ;;  %v3130_v58 = vadd.f32 0.014752088, %v3129_v37  ;;  %vm2743_vm7 = vweird.f32 %v3534_v6 }
 0x1af   :  { %v3507_v55 = vclamps-f32 %v2711_v27, 1.0  ;;  %v2740_v28 = vmul.f32 %v3534_v6, %v2739_v40  ;;  %3535 = vrcp.f32 %v5303_v24  ;;  %vm2742_vm8 = vweird.f32 %v5265_v25 }
 0x1b0   :  { %v5310_v50 = vadd.f32 1.0, %v2575_v63  ;;  %v3093_v34 = vmul.f32 %v3092_v46, %v5099_v41  ;;  %v2408_v11 = vadd.f32 0.001143296, %v2407_v35  ;;  %v3131_v14 = vmul.f32 %v3130_v58, %v5110_v42  ;;  %vm2744_vm9 = vmor %vm2742_vm8, %vm2743_vm7 }
 0x1b1   :  { %v3206_v1 = vadd.f32 1.0, %v3507_v55  ;;  %v2741_v39 = vadd.f32 %v3534_v6, %v2740_v28  ;;  %v2370_v16 = vadd.f32 0.014752088, %v2369_v32  ;;  %v5316_v53 = vmul.f32 %v5269_v49, %v5078_v3 }
 0x1b2   :  { %v2749_v45 = vor.u32 1.1754944e-38, %v2748_v54  ;;  %v2546_v22 = vand.u32 2147483647, %v5303_v24  ;;  %3537 = vrcp.f32 %v5310_v50  ;;  %vm2747_vm10 = vcmp.eq.f32.partialorder %v2746_v12, 8.507059e+37 }
 0x1b3   :  { %v3270_v25 = vmul.f32 %v3206_v1, %v4923_v44  ;;  %v2745_v52 = vsel %vm2744_vm9, %v3534_v6, %v2741_v39  ;;  %v2548_v17 = vand.u32 2147483648, %v5303_v24  ;;  %v3094_v47 = vadd.f32 0.4994258, %v3093_v34 }
 0x1b4   :  { %v2750_v0 = vsel %vm2747_vm10, %v2749_v45, %v2745_v52  ;;  %v3132_v20 = vadd.f32 0.112945676, %v3131_v14  ;;  %v2371_v26 = vmul.f32 %v2370_v16, %v4739_v57  ;;  %v5325_v3 = vmul.f32 %v5275_v19, %v5094_v30 }
 0x1b5   :  { %v3536_v60 = vpop.eup %3535  ;;  %3291 = vmatpush.msrb.mxu0 %v3270_v25  ;;  %v2751_v49 = vmul.f32 %v2750_v0, %v5106_v5  ;;  %vm2542_vm11 = vweird.f32 %v5303_v24  ;;  %v2409_v44 = vmul.f32 %v2408_v11, %v4767_v59  ;;  %vm5331_vm12 = vcmp.eq.f32.partialorder %v2546_v22, 8.507059e+37 }
 0x1b6   :  { %v2538_v18 = vmul.f32 %v3536_v60, %v5303_v24  ;;  %v3095_v4 = vmul.f32 %v3094_v47, %v5099_v41  ;;  %v3133_v51 = vmul.f32 %v3132_v20, %v5110_v42  ;;  %v2549_v30 = vor.u32 1.1754944e-38, %v2548_v17 }
 0x1b7   :  { %v3508_v6 = vclamps-f32 %v2751_v49, 1.0  ;;  %v2586_v19 = vand.u32 2147483647, %v5310_v50  ;;  %v2372_v29 = vadd.f32 0.112945676, %v2371_v26  ;;  %vm2582_vm13 = vweird.f32 %v5310_v50 }
 0x1b8   :  { %v3538_v5 = vpop.eup %3537  ;;  %v2539_v10 = vsub.f32 1.0, %v2538_v18  ;;  %v5338_v38 = vadd.f32 1.0, %v3095_v4  ;;  %v3134_v33 = vadd.f32 0.4994258, %v3133_v51  ;;  %v2410_v48 = vadd.f32 0.014752088, %v2409_v44 }
 0x1b9   :  { %v3207_v7 = vadd.f32 1.0, %v3508_v6  ;;  %v2578_v8 = vmul.f32 %v3538_v5, %v5310_v50  ;;  %v2373_v41 = vmul.f32 %v2372_v29, %v4739_v57  ;;  %vm2543_vm14 = vweird.f32 %v3536_v60 }
 0x1ba   :  { %v2540_v35 = vmul.f32 %v3536_v60, %v2539_v10  ;;  %v2588_v2 = vand.u32 2147483648, %v5310_v50  ;;  %3539 = vrcp.f32 %v5338_v38  ;;  %vm5346_vm15 = vcmp.eq.f32.partialorder %v2586_v19, 8.507059e+37  ;;  %vm2544_vm1 = vmor %vm2542_vm11, %vm2543_vm14 }
 0x1bb   :  { %v3271_v23 = vmul.f32 %v3207_v7, %v4996_v13  ;;  %v2579_v61 = vsub.f32 1.0, %v2578_v8  ;;  %v3135_v27 = vmul.f32 %v3134_v33, %v5110_v42  ;;  %v2374_v32 = vadd.f32 0.4994258, %v2373_v41 }
 0x1bc   :  { %v2541_v40 = vadd.f32 %v3536_v60, %v2540_v35  ;;  %v2411_v54 = vmul.f32 %v2410_v48, %v4767_v59  ;;  %v2927_v63 = vmul.f32 3.8918573e-05, %v5012_v15  ;;  %vm2583_vm2 = vweird.f32 %v3538_v5 }
 0x1bd   :  { %3311 = vmatpush.msrb.mxu1 %v3271_v23  ;;  %v2580_v46 = vmul.f32 %v3538_v5, %v2579_v61  ;;  %v3106_v13 = vand.u32 2147483647, %v5338_v38  ;;  %v5356_v58 = vadd.f32 1.0, %v3135_v27  ;;  %v2589_v28 = vor.u32 1.1754944e-38, %v2588_v2  ;;  %vm2584_vm3 = vmor %vm2582_vm13, %vm2583_vm2 }
 0x1be   :  { %v2545_v55 = vsel %vm2544_vm1, %v3536_v60, %v2541_v40  ;;  %v2375_v42 = vmul.f32 %v2374_v32, %v4739_v57  ;;  %v2412_v34 = vadd.f32 0.112945676, %v2411_v54  ;;  %v3108_v39 = vand.u32 2147483648, %v5338_v38  ;;  %v6927_v40 = vld [vmem:[#allocation147_spill] sm:$0xff] }
 0x1bf   :  { %v2550_v11 = vsel %vm5331_vm12, %v2549_v30, %v2545_v55  ;;  %v2581_v1 = vadd.f32 %v3538_v5, %v2580_v46  ;;  %3541 = vrcp.f32 %v5356_v58  ;;  %vm3102_vm4 = vweird.f32 %v5338_v38 }
 0x1c0   :  { %v3540_v24 = vpop.eup %3539  ;;  %v2551_v14 = vmul.f32 %v2550_v11, %v5025_v9  ;;  %v5367_v16 = vadd.f32 1.0, %v2375_v42  ;;  %v2928_v57 = vadd.f32 0.001143296, %v2927_v63  ;;  %vm5370_vm5 = vcmp.eq.f32.partialorder %v3106_v13, 8.507059e+37 }
 0x1c1   :  { %v2585_v45 = vsel %vm2584_vm3, %v3538_v5, %v2581_v1  ;;  %v3098_v22 = vmul.f32 %v3540_v24, %v5338_v38  ;;  %v2413_v52 = vmul.f32 %v2412_v34, %v4767_v59  ;;  %v2967_v17 = vmul.f32 3.8918573e-05, %v5020_v56 }
 0x1c2   :  { %v3503_v9 = vclamps-f32 %v2551_v14, 1.0  ;;  %v2590_v50 = vsel %vm5346_vm15, %v2589_v28, %v2585_v45  ;;  %v3146_v0 = vand.u32 2147483647, %v5356_v58  ;;  %v3148_v47 = vand.u32 2147483648, %v5356_v58 }
 0x1c3   :  { %v2591_v20 = vmul.f32 %v2590_v50, %v5036_v31  ;;  %v3099_v26 = vsub.f32 1.0, %v3098_v22  ;;  %v3109_v60 = vor.u32 1.1754944e-38, %v3108_v39  ;;  %3543 = vrcp.f32 %v5367_v16 }
 0x1c4   :  { %v3202_v49 = vadd.f32 1.0, %v3503_v9  ;;  %vm3103_vm6 = vweird.f32 %v3540_v24  ;;  %vm3142_vm7 = vweird.f32 %v5356_v58  ;;  %v2414_v44 = vadd.f32 0.4994258, %v2413_v52  ;;  %v6922_v9 = vld [vmem:[#allocation177_spill] sm:$0xff] }
 0x1c5   :  { %v3542_v18 = vpop.eup %3541  ;;  %v3504_v12 = vclamps-f32 %v2591_v20, 1.0  ;;  %v3100_v4 = vmul.f32 %v3540_v24, %v3099_v26  ;;  %v2929_v51 = vmul.f32 %v2928_v57, %v5012_v15  ;;  %v2968_v6 = vadd.f32 0.001143296, %v2967_v17  ;;  %vm3104_vm9 = vmor %vm3102_vm4, %vm3103_vm6  ;;  %v6923_v20 = vld [vmem:[#allocation163_spill] sm:$0xff] }
 0x1c6   :  { %v3266_v30 = vmul.f32 %v3202_v49, %v4875_v21  ;;  %v3138_v19 = vmul.f32 %v3542_v18, %v5356_v58  ;;  %vm5386_vm8 = vcmp.eq.f32.partialorder %v3146_v0, 8.507059e+37  ;;  %v3149_v29 = vor.u32 1.1754944e-38, %v3148_v47 }
 0x1c7   :  { %v2386_v5 = vand.u32 2147483647, %v5367_v16  ;;  %v3203_v10 = vadd.f32 1.0, %v3504_v12  ;;  %v3101_v33 = vadd.f32 %v3540_v24, %v3100_v4  ;;  %v2388_v48 = vand.u32 2147483648, %v5367_v16 }
 0x1c8   :  { %v2415_v7 = vmul.f32 %v2414_v44, %v4767_v59  ;;  %3292 = vmatpush.msrb.mxu0 %v3266_v30  ;;  %v3139_v21 = vsub.f32 1.0, %v3138_v19  ;;  %vm3143_vm10 = vweird.f32 %v3542_v18  ;;  %vm2382_vm11 = vweird.f32 %v5367_v16 }
 0x1c9   :  { %v2930_v8 = vadd.f32 0.014752088, %v2929_v51  ;;  %v2969_v41 = vmul.f32 %v2968_v6, %v5020_v56  ;;  %v3544_v35 = vpop.eup %3543  ;;  %v3267_v2 = vmul.f32 %v3203_v10, %v4885_v43  ;;  %v3105_v23 = vsel %vm3104_vm9, %v3540_v24, %v3101_v33  ;;  %vm3144_vm13 = vmor %vm3142_vm7, %vm3143_vm10  ;;  %v6924_v51 = vld [vmem:[#allocation160_spill] sm:$0xff]  ;;  %v6925_v33 = vld [vmem:[#allocation179_spill] sm:$0xff] }
 0x1ca   :  { %v5399_v61 = vadd.f32 1.0, %v2415_v7  ;;  %v2207_v59 = vmul.f32 3.8918573e-05, %v4627_v62  ;;  %v3110_v37 = vsel %vm5370_vm5, %v3109_v60, %v3105_v23  ;;  %v3140_v38 = vmul.f32 %v3542_v18, %v3139_v21 }
 0x1cb   :  { %v2378_v27 = vmul.f32 %v3544_v35, %v5367_v16  ;;  %vm5405_vm12 = vcmp.eq.f32.partialorder %v2386_v5, 8.507059e+37  ;;  %3312 = vmatpush.msrb.mxu1 %v3267_v2  ;;  %v3111_v32 = vmul.f32 %v3110_v37, %v5316_v53  ;;  %v2389_v54 = vor.u32 1.1754944e-38, %v2388_v48 }
 0x1cc   :  { %3545 = vrcp.f32 %v5399_v61  ;;  %v2247_v43 = vmul.f32 3.8918573e-05, %v4647_v36  ;;  %v3141_v63 = vadd.f32 %v3542_v18, %v3140_v38  ;;  %v2426_v13 = vand.u32 2147483647, %v5399_v61 }
 0x1cd   :  { %v2379_v46 = vsub.f32 1.0, %v2378_v27  ;;  %v2931_v55 = vmul.f32 %v2930_v8, %v5012_v15  ;;  %v3517_v28 = vclamps-f32 %v3111_v32, 1.0  ;;  %vm2383_vm14 = vweird.f32 %v3544_v35 }
 0x1ce   :  { %v2970_v42 = vadd.f32 0.014752088, %v2969_v41  ;;  %v2208_v34 = vadd.f32 0.001143296, %v2207_v59  ;;  %v3145_v53 = vsel %vm3144_vm13, %v3542_v18, %v3141_v63  ;;  %v2428_v1 = vand.u32 2147483648, %v5399_v61  ;;  %vm2384_vm15 = vmor %vm2382_vm11, %vm2383_vm14  ;;  %v6928_v63 = vld [vmem:[#allocation161_spill] sm:$0xff] }
 0x1cf   :  { %v2380_v11 = vmul.f32 %v3544_v35, %v2379_v46  ;;  %v2932_v39 = vadd.f32 0.112945676, %v2931_v55  ;;  %v3216_v24 = vadd.f32 1.0, %v3517_v28  ;;  %v3150_v14 = vsel %vm5386_vm8, %v3149_v29, %v3145_v53  ;;  %v6929_v46 = vld [vmem:[#allocation176_spill] sm:$0xff]  ;;  %v6931_v53 = vld [vmem:[#allocation178_spill] sm:$0xff] }
 0x1d0   :  { %v2971_v57 = vmul.f32 %v2970_v42, %v5020_v56  ;;  %v2209_v45 = vmul.f32 %v2208_v34, %v4627_v62  ;;  %v3151_v22 = vmul.f32 %v3150_v14, %v5325_v3  ;;  %v2248_v52 = vadd.f32 0.001143296, %v2247_v43  ;;  %v6930_v55 = vld [vmem:[#allocation168_spill] sm:$0xff] }
 0x1d1   :  { %v2381_v58 = vadd.f32 %v3544_v35, %v2380_v11  ;;  %v2933_v25 = vmul.f32 %v2932_v39, %v5012_v15  ;;  %v3280_v50 = vmul.f32 %v3216_v24, %v6922_v9  ;;  %v2767_v26 = vmul.f32 3.8918573e-05, %v6923_v20  ;;  %v6936_v9 = vld [vmem:[#allocation181_spill] sm:$0xff] }
 0x1d2   :  { %v3546_v17 = vpop.eup %3545  ;;  %v2972_v0 = vadd.f32 0.112945676, %v2971_v57  ;;  %v2210_v47 = vadd.f32 0.014752088, %v2209_v45  ;;  %v3518_v60 = vclamps-f32 %v3151_v22, 1.0  ;;  %v2249_v19 = vmul.f32 %v2248_v52, %v4647_v36 }
 0x1d3   :  { %v2385_v49 = vsel %vm2384_vm15, %v3544_v35, %v2381_v58  ;;  %v2418_v44 = vmul.f32 %v3546_v17, %v5399_v61  ;;  %vm2423_vm1 = vweird.f32 %v3546_v17  ;;  %3329 = vmatpush.msrb.mxu2 %v3280_v50  ;;  %v2934_v18 = vadd.f32 0.4994258, %v2933_v25  ;;  %v6933_v58 = vld [vmem:[#allocation169_spill] sm:$0xff]  ;;  %v6934_v25 = vld [vmem:[#allocation180_spill] sm:$0xff] }
 0x1d4   :  { %v2390_v3 = vsel %vm5405_vm12, %v2389_v54, %v2385_v49  ;;  %v2973_v12 = vmul.f32 %v2972_v0, %v5020_v56  ;;  %v2211_v4 = vmul.f32 %v2210_v47, %v4627_v62  ;;  %v3217_v16 = vadd.f32 1.0, %v3518_v60 }
 0x1d5   :  { %v2391_v6 = vmul.f32 %v2390_v3, %v6924_v51  ;;  %v2419_v30 = vsub.f32 1.0, %v2418_v44  ;;  %v2935_v31 = vmul.f32 %v2934_v18, %v5012_v15  ;;  %v2768_v10 = vadd.f32 0.001143296, %v2767_v26 }
 0x1d6   :  { %v2974_v29 = vadd.f32 0.4994258, %v2973_v12  ;;  %v2212_v5 = vadd.f32 0.112945676, %v2211_v4  ;;  %v3281_v48 = vmul.f32 %v3217_v16, %v6925_v33  ;;  %v2250_v8 = vadd.f32 0.014752088, %v2249_v19 }
 0x1d7   :  { %v3499_v7 = vclamps-f32 %v2391_v6, 1.0  ;;  %v2420_v21 = vmul.f32 %v3546_v17, %v2419_v30  ;;  %vm2422_vm2 = vweird.f32 %v5399_v61  ;;  %v5439_v41 = vadd.f32 1.0, %v2935_v31  ;;  %v6926_v61 = vld [vmem:[#allocation166_spill] sm:$0xff] }
 0x1d8   :  { %v2975_v35 = vmul.f32 %v2974_v29, %v5020_v56  ;;  %v2213_v2 = vmul.f32 %v2212_v5, %v4627_v62  ;;  %3349 = vmatpush.msrb.mxu3 %v3281_v48  ;;  %vm2427_vm3 = vcmp.eq.f32.partialorder %v2426_v13, 8.507059e+37  ;;  %v2251_v15 = vmul.f32 %v2250_v8, %v4647_v36  ;;  %vm2424_vm4 = vmor %vm2422_vm2, %vm2423_vm1  ;;  %v6939_v30 = vld [vmem:[#allocation150_spill] sm:$0xff]  ;;  %v6940_v48 = vld [vmem:[#allocation116_spill] sm:$0xff] }
 0x1d9   :  { %v3198_v23 = vadd.f32 1.0, %v3499_v7  ;;  %v2421_v59 = vadd.f32 %v3546_v17, %v2420_v21  ;;  %v2429_v37 = vor.u32 1.1754944e-38, %v2428_v1  ;;  %3547 = vrcp.f32 %v5439_v41  ;;  %v6932_v1 = vld [vmem:[#allocation162_spill] sm:$0xff] }
 0x1da   :  { %v2769_v38 = vmul.f32 %v2768_v10, %v6923_v20  ;;  %v2807_v27 = vmul.f32 3.8918573e-05, %v6926_v61  ;;  %v5449_v54 = vadd.f32 1.0, %v2975_v35  ;;  %v2214_v43 = vadd.f32 0.4994258, %v2213_v2 }
 0x1db   :  { %v3262_v32 = vmul.f32 %v3198_v23, %v6927_v40  ;;  %v2425_v56 = vsel %vm2424_vm4, %v3546_v17, %v2421_v59  ;;  %v5453_v13 = vmul.f32 %v6929_v46, %v6928_v63  ;;  %v5456_v28 = vmul.f32 0.5, %v6930_v55  ;;  %v6935_v17 = vld [vmem:[#allocation171_spill] sm:$0xff] }
 0x1dc   :  { %v2430_v42 = vsel %vm2427_vm3, %v2429_v37, %v2425_v56  ;;  %v2252_v34 = vadd.f32 0.112945676, %v2251_v15  ;;  %v5459_v11 = vadd.f32 1.1283791, %v6931_v53  ;;  %v2946_v24 = vand.u32 2147483647, %v5439_v41 }
 0x1dd   :  { %3293 = vmatpush.msrb.mxu0 %v3262_v32  ;;  %v2431_v39 = vmul.f32 %v2430_v42, %v6932_v1  ;;  %3549 = vrcp.f32 %v5449_v54  ;;  %v2948_v14 = vand.u32 2147483648, %v5439_v41  ;;  %v2215_v57 = vmul.f32 %v2214_v43, %v4627_v62  ;;  %v6945_v55 = vld [vmem:[#allocation119_spill] sm:$0xff] }
 0x1de   :  { %v2253_v45 = vmul.f32 %v2252_v34, %v4647_v36  ;;  %v2770_v22 = vadd.f32 0.014752088, %v2769_v38  ;;  %v2926_v52 = vmul.f32 %v6934_v25, %v6933_v58  ;;  %v5471_v50 = vmul.f32 %v6936_v9, %v6935_v17 }
 0x1df   :  { %v3500_v0 = vclamps-f32 %v2431_v39, 1.0  ;;  %v2808_v47 = vadd.f32 0.001143296, %v2807_v27  ;;  %v3548_v26 = vpop.eup %3547  ;;  %vm2942_vm5 = vweird.f32 %v5439_v41  ;;  %v5474_v60 = vadd.f32 1.0, %v2215_v57 }
 0x1e0   :  { %v2254_v49 = vadd.f32 0.4994258, %v2253_v45  ;;  %v2771_v62 = vmul.f32 %v2770_v22, %v6923_v20  ;;  %v2938_v3 = vmul.f32 %v3548_v26, %v5439_v41  ;;  %vm5478_vm6 = vcmp.eq.f32.partialorder %v2946_v24, 8.507059e+37 }
 0x1e1   :  { %v3199_v44 = vadd.f32 1.0, %v3500_v0  ;;  %v2809_v12 = vmul.f32 %v2808_v47, %v6926_v61  ;;  %v2949_v4 = vor.u32 1.1754944e-38, %v2948_v14  ;;  %v2986_v16 = vand.u32 2147483647, %v5449_v54 }
 0x1e2   :  { %v2988_v51 = vand.u32 2147483648, %v5449_v54  ;;  %3551 = vrcp.f32 %v5474_v60  ;;  %v2939_v31 = vsub.f32 1.0, %v2938_v3  ;;  %v2255_v29 = vmul.f32 %v2254_v49, %v4647_v36 }
 0x1e3   :  { %v3550_v6 = vpop.eup %3549  ;;  %v3263_v19 = vmul.f32 %v3199_v44, %v6939_v30  ;;  %v2772_v5 = vadd.f32 0.112945676, %v2771_v62  ;;  %vm2943_vm7 = vweird.f32 %v3548_v26  ;;  %v2226_v33 = vand.u32 2147483647, %v5474_v60 }
 0x1e4   :  { %v2978_v10 = vmul.f32 %v3550_v6, %v5449_v54  ;;  %v2047_v7 = vmul.f32 3.8918573e-05, %v6940_v48  ;;  %v2940_v21 = vmul.f32 %v3548_v26, %v2939_v31  ;;  %v5491_v8 = vadd.f32 1.0, %v2255_v29  ;;  %vm2944_vm12 = vmor %vm2942_vm5, %vm2943_vm7 }
 0x1e5   :  { %3313 = vmatpush.msrb.mxu1 %v3263_v19  ;;  %v2773_v35 = vmul.f32 %v2772_v5, %v6923_v20  ;;  %v2810_v2 = vadd.f32 0.014752088, %v2809_v12  ;;  %vm2982_vm8 = vweird.f32 %v5449_v54  ;;  %vm5495_vm9 = vcmp.eq.f32.partialorder %v2986_v16, 8.507059e+37  ;;  %v6948_v12 = vld [vmem:[#allocation175_spill] sm:$0xff] }
 0x1e6   :  { %v2979_v23 = vsub.f32 1.0, %v2978_v10  ;;  %v2989_v59 = vor.u32 1.1754944e-38, %v2988_v51  ;;  %v2941_v15 = vadd.f32 %v3548_v26, %v2940_v21  ;;  %vm2983_vm10 = vweird.f32 %v3550_v6 }
 0x1e7   :  { %vm2222_vm11 = vweird.f32 %v5474_v60  ;;  %v2228_v37 = vand.u32 2147483648, %v5474_v60  ;;  %3553 = vrcp.f32 %v5491_v8  ;;  %v2774_v40 = vadd.f32 0.4994258, %v2773_v35  ;;  %vm2984_vm14 = vmor %vm2982_vm8, %vm2983_vm10 }
 0x1e8   :  { %v3552_v38 = vpop.eup %3551  ;;  %v2980_v27 = vmul.f32 %v3550_v6, %v2979_v23  ;;  %v2811_v32 = vmul.f32 %v2810_v2, %v6926_v61  ;;  %v2048_v56 = vadd.f32 0.001143296, %v2047_v7  ;;  %v2945_v43 = vsel %vm2944_vm12, %v3548_v26, %v2941_v15  ;;  %v6950_v23 = vld [vmem:[#allocation146_spill] sm:$0xff] }
 0x1e9   :  { %v2218_v63 = vmul.f32 %v3552_v38, %v5474_v60  ;;  %vm5507_vm13 = vcmp.eq.f32.partialorder %v2226_v33, 8.507059e+37  ;;  %v2087_v42 = vmul.f32 3.8918573e-05, %v6945_v55  ;;  %v2950_v34 = vsel %vm5478_vm6, %v2949_v4, %v2945_v43  ;;  %v6949_v60 = vld [vmem:[#allocation152_spill] sm:$0xff] }
 0x1ea   :  { %v2981_v53 = vadd.f32 %v3550_v6, %v2980_v27  ;;  %v2266_v41 = vand.u32 2147483647, %v5491_v8  ;;  %v2775_v1 = vmul.f32 %v2774_v40, %v6923_v20  ;;  %v2951_v39 = vmul.f32 %v2950_v34, %v2926_v52  ;;  %v6953_v34 = vld [vmem:[#allocation95_spill] sm:$0xff] }
 0x1eb   :  { %v2219_v24 = vsub.f32 1.0, %v2218_v63  ;;  %v2268_v14 = vand.u32 2147483648, %v5491_v8  ;;  %v2812_v57 = vadd.f32 0.112945676, %v2811_v32  ;;  %vm2223_vm15 = vweird.f32 %v3552_v38 }
 0x1ec   :  { %v2985_v45 = vsel %vm2984_vm14, %v3550_v6, %v2981_v53  ;;  %v5520_v22 = vadd.f32 1.0, %v2775_v1  ;;  %v2049_v58 = vmul.f32 %v2048_v56, %v6940_v48  ;;  %v3513_v17 = vclamps-f32 %v2951_v39, 1.0  ;;  %vm2224_vm2 = vmor %vm2222_vm11, %vm2223_vm15 }
 0x1ed   :  { %v3554_v25 = vpop.eup %3553  ;;  %v2990_v20 = vsel %vm5495_vm9, %v2989_v59, %v2985_v45  ;;  %v2220_v52 = vmul.f32 %v3552_v38, %v2219_v24  ;;  %v2813_v9 = vmul.f32 %v2812_v57, %v6926_v61  ;;  %v2229_v0 = vor.u32 1.1754944e-38, %v2228_v37 }
 0x1ee   :  { %v2991_v54 = vmul.f32 %v2990_v20, %v5471_v50  ;;  %v2258_v47 = vmul.f32 %v3554_v25, %v5491_v8  ;;  %3555 = vrcp.f32 %v5520_v22  ;;  %v3212_v26 = vadd.f32 1.0, %v3513_v17 }
 0x1ef   :  { %v2221_v49 = vadd.f32 %v3552_v38, %v2220_v52  ;;  %vm2262_vm1 = vweird.f32 %v5491_v8  ;;  %v2088_v62 = vadd.f32 0.001143296, %v2087_v42  ;;  %vm5533_vm3 = vcmp.eq.f32.partialorder %v2266_v41, 8.507059e+37  ;;  %v6952_v8 = vld [vmem:[#allocation154_spill] sm:$0xff]  ;;  %v6954_v41 = vld [vmem:[#allocation137_spill] sm:$0xff] }
 0x1f0   :  { %v3514_v44 = vclamps-f32 %v2991_v54, 1.0  ;;  %v2259_v3 = vsub.f32 1.0, %v2258_v47  ;;  %v2814_v50 = vadd.f32 0.4994258, %v2813_v9  ;;  %v3276_v4 = vmul.f32 %v3212_v26, %v6948_v12 }
 0x1f1   :  { %v2225_v16 = vsel %vm2224_vm2, %v3552_v38, %v2221_v49  ;;  %v2269_v51 = vor.u32 1.1754944e-38, %v2268_v14  ;;  %v2050_v6 = vadd.f32 0.014752088, %v2049_v58  ;;  %vm2263_vm4 = vweird.f32 %v3554_v25 }
 0x1f2   :  { %v3213_v30 = vadd.f32 1.0, %v3514_v44  ;;  %v2230_v19 = vsel %vm5507_vm13, %v2229_v0, %v2225_v16  ;;  %v2260_v31 = vmul.f32 %v3554_v25, %v2259_v3  ;;  %3330 = vmatpush.msrb.mxu2 %v3276_v4  ;;  %v2815_v5 = vmul.f32 %v2814_v50, %v6926_v61  ;;  %vm2264_vm5 = vmor %vm2262_vm1, %vm2263_vm4  ;;  %v6951_v61 = vld [vmem:[#allocation151_spill] sm:$0xff]  ;;  %v6957_v3 = vld [vmem:[#allocation164_spill] sm:$0xff] }
 0x1f3   :  { %v2231_v29 = vmul.f32 %v2230_v19, %v6949_v60  ;;  %v2051_v10 = vmul.f32 %v2050_v6, %v6940_v48  ;;  %v2089_v33 = vmul.f32 %v2088_v62, %v6945_v55  ;;  %v2786_v2 = vand.u32 2147483647, %v5520_v22  ;;  %v6958_v50 = vld [vmem:[#allocation138_spill] sm:$0xff] }
 0x1f4   :  { %v3556_v7 = vpop.eup %3555  ;;  %v3277_v21 = vmul.f32 %v3213_v30, %v5456_v28  ;;  %v2261_v35 = vadd.f32 %v3554_v25, %v2260_v31  ;;  %v2607_v36 = vmul.f32 3.8918573e-05, %v6950_v23  ;;  %v5550_v37 = vadd.f32 1.0, %v2815_v5 }
 0x1f5   :  { %v3495_v59 = vclamps-f32 %v2231_v29, 1.0  ;;  %v2778_v15 = vmul.f32 %v3556_v7, %v5520_v22  ;;  %v2647_v38 = vmul.f32 3.8918573e-05, %v6951_v61  ;;  %v2052_v40 = vadd.f32 0.112945676, %v2051_v10 }
 0x1f6   :  { %3350 = vmatpush.msrb.mxu3 %v3277_v21  ;;  %v2265_v27 = vsel %vm2264_vm5, %v3554_v25, %v2261_v35  ;;  %v2090_v32 = vadd.f32 0.014752088, %v2089_v33  ;;  %v2608_v28 = vadd.f32 0.001143296, %v2607_v36  ;;  %3557 = vrcp.f32 %v5550_v37 }
 0x1f7   :  { %v3194_v56 = vadd.f32 1.0, %v3495_v59  ;;  %v2270_v43 = vsel %vm5533_vm3, %v2269_v51, %v2265_v27  ;;  %v2779_v63 = vsub.f32 1.0, %v2778_v15  ;;  %vm2783_vm6 = vweird.f32 %v3556_v7 }
 0x1f8   :  { %v2271_v46 = vmul.f32 %v2270_v43, %v6952_v8  ;;  %v2788_v42 = vand.u32 2147483648, %v5520_v22  ;;  %v1887_v53 = vmul.f32 3.8918573e-05, %v6953_v34  ;;  %v2053_v24 = vmul.f32 %v2052_v40, %v6940_v48  ;;  %v6960_v40 = vld [vmem:[#allocation170_spill] sm:$0xff]  ;;  %v6961_v8 = vld [vmem:[#allocation148_spill] sm:$0xff] }
 0x1f9   :  { %v3258_v1 = vmul.f32 %v3194_v56, %v6954_v41  ;;  %v2780_v39 = vmul.f32 %v3556_v7, %v2779_v63  ;;  %v2091_v14 = vmul.f32 %v2090_v32, %v6945_v55  ;;  %vm2782_vm7 = vweird.f32 %v5520_v22 }
 0x1fa   :  { %v3496_v57 = vclamps-f32 %v2271_v46, 1.0  ;;  %vm5563_vm8 = vcmp.eq.f32.partialorder %v2786_v2, 8.507059e+37  ;;  %v2609_v58 = vmul.f32 %v2608_v28, %v6950_v23  ;;  %v2054_v17 = vadd.f32 0.4994258, %v2053_v24  ;;  %vm2784_vm9 = vmor %vm2782_vm7, %vm2783_vm6  ;;  %v6962_v46 = vld [vmem:[#allocation174_spill] sm:$0xff] }
 0x1fb   :  { %3294 = vmatpush.msrb.mxu0 %v3258_v1  ;;  %v2781_v25 = vadd.f32 %v3556_v7, %v2780_v39  ;;  %v2092_v20 = vadd.f32 0.112945676, %v2091_v14  ;;  %v2648_v52 = vadd.f32 0.001143296, %v2647_v38  ;;  %v2789_v54 = vor.u32 1.1754944e-38, %v2788_v42 }
 0x1fc   :  { %v3195_v9 = vadd.f32 1.0, %v3496_v57  ;;  %v2610_v0 = vadd.f32 0.014752088, %v2609_v58  ;;  %v1888_v47 = vadd.f32 0.001143296, %v1887_v53  ;;  %v3558_v26 = vpop.eup %3557  ;;  %v2055_v22 = vmul.f32 %v2054_v17, %v6940_v48 }
 0x1fd   :  { %v2785_v49 = vsel %vm2784_vm9, %v3556_v7, %v2781_v25  ;;  %v2093_v62 = vmul.f32 %v2092_v20, %v6945_v55  ;;  %v2649_v44 = vmul.f32 %v2648_v52, %v6951_v61  ;;  %v2806_v18 = vmul.f32 %v5459_v11, %v6957_v3  ;;  %v6959_v7 = vld [vmem:[#allocation96_spill] sm:$0xff] }
 0x1fe   :  { %v3259_v12 = vmul.f32 %v3195_v9, %v6958_v50  ;;  %v2790_v4 = vsel %vm5563_vm8, %v2789_v54, %v2785_v49  ;;  %v2818_v16 = vmul.f32 %v3558_v26, %v5550_v37  ;;  %v5579_v6 = vadd.f32 1.0, %v2055_v22  ;;  %v6965_v9 = vld [vmem:[#allocation142_spill] sm:$0xff]  ;;  %v6966_v50 = vld [vmem:[#allocation172_spill] sm:$0xff] }
 0x1ff   :  { %v2791_v51 = vmul.f32 %v2790_v4, %v5453_v13  ;;  %v2094_v30 = vadd.f32 0.4994258, %v2093_v62  ;;  %v2611_v48 = vmul.f32 %v2610_v0, %v6950_v23  ;;  %v2828_v31 = vand.u32 2147483648, %v5550_v37 }
 0x200   :  { %3314 = vmatpush.msrb.mxu1 %v3259_v12  ;;  %v2819_v19 = vsub.f32 1.0, %v2818_v16  ;;  %v2650_v60 = vadd.f32 0.014752088, %v2649_v44  ;;  %v1889_v11 = vmul.f32 %v1888_v47, %v6953_v34  ;;  %vm2823_vm10 = vweird.f32 %v3558_v26 }
 0x201   :  { %v3509_v29 = vclamps-f32 %v2791_v51, 1.0  ;;  %v2826_v5 = vand.u32 2147483647, %v5550_v37  ;;  %3559 = vrcp.f32 %v5579_v6  ;;  %v2095_v13 = vmul.f32 %v2094_v30, %v6945_v55 }
 0x202   :  { %v2820_v10 = vmul.f32 %v3558_v26, %v2819_v19  ;;  %v2612_v33 = vadd.f32 0.112945676, %v2611_v48  ;;  %v1927_v21 = vmul.f32 3.8918573e-05, %v6959_v7  ;;  %vm2822_vm11 = vweird.f32 %v5550_v37 }
 0x203   :  { %v3208_v35 = vadd.f32 1.0, %v3509_v29  ;;  %v2651_v2 = vmul.f32 %v2650_v60, %v6951_v61  ;;  %v1890_v36 = vadd.f32 0.014752088, %v1889_v11  ;;  %v2829_v15 = vor.u32 1.1754944e-38, %v2828_v31  ;;  %vm2824_vm12 = vmor %vm2822_vm11, %vm2823_vm10  ;;  %v6967_v29 = vld [vmem:[#allocation144_spill] sm:$0xff] }
 0x204   :  { %v2821_v59 = vadd.f32 %v3558_v26, %v2820_v10  ;;  %v5590_v38 = vadd.f32 1.0, %v2095_v13  ;;  %v2613_v27 = vmul.f32 %v2612_v33, %v6950_v23  ;;  %v2066_v55 = vand.u32 2147483647, %v5579_v6 }
 0x205   :  { %v3272_v32 = vmul.f32 %v3208_v35, %v6960_v40  ;;  %v2652_v28 = vadd.f32 0.112945676, %v2651_v2  ;;  %v1891_v56 = vmul.f32 %v1890_v36, %v6953_v34  ;;  %vm2827_vm13 = vcmp.eq.f32.partialorder %v2826_v5, 8.507059e+37 }
 0x206   :  { %v2825_v43 = vsel %vm2824_vm12, %v3558_v26, %v2821_v59  ;;  %3561 = vrcp.f32 %v5590_v38  ;;  %v1928_v37 = vadd.f32 0.001143296, %v1927_v21  ;;  %v5600_v42 = vmul.f32 %v6962_v46, %v6961_v8 }
 0x207   :  { %v3560_v63 = vpop.eup %3559  ;;  %3331 = vmatpush.msrb.mxu2 %v3272_v32  ;;  %v2830_v53 = vsel %vm2827_vm13, %v2829_v15, %v2825_v43  ;;  %v2614_v41 = vadd.f32 0.4994258, %v2613_v27  ;;  %v2653_v1 = vmul.f32 %v2652_v28, %v6951_v61  ;;  %vm2062_vm14 = vweird.f32 %v5579_v6 }
 0x208   :  { %v2831_v39 = vmul.f32 %v2830_v53, %v2806_v18  ;;  %v2058_v24 = vmul.f32 %v3560_v63, %v5579_v6  ;;  %v2068_v14 = vand.u32 2147483648, %v5579_v6  ;;  %vm5606_vm15 = vcmp.eq.f32.partialorder %v2066_v55, 8.507059e+37  ;;  %v6968_v6 = vld [vmem:[#allocation141_spill] sm:$0xff] }
 0x209   :  { %v2615_v45 = vmul.f32 %v2614_v41, %v6950_v23  ;;  %v2654_v58 = vadd.f32 0.4994258, %v2653_v1  ;;  %v1892_v25 = vadd.f32 0.112945676, %v1891_v56  ;;  %v1929_v52 = vmul.f32 %v1928_v37, %v6959_v7  ;;  %v6973_v41 = vld [vmem:[#allocation149_spill] sm:$0xff] }
 0x20a   :  { %v3510_v17 = vclamps-f32 %v2831_v39, 1.0  ;;  %v2059_v20 = vsub.f32 1.0, %v2058_v24  ;;  %v2447_v54 = vmul.f32 3.8918573e-05, %v6965_v9  ;;  %vm2063_vm1 = vweird.f32 %v3560_v63 }
 0x20b   :  { %v5613_v0 = vadd.f32 1.0, %v2615_v45  ;;  %v2655_v47 = vmul.f32 %v2654_v58, %v6951_v61  ;;  %v1893_v26 = vmul.f32 %v1892_v25, %v6953_v34  ;;  %v1930_v44 = vadd.f32 0.014752088, %v1929_v52  ;;  %vm2064_vm3 = vmor %vm2062_vm14, %vm2063_vm1 }
 0x20c   :  { %v3562_v49 = vpop.eup %3561  ;;  %v3209_v22 = vadd.f32 1.0, %v3510_v17  ;;  %v2060_v62 = vmul.f32 %v3560_v63, %v2059_v20  ;;  %v2448_v23 = vadd.f32 0.001143296, %v2447_v54  ;;  %v2069_v3 = vor.u32 1.1754944e-38, %v2068_v14  ;;  %v6974_v14 = vld [vmem:[#allocation128_spill] sm:$0xff] }
 0x20d   :  { %v2098_v18 = vmul.f32 %v3562_v49, %v5590_v38  ;;  %vm2102_vm2 = vweird.f32 %v5590_v38  ;;  %3563 = vrcp.f32 %v5613_v0  ;;  %v2106_v16 = vand.u32 2147483647, %v5590_v38 }
 0x20e   :  { %v3273_v12 = vmul.f32 %v3209_v22, %v6966_v50  ;;  %v2061_v4 = vadd.f32 %v3560_v63, %v2060_v62  ;;  %v2108_v61 = vand.u32 2147483648, %v5590_v38  ;;  %v5626_v30 = vadd.f32 1.0, %v2655_v47 }
 0x20f   :  { %v2099_v51 = vsub.f32 1.0, %v2098_v18  ;;  %v1894_v48 = vadd.f32 0.4994258, %v1893_v26  ;;  %v1931_v19 = vmul.f32 %v1930_v44, %v6959_v7  ;;  %v2626_v60 = vand.u32 2147483647, %v5613_v0  ;;  %v6977_v44 = vld [vmem:[#allocation89_spill] sm:$0xff] }
 0x210   :  { %3351 = vmatpush.msrb.mxu3 %v3273_v12  ;;  %v2065_v31 = vsel %vm2064_vm3, %v3560_v63, %v2061_v4  ;;  %v2449_v11 = vmul.f32 %v2448_v23, %v6965_v9  ;;  %v2487_v5 = vmul.f32 3.8918573e-05, %v6967_v29  ;;  %vm2103_vm4 = vweird.f32 %v3562_v49  ;;  %v6978_v4 = vld [vmem:[#allocation130_spill] sm:$0xff] }
 0x211   :  { %v2070_v10 = vsel %vm5606_vm15, %v2069_v3, %v2065_v31  ;;  %v2100_v13 = vmul.f32 %v3562_v49, %v2099_v51  ;;  %3565 = vrcp.f32 %v5626_v30  ;;  %vm5636_vm5 = vcmp.eq.f32.partialorder %v2106_v16, 8.507059e+37  ;;  %vm2104_vm6 = vmor %vm2102_vm2, %vm2103_vm4 }
 0x212   :  { %v2071_v33 = vmul.f32 %v2070_v10, %v6968_v6  ;;  %v2109_v35 = vor.u32 1.1754944e-38, %v2108_v61  ;;  %v1895_v2 = vmul.f32 %v1894_v48, %v6953_v34  ;;  %v2628_v15 = vand.u32 2147483648, %v5613_v0  ;;  %v6979_v48 = vld [vmem:[#allocation173_spill] sm:$0xff] }
 0x213   :  { %v3564_v36 = vpop.eup %3563  ;;  %v2101_v59 = vadd.f32 %v3562_v49, %v2100_v13  ;;  %v1932_v27 = vadd.f32 0.112945676, %v1931_v19  ;;  %v2450_v40 = vadd.f32 0.014752088, %v2449_v11  ;;  %vm2622_vm7 = vweird.f32 %v5613_v0 }
 0x214   :  { %v3491_v32 = vclamps-f32 %v2071_v33, 1.0  ;;  %v2618_v55 = vmul.f32 %v3564_v36, %v5613_v0  ;;  %vm5646_vm8 = vcmp.eq.f32.partialorder %v2626_v60, 8.507059e+37  ;;  %v5650_v34 = vadd.f32 1.0, %v1895_v2 }
 0x215   :  { %v2105_v56 = vsel %vm2104_vm6, %v3562_v49, %v2101_v59  ;;  %v1933_v43 = vmul.f32 %v1932_v27, %v6959_v7  ;;  %v2488_v37 = vadd.f32 0.001143296, %v2487_v5  ;;  %v2451_v46 = vmul.f32 %v2450_v40, %v6965_v9 }
 0x216   :  { %v3190_v63 = vadd.f32 1.0, %v3491_v32  ;;  %v2110_v8 = vsel %vm5636_vm5, %v2109_v35, %v2105_v56  ;;  %v2619_v38 = vsub.f32 1.0, %v2618_v55  ;;  %v2629_v39 = vor.u32 1.1754944e-38, %v2628_v15  ;;  %v6980_v55 = vld [vmem:[#allocation91_spill] sm:$0xff]  ;;  %v6981_v56 = vld [vmem:[#allocation158_spill] sm:$0xff] }
 0x217   :  { %v3566_v53 = vpop.eup %3565  ;;  %v2111_v1 = vmul.f32 %v2110_v8, %v6973_v41  ;;  %v2666_v24 = vand.u32 2147483647, %v5626_v30  ;;  %3567 = vrcp.f32 %v5650_v34  ;;  %vm2623_vm9 = vweird.f32 %v3564_v36 }
 0x218   :  { %v3254_v57 = vmul.f32 %v3190_v63, %v6974_v14  ;;  %v2620_v45 = vmul.f32 %v3564_v36, %v2619_v38  ;;  %v2658_v58 = vmul.f32 %v3566_v53, %v5626_v30  ;;  %vm2662_vm10 = vweird.f32 %v5626_v30  ;;  %vm2624_vm11 = vmor %vm2622_vm7, %vm2623_vm9 }
 0x219   :  { %v3492_v25 = vclamps-f32 %v2111_v1, 1.0  ;;  %v2668_v17 = vand.u32 2147483648, %v5626_v30  ;;  %v1934_v20 = vadd.f32 0.4994258, %v1933_v43  ;;  %v2452_v47 = vadd.f32 0.112945676, %v2451_v46 }
 0x21a   :  { %3295 = vmatpush.msrb.mxu0 %v3254_v57  ;;  %v2621_v52 = vadd.f32 %v3564_v36, %v2620_v45  ;;  %v2659_v54 = vsub.f32 1.0, %v2658_v58  ;;  %v2489_v26 = vmul.f32 %v2488_v37, %v6967_v29  ;;  %vm5666_vm12 = vcmp.eq.f32.partialorder %v2666_v24, 8.507059e+37  ;;  %v6984_v58 = vld [vmem:[#allocation132_spill] sm:$0xff] }
 0x21b   :  { %v3191_v49 = vadd.f32 1.0, %v3492_v25  ;;  %v1935_v62 = vmul.f32 %v1934_v20, %v6959_v7  ;;  %v1727_v23 = vmul.f32 3.8918573e-05, %v6977_v44  ;;  %vm2663_vm13 = vweird.f32 %v3566_v53 }
 0x21c   :  { %v2625_v3 = vsel %vm2624_vm11, %v3564_v36, %v2621_v52  ;;  %v2660_v18 = vmul.f32 %v3566_v53, %v2659_v54  ;;  %v2453_v50 = vmul.f32 %v2452_v47, %v6965_v9  ;;  %v2490_v51 = vadd.f32 0.014752088, %v2489_v26  ;;  %vm2664_vm14 = vmor %vm2662_vm10, %vm2663_vm13 }
 0x21d   :  { %v3568_v12 = vpop.eup %3567  ;;  %v3255_v16 = vmul.f32 %v3191_v49, %v6978_v4  ;;  %v2630_v0 = vsel %vm5646_vm8, %v2629_v39, %v2625_v3  ;;  %v5676_v61 = vadd.f32 1.0, %v1935_v62  ;;  %v2669_v7 = vor.u32 1.1754944e-38, %v2668_v17  ;;  %v6985_v62 = vld [vmem:[#allocation129_spill] sm:$0xff] }
 0x21e   :  { %v2631_v19 = vmul.f32 %v2630_v0, %v6979_v48  ;;  %v2661_v31 = vadd.f32 %v3566_v53, %v2660_v18  ;;  %v1898_v60 = vmul.f32 %v3568_v12, %v5650_v34  ;;  %vm1902_vm15 = vweird.f32 %v5650_v34 }
 0x21f   :  { %3315 = vmatpush.msrb.mxu1 %v3255_v16  ;;  %v1908_v11 = vand.u32 2147483648, %v5650_v34  ;;  %3569 = vrcp.f32 %v5676_v61  ;;  %v1728_v5 = vadd.f32 0.001143296, %v1727_v23  ;;  %v2454_v33 = vadd.f32 0.4994258, %v2453_v50 }
 0x220   :  { %v3505_v10 = vclamps-f32 %v2631_v19, 1.0  ;;  %v2665_v13 = vsel %vm2664_vm14, %v3566_v53, %v2661_v31  ;;  %v1899_v6 = vsub.f32 1.0, %v1898_v60  ;;  %vm1903_vm1 = vweird.f32 %v3568_v12  ;;  %v6982_v53 = vld [vmem:[#allocation66_spill] sm:$0xff] }
 0x221   :  { %v2670_v21 = vsel %vm5666_vm12, %v2669_v7, %v2665_v13  ;;  %v1906_v35 = vand.u32 2147483647, %v5650_v34  ;;  %v2491_v30 = vmul.f32 %v2490_v51, %v6967_v29  ;;  %v2455_v15 = vmul.f32 %v2454_v33, %v6965_v9  ;;  %vm1904_vm2 = vmor %vm1902_vm15, %vm1903_vm1  ;;  %v6983_v34 = vld [vmem:[#allocation159_spill] sm:$0xff]  ;;  %v6988_v33 = vld [vmem:[#allocation133_spill] sm:$0xff] }
 0x222   :  { %v3204_v2 = vadd.f32 1.0, %v3505_v10  ;;  %v2671_v36 = vmul.f32 %v2670_v21, %v5600_v42  ;;  %v1900_v59 = vmul.f32 %v3568_v12, %v1899_v6  ;;  %v1909_v27 = vor.u32 1.1754944e-38, %v1908_v11 }
 0x223   :  { %v2492_v40 = vadd.f32 0.112945676, %v2491_v30  ;;  %v1729_v32 = vmul.f32 %v1728_v5, %v6977_v44  ;;  %v1767_v28 = vmul.f32 3.8918573e-05, %v6980_v55  ;;  %v5694_v8 = vadd.f32 1.0, %v2455_v15 }
 0x224   :  { %v3268_v43 = vmul.f32 %v3204_v2, %v6981_v56  ;;  %v3506_v37 = vclamps-f32 %v2671_v36, 1.0  ;;  %v1901_v63 = vadd.f32 %v3568_v12, %v1900_v59  ;;  %v1567_v41 = vmul.f32 3.8918573e-05, %v6982_v53 }
 0x225   :  { %v3570_v38 = vpop.eup %3569  ;;  %v2493_v42 = vmul.f32 %v2492_v40, %v6967_v29  ;;  %v1730_v9 = vadd.f32 0.014752088, %v1729_v32  ;;  %v1768_v46 = vadd.f32 0.001143296, %v1767_v28  ;;  %vm1907_vm3 = vcmp.eq.f32.partialorder %v1906_v35, 8.507059e+37 }
 0x226   :  { %3332 = vmatpush.msrb.mxu2 %v3268_v43  ;;  %v3205_v1 = vadd.f32 1.0, %v3506_v37  ;;  %v1905_v39 = vsel %vm1904_vm2, %v3568_v12, %v1901_v63  ;;  %v1938_v24 = vmul.f32 %v3570_v38, %v5676_v61  ;;  %vm1942_vm4 = vweird.f32 %v5676_v61  ;;  %v6986_v12 = vld [vmem:[#allocation131_spill] sm:$0xff] }
 0x227   :  { %v1910_v14 = vsel %vm1907_vm3, %v1909_v27, %v1905_v39  ;;  %v1946_v57 = vand.u32 2147483647, %v5676_v61  ;;  %3571 = vrcp.f32 %v5694_v8  ;;  %v1948_v20 = vand.u32 2147483648, %v5676_v61 }
 0x228   :  { %v3269_v45 = vmul.f32 %v3205_v1, %v6983_v34  ;;  %v1911_v25 = vmul.f32 %v1910_v14, %v6984_v58  ;;  %v1939_v17 = vsub.f32 1.0, %v1938_v24  ;;  %v2494_v52 = vadd.f32 0.4994258, %v2493_v42  ;;  %v6989_v24 = vld [vmem:[#allocation113_spill] sm:$0xff] }
 0x229   :  { %v1731_v54 = vmul.f32 %v1730_v9, %v6977_v44  ;;  %v1769_v47 = vmul.f32 %v1768_v46, %v6980_v55  ;;  %v1568_v26 = vadd.f32 0.001143296, %v1567_v41  ;;  %vm1943_vm5 = vweird.f32 %v3570_v38 }
 0x22a   :  { %3352 = vmatpush.msrb.mxu3 %v3269_v45  ;;  %v3487_v49 = vclamps-f32 %v1911_v25, 1.0  ;;  %v1940_v22 = vmul.f32 %v3570_v38, %v1939_v17  ;;  %v2287_v23 = vmul.f32 3.8918573e-05, %v6985_v62  ;;  %v2495_v3 = vmul.f32 %v2494_v52, %v6967_v29  ;;  %vm1944_vm6 = vmor %vm1942_vm4, %vm1943_vm5  ;;  %v6987_v29 = vld [vmem:[#allocation110_spill] sm:$0xff]  ;;  %v6990_v17 = vld [vmem:[#allocation165_spill] sm:$0xff] }
 0x22b   :  { %v1732_v18 = vadd.f32 0.112945676, %v1731_v54  ;;  %v1770_v50 = vadd.f32 0.014752088, %v1769_v47  ;;  %v2327_v4 = vmul.f32 3.8918573e-05, %v6986_v12  ;;  %vm2462_vm8 = vweird.f32 %v5694_v8 }
 0x22c   :  { %v3186_v16 = vadd.f32 1.0, %v3487_v49  ;;  %v1941_v0 = vadd.f32 %v3570_v38, %v1940_v22  ;;  %v1949_v51 = vor.u32 1.1754944e-38, %v1948_v20  ;;  %v2288_v48 = vadd.f32 0.001143296, %v2287_v23  ;;  %v6991_v49 = vld [vmem:[#allocation67_spill] sm:$0xff] }
 0x22d   :  { %v3572_v19 = vpop.eup %3571  ;;  %v5715_v31 = vadd.f32 1.0, %v2495_v3  ;;  %v1733_v7 = vmul.f32 %v1732_v18, %v6977_v44  ;;  %v1771_v60 = vmul.f32 %v1770_v50, %v6980_v55  ;;  %v2328_v11 = vadd.f32 0.001143296, %v2327_v4 }
 0x22e   :  { %v3250_v5 = vmul.f32 %v3186_v16, %v6987_v29  ;;  %v1945_v10 = vsel %vm1944_vm6, %v3570_v38, %v1941_v0  ;;  %vm1947_vm7 = vcmp.eq.f32.partialorder %v1946_v57, 8.507059e+37  ;;  %v2458_v13 = vmul.f32 %v3572_v19, %v5694_v8 }
 0x22f   :  { %v1950_v6 = vsel %vm1947_vm7, %v1949_v51, %v1945_v10  ;;  %3573 = vrcp.f32 %v5715_v31  ;;  %v1569_v61 = vmul.f32 %v1568_v26, %v6982_v53  ;;  %v2466_v30 = vand.u32 2147483647, %v5694_v8 }
 0x230   :  { %3296 = vmatpush.msrb.mxu0 %v3250_v5  ;;  %v1951_v21 = vmul.f32 %v1950_v6, %v6988_v33  ;;  %v2459_v35 = vsub.f32 1.0, %v2458_v13  ;;  %v1734_v2 = vadd.f32 0.4994258, %v1733_v7  ;;  %v2468_v36 = vand.u32 2147483648, %v5694_v8  ;;  %v6994_v5 = vld [vmem:[#allocation153_spill] sm:$0xff] }
 0x231   :  { %v1772_v59 = vadd.f32 0.112945676, %v1771_v60  ;;  %v2289_v15 = vmul.f32 %v2288_v48, %v6985_v62  ;;  %v2329_v27 = vmul.f32 %v2328_v11, %v6986_v12  ;;  %vm2463_vm9 = vweird.f32 %v3572_v19 }
 0x232   :  { %v3488_v40 = vclamps-f32 %v1951_v21, 1.0  ;;  %v2460_v32 = vmul.f32 %v3572_v19, %v2459_v35  ;;  %v1735_v28 = vmul.f32 %v1734_v2, %v6977_v44  ;;  %v1570_v63 = vadd.f32 0.014752088, %v1569_v61  ;;  %vm2464_vm11 = vmor %vm2462_vm8, %vm2463_vm9  ;;  %v6997_v2 = vld [vmem:[#allocation167_spill] sm:$0xff] }
 0x233   :  { %v1773_v56 = vmul.f32 %v1772_v59, %v6980_v55  ;;  %v2290_v43 = vadd.f32 0.014752088, %v2289_v15  ;;  %v2330_v37 = vadd.f32 0.014752088, %v2329_v27  ;;  %vm2467_vm10 = vcmp.eq.f32.partialorder %v2466_v30, 8.507059e+37  ;;  %v7008_v61 = vld [vmem:[#allocation123_spill] sm:$0xff] }
 0x234   :  { %v3187_v38 = vadd.f32 1.0, %v3488_v40  ;;  %v2461_v42 = vadd.f32 %v3572_v19, %v2460_v32  ;;  %v5731_v9 = vadd.f32 1.0, %v1735_v28  ;;  %v2469_v41 = vor.u32 1.1754944e-38, %v2468_v36 }
 0x235   :  { %v3574_v46 = vpop.eup %3573  ;;  %v1774_v1 = vadd.f32 0.4994258, %v1773_v56  ;;  %v2291_v39 = vmul.f32 %v2290_v43, %v6985_v62  ;;  %v2331_v44 = vmul.f32 %v2330_v37, %v6986_v12  ;;  %v2506_v45 = vand.u32 2147483647, %v5715_v31 }
 0x236   :  { %v3251_v14 = vmul.f32 %v3187_v38, %v6989_v24  ;;  %v2465_v57 = vsel %vm2464_vm11, %v3572_v19, %v2461_v42  ;;  %v2498_v34 = vmul.f32 %v3574_v46, %v5715_v31  ;;  %v2508_v25 = vand.u32 2147483648, %v5715_v31 }
 0x237   :  { %v2470_v58 = vsel %vm2467_vm10, %v2469_v41, %v2465_v57  ;;  %3575 = vrcp.f32 %v5731_v9  ;;  %v1571_v8 = vmul.f32 %v1570_v63, %v6982_v53  ;;  %vm2502_vm12 = vweird.f32 %v5715_v31  ;;  %v7001_v57 = vld [vmem:[#allocation155_spill] sm:$0xff] }
 0x238   :  { %3316 = vmatpush.msrb.mxu1 %v3251_v14  ;;  %v2471_v20 = vmul.f32 %v2470_v58, %v6990_v17  ;;  %v2499_v52 = vsub.f32 1.0, %v2498_v34  ;;  %v1775_v54 = vmul.f32 %v1774_v1, %v6980_v55  ;;  %vm2503_vm13 = vweird.f32 %v3574_v46 }
 0x239   :  { %v2292_v47 = vadd.f32 0.112945676, %v2291_v39  ;;  %v2332_v26 = vadd.f32 0.112945676, %v2331_v44  ;;  %v1607_v22 = vmul.f32 3.8918573e-05, %v6991_v49  ;;  %vm2504_vm15 = vmor %vm2502_vm12, %vm2503_vm13  ;;  %vm1742_vm1 = vweird.f32 %v5731_v9 }
 0x23a   :  { %v3501_v23 = vclamps-f32 %v2471_v20, 1.0  ;;  %v2500_v3 = vmul.f32 %v3574_v46, %v2499_v52  ;;  %v1746_v18 = vand.u32 2147483647, %v5731_v9  ;;  %v5748_v50 = vadd.f32 1.0, %v1775_v54  ;;  %v7000_v39 = vld [vmem:[#allocation61_spill] sm:$0xff]  ;;  %v7003_v20 = vld [vmem:[#allocation122_spill] sm:$0xff] }
 0x23b   :  { %vm5750_vm14 = vcmp.eq.f32.partialorder %v2506_v45, 8.507059e+37  ;;  %v2509_v16 = vor.u32 1.1754944e-38, %v2508_v25  ;;  %v2293_v0 = vmul.f32 %v2292_v47, %v6985_v62  ;;  %v1572_v51 = vadd.f32 0.112945676, %v1571_v8  ;;  %v7002_v25 = vld [vmem:[#allocation63_spill] sm:$0xff] }
 0x23c   :  { %v3200_v55 = vadd.f32 1.0, %v3501_v23  ;;  %v2501_v48 = vadd.f32 %v3574_v46, %v2500_v3  ;;  %3577 = vrcp.f32 %v5748_v50  ;;  %v2333_v19 = vmul.f32 %v2332_v26, %v6986_v12 }
 0x23d   :  { %v3576_v7 = vpop.eup %3575  ;;  %v1748_v60 = vand.u32 2147483648, %v5731_v9  ;;  %v2294_v11 = vadd.f32 0.4994258, %v2293_v0  ;;  %v1573_v29 = vmul.f32 %v1572_v51, %v6982_v53  ;;  %vm5765_vm2 = vcmp.eq.f32.partialorder %v1746_v18, 8.507059e+37 }
 0x23e   :  { %v3264_v10 = vmul.f32 %v3200_v55, %v6994_v5  ;;  %v2505_v13 = vsel %vm2504_vm15, %v3574_v46, %v2501_v48  ;;  %v1738_v6 = vmul.f32 %v3576_v7, %v5731_v9  ;;  %v1608_v33 = vadd.f32 0.001143296, %v1607_v22  ;;  %v7006_v5 = vld [vmem:[#allocation124_spill] sm:$0xff] }
 0x23f   :  { %v2510_v31 = vsel %vm5750_vm14, %v2509_v16, %v2505_v13  ;;  %v1786_v21 = vand.u32 2147483647, %v5748_v50  ;;  %v1788_v35 = vand.u32 2147483648, %v5748_v50  ;;  %v2295_v30 = vmul.f32 %v2294_v11, %v6985_v62  ;;  %v7007_v13 = vld [vmem:[#allocation121_spill] sm:$0xff] }
 0x240   :  { %3333 = vmatpush.msrb.mxu2 %v3264_v10  ;;  %v2511_v36 = vmul.f32 %v2510_v31, %v6997_v2  ;;  %v1739_v59 = vsub.f32 1.0, %v1738_v6  ;;  %v2334_v15 = vadd.f32 0.4994258, %v2333_v19  ;;  %v1574_v27 = vadd.f32 0.4994258, %v1573_v29 }
 0x241   :  { %vm1743_vm3 = vweird.f32 %v3576_v7  ;;  %v1749_v40 = vor.u32 1.1754944e-38, %v1748_v60  ;;  %vm1782_vm4 = vweird.f32 %v5748_v50  ;;  %v5776_v32 = vadd.f32 1.0, %v2295_v30 }
 0x242   :  { %v3578_v28 = vpop.eup %3577  ;;  %v3502_v56 = vclamps-f32 %v2511_v36, 1.0  ;;  %v1740_v43 = vmul.f32 %v3576_v7, %v1739_v59  ;;  %v2335_v37 = vmul.f32 %v2334_v15, %v6986_v12  ;;  %v1575_v63 = vmul.f32 %v1574_v27, %v6982_v53  ;;  %vm1744_vm6 = vmor %vm1742_vm1, %vm1743_vm3 }
 0x243   :  { %v1778_v62 = vmul.f32 %v3578_v28, %v5748_v50  ;;  %vm5781_vm5 = vcmp.eq.f32.partialorder %v1786_v21, 8.507059e+37  ;;  %v1789_v42 = vor.u32 1.1754944e-38, %v1788_v35  ;;  %3579 = vrcp.f32 %v5776_v32  ;;  %v7009_v35 = vld [vmem:[#allocation104_spill] sm:$0xff] }
 0x244   :  { %v3201_v46 = vadd.f32 1.0, %v3502_v56  ;;  %v1741_v41 = vadd.f32 %v3576_v7, %v1740_v43  ;;  %v1609_v1 = vmul.f32 %v1608_v33, %v6991_v49  ;;  %v1407_v44 = vmul.f32 3.8918573e-05, %v7000_v39 }
 0x245   :  { %v1779_v53 = vsub.f32 1.0, %v1778_v62  ;;  %v2308_v12 = vand.u32 2147483648, %v5776_v32  ;;  %v5792_v24 = vadd.f32 1.0, %v2335_v37  ;;  %v5794_v14 = vadd.f32 1.0, %v1575_v63 }
 0x246   :  { %v3265_v34 = vmul.f32 %v3201_v46, %v7001_v57  ;;  %v1745_v45 = vsel %vm1744_vm6, %v3576_v7, %v1741_v41  ;;  %v2306_v58 = vand.u32 2147483647, %v5776_v32  ;;  %v5799_v8 = vmul.f32 3.8918573e-05, %v7002_v25 }
 0x247   :  { %v1750_v17 = vsel %vm5765_vm2, %v1749_v40, %v1745_v45  ;;  %v1780_v9 = vmul.f32 %v3578_v28, %v1779_v53  ;;  %vm1783_vm7 = vweird.f32 %v3578_v28  ;;  %3581 = vrcp.f32 %v5792_v24 }
 0x248   :  { %3353 = vmatpush.msrb.mxu3 %v3265_v34  ;;  %v1751_v52 = vmul.f32 %v1750_v17, %v7003_v20  ;;  %v2348_v54 = vand.u32 2147483648, %v5792_v24  ;;  %3583 = vrcp.f32 %v5794_v14  ;;  %v1610_v47 = vadd.f32 0.014752088, %v1609_v1  ;;  %vm1784_vm9 = vmor %vm1782_vm4, %vm1783_vm7 }
 0x249   :  { %v3580_v26 = vpop.eup %3579  ;;  %v1781_v22 = vadd.f32 %v3578_v28, %v1780_v9  ;;  %vm2302_vm8 = vweird.f32 %v5776_v32  ;;  %v2309_v23 = vor.u32 1.1754944e-38, %v2308_v12  ;;  %v1588_v3 = vand.u32 2147483648, %v5794_v14  ;;  %v7014_v12 = vld [vmem:[#allocation105_spill] sm:$0xff] }
 0x24a   :  { %v3483_v18 = vclamps-f32 %v1751_v52, 1.0  ;;  %v2298_v4 = vmul.f32 %v3580_v26, %v5776_v32  ;;  %vm5812_vm10 = vcmp.eq.f32.partialorder %v2306_v58, 8.507059e+37  ;;  %v2346_v0 = vand.u32 2147483647, %v5792_v24  ;;  %v7015_v32 = vld [vmem:[#allocation156_spill] sm:$0xff] }
 0x24b   :  { %v1586_v51 = vand.u32 2147483647, %v5794_v14  ;;  %v1785_v55 = vsel %vm1784_vm9, %v3578_v28, %v1781_v22  ;;  %vm2303_vm11 = vweird.f32 %v3580_v26  ;;  %v2349_v48 = vor.u32 1.1754944e-38, %v2348_v54 }
 0x24c   :  { %v5818_v19 = vor.u32 1.1754944e-38, %v1588_v3  ;;  %v3182_v7 = vadd.f32 1.0, %v3483_v18  ;;  %v1790_v50 = vsel %vm5781_vm5, %v1789_v42, %v1785_v55  ;;  %v2299_v60 = vsub.f32 1.0, %v2298_v4  ;;  %vm2304_vm3 = vmor %vm2302_vm8, %vm2303_vm11 }
 0x24d   :  { %vm2342_vm12 = vweird.f32 %v5792_v24  ;;  %v1611_v11 = vmul.f32 %v1610_v47, %v6991_v49  ;;  %v3582_v29 = vpop.eup %3581  ;;  %v1791_v10 = vmul.f32 %v1790_v50, %v7006_v5  ;;  %vm1582_vm13 = vweird.f32 %v5794_v14  ;;  %v7017_v50 = vld [vmem:[#allocation97_spill] sm:$0xff] }
 0x24e   :  { %v2127_v6 = vmul.f32 3.8918573e-05, %v7007_v13  ;;  %v2167_v33 = vmul.f32 3.8918573e-05, %v7008_v61  ;;  %v1408_v31 = vadd.f32 0.001143296, %v1407_v44  ;;  %v3584_v21 = vpop.eup %3583  ;;  %v3246_v30 = vmul.f32 %v3182_v7, %v7009_v35 }
 0x24f   :  { %v2300_v2 = vmul.f32 %v3580_v26, %v2299_v60  ;;  %v2338_v36 = vmul.f32 %v3582_v29, %v5792_v24  ;;  %vm2343_vm14 = vweird.f32 %v3582_v29  ;;  %vm5830_vm15 = vcmp.eq.f32.partialorder %v2346_v0, 8.507059e+37  ;;  %v7018_v60 = vld [vmem:[#allocation136_spill] sm:$0xff] }
 0x250   :  { %v3484_v15 = vclamps-f32 %v1791_v10, 1.0  ;;  %v1578_v27 = vmul.f32 %v3584_v21, %v5794_v14  ;;  %vm1583_vm1 = vweird.f32 %v3584_v21  ;;  %vm5835_vm2 = vcmp.eq.f32.partialorder %v1586_v51, 8.507059e+37  ;;  %3297 = vmatpush.msrb.mxu0 %v3246_v30  ;;  %vm2344_vm4 = vmor %vm2342_vm12, %vm2343_vm14 }
 0x251   :  { %v1612_v28 = vadd.f32 0.112945676, %v1611_v11  ;;  %v2301_v56 = vadd.f32 %v3580_v26, %v2300_v2  ;;  %v2339_v43 = vsub.f32 1.0, %v2338_v36  ;;  %v2128_v37 = vadd.f32 0.001143296, %v2127_v6  ;;  %vm1584_vm5 = vmor %vm1582_vm13, %vm1583_vm1  ;;  %v7021_v6 = vld [vmem:[#allocation143_spill] sm:$0xff] }
 0x252   :  { %v2168_v63 = vadd.f32 0.001143296, %v2167_v33  ;;  %v3183_v62 = vadd.f32 1.0, %v3484_v15  ;;  %v1579_v38 = vsub.f32 1.0, %v1578_v27  ;;  %v1409_v46 = vmul.f32 %v1408_v31, %v7000_v39  ;;  %v7022_v31 = vld [vmem:[#allocation140_spill] sm:$0xff]  ;;  %v7024_v27 = vld [vmem:[#allocation145_spill] sm:$0xff] }
 0x253   :  { %v1613_v42 = vmul.f32 %v1612_v28, %v6991_v49  ;;  %v2305_v41 = vsel %vm2304_vm3, %v3580_v26, %v2301_v56  ;;  %v2340_v1 = vmul.f32 %v3582_v29, %v2339_v43  ;;  %v2129_v44 = vmul.f32 %v2128_v37, %v7007_v13 }
 0x254   :  { %v2169_v53 = vmul.f32 %v2168_v63, %v7008_v61  ;;  %v3247_v57 = vmul.f32 %v3183_v62, %v7014_v12  ;;  %v2310_v34 = vsel %vm5812_vm10, %v2309_v23, %v2305_v41  ;;  %v1580_v45 = vmul.f32 %v3584_v21, %v1579_v38  ;;  %v7025_v38 = vld [vmem:[#allocation98_spill] sm:$0xff] }
 0x255   :  { %v1614_v58 = vadd.f32 0.4994258, %v1613_v42  ;;  %v2311_v17 = vmul.f32 %v2310_v34, %v7015_v32  ;;  %v2341_v9 = vadd.f32 %v3582_v29, %v2340_v1  ;;  %v2130_v20 = vadd.f32 0.014752088, %v2129_v44  ;;  %v7026_v44 = vld [vmem:[#allocation111_spill] sm:$0xff] }
 0x256   :  { %v2170_v52 = vadd.f32 0.014752088, %v2169_v53  ;;  %3317 = vmatpush.msrb.mxu1 %v3247_v57  ;;  %v1581_v54 = vadd.f32 %v3584_v21, %v1580_v45  ;;  %v1410_v26 = vadd.f32 0.014752088, %v1409_v46  ;;  %v1448_v22 = vadd.f32 0.001143296, %v5799_v8 }
 0x257   :  { %v1615_v47 = vmul.f32 %v1614_v58, %v6991_v49  ;;  %v3497_v3 = vclamps-f32 %v2311_v17, 1.0  ;;  %v2345_v23 = vsel %vm2344_vm4, %v3582_v29, %v2341_v9  ;;  %v2131_v18 = vmul.f32 %v2130_v20, %v7007_v13  ;;  %v7016_v8 = vld [vmem:[#allocation157_spill] sm:$0xff]  ;;  %v7019_v29 = vld [vmem:[#allocation139_spill] sm:$0xff] }
 0x258   :  { %v2171_v4 = vmul.f32 %v2170_v52, %v7008_v61  ;;  %v2350_v24 = vsel %vm5830_vm15, %v2349_v48, %v2345_v23  ;;  %v1585_v16 = vsel %vm1584_vm5, %v3584_v21, %v1581_v54  ;;  %v1411_v49 = vmul.f32 %v1410_v26, %v7000_v39  ;;  %v7020_v48 = vld [vmem:[#allocation107_spill] sm:$0xff]  ;;  %v7027_v57 = vld [vmem:[#allocation85_spill] sm:$0xff] }
 0x259   :  { %v5862_v0 = vadd.f32 1.0, %v1615_v47  ;;  %v3196_v51 = vadd.f32 1.0, %v3497_v3  ;;  %v2351_v55 = vmul.f32 %v2350_v24, %v7016_v8  ;;  %v1590_v14 = vsel %vm5835_vm2, %v5818_v19, %v1585_v16  ;;  %v7023_v19 = vld [vmem:[#allocation125_spill] sm:$0xff]  ;;  %v7029_v8 = vld [vmem:[#allocation120_spill] sm:$0xff] }
 0x25a   :  { %v2132_v7 = vadd.f32 0.112945676, %v2131_v18  ;;  %v5871_v11 = vmul.f32 %v7018_v60, %v7017_v50  ;;  %v5874_v5 = vadd.f32 1.1283791, %v7019_v29  ;;  %v1591_v10 = vmul.f32 %v1590_v14, %v7020_v48 }
 0x25b   :  { %3585 = vrcp.f32 %v5862_v0  ;;  %v2125_v33 = vadd.f32 1.1283791, %v7021_v6  ;;  %v3260_v21 = vmul.f32 %v3196_v51, %v7022_v31  ;;  %v3498_v35 = vclamps-f32 %v2351_v55, 1.0 }
 0x25c   :  { %v2133_v30 = vmul.f32 %v2132_v7, %v7007_v13  ;;  %v509_v2 = vmul.f32 0.5, %v7023_v19  ;;  %v3479_v36 = vclamps-f32 %v1591_v10, 1.0  ;;  %v2172_v59 = vadd.f32 0.112945676, %v2171_v4 }
 0x25d   :  { %v1412_v15 = vadd.f32 0.112945676, %v1411_v49  ;;  %v2164_v40 = vmul.f32 %v7024_v27, %v7008_v61  ;;  %3334 = vmatpush.msrb.mxu2 %v3260_v21  ;;  %v3197_v28 = vadd.f32 1.0, %v3498_v35  ;;  %v1449_v43 = vmul.f32 %v1448_v22, %v7002_v25  ;;  %v7028_v22 = vld [vmem:[#allocation118_spill] sm:$0xff] }
 0x25e   :  { %v2134_v56 = vadd.f32 0.4994258, %v2133_v30  ;;  %v3178_v37 = vadd.f32 1.0, %v3479_v36  ;;  %v2173_v63 = vmul.f32 %v2172_v59, %v7008_v61  ;;  %v1967_v42 = vmul.f32 3.8918573e-05, %v7025_v38 }
 0x25f   :  { %v1413_v62 = vmul.f32 %v1412_v15, %v7000_v39  ;;  %v3261_v46 = vmul.f32 %v3197_v28, %v509_v2  ;;  %v1450_v1 = vadd.f32 0.014752088, %v1449_v43  ;;  %v2007_v53 = vmul.f32 3.8918573e-05, %v7026_v44  ;;  %v7032_v2 = vld [vmem:[#allocation108_spill] sm:$0xff] }
 0x260   :  { %v2135_v41 = vmul.f32 %v2134_v56, %v7007_v13  ;;  %v3242_v34 = vmul.f32 %v3178_v37, %v7027_v57  ;;  %v2174_v45 = vadd.f32 0.4994258, %v2173_v63  ;;  %v1968_v32 = vadd.f32 0.001143296, %v1967_v42  ;;  %v7035_v57 = vld [vmem:[#allocation34_spill] sm:$0xff] }
 0x261   :  { %v3586_v12 = vpop.eup %3585  ;;  %v1414_v58 = vadd.f32 0.4994258, %v1413_v62  ;;  %v2165_v17 = vadd.f32 1.1283791, %v2164_v40  ;;  %3354 = vmatpush.msrb.mxu3 %v3261_v46  ;;  %v1451_v52 = vmul.f32 %v1450_v1, %v7002_v25  ;;  %v2008_v26 = vadd.f32 0.001143296, %v2007_v53 }
 0x262   :  { %v1618_v9 = vmul.f32 %v3586_v12, %v5862_v0  ;;  %v5892_v20 = vadd.f32 1.0, %v2135_v41  ;;  %3298 = vmatpush.msrb.mxu0 %v3242_v34  ;;  %v2175_v13 = vmul.f32 %v2174_v45, %v7008_v61  ;;  %v1969_v47 = vmul.f32 %v1968_v32, %v7025_v38 }
 0x263   :  { %v1415_v54 = vmul.f32 %v1414_v58, %v7000_v39  ;;  %v5899_v3 = vmul.f32 %v2125_v33, %v7028_v22  ;;  %v1626_v18 = vand.u32 2147483647, %v5862_v0  ;;  %v1628_v4 = vand.u32 2147483648, %v5862_v0 }
 0x264   :  { %v1619_v23 = vsub.f32 1.0, %v1618_v9  ;;  %3587 = vrcp.f32 %v5892_v20  ;;  %v5904_v24 = vadd.f32 1.0, %v2175_v13  ;;  %v1452_v61 = vadd.f32 0.112945676, %v1451_v52 }
 0x265   :  { %v5906_v16 = vadd.f32 1.0, %v1415_v54  ;;  %vm1623_vm6 = vweird.f32 %v3586_v12  ;;  %v1970_v39 = vadd.f32 0.014752088, %v1969_v47  ;;  %v2009_v51 = vmul.f32 %v2008_v26, %v7026_v44 }
 0x266   :  { %v1620_v49 = vmul.f32 %v3586_v12, %v1619_v23  ;;  %v5910_v55 = vmul.f32 %v2165_v17, %v7029_v8  ;;  %v2146_v14 = vand.u32 2147483647, %v5892_v20  ;;  %v2148_v7 = vand.u32 2147483648, %v5892_v20 }
 0x267   :  { %3589 = vrcp.f32 %v5904_v24  ;;  %vm1622_vm7 = vweird.f32 %v5862_v0  ;;  %vm1627_vm8 = vcmp.eq.f32.partialorder %v1626_v18, 8.507059e+37  ;;  %v1629_v60 = vor.u32 1.1754944e-38, %v1628_v4 }
 0x268   :  { %v1621_v50 = vadd.f32 %v3586_v12, %v1620_v49  ;;  %3591 = vrcp.f32 %v5906_v16  ;;  %vm1624_vm9 = vmor %vm1622_vm7, %vm1623_vm6  ;;  %vm2142_vm10 = vweird.f32 %v5892_v20  ;;  %v2188_v29 = vand.u32 2147483648, %v5904_v24 }
 0x269   :  { %v1453_v48 = vmul.f32 %v1452_v61, %v7002_v25  ;;  %v2186_v33 = vand.u32 2147483647, %v5904_v24  ;;  %v1971_v31 = vmul.f32 %v1970_v39, %v7025_v38  ;;  %v2010_v21 = vadd.f32 0.014752088, %v2009_v51 }
 0x26a   :  { %v3588_v10 = vpop.eup %3587  ;;  %v1625_v6 = vsel %vm1624_vm9, %v3586_v12, %v1621_v50  ;;  %vm5923_vm11 = vcmp.eq.f32.partialorder %v2146_v14, 8.507059e+37  ;;  %v2149_v19 = vor.u32 1.1754944e-38, %v2148_v7  ;;  %vm2182_vm12 = vweird.f32 %v5904_v24  ;;  %v7039_v14 = vld [vmem:[#allocation38_spill] sm:$0xff] }
 0x26b   :  { %v1630_v35 = vsel %vm1627_vm8, %v1629_v60, %v1625_v6  ;;  %v2138_v0 = vmul.f32 %v3588_v10, %v5892_v20  ;;  %v1426_v59 = vand.u32 2147483647, %v5906_v16  ;;  %v1454_v15 = vadd.f32 0.4994258, %v1453_v48 }
 0x26c   :  { %v1631_v36 = vmul.f32 %v1630_v35, %v7032_v2  ;;  %v1972_v27 = vadd.f32 0.112945676, %v1971_v31  ;;  %v2189_v56 = vor.u32 1.1754944e-38, %v2188_v29  ;;  %vm1422_vm13 = vweird.f32 %v5906_v16  ;;  %v7040_v35 = vld [vmem:[#allocation99_spill] sm:$0xff] }
 0x26d   :  { %v3590_v40 = vpop.eup %3589  ;;  %v2139_v28 = vsub.f32 1.0, %v2138_v0  ;;  %v1428_v43 = vand.u32 2147483648, %v5906_v16  ;;  %v2011_v37 = vmul.f32 %v2010_v21, %v7026_v44  ;;  %vm2143_vm14 = vweird.f32 %v3588_v10 }
 0x26e   :  { %v3592_v63 = vpop.eup %3591  ;;  %v3480_v62 = vclamps-f32 %v1631_v36, 1.0  ;;  %v2178_v42 = vmul.f32 %v3590_v40, %v5904_v24  ;;  %vm5934_vm15 = vcmp.eq.f32.partialorder %v2186_v33, 8.507059e+37  ;;  %v1455_v41 = vmul.f32 %v1454_v15, %v7002_v25  ;;  %v7038_v25 = vld [vmem:[#allocation86_spill] sm:$0xff]  ;;  %vm2144_vm2 = vmor %vm2142_vm10, %vm2143_vm14 }
 0x26f   :  { %v2140_v1 = vmul.f32 %v3588_v10, %v2139_v28  ;;  %v1418_v53 = vmul.f32 %v3592_v63, %v5906_v16  ;;  %v1973_v12 = vmul.f32 %v1972_v27, %v7025_v38  ;;  %v1247_v34 = vmul.f32 3.8918573e-05, %v7035_v57  ;;  %v7041_v15 = vld [vmem:[#allocation134_spill] sm:$0xff] }
 0x270   :  { %v3179_v45 = vadd.f32 1.0, %v3480_v62  ;;  %v2179_v58 = vsub.f32 1.0, %v2178_v42  ;;  %v5942_v32 = vadd.f32 1.0, %v1455_v41  ;;  %v2012_v17 = vadd.f32 0.112945676, %v2011_v37 }
 0x271   :  { %v2141_v9 = vadd.f32 %v3588_v10, %v2140_v1  ;;  %v1419_v52 = vsub.f32 1.0, %v1418_v53  ;;  %vm5944_vm1 = vcmp.eq.f32.partialorder %v1426_v59, 8.507059e+37  ;;  %v1974_v54 = vadd.f32 0.4994258, %v1973_v12 }
 0x272   :  { %v3243_v47 = vmul.f32 %v3179_v45, %v7038_v25  ;;  %v2180_v26 = vmul.f32 %v3590_v40, %v2179_v58  ;;  %vm2183_vm3 = vweird.f32 %v3590_v40  ;;  %3593 = vrcp.f32 %v5942_v32 }
 0x273   :  { %v2145_v22 = vsel %vm2144_vm2, %v3588_v10, %v2141_v9  ;;  %v1420_v23 = vmul.f32 %v3592_v63, %v1419_v52  ;;  %vm1423_vm4 = vweird.f32 %v3592_v63  ;;  %v1248_v18 = vadd.f32 0.001143296, %v1247_v34  ;;  %vm2184_vm5 = vmor %vm2182_vm12, %vm2183_vm3  ;;  %v7045_v34 = vld [vmem:[#allocation78_spill] sm:$0xff] }
 0x274   :  { %3318 = vmatpush.msrb.mxu1 %v3243_v47  ;;  %v2150_v4 = vsel %vm5923_vm11, %v2149_v19, %v2145_v22  ;;  %v2181_v61 = vadd.f32 %v3590_v40, %v2180_v26  ;;  %v1975_v49 = vmul.f32 %v1974_v54, %v7025_v38  ;;  %v2013_v39 = vmul.f32 %v2012_v17, %v7026_v44  ;;  %vm1424_vm6 = vmor %vm1422_vm13, %vm1423_vm4  ;;  %v7048_v22 = vld [vmem:[#allocation93_spill] sm:$0xff] }
 0x275   :  { %v2151_v20 = vmul.f32 %v2150_v4, %v5899_v3  ;;  %v1421_v51 = vadd.f32 %v3592_v63, %v1420_v23  ;;  %v1429_v8 = vor.u32 1.1754944e-38, %v1428_v43  ;;  %v1287_v7 = vmul.f32 3.8918573e-05, %v7039_v14 }
 0x276   :  { %v2185_v50 = vsel %vm2184_vm5, %v3590_v40, %v2181_v61  ;;  %v1466_v60 = vand.u32 2147483647, %v5942_v32  ;;  %v5964_v29 = vadd.f32 1.0, %v1975_v49  ;;  %v2014_v38 = vadd.f32 0.4994258, %v2013_v39 }
 0x277   :  { %v3493_v48 = vclamps-f32 %v2151_v20, 1.0  ;;  %v2190_v3 = vsel %vm5934_vm15, %v2189_v56, %v2185_v50  ;;  %v1425_v10 = vsel %vm1424_vm6, %v3592_v63, %v1421_v51  ;;  %v1249_v24 = vmul.f32 %v1248_v18, %v7035_v57  ;;  %v7049_v18 = vld [vmem:[#allocation94_spill] sm:$0xff]  ;;  %v7050_v20 = vld [vmem:[#allocation100_spill] sm:$0xff] }
 0x278   :  { %v3594_v6 = vpop.eup %3593  ;;  %v2191_v33 = vmul.f32 %v2190_v3, %v5910_v55  ;;  %v1430_v31 = vsel %vm5944_vm1, %v1429_v8, %v1425_v10  ;;  %v1468_v16 = vand.u32 2147483648, %v5942_v32  ;;  %3595 = vrcp.f32 %v5964_v29  ;;  %v7051_v3 = vld [vmem:[#allocation28_spill] sm:$0xff] }
 0x279   :  { %v3192_v21 = vadd.f32 1.0, %v3493_v48  ;;  %v1431_v0 = vmul.f32 %v1430_v31, %v7040_v35  ;;  %v1458_v30 = vmul.f32 %v3594_v6, %v5942_v32  ;;  %v1288_v19 = vadd.f32 0.001143296, %v1287_v7 }
 0x27a   :  { %v3494_v2 = vclamps-f32 %v2191_v33, 1.0  ;;  %v1986_v36 = vand.u32 2147483647, %v5964_v29  ;;  %v1988_v59 = vand.u32 2147483648, %v5964_v29  ;;  %v2015_v55 = vmul.f32 %v2014_v38, %v7026_v44  ;;  %v7042_v44 = vld [vmem:[#allocation135_spill] sm:$0xff] }
 0x27b   :  { %v3256_v27 = vmul.f32 %v3192_v21, %v7041_v15  ;;  %v3475_v40 = vclamps-f32 %v1431_v0, 1.0  ;;  %v1459_v28 = vsub.f32 1.0, %v1458_v30  ;;  %v1250_v56 = vadd.f32 0.014752088, %v1249_v24  ;;  %v7052_v15 = vld [vmem:[#allocation79_spill] sm:$0xff] }
 0x27c   :  { %v3193_v43 = vadd.f32 1.0, %v3494_v2  ;;  %vm1462_vm7 = vweird.f32 %v5942_v32  ;;  %vm1463_vm8 = vweird.f32 %v3594_v6  ;;  %v5981_v37 = vadd.f32 1.0, %v2015_v55 }
 0x27d   :  { %3335 = vmatpush.msrb.mxu2 %v3256_v27  ;;  %v3174_v63 = vadd.f32 1.0, %v3475_v40  ;;  %v1460_v62 = vmul.f32 %v3594_v6, %v1459_v28  ;;  %v1251_v42 = vmul.f32 %v1250_v56, %v7035_v57  ;;  %v1289_v46 = vmul.f32 %v1288_v19, %v7039_v14  ;;  %vm1464_vm11 = vmor %vm1462_vm7, %vm1463_vm8  ;;  %v7053_v56 = vld [vmem:[#allocation127_spill] sm:$0xff] }
 0x27e   :  { %v3596_v41 = vpop.eup %3595  ;;  %v3257_v1 = vmul.f32 %v3193_v43, %v7042_v44  ;;  %vm5986_vm9 = vcmp.eq.f32.partialorder %v1466_v60, 8.507059e+37  ;;  %v1469_v12 = vor.u32 1.1754944e-38, %v1468_v16  ;;  %3597 = vrcp.f32 %v5981_v37 }
 0x27f   :  { %v3238_v45 = vmul.f32 %v3174_v63, %v7045_v34  ;;  %v1461_v58 = vadd.f32 %v3594_v6, %v1460_v62  ;;  %v1978_v17 = vmul.f32 %v3596_v41, %v5964_v29  ;;  %vm5993_vm10 = vcmp.eq.f32.partialorder %v1986_v36, 8.507059e+37  ;;  %v7054_v63 = vld [vmem:[#allocation102_spill] sm:$0xff] }
 0x280   :  { %v1989_v52 = vor.u32 1.1754944e-38, %v1988_v59  ;;  %3355 = vmatpush.msrb.mxu3 %v3257_v1  ;;  %vm1983_vm12 = vweird.f32 %v3596_v41  ;;  %v2026_v13 = vand.u32 2147483647, %v5981_v37  ;;  %v1252_v54 = vadd.f32 0.112945676, %v1251_v42 }
 0x281   :  { %v1290_v25 = vadd.f32 0.014752088, %v1289_v46  ;;  %3299 = vmatpush.msrb.mxu0 %v3238_v45  ;;  %v1465_v47 = vsel %vm1464_vm11, %v3594_v6, %v1461_v58  ;;  %v1979_v26 = vsub.f32 1.0, %v1978_v17  ;;  %v1807_v23 = vmul.f32 3.8918573e-05, %v7048_v22  ;;  %v7055_v45 = vld [vmem:[#allocation90_spill] sm:$0xff] }
 0x282   :  { %v1847_v4 = vmul.f32 3.8918573e-05, %v7049_v18  ;;  %v1470_v61 = vsel %vm5986_vm9, %v1469_v12, %v1465_v47  ;;  %v2028_v49 = vand.u32 2147483648, %v5981_v37  ;;  %v1253_v32 = vmul.f32 %v1252_v54, %v7035_v57  ;;  %v7056_v58 = vld [vmem:[#allocation126_spill] sm:$0xff]  ;;  %v7057_v54 = vld [vmem:[#allocation115_spill] sm:$0xff]  ;;  %v7058_v47 = vld [vmem:[#allocation29_spill] sm:$0xff] }
 0x283   :  { %v1291_v39 = vmul.f32 %v1290_v25, %v7039_v14  ;;  %v1471_v51 = vmul.f32 %v1470_v61, %v7050_v20  ;;  %v1980_v8 = vmul.f32 %v3596_v41, %v1979_v26  ;;  %v1808_v7 = vadd.f32 0.001143296, %v1807_v23 }
 0x284   :  { %v1848_v50 = vadd.f32 0.001143296, %v1847_v4  ;;  %v3598_v60 = vpop.eup %3597  ;;  %vm1982_vm13 = vweird.f32 %v5964_v29  ;;  %v1254_v38 = vadd.f32 0.4994258, %v1253_v32  ;;  %v1087_v10 = vmul.f32 3.8918573e-05, %v7051_v3 }
 0x285   :  { %v1292_v48 = vadd.f32 0.112945676, %v1291_v39  ;;  %v3476_v24 = vclamps-f32 %v1471_v51, 1.0  ;;  %v1981_v6 = vadd.f32 %v3596_v41, %v1980_v8  ;;  %v2018_v33 = vmul.f32 %v3598_v60, %v5981_v37  ;;  %vm1984_vm15 = vmor %vm1982_vm13, %vm1983_vm12  ;;  %v7059_v4 = vld [vmem:[#allocation92_spill] sm:$0xff] }
 0x286   :  { %vm2023_vm14 = vweird.f32 %v3598_v60  ;;  %v1255_v31 = vmul.f32 %v1254_v38, %v7035_v57  ;;  %v1809_v21 = vmul.f32 %v1808_v7, %v7048_v22  ;;  %v1849_v35 = vmul.f32 %v1848_v50, %v7049_v18 }
 0x287   :  { %v1293_v16 = vmul.f32 %v1292_v48, %v7039_v14  ;;  %v3175_v29 = vadd.f32 1.0, %v3476_v24  ;;  %v1985_v0 = vsel %vm1984_vm15, %v3596_v41, %v1981_v6  ;;  %v2019_v30 = vsub.f32 1.0, %v2018_v33 }
 0x288   :  { %v1088_v19 = vadd.f32 0.001143296, %v1087_v10  ;;  %v1990_v2 = vsel %vm5993_vm10, %v1989_v52, %v1985_v0  ;;  %v6019_v36 = vadd.f32 1.0, %v1255_v31  ;;  %v1810_v55 = vadd.f32 0.014752088, %v1809_v21 }
 0x289   :  { %v1294_v59 = vadd.f32 0.4994258, %v1293_v16  ;;  %v3239_v27 = vmul.f32 %v3175_v29, %v7052_v15  ;;  %v1991_v57 = vmul.f32 %v1990_v2, %v5871_v11  ;;  %v2020_v40 = vmul.f32 %v3598_v60, %v2019_v30 }
 0x28a   :  { %v1850_v28 = vadd.f32 0.014752088, %v1849_v35  ;;  %v1845_v43 = vadd.f32 1.1283791, %v7053_v56  ;;  %v2006_v62 = vmul.f32 %v5874_v5, %v7054_v63  ;;  %vm2022_vm1 = vweird.f32 %v5981_v37  ;;  %v7060_v35 = vld [vmem:[#allocation117_spill] sm:$0xff] }
 0x28b   :  { %3599 = vrcp.f32 %v6019_v36  ;;  %3319 = vmatpush.msrb.mxu1 %v3239_v27  ;;  %v3489_v42 = vclamps-f32 %v1991_v57, 1.0  ;;  %v2021_v46 = vadd.f32 %v3598_v60, %v2020_v40  ;;  %v1295_v41 = vmul.f32 %v1294_v59, %v7039_v14  ;;  %vm2024_vm2 = vmor %vm2022_vm1, %vm2023_vm14 }
 0x28c   :  { %v1811_v44 = vmul.f32 %v1810_v55, %v7048_v22  ;;  %vm2027_vm3 = vcmp.eq.f32.partialorder %v2026_v13, 8.507059e+37  ;;  %v2029_v11 = vor.u32 1.1754944e-38, %v2028_v49  ;;  %v1851_v1 = vmul.f32 %v1850_v28, %v7049_v18  ;;  %v7063_v28 = vld [vmem:[#allocation73_spill] sm:$0xff] }
 0x28d   :  { %v1089_v53 = vmul.f32 %v1088_v19, %v7051_v3  ;;  %v3188_v5 = vadd.f32 1.0, %v3489_v42  ;;  %v2025_v12 = vsel %vm2024_vm2, %v3598_v60, %v2021_v46  ;;  %v6033_v37 = vadd.f32 1.0, %v1295_v41 }
 0x28e   :  { %v1812_v34 = vadd.f32 0.112945676, %v1811_v44  ;;  %v6037_v17 = vmul.f32 %v7056_v58, %v7055_v45  ;;  %v2030_v14 = vsel %vm2027_vm3, %v2029_v11, %v2025_v12  ;;  %v1852_v9 = vadd.f32 0.112945676, %v1851_v1  ;;  %v7067_v44 = vld [vmem:[#allocation77_spill] sm:$0xff] }
 0x28f   :  { %v1090_v52 = vadd.f32 0.014752088, %v1089_v53  ;;  %v3252_v25 = vmul.f32 %v3188_v5, %v7057_v54  ;;  %v2031_v13 = vmul.f32 %v2030_v14, %v2006_v62  ;;  %3601 = vrcp.f32 %v6033_v37  ;;  %v7068_v5 = vld [vmem:[#allocation10_spill] sm:$0xff] }
 0x290   :  { %v1127_v26 = vmul.f32 3.8918573e-05, %v7058_v47  ;;  %v6043_v61 = vmul.f32 %v1845_v43, %v7059_v4  ;;  %v1266_v49 = vand.u32 2147483647, %v6019_v36  ;;  %v1813_v32 = vmul.f32 %v1812_v34, %v7048_v22 }
 0x291   :  { %v3600_v23 = vpop.eup %3599  ;;  %v1853_v39 = vmul.f32 %v1852_v9, %v7049_v18  ;;  %3336 = vmatpush.msrb.mxu2 %v3252_v25  ;;  %v3490_v20 = vclamps-f32 %v2031_v13, 1.0  ;;  %v1268_v8 = vand.u32 2147483648, %v6019_v36  ;;  %v1091_v7 = vmul.f32 %v1090_v52, %v7051_v3 }
 0x292   :  { %v1258_v51 = vmul.f32 %v3600_v23, %v6019_v36  ;;  %vm1262_vm4 = vweird.f32 %v6019_v36  ;;  %v1306_v50 = vand.u32 2147483647, %v6033_v37  ;;  %v1814_v60 = vadd.f32 0.4994258, %v1813_v32  ;;  %v7066_v36 = vld [vmem:[#allocation9_spill] sm:$0xff] }
 0x293   :  { %v1854_v38 = vadd.f32 0.4994258, %v1853_v39  ;;  %v3189_v48 = vadd.f32 1.0, %v3490_v20  ;;  %v1092_v24 = vadd.f32 0.112945676, %v1091_v7  ;;  %vm1263_vm5 = vweird.f32 %v3600_v23 }
 0x294   :  { %v1259_v10 = vsub.f32 1.0, %v1258_v51  ;;  %v1128_v6 = vadd.f32 0.001143296, %v1127_v26  ;;  %v1308_v33 = vand.u32 2147483648, %v6033_v37  ;;  %v1815_v31 = vmul.f32 %v1814_v60, %v7048_v22  ;;  %vm1264_vm8 = vmor %vm1262_vm4, %vm1263_vm5 }
 0x295   :  { %v1855_v16 = vmul.f32 %v1854_v38, %v7049_v18  ;;  %v3602_v21 = vpop.eup %3601  ;;  %v3253_v29 = vmul.f32 %v3189_v48, %v7060_v35  ;;  %v1093_v30 = vmul.f32 %v1092_v24, %v7051_v3  ;;  %vm6059_vm6 = vcmp.eq.f32.partialorder %v1266_v49, 8.507059e+37  ;;  %v7073_v38 = vld [vmem:[#allocation58_spill] sm:$0xff]  ;;  %v7081_v24 = vld [vmem:[#allocation109_spill] sm:$0xff] }
 0x296   :  { %v1260_v0 = vmul.f32 %v3600_v23, %v1259_v10  ;;  %v1129_v19 = vmul.f32 %v1128_v6, %v7058_v47  ;;  %v1298_v59 = vmul.f32 %v3602_v21, %v6033_v37  ;;  %v6064_v55 = vadd.f32 1.0, %v1815_v31 }
 0x297   :  { %v6066_v15 = vadd.f32 1.0, %v1855_v16  ;;  %3356 = vmatpush.msrb.mxu3 %v3253_v29  ;;  %v1269_v18 = vor.u32 1.1754944e-38, %v1268_v8  ;;  %vm1302_vm7 = vweird.f32 %v6033_v37  ;;  %v1094_v27 = vadd.f32 0.4994258, %v1093_v30  ;;  %v7072_v8 = vld [vmem:[#allocation81_spill] sm:$0xff] }
 0x298   :  { %v1261_v22 = vadd.f32 %v3600_v23, %v1260_v0  ;;  %v1299_v57 = vsub.f32 1.0, %v1298_v59  ;;  %3603 = vrcp.f32 %v6064_v55  ;;  %v1130_v40 = vadd.f32 0.014752088, %v1129_v19 }
 0x299   :  { %v1647_v56 = vmul.f32 3.8918573e-05, %v7063_v28  ;;  %vm6074_vm9 = vcmp.eq.f32.partialorder %v1306_v50, 8.507059e+37  ;;  %v1309_v62 = vor.u32 1.1754944e-38, %v1308_v33  ;;  %3605 = vrcp.f32 %v6066_v15 }
 0x29a   :  { %v1265_v43 = vsel %vm1264_vm8, %v3600_v23, %v1261_v22  ;;  %v1300_v46 = vmul.f32 %v3602_v21, %v1299_v57  ;;  %vm1303_vm10 = vweird.f32 %v3602_v21  ;;  %v927_v41 = vmul.f32 3.8918573e-05, %v7066_v36  ;;  %v7069_v23 = vld [vmem:[#allocation76_spill] sm:$0xff] }
 0x29b   :  { %v1270_v42 = vsel %vm6059_vm6, %v1269_v18, %v1265_v43  ;;  %v1826_v1 = vand.u32 2147483647, %v6064_v55  ;;  %v1095_v53 = vmul.f32 %v1094_v27, %v7051_v3  ;;  %v6086_v12 = vmul.f32 3.8918573e-05, %v7068_v5  ;;  %vm1304_vm11 = vmor %vm1302_vm7, %vm1303_vm10 }
 0x29c   :  { %v1271_v11 = vmul.f32 %v1270_v42, %v7067_v44  ;;  %v1301_v34 = vadd.f32 %v3602_v21, %v1300_v46  ;;  %v1828_v45 = vand.u32 2147483648, %v6064_v55  ;;  %v1131_v58 = vmul.f32 %v1130_v40, %v7058_v47  ;;  %v7076_v40 = vld [vmem:[#allocation59_spill] sm:$0xff] }
 0x29d   :  { %v1648_v14 = vadd.f32 0.001143296, %v1647_v56  ;;  %vm1822_vm12 = vweird.f32 %v6064_v55  ;;  %v1866_v52 = vand.u32 2147483647, %v6066_v15  ;;  %v1868_v54 = vand.u32 2147483648, %v6066_v15 }
 0x29e   :  { %v3471_v9 = vclamps-f32 %v1271_v11, 1.0  ;;  %v6095_v3 = vadd.f32 1.0, %v1095_v53  ;;  %v3604_v25 = vpop.eup %3603  ;;  %v1305_v13 = vsel %vm1304_vm11, %v3602_v21, %v1301_v34  ;;  %vm1862_vm13 = vweird.f32 %v6066_v15 }
 0x29f   :  { %v1132_v26 = vadd.f32 0.112945676, %v1131_v58  ;;  %v1687_v4 = vmul.f32 3.8918573e-05, %v7069_v23  ;;  %v3606_v49 = vpop.eup %3605  ;;  %v1310_v37 = vsel %vm6074_vm9, %v1309_v62, %v1305_v13  ;;  %v1818_v39 = vmul.f32 %v3604_v25, %v6064_v55 }
 0x2a0   :  { %v3170_v32 = vadd.f32 1.0, %v3471_v9  ;;  %vm6102_vm14 = vcmp.eq.f32.partialorder %v1826_v1, 8.507059e+37  ;;  %v1649_v51 = vmul.f32 %v1648_v14, %v7063_v28  ;;  %v1311_v7 = vmul.f32 %v1310_v37, %v7072_v8  ;;  %v7079_v8 = vld [vmem:[#allocation106_spill] sm:$0xff] }
 0x2a1   :  { %v1829_v50 = vor.u32 1.1754944e-38, %v1828_v45  ;;  %v1858_v60 = vmul.f32 %v3606_v49, %v6066_v15  ;;  %3607 = vrcp.f32 %v6095_v3  ;;  %v1819_v10 = vsub.f32 1.0, %v1818_v39 }
 0x2a2   :  { %v3234_v48 = vmul.f32 %v3170_v32, %v7073_v38  ;;  %vm6111_vm15 = vcmp.eq.f32.partialorder %v1866_v52, 8.507059e+37  ;;  %v1869_v6 = vor.u32 1.1754944e-38, %v1868_v54  ;;  %v3472_v33 = vclamps-f32 %v1311_v7, 1.0  ;;  %v7080_v38 = vld [vmem:[#allocation65_spill] sm:$0xff] }
 0x2a3   :  { %v1859_v31 = vsub.f32 1.0, %v1858_v60  ;;  %v1133_v16 = vmul.f32 %v1132_v26, %v7058_v47  ;;  %v928_v21 = vadd.f32 0.001143296, %v927_v41  ;;  %v1820_v35 = vmul.f32 %v3604_v25, %v1819_v10 }
 0x2a4   :  { %3300 = vmatpush.msrb.mxu0 %v3234_v48  ;;  %vm1823_vm1 = vweird.f32 %v3604_v25  ;;  %v1650_v29 = vadd.f32 0.014752088, %v1649_v51  ;;  %v1688_v0 = vadd.f32 0.001143296, %v1687_v4  ;;  %v3171_v30 = vadd.f32 1.0, %v3472_v33 }
 0x2a5   :  { %v1860_v19 = vmul.f32 %v3606_v49, %v1859_v31  ;;  %vm1863_vm2 = vweird.f32 %v3606_v49  ;;  %v1134_v2 = vadd.f32 0.4994258, %v1133_v16  ;;  %v1821_v59 = vadd.f32 %v3604_v25, %v1820_v35  ;;  %vm1824_vm4 = vmor %vm1822_vm12, %vm1823_vm1  ;;  %v7082_v31 = vld [vmem:[#allocation68_spill] sm:$0xff] }
 0x2a6   :  { %vm1102_vm3 = vweird.f32 %v6095_v3  ;;  %v1106_v22 = vand.u32 2147483647, %v6095_v3  ;;  %v1651_v18 = vmul.f32 %v1650_v29, %v7063_v28  ;;  %v1689_v27 = vmul.f32 %v1688_v0, %v7069_v23  ;;  %vm1864_vm5 = vmor %vm1862_vm13, %vm1863_vm2  ;;  %v7083_v16 = vld [vmem:[#allocation112_spill] sm:$0xff] }
 0x2a7   :  { %v3608_v57 = vpop.eup %3607  ;;  %v3235_v56 = vmul.f32 %v3171_v30, %v7076_v40  ;;  %v1861_v43 = vadd.f32 %v3606_v49, %v1860_v19  ;;  %v1108_v63 = vand.u32 2147483648, %v6095_v3  ;;  %v1135_v62 = vmul.f32 %v1134_v2, %v7058_v47  ;;  %v7084_v35 = vld [vmem:[#allocation72_spill] sm:$0xff]  ;;  %v7085_v30 = vld [vmem:[#allocation71_spill] sm:$0xff]  ;;  %v7086_v19 = vld [vmem:[#allocation114_spill] sm:$0xff] }
 0x2a8   :  { %v1825_v42 = vsel %vm1824_vm4, %v3604_v25, %v1821_v59  ;;  %v1098_v46 = vmul.f32 %v3608_v57, %v6095_v3  ;;  %v1652_v41 = vadd.f32 0.112945676, %v1651_v18  ;;  %v929_v44 = vmul.f32 %v928_v21, %v7066_v36 }
 0x2a9   :  { %3320 = vmatpush.msrb.mxu1 %v3235_v56  ;;  %v1830_v11 = vsel %vm6102_vm14, %v1829_v50, %v1825_v42  ;;  %v1865_v55 = vsel %vm1864_vm5, %v3606_v49, %v1861_v43  ;;  %v6131_v1 = vadd.f32 1.0, %v1135_v62  ;;  %v1690_v53 = vadd.f32 0.014752088, %v1689_v27 }
 0x2aa   :  { %v1831_v34 = vmul.f32 %v1830_v11, %v6037_v17  ;;  %v1870_v47 = vsel %vm6111_vm15, %v1869_v6, %v1865_v55  ;;  %v1099_v15 = vsub.f32 1.0, %v1098_v46  ;;  %v1653_v45 = vmul.f32 %v1652_v41, %v7063_v28 }
 0x2ab   :  { %v1871_v58 = vmul.f32 %v1870_v47, %v6043_v61  ;;  %vm6138_vm6 = vcmp.eq.f32.partialorder %v1106_v22, 8.507059e+37  ;;  %3609 = vrcp.f32 %v6131_v1  ;;  %v968_v9 = vadd.f32 0.001143296, %v6086_v12  ;;  %v7089_v47 = vld [vmem:[#allocation53_spill] sm:$0xff] }
 0x2ac   :  { %v3485_v52 = vclamps-f32 %v1831_v34, 1.0  ;;  %v1100_v54 = vmul.f32 %v3608_v57, %v1099_v15  ;;  %vm1103_vm7 = vweird.f32 %v3608_v57  ;;  %v1654_v17 = vadd.f32 0.4994258, %v1653_v45 }
 0x2ad   :  { %v3486_v25 = vclamps-f32 %v1871_v58, 1.0  ;;  %v1109_v13 = vor.u32 1.1754944e-38, %v1108_v63  ;;  %v1691_v26 = vmul.f32 %v1690_v53, %v7069_v23  ;;  %v930_v4 = vadd.f32 0.014752088, %v929_v44  ;;  %vm1104_vm8 = vmor %vm1102_vm3, %vm1103_vm7 }
 0x2ae   :  { %v3184_v49 = vadd.f32 1.0, %v3485_v52  ;;  %v1101_v32 = vadd.f32 %v3608_v57, %v1100_v54  ;;  %v1146_v61 = vand.u32 2147483647, %v6131_v1  ;;  %v1655_v37 = vmul.f32 %v1654_v17, %v7063_v28  ;;  %v7090_v52 = vld [vmem:[#allocation69_spill] sm:$0xff] }
 0x2af   :  { %v3185_v39 = vadd.f32 1.0, %v3486_v25  ;;  %v1692_v12 = vadd.f32 0.112945676, %v1691_v26  ;;  %v931_v20 = vmul.f32 %v930_v4, %v7066_v36  ;;  %v969_v51 = vmul.f32 %v968_v9, %v7068_v5 }
 0x2b0   :  { %v3248_v7 = vmul.f32 %v3184_v49, %v7079_v8  ;;  %v1105_v50 = vsel %vm1104_vm8, %v3608_v57, %v1101_v32  ;;  %v6152_v60 = vadd.f32 1.0, %v1655_v37  ;;  %v1487_v48 = vmul.f32 3.8918573e-05, %v7080_v38 }
 0x2b1   :  { %v3610_v10 = vpop.eup %3609  ;;  %v3249_v6 = vmul.f32 %v3185_v39, %v7081_v24  ;;  %v1110_v28 = vsel %vm6138_vm6, %v1109_v13, %v1105_v50  ;;  %v1693_v3 = vmul.f32 %v1692_v12, %v7069_v23  ;;  %v932_v33 = vadd.f32 0.112945676, %v931_v20 }
 0x2b2   :  { %v6161_v21 = vmul.f32 %v7083_v16, %v7082_v31  ;;  %3337 = vmatpush.msrb.mxu2 %v3248_v7  ;;  %v1111_v29 = vmul.f32 %v1110_v28, %v7084_v35  ;;  %v1138_v0 = vmul.f32 %v3610_v10, %v6131_v1  ;;  %3611 = vrcp.f32 %v6152_v60  ;;  %v7104_v31 = vld [vmem:[#allocation88_spill] sm:$0xff] }
 0x2b3   :  { %v6168_v2 = vmul.f32 %v7086_v19, %v7085_v30  ;;  %3357 = vmatpush.msrb.mxu3 %v3249_v6  ;;  %vm1142_vm9 = vweird.f32 %v6131_v1  ;;  %v1148_v59 = vand.u32 2147483648, %v6131_v1  ;;  %v1694_v22 = vadd.f32 0.4994258, %v1693_v3 }
 0x2b4   :  { %v3467_v18 = vclamps-f32 %v1111_v29, 1.0  ;;  %v1139_v27 = vsub.f32 1.0, %v1138_v0  ;;  %v933_v57 = vmul.f32 %v932_v33, %v7066_v36  ;;  %v970_v40 = vadd.f32 0.014752088, %v969_v51 }
 0x2b5   :  { %vm1143_vm10 = vweird.f32 %v3610_v10  ;;  %vm6173_vm11 = vcmp.eq.f32.partialorder %v1146_v61, 8.507059e+37  ;;  %v1695_v43 = vmul.f32 %v1694_v22, %v7069_v23  ;;  %v1488_v63 = vadd.f32 0.001143296, %v1487_v48  ;;  %v7092_v61 = vld [vmem:[#allocation75_spill] sm:$0xff]  ;;  %v7097_v22 = vld [vmem:[#allocation54_spill] sm:$0xff] }
 0x2b6   :  { %v3166_v62 = vadd.f32 1.0, %v3467_v18  ;;  %v1140_v42 = vmul.f32 %v3610_v10, %v1139_v27  ;;  %v934_v46 = vadd.f32 0.4994258, %v933_v57  ;;  %v971_v41 = vmul.f32 %v970_v40, %v7068_v5  ;;  %vm1144_vm12 = vmor %vm1142_vm9, %vm1143_vm10 }
 0x2b7   :  { %v1149_v44 = vor.u32 1.1754944e-38, %v1148_v59  ;;  %v1666_v11 = vand.u32 2147483647, %v6152_v60  ;;  %v6180_v55 = vadd.f32 1.0, %v1695_v43  ;;  %v1489_v53 = vmul.f32 %v1488_v63, %v7080_v38 }
 0x2b8   :  { %v3612_v34 = vpop.eup %3611  ;;  %v3230_v15 = vmul.f32 %v3166_v62, %v7089_v47  ;;  %v1141_v45 = vadd.f32 %v3610_v10, %v1140_v42  ;;  %v935_v58 = vmul.f32 %v934_v46, %v7066_v36  ;;  %v972_v23 = vadd.f32 0.112945676, %v971_v41  ;;  %v7091_v36 = vld [vmem:[#allocation2_spill] sm:$0xff] }
 0x2b9   :  { %v1658_v14 = vmul.f32 %v3612_v34, %v6152_v60  ;;  %v1668_v9 = vand.u32 2147483648, %v6152_v60  ;;  %3613 = vrcp.f32 %v6180_v55  ;;  %v1527_v54 = vmul.f32 3.8918573e-05, %v7090_v52 }
 0x2ba   :  { %3301 = vmatpush.msrb.mxu0 %v3230_v15  ;;  %v1145_v17 = vsel %vm1144_vm12, %v3610_v10, %v1141_v45  ;;  %v1708_v25 = vand.u32 2147483648, %v6180_v55  ;;  %v6193_v13 = vadd.f32 1.0, %v935_v58  ;;  %v767_v26 = vmul.f32 3.8918573e-05, %v7091_v36 }
 0x2bb   :  { %v1150_v1 = vsel %vm6173_vm11, %v1149_v44, %v1145_v17  ;;  %v1659_v4 = vsub.f32 1.0, %v1658_v14  ;;  %v973_v49 = vmul.f32 %v972_v23, %v7068_v5  ;;  %v1490_v32 = vadd.f32 0.014752088, %v1489_v53  ;;  %v7098_v14 = vld [vmem:[#allocation3_spill] sm:$0xff] }
 0x2bc   :  { %v1151_v37 = vmul.f32 %v1150_v1, %v7092_v61  ;;  %vm1662_vm13 = vweird.f32 %v6152_v60  ;;  %v1706_v39 = vand.u32 2147483647, %v6180_v55  ;;  %3615 = vrcp.f32 %v6193_v13 }
 0x2bd   :  { %v1660_v12 = vmul.f32 %v3612_v34, %v1659_v4  ;;  %vm1663_vm14 = vweird.f32 %v3612_v34  ;;  %vm6203_vm15 = vcmp.eq.f32.partialorder %v1666_v11, 8.507059e+37  ;;  %v1669_v51 = vor.u32 1.1754944e-38, %v1668_v9 }
 0x2be   :  { %v3468_v8 = vclamps-f32 %v1151_v37, 1.0  ;;  %v974_v7 = vadd.f32 0.4994258, %v973_v49  ;;  %v1491_v50 = vmul.f32 %v1490_v32, %v7080_v38  ;;  %v1528_v48 = vadd.f32 0.001143296, %v1527_v54  ;;  %vm1664_vm2 = vmor %vm1662_vm13, %vm1663_vm14  ;;  %v7099_v54 = vld [vmem:[#allocation87_spill] sm:$0xff] }
 0x2bf   :  { %v3614_v10 = vpop.eup %3613  ;;  %v1661_v24 = vadd.f32 %v3612_v34, %v1660_v12  ;;  %vm1702_vm1 = vweird.f32 %v6180_v55  ;;  %v1709_v6 = vor.u32 1.1754944e-38, %v1708_v25  ;;  %v768_v28 = vadd.f32 0.001143296, %v767_v26 }
 0x2c0   :  { %v3167_v3 = vadd.f32 1.0, %v3468_v8  ;;  %v1698_v33 = vmul.f32 %v3614_v10, %v6180_v55  ;;  %vm6212_vm3 = vcmp.eq.f32.partialorder %v1706_v39, 8.507059e+37  ;;  %v948_v16 = vand.u32 2147483648, %v6193_v13  ;;  %v7100_v39 = vld [vmem:[#allocation103_spill] sm:$0xff] }
 0x2c1   :  { %v975_v35 = vmul.f32 %v974_v7, %v7068_v5  ;;  %v1665_v29 = vsel %vm1664_vm2, %v3612_v34, %v1661_v24  ;;  %v1492_v0 = vadd.f32 0.112945676, %v1491_v50  ;;  %v1529_v30 = vmul.f32 %v1528_v48, %v7090_v52 }
 0x2c2   :  { %v769_v19 = vmul.f32 %v768_v28, %v7091_v36  ;;  %v3616_v59 = vpop.eup %3615  ;;  %v3231_v60 = vmul.f32 %v3167_v3, %v7097_v22  ;;  %v1670_v18 = vsel %vm6203_vm15, %v1669_v51, %v1665_v29  ;;  %v1699_v27 = vsub.f32 1.0, %v1698_v33 }
 0x2c3   :  { %v6223_v57 = vadd.f32 1.0, %v975_v35  ;;  %v1671_v40 = vmul.f32 %v1670_v18, %v6161_v21  ;;  %v938_v56 = vmul.f32 %v3616_v59, %v6193_v13  ;;  %vm942_vm4 = vweird.f32 %v6193_v13 }
 0x2c4   :  { %v1493_v5 = vmul.f32 %v1492_v0, %v7080_v38  ;;  %3321 = vmatpush.msrb.mxu1 %v3231_v60  ;;  %v1700_v43 = vmul.f32 %v3614_v10, %v1699_v27  ;;  %vm1703_vm5 = vweird.f32 %v3614_v10  ;;  %v946_v63 = vand.u32 2147483647, %v6193_v13  ;;  %v7105_v0 = vld [vmem:[#allocation41_spill] sm:$0xff] }
 0x2c5   :  { %3617 = vrcp.f32 %v6223_v57  ;;  %v3481_v62 = vclamps-f32 %v1671_v40, 1.0  ;;  %v939_v42 = vsub.f32 1.0, %v938_v56  ;;  %v949_v46 = vor.u32 1.1754944e-38, %v948_v16  ;;  %vm1704_vm7 = vmor %vm1702_vm1, %vm1703_vm5 }
 0x2c6   :  { %v1494_v41 = vadd.f32 0.4994258, %v1493_v5  ;;  %v1701_v44 = vadd.f32 %v3614_v10, %v1700_v43  ;;  %vm943_vm6 = vweird.f32 %v3616_v59  ;;  %v1530_v21 = vadd.f32 0.014752088, %v1529_v30  ;;  %v7106_v43 = vld [vmem:[#allocation20_spill] sm:$0xff] }
 0x2c7   :  { %v770_v11 = vadd.f32 0.014752088, %v769_v19  ;;  %v3180_v53 = vadd.f32 1.0, %v3481_v62  ;;  %v940_v34 = vmul.f32 %v3616_v59, %v939_v42  ;;  %v986_v47 = vand.u32 2147483647, %v6223_v57  ;;  %vm944_vm8 = vmor %vm942_vm4, %vm943_vm6 }
 0x2c8   :  { %v1495_v15 = vmul.f32 %v1494_v41, %v7080_v38  ;;  %v1705_v45 = vsel %vm1704_vm7, %v3614_v10, %v1701_v44  ;;  %v1531_v58 = vmul.f32 %v1530_v21, %v7090_v52  ;;  %v807_v9 = vmul.f32 3.8918573e-05, %v7098_v14  ;;  %v7107_v21 = vld [vmem:[#allocation48_spill] sm:$0xff] }
 0x2c9   :  { %v771_v23 = vmul.f32 %v770_v11, %v7091_v36  ;;  %v3244_v17 = vmul.f32 %v3180_v53, %v7099_v54  ;;  %v1710_v25 = vsel %vm6212_vm3, %v1709_v6, %v1705_v45  ;;  %v941_v26 = vadd.f32 %v3616_v59, %v940_v34  ;;  %v7108_v53 = vld [vmem:[#allocation46_spill] sm:$0xff]  ;;  %v7112_v54 = vld [vmem:[#allocation64_spill] sm:$0xff] }
 0x2ca   :  { %v6241_v55 = vadd.f32 1.0, %v1495_v15  ;;  %v1711_v4 = vmul.f32 %v1710_v25, %v6168_v2  ;;  %v1532_v38 = vadd.f32 0.112945676, %v1531_v58  ;;  %v808_v32 = vadd.f32 0.001143296, %v807_v9  ;;  %v7101_v2 = vld [vmem:[#allocation47_spill] sm:$0xff] }
 0x2cb   :  { %v3618_v1 = vpop.eup %3617  ;;  %v772_v49 = vadd.f32 0.112945676, %v771_v23  ;;  %3338 = vmatpush.msrb.mxu2 %v3244_v17  ;;  %v945_v61 = vsel %vm944_vm8, %v3616_v59, %v941_v26  ;;  %vm947_vm9 = vcmp.eq.f32.partialorder %v946_v63, 8.507059e+37  ;;  %v1525_v12 = vadd.f32 1.1283791, %v7100_v39  ;;  %v7110_v58 = vld [vmem:[#allocation62_spill] sm:$0xff] }
 0x2cc   :  { %v978_v37 = vmul.f32 %v3618_v1, %v6223_v57  ;;  %3619 = vrcp.f32 %v6241_v55  ;;  %v3482_v20 = vclamps-f32 %v1711_v4, 1.0  ;;  %v950_v51 = vsel %vm947_vm9, %v949_v46, %v945_v61  ;;  %v7111_v23 = vld [vmem:[#allocation101_spill] sm:$0xff] }
 0x2cd   :  { %vm982_vm10 = vweird.f32 %v6223_v57  ;;  %v951_v8 = vmul.f32 %v950_v51, %v7101_v2  ;;  %v988_v7 = vand.u32 2147483648, %v6223_v57  ;;  %v1533_v50 = vmul.f32 %v1532_v38, %v7090_v52  ;;  %v7113_v51 = vld [vmem:[#allocation21_spill] sm:$0xff] }
 0x2ce   :  { %v979_v13 = vsub.f32 1.0, %v978_v37  ;;  %v3181_v48 = vadd.f32 1.0, %v3482_v20  ;;  %vm6254_vm11 = vcmp.eq.f32.partialorder %v986_v47, 8.507059e+37  ;;  %v773_v24 = vmul.f32 %v772_v49, %v7091_v36  ;;  %v7109_v47 = vld [vmem:[#allocation82_spill] sm:$0xff] }
 0x2cf   :  { %v809_v6 = vmul.f32 %v808_v32, %v7098_v14  ;;  %v3463_v28 = vclamps-f32 %v951_v8, 1.0  ;;  %vm983_vm12 = vweird.f32 %v3618_v1  ;;  %v1534_v33 = vadd.f32 0.4994258, %v1533_v50 }
 0x2d0   :  { %v980_v3 = vmul.f32 %v3618_v1, %v979_v13  ;;  %v3245_v16 = vmul.f32 %v3181_v48, %v7104_v31  ;;  %v774_v35 = vadd.f32 0.4994258, %v773_v24  ;;  %v1327_v30 = vmul.f32 3.8918573e-05, %v7105_v0  ;;  %vm984_vm13 = vmor %vm982_vm10, %vm983_vm12 }
 0x2d1   :  { %v810_v29 = vadd.f32 0.014752088, %v809_v6  ;;  %v3162_v59 = vadd.f32 1.0, %v3463_v28  ;;  %v989_v60 = vor.u32 1.1754944e-38, %v988_v7  ;;  %v1535_v18 = vmul.f32 %v1534_v33, %v7090_v52  ;;  %v7114_v7 = vld [vmem:[#allocation50_spill] sm:$0xff]  ;;  %v7121_v6 = vld [vmem:[#allocation17_spill] sm:$0xff] }
 0x2d2   :  { %v3620_v19 = vpop.eup %3619  ;;  %v981_v22 = vadd.f32 %v3618_v1, %v980_v3  ;;  %3358 = vmatpush.msrb.mxu3 %v3245_v16  ;;  %v1506_v40 = vand.u32 2147483647, %v6241_v55  ;;  %v775_v56 = vmul.f32 %v774_v35, %v7091_v36  ;;  %v1328_v46 = vadd.f32 0.001143296, %v1327_v30 }
 0x2d3   :  { %v1498_v27 = vmul.f32 %v3620_v19, %v6241_v55  ;;  %v811_v5 = vmul.f32 %v810_v29, %v7098_v14  ;;  %v3226_v63 = vmul.f32 %v3162_v59, %v7106_v43  ;;  %v6270_v42 = vadd.f32 1.0, %v1535_v18  ;;  %v7117_v43 = vld [vmem:[#allocation80_spill] sm:$0xff] }
 0x2d4   :  { %v985_v62 = vsel %vm984_vm13, %v3618_v1, %v981_v22  ;;  %v6274_v57 = vadd.f32 1.0, %v775_v56  ;;  %v1508_v36 = vand.u32 2147483648, %v6241_v55  ;;  %v1367_v34 = vmul.f32 3.8918573e-05, %v7108_v53 }
 0x2d5   :  { %v990_v52 = vsel %vm6254_vm11, %v989_v60, %v985_v62  ;;  %v1499_v41 = vsub.f32 1.0, %v1498_v27  ;;  %v812_v44 = vadd.f32 0.112945676, %v811_v5  ;;  %3302 = vmatpush.msrb.mxu0 %v3226_v63  ;;  %3621 = vrcp.f32 %v6270_v42 }
 0x2d6   :  { %v991_v11 = vmul.f32 %v990_v52, %v7107_v21  ;;  %v6281_v15 = vadd.f32 1.1283791, %v7109_v47  ;;  %vm1503_vm14 = vweird.f32 %v3620_v19  ;;  %3623 = vrcp.f32 %v6274_v57 }
 0x2d7   :  { %v1500_v45 = vmul.f32 %v3620_v19, %v1499_v41  ;;  %v1486_v9 = vmul.f32 %v7111_v23, %v7110_v58  ;;  %v6287_v17 = vmul.f32 %v1525_v12, %v7112_v54  ;;  %vm1502_vm15 = vweird.f32 %v6241_v55 }
 0x2d8   :  { %v3464_v25 = vclamps-f32 %v991_v11, 1.0  ;;  %v1546_v1 = vand.u32 2147483647, %v6270_v42  ;;  %v813_v4 = vmul.f32 %v812_v44, %v7098_v14  ;;  %v1329_v38 = vmul.f32 %v1328_v46, %v7105_v0  ;;  %vm1504_vm1 = vmor %vm1502_vm15, %vm1503_vm14 }
 0x2d9   :  { %v1501_v26 = vadd.f32 %v3620_v19, %v1500_v45  ;;  %vm1507_vm2 = vcmp.eq.f32.partialorder %v1506_v40, 8.507059e+37  ;;  %v1509_v32 = vor.u32 1.1754944e-38, %v1508_v36  ;;  %v1368_v61 = vadd.f32 0.001143296, %v1367_v34 }
 0x2da   :  { %v3163_v49 = vadd.f32 1.0, %v3464_v25  ;;  %vm1542_vm3 = vweird.f32 %v6270_v42  ;;  %v1548_v39 = vand.u32 2147483648, %v6270_v42  ;;  %v814_v12 = vadd.f32 0.4994258, %v813_v4 }
 0x2db   :  { %v1505_v37 = vsel %vm1504_vm1, %v3620_v19, %v1501_v26  ;;  %v1330_v20 = vadd.f32 0.014752088, %v1329_v38  ;;  %v3622_v55 = vpop.eup %3621  ;;  %vm782_vm4 = vweird.f32 %v6274_v57  ;;  %v1369_v13 = vmul.f32 %v1368_v61, %v7108_v53  ;;  %v7119_v38 = vld [vmem:[#allocation30_spill] sm:$0xff] }
 0x2dc   :  { %v3227_v2 = vmul.f32 %v3163_v49, %v7113_v51  ;;  %v1510_v8 = vsel %vm1507_vm2, %v1509_v32, %v1505_v37  ;;  %v596_v50 = vmul.f32 2.1237322e-06, %v7114_v7  ;;  %v3624_v48 = vpop.eup %3623  ;;  %v1538_v24 = vmul.f32 %v3622_v55, %v6270_v42 }
 0x2dd   :  { %v1511_v10 = vmul.f32 %v1510_v8, %v1486_v9  ;;  %vm6300_vm5 = vcmp.eq.f32.partialorder %v1546_v1, 8.507059e+37  ;;  %v815_v28 = vmul.f32 %v814_v12, %v7098_v14  ;;  %v778_v3 = vmul.f32 %v3624_v48, %v6274_v57 }
 0x2de   :  { %3322 = vmatpush.msrb.mxu1 %v3227_v2  ;;  %v788_v33 = vand.u32 2147483648, %v6274_v57  ;;  %v1331_v31 = vmul.f32 %v1330_v20, %v7105_v0  ;;  %v1370_v16 = vadd.f32 0.014752088, %v1369_v13  ;;  %v1539_v29 = vsub.f32 1.0, %v1538_v24 }
 0x2df   :  { %v3477_v35 = vclamps-f32 %v1511_v10, 1.0  ;;  %v6308_v30 = vadd.f32 1.0, %v815_v28  ;;  %v597_v19 = vadd.f32 0.00028619796, %v596_v50  ;;  %vm1543_vm6 = vweird.f32 %v3622_v55 }
 0x2e0   :  { %v779_v59 = vsub.f32 1.0, %v778_v3  ;;  %v1332_v22 = vadd.f32 0.112945676, %v1331_v31  ;;  %v1371_v60 = vmul.f32 %v1370_v16, %v7108_v53  ;;  %v1540_v14 = vmul.f32 %v3622_v55, %v1539_v29  ;;  %vm1544_vm8 = vmor %vm1542_vm3, %vm1543_vm6 }
 0x2e1   :  { %v3176_v18 = vadd.f32 1.0, %v3477_v35  ;;  %3625 = vrcp.f32 %v6308_v30  ;;  %v607_v27 = vmul.f32 3.8918573e-05, %v7114_v7  ;;  %vm783_vm7 = vweird.f32 %v3624_v48  ;;  %v7122_v35 = vld [vmem:[#allocation51_spill] sm:$0xff] }
 0x2e2   :  { %v780_v40 = vmul.f32 %v3624_v48, %v779_v59  ;;  %v786_v56 = vand.u32 2147483647, %v6274_v57  ;;  %v1333_v5 = vmul.f32 %v1332_v22, %v7105_v0  ;;  %v1541_v62 = vadd.f32 %v3622_v55, %v1540_v14  ;;  %vm784_vm9 = vmor %vm782_vm4, %vm783_vm7  ;;  %v7118_v57 = vld [vmem:[#allocation39_spill] sm:$0xff] }
 0x2e3   :  { %v3240_v63 = vmul.f32 %v3176_v18, %v7117_v43  ;;  %v1372_v46 = vadd.f32 0.112945676, %v1371_v60  ;;  %v598_v52 = vmul.f32 %v597_v19, %v7114_v7  ;;  %v1549_v41 = vor.u32 1.1754944e-38, %v1548_v39  ;;  %v7123_v18 = vld [vmem:[#allocation31_spill] sm:$0xff]  ;;  %v7126_v43 = vld [vmem:[#allocation42_spill] sm:$0xff] }
 0x2e4   :  { %v781_v44 = vadd.f32 %v3624_v48, %v780_v40  ;;  %v789_v21 = vor.u32 1.1754944e-38, %v788_v33  ;;  %v1334_v11 = vadd.f32 0.4994258, %v1333_v5  ;;  %v1545_v36 = vsel %vm1544_vm8, %v3622_v55, %v1541_v62 }
 0x2e5   :  { %3339 = vmatpush.msrb.mxu2 %v3240_v63  ;;  %v1373_v34 = vmul.f32 %v1372_v46, %v7108_v53  ;;  %v599_v47 = vadd.f32 0.0036580483, %v598_v52  ;;  %v608_v45 = vadd.f32 0.001143296, %v607_v27  ;;  %v1550_v58 = vsel %vm6300_vm5, %v1549_v41, %v1545_v36 }
 0x2e6   :  { %v785_v23 = vsel %vm784_vm9, %v3624_v48, %v781_v44  ;;  %vm787_vm10 = vcmp.eq.f32.partialorder %v786_v56, 8.507059e+37  ;;  %v1335_v42 = vmul.f32 %v1334_v11, %v7105_v0  ;;  %v1551_v54 = vmul.f32 %v1550_v58, %v6287_v17  ;;  %v7120_v48 = vld [vmem:[#allocation83_spill] sm:$0xff] }
 0x2e7   :  { %v3626_v9 = vpop.eup %3625  ;;  %v790_v25 = vsel %vm787_vm10, %v789_v21, %v785_v23  ;;  %v1374_v26 = vadd.f32 0.4994258, %v1373_v34  ;;  %v600_v1 = vmul.f32 %v599_v47, %v7114_v7  ;;  %v6330_v4 = vmul.f32 %v6281_v15, %v7118_v57 }
 0x2e8   :  { %v791_v49 = vmul.f32 %v790_v25, %v7119_v38  ;;  %v818_v32 = vmul.f32 %v3626_v9, %v6308_v30  ;;  %v6334_v61 = vadd.f32 1.0, %v1335_v42  ;;  %v3478_v37 = vclamps-f32 %v1551_v54, 1.0 }
 0x2e9   :  { %v826_v0 = vand.u32 2147483647, %v6308_v30  ;;  %v1375_v39 = vmul.f32 %v1374_v26, %v7108_v53  ;;  %v609_v17 = vmul.f32 %v608_v45, %v7114_v7  ;;  %v601_v55 = vadd.f32 0.05243302, %v600_v1 }
 0x2ea   :  { %v3459_v12 = vclamps-f32 %v791_v49, 1.0  ;;  %v819_v20 = vsub.f32 1.0, %v818_v32  ;;  %3627 = vrcp.f32 %v6334_v61  ;;  %v3177_v15 = vadd.f32 1.0, %v3478_v37  ;;  %v7127_v49 = vld [vmem:[#allocation18_spill] sm:$0xff] }
 0x2eb   :  { %vm822_vm11 = vweird.f32 %v6308_v30  ;;  %v828_v51 = vand.u32 2147483648, %v6308_v30  ;;  %v6342_v2 = vadd.f32 1.0, %v1375_v39  ;;  %vm823_vm12 = vweird.f32 %v3626_v9  ;;  %v7128_v39 = vld [vmem:[#allocation35_spill] sm:$0xff] }
 0x2ec   :  { %v3158_v8 = vadd.f32 1.0, %v3459_v12  ;;  %v820_v13 = vmul.f32 %v3626_v9, %v819_v20  ;;  %v610_v50 = vadd.f32 0.014752088, %v609_v17  ;;  %v3241_v53 = vmul.f32 %v3177_v15, %v7120_v48  ;;  %vm824_vm14 = vmor %vm822_vm11, %vm823_vm12 }
 0x2ed   :  { %v1346_v10 = vand.u32 2147483647, %v6334_v61  ;;  %v1348_v24 = vand.u32 2147483648, %v6334_v61  ;;  %3629 = vrcp.f32 %v6342_v2  ;;  %vm827_vm13 = vcmp.eq.f32.partialorder %v826_v0, 8.507059e+37 }
 0x2ee   :  { %v3222_v28 = vmul.f32 %v3158_v8, %v7121_v6  ;;  %v821_v3 = vadd.f32 %v3626_v9, %v820_v13  ;;  %v602_v33 = vmul.f32 %v601_v55, %v7114_v7  ;;  %3359 = vmatpush.msrb.mxu3 %v3241_v53  ;;  %v829_v31 = vor.u32 1.1754944e-38, %v828_v51 }
 0x2ef   :  { %vm1342_vm15 = vweird.f32 %v6334_v61  ;;  %v611_v16 = vmul.f32 %v610_v50, %v7114_v7  ;;  %v636_v29 = vmul.f32 2.1237322e-06, %v7122_v35  ;;  %v1388_v22 = vand.u32 2147483648, %v6342_v2  ;;  %v7129_v50 = vld [vmem:[#allocation84_spill] sm:$0xff] }
 0x2f0   :  { %v3628_v19 = vpop.eup %3627  ;;  %3303 = vmatpush.msrb.mxu0 %v3222_v28  ;;  %v825_v59 = vsel %vm824_vm14, %v3626_v9, %v821_v3  ;;  %v647_v60 = vmul.f32 3.8918573e-05, %v7122_v35  ;;  %v1167_v14 = vmul.f32 3.8918573e-05, %v7123_v18  ;;  %vm6359_vm1 = vcmp.eq.f32.partialorder %v1346_v10, 8.507059e+37 }
 0x2f1   :  { %v830_v27 = vsel %vm827_vm13, %v829_v31, %v825_v59  ;;  %v1338_v30 = vmul.f32 %v3628_v19, %v6334_v61  ;;  %v1349_v56 = vor.u32 1.1754944e-38, %v1348_v24  ;;  %v1386_v5 = vand.u32 2147483647, %v6342_v2 }
 0x2f2   :  { %v831_v63 = vmul.f32 %v830_v27, %v7126_v43  ;;  %v603_v62 = vadd.f32 0.18741608, %v602_v33  ;;  %v612_v46 = vadd.f32 0.112945676, %v611_v16  ;;  %v637_v52 = vadd.f32 0.00028619796, %v636_v29 }
 0x2f3   :  { %v3630_v41 = vpop.eup %3629  ;;  %v1339_v44 = vsub.f32 1.0, %v1338_v30  ;;  %vm1382_vm2 = vweird.f32 %v6342_v2  ;;  %v648_v21 = vadd.f32 0.001143296, %v647_v60  ;;  %v1168_v11 = vadd.f32 0.001143296, %v1167_v14  ;;  %v7130_v33 = vld [vmem:[#allocation32_spill] sm:$0xff] }
 0x2f4   :  { %v3460_v36 = vclamps-f32 %v831_v63, 1.0  ;;  %vm1343_vm3 = vweird.f32 %v3628_v19  ;;  %v1378_v34 = vmul.f32 %v3630_v41, %v6342_v2  ;;  %v1389_v47 = vor.u32 1.1754944e-38, %v1388_v22  ;;  %v7132_v60 = vld [vmem:[#allocation14_spill] sm:$0xff] }
 0x2f5   :  { %v1340_v45 = vmul.f32 %v3628_v19, %v1339_v44  ;;  %v613_v58 = vmul.f32 %v612_v46, %v7114_v7  ;;  %v638_v23 = vmul.f32 %v637_v52, %v7122_v35  ;;  %v649_v42 = vmul.f32 %v648_v21, %v7122_v35  ;;  %vm1344_vm5 = vmor %vm1342_vm15, %vm1343_vm3  ;;  %v7134_v43 = vld [vmem:[#allocation74_spill] sm:$0xff]  ;;  %v7135_v44 = vld [vmem:[#allocation60_spill] sm:$0xff] }
 0x2f6   :  { %v3159_v9 = vadd.f32 1.0, %v3460_v36  ;;  %v1379_v54 = vsub.f32 1.0, %v1378_v34  ;;  %vm1383_vm4 = vweird.f32 %v3630_v41  ;;  %v1169_v25 = vmul.f32 %v1168_v11, %v7123_v18 }
 0x2f7   :  { %v1341_v26 = vadd.f32 %v3628_v19, %v1340_v45  ;;  %v614_v1 = vadd.f32 0.4994258, %v613_v58  ;;  %v639_v57 = vadd.f32 0.0036580483, %v638_v23  ;;  %v650_v38 = vadd.f32 0.014752088, %v649_v42  ;;  %vm1384_vm6 = vmor %vm1382_vm2, %vm1383_vm4 }
 0x2f8   :  { %v3223_v32 = vmul.f32 %v3159_v9, %v7127_v49  ;;  %v1380_v37 = vmul.f32 %v3630_v41, %v1379_v54  ;;  %v1170_v0 = vadd.f32 0.014752088, %v1169_v25  ;;  %v1207_v17 = vmul.f32 3.8918573e-05, %v7128_v39  ;;  %v7136_v58 = vld [vmem:[#allocation16_spill] sm:$0xff] }
 0x2f9   :  { %v1345_v12 = vsel %vm1344_vm5, %v3628_v19, %v1341_v26  ;;  %v615_v20 = vmul.f32 %v614_v1, %v7114_v7  ;;  %v640_v55 = vmul.f32 %v639_v57, %v7122_v35  ;;  %v651_v15 = vmul.f32 %v650_v38, %v7122_v35  ;;  %v7131_v19 = vld [vmem:[#allocation70_spill] sm:$0xff] }
 0x2fa   :  { %3323 = vmatpush.msrb.mxu1 %v3223_v32  ;;  %v1350_v51 = vsel %vm6359_vm1, %v1349_v56, %v1345_v12  ;;  %v1381_v8 = vadd.f32 %v3630_v41, %v1380_v37  ;;  %v1171_v13 = vmul.f32 %v1170_v0, %v7123_v18  ;;  %v1208_v61 = vadd.f32 0.001143296, %v1207_v17 }
 0x2fb   :  { %v1351_v48 = vmul.f32 %v1350_v51, %v7129_v50  ;;  %v6386_v53 = vadd.f32 1.0, %v615_v20  ;;  %v641_v10 = vadd.f32 0.05243302, %v640_v55  ;;  %v652_v24 = vadd.f32 0.112945676, %v651_v15  ;;  %v7139_v55 = vld [vmem:[#allocation24_spill] sm:$0xff] }
 0x2fc   :  { %v1385_v6 = vsel %vm1384_vm6, %v3630_v41, %v1381_v8  ;;  %vm1387_vm7 = vcmp.eq.f32.partialorder %v1386_v5, 8.507059e+37  ;;  %v1172_v28 = vadd.f32 0.112945676, %v1171_v13  ;;  %v1209_v3 = vmul.f32 %v1208_v61, %v7128_v39  ;;  %v7133_v5 = vld [vmem:[#allocation25_spill] sm:$0xff] }
 0x2fd   :  { %v485_v31 = vmul.f32 0.5, %v7130_v33  ;;  %v3473_v16 = vclamps-f32 %v1351_v48, 1.0  ;;  %v1390_v29 = vsel %vm1387_vm7, %v1389_v47, %v1385_v6  ;;  %3631 = vrcp.f32 %v6386_v53  ;;  %v7140_v13 = vld [vmem:[#allocation33_spill] sm:$0xff] }
 0x2fe   :  { %v1205_v59 = vadd.f32 1.1283791, %v7131_v19  ;;  %v1391_v2 = vmul.f32 %v1390_v29, %v6330_v4  ;;  %v642_v22 = vmul.f32 %v641_v10, %v7122_v35  ;;  %v1007_v14 = vmul.f32 3.8918573e-05, %v7132_v60 }
 0x2ff   :  { %v3172_v27 = vadd.f32 1.0, %v3473_v16  ;;  %v653_v30 = vmul.f32 %v652_v24, %v7122_v35  ;;  %v1173_v40 = vmul.f32 %v1172_v28, %v7123_v18  ;;  %v1210_v56 = vadd.f32 0.014752088, %v1209_v3 }
 0x300   :  { %v6399_v63 = vmul.f32 %v7134_v43, %v7133_v5  ;;  %v3474_v46 = vclamps-f32 %v1391_v2, 1.0  ;;  %v604_v52 = vmul.f32 %v603_v62, %v7114_v7  ;;  %v643_v41 = vadd.f32 0.18741608, %v642_v22  ;;  %v7137_v62 = vld [vmem:[#allocation7_spill] sm:$0xff] }
 0x301   :  { %v3236_v4 = vmul.f32 %v3172_v27, %v7135_v44  ;;  %v654_v21 = vadd.f32 0.4994258, %v653_v30  ;;  %v1174_v11 = vadd.f32 0.4994258, %v1173_v40  ;;  %v1211_v36 = vmul.f32 %v1210_v56, %v7128_v39 }
 0x302   :  { %v3173_v34 = vadd.f32 1.0, %v3474_v46  ;;  %v644_v47 = vmul.f32 %v643_v41, %v7122_v35  ;;  %v1008_v45 = vadd.f32 0.001143296, %v1007_v14  ;;  %v1047_v23 = vmul.f32 3.8918573e-05, %v7136_v58  ;;  %v7144_v14 = vld [vmem:[#allocation8_spill] sm:$0xff] }
 0x303   :  { %v3632_v42 = vpop.eup %3631  ;;  %3340 = vmatpush.msrb.mxu2 %v3236_v4  ;;  %v655_v9 = vmul.f32 %v654_v21, %v7122_v35  ;;  %v1175_v54 = vmul.f32 %v1174_v11, %v7123_v18  ;;  %v1212_v7 = vadd.f32 0.112945676, %v1211_v36  ;;  %v847_v25 = vmul.f32 3.8918573e-05, %v7137_v62  ;;  %v7138_v35 = vld [vmem:[#allocation26_spill] sm:$0xff] }
 0x304   :  { %v3237_v26 = vmul.f32 %v3173_v34, %v485_v31  ;;  %v605_v1 = vadd.f32 1.1283791, %v604_v52  ;;  %v618_v57 = vmul.f32 %v3632_v42, %v6386_v53  ;;  %v626_v38 = vand.u32 2147483647, %v6386_v53  ;;  %v7143_v31 = vld [vmem:[#allocation36_spill] sm:$0xff] }
 0x305   :  { %v628_v49 = vand.u32 2147483648, %v6386_v53  ;;  %v6412_v32 = vadd.f32 1.0, %v655_v9  ;;  %v6414_v37 = vadd.f32 1.0, %v1175_v54  ;;  %v1213_v0 = vmul.f32 %v1212_v7, %v7128_v39 }
 0x306   :  { %v6418_v17 = vmul.f32 %v1205_v59, %v7138_v35  ;;  %3360 = vmatpush.msrb.mxu3 %v3237_v26  ;;  %v619_v18 = vsub.f32 1.0, %v618_v57  ;;  %v1009_v12 = vmul.f32 %v1008_v45, %v7132_v60  ;;  %v1048_v20 = vadd.f32 0.001143296, %v1047_v23 }
 0x307   :  { %v466_v15 = vmul.f32 0.5, %v7139_v55  ;;  %v645_v51 = vadd.f32 1.1283791, %v644_v47  ;;  %3633 = vrcp.f32 %v6412_v32  ;;  %v848_v8 = vadd.f32 0.001143296, %v847_v25  ;;  %v7153_v47 = vld [vmem:[#allocation5_spill] sm:$0xff] }
 0x308   :  { %v606_v61 = vmul.f32 %v605_v1, %v7140_v13  ;;  %v620_v50 = vmul.f32 %v3632_v42, %v619_v18  ;;  %vm623_vm8 = vweird.f32 %v3632_v42  ;;  %3635 = vrcp.f32 %v6414_v37  ;;  %v6465_v18 = vld [vmem:[%s6593_s3] sm:$0x3] }
 0x309   :  { %vm622_vm9 = vweird.f32 %v6386_v53  ;;  %vm6426_vm10 = vcmp.eq.f32.partialorder %v626_v38, 8.507059e+37  ;;  %v629_v10 = vor.u32 1.1754944e-38, %v628_v49  ;;  %v1214_v24 = vadd.f32 0.4994258, %v1213_v0 }
 0x30a   :  { %v621_v6 = vadd.f32 %v3632_v42, %v620_v50  ;;  %v666_v28 = vand.u32 2147483647, %v6412_v32  ;;  %v1010_v3 = vadd.f32 0.014752088, %v1009_v12  ;;  %v1049_v33 = vmul.f32 %v1048_v20, %v7136_v58  ;;  %vm624_vm11 = vmor %vm622_vm9, %vm623_vm8 }
 0x30b   :  { %v6433_v16 = vmul.f32 %v645_v51, %v7143_v31  ;;  %v668_v29 = vand.u32 2147483648, %v6412_v32  ;;  %v1215_v53 = vmul.f32 %v1214_v24, %v7128_v39  ;;  %v849_v19 = vmul.f32 %v848_v8, %v7137_v62 }
 0x30c   :  { %v625_v59 = vsel %vm624_vm11, %v3632_v42, %v621_v6  ;;  %vm662_vm12 = vweird.f32 %v6412_v32  ;;  %v1186_v2 = vand.u32 2147483647, %v6414_v37  ;;  %v1011_v22 = vmul.f32 %v1010_v3, %v7132_v60 }
 0x30d   :  { %v887_v27 = vmul.f32 3.8918573e-05, %v7144_v14  ;;  %v3634_v30 = vpop.eup %3633  ;;  %v630_v40 = vsel %vm6426_vm10, %v629_v10, %v625_v59  ;;  %vm1182_vm13 = vweird.f32 %v6414_v37  ;;  %v6445_v56 = vadd.f32 1.0, %v1215_v53 }
 0x30e   :  { %v1050_v39 = vadd.f32 0.014752088, %v1049_v33  ;;  %v850_v5 = vadd.f32 0.014752088, %v849_v19  ;;  %v3636_v43 = vpop.eup %3635  ;;  %v631_v46 = vmul.f32 %v630_v40, %v606_v61  ;;  %v658_v52 = vmul.f32 %v3634_v30, %v6412_v32  ;;  %v7149_v33 = vld [vmem:[#allocation27_spill] sm:$0xff] }
 0x30f   :  { %vm6448_vm14 = vcmp.eq.f32.partialorder %v666_v28, 8.507059e+37  ;;  %v1012_v44 = vadd.f32 0.112945676, %v1011_v22  ;;  %v669_v4 = vor.u32 1.1754944e-38, %v668_v29  ;;  %v1178_v21 = vmul.f32 %v3636_v43, %v6414_v37 }
 0x310   :  { %v1188_v11 = vand.u32 2147483648, %v6414_v37  ;;  %3637 = vrcp.f32 %v6445_v56  ;;  %v3455_v36 = vclamps-f32 %v631_v46, 1.0  ;;  %v659_v34 = vsub.f32 1.0, %v658_v52  ;;  %v7150_v46 = vld [vmem:[#allocation52_spill] sm:$0xff] }
 0x311   :  { %vm6455_vm15 = vcmp.eq.f32.partialorder %v1186_v2, 8.507059e+37  ;;  %v888_v45 = vadd.f32 0.001143296, %v887_v27  ;;  %v1179_v23 = vsub.f32 1.0, %v1178_v21  ;;  %v1013_v42 = vmul.f32 %v1012_v44, %v7132_v60  ;;  %v7151_v44 = vld [vmem:[#allocation57_spill] sm:$0xff]  ;;  %v7152_v21 = vld [vmem:[#allocation55_spill] sm:$0xff] }
 0x312   :  { %v1051_v9 = vmul.f32 %v1050_v39, %v7136_v58  ;;  %v851_v54 = vmul.f32 %v850_v5, %v7137_v62  ;;  %v3154_v7 = vadd.f32 1.0, %v3455_v36  ;;  %v660_v25 = vmul.f32 %v3634_v30, %v659_v34 }
 0x313   :  { %vm663_vm1 = vweird.f32 %v3634_v30  ;;  %vm1183_vm2 = vweird.f32 %v3636_v43  ;;  %v1180_v26 = vmul.f32 %v3636_v43, %v1179_v23  ;;  %v1014_v1 = vadd.f32 0.4994258, %v1013_v42 }
 0x314   :  { %v1052_v57 = vadd.f32 0.112945676, %v1051_v9  ;;  %v852_v38 = vadd.f32 0.112945676, %v851_v54  ;;  %v3218_v49 = vmul.f32 %v3154_v7, %v466_v15  ;;  %v661_v0 = vadd.f32 %v3634_v30, %v660_v25  ;;  %vm664_vm3 = vmor %vm662_vm12, %vm663_vm1  ;;  %v7155_v54 = vld [vmem:[#allocation11_spill] sm:$0xff]  ;;  %v7156_v7 = vld [vmem:[#allocation56_spill] sm:$0xff] }
 0x315   :  { %v1189_v35 = vor.u32 1.1754944e-38, %v1188_v11  ;;  %v889_v12 = vmul.f32 %v888_v45, %v7144_v14  ;;  %v1181_v55 = vadd.f32 %v3636_v43, %v1180_v26  ;;  %v1015_v51 = vmul.f32 %v1014_v1, %v7132_v60  ;;  %vm1184_vm4 = vmor %vm1182_vm13, %vm1183_vm2  ;;  %v7154_v45 = vld [vmem:[#allocation40_spill] sm:$0xff]  ;;  %v7157_v26 = vld [vmem:[#allocation49_spill] sm:$0xff] }
 0x316   :  { %v3638_v20 = vpop.eup %3637  ;;  %v1053_v8 = vmul.f32 %v1052_v57, %v7136_v58  ;;  %v853_v15 = vmul.f32 %v852_v38, %v7137_v62  ;;  %3304 = vmatpush.msrb.mxu0 %v3218_v49  ;;  %v665_v13 = vsel %vm664_vm3, %v3634_v30, %v661_v0  ;;  %v1226_v50 = vand.u32 2147483647, %v6445_v56  ;;  %v7158_v57 = vld [vmem:[#allocation23_spill] sm:$0xff] }
 0x317   :  { %v1218_v61 = vmul.f32 %v3638_v20, %v6445_v56  ;;  %v890_v48 = vadd.f32 0.014752088, %v889_v12  ;;  %v670_v32 = vsel %vm6448_vm14, %v669_v4, %v665_v13  ;;  %v1185_v10 = vsel %vm1184_vm4, %v3636_v43, %v1181_v55  ;;  %3305 = vmatmul.f32.vlgmr.msrb.gmra.mxu0 %v6465_v18 }
 0x318   :  { %v6481_v60 = vadd.f32 1.0, %v1015_v51  ;;  %v1054_v24 = vadd.f32 0.4994258, %v1053_v8  ;;  %v671_v6 = vmul.f32 %v670_v32, %v6433_v16  ;;  %v1190_v37 = vsel %vm6455_vm15, %v1189_v35, %v1185_v10 }
 0x319   :  { %v1219_v28 = vsub.f32 1.0, %v1218_v61  ;;  %v854_v3 = vadd.f32 0.4994258, %v853_v15  ;;  %v467_v31 = vmul.f32 0.5, %v7149_v33  ;;  %v1191_v29 = vmul.f32 %v1190_v37, %v6399_v63 }
 0x31a   :  { %v1228_v53 = vand.u32 2147483648, %v6445_v56  ;;  %3639 = vrcp.f32 %v6481_v60  ;;  %v3456_v19 = vclamps-f32 %v671_v6, 1.0  ;;  %vm1223_vm5 = vweird.f32 %v3638_v20 }
 0x31b   :  { %v1220_v59 = vmul.f32 %v3638_v20, %v1219_v28  ;;  %v1055_v2 = vmul.f32 %v1054_v24, %v7136_v58  ;;  %v3469_v22 = vclamps-f32 %v1191_v29, 1.0  ;;  %vm1222_vm6 = vweird.f32 %v6445_v56 }
 0x31c   :  { %v855_v16 = vmul.f32 %v854_v3, %v7137_v62  ;;  %v891_v27 = vmul.f32 %v890_v48, %v7144_v14  ;;  %v3155_v30 = vadd.f32 1.0, %v3456_v19  ;;  %vm1227_vm7 = vcmp.eq.f32.partialorder %v1226_v50, 8.507059e+37  ;;  %vm1224_vm8 = vmor %vm1222_vm6, %vm1223_vm5 }
 0x31d   :  { %v1221_v40 = vadd.f32 %v3638_v20, %v1220_v59  ;;  %v6494_v63 = vadd.f32 1.0, %v1055_v2  ;;  %v3168_v39 = vadd.f32 1.0, %v3469_v22  ;;  %v1229_v5 = vor.u32 1.1754944e-38, %v1228_v53 }
 0x31e   :  { %v6496_v43 = vadd.f32 1.0, %v855_v16  ;;  %v676_v52 = vmul.f32 2.1237322e-06, %v7150_v46  ;;  %v3219_v58 = vmul.f32 %v3155_v30, %v467_v31  ;;  %v892_v56 = vadd.f32 0.112945676, %v891_v27 }
 0x31f   :  { %v1225_v41 = vsel %vm1224_vm8, %v3638_v20, %v1221_v40  ;;  %3641 = vrcp.f32 %v6494_v63  ;;  %v1045_v4 = vadd.f32 1.1283791, %v7151_v44  ;;  %v3232_v11 = vmul.f32 %v3168_v39, %v7152_v21  ;;  %v7159_v20 = vld [vmem:[#allocation13_spill] sm:$0xff] }
 0x320   :  { %v3640_v62 = vpop.eup %3639  ;;  %v1230_v36 = vsel %vm1227_vm7, %v1229_v5, %v1225_v41  ;;  %v1026_v34 = vand.u32 2147483647, %v6481_v60  ;;  %v6505_v23 = vmul.f32 %v7154_v45, %v7153_v47  ;;  %3324 = vmatpush.msrb.mxu1 %v3219_v58  ;;  %3643 = vrcp.f32 %v6496_v43 }
 0x321   :  { %v1231_v42 = vmul.f32 %v1230_v36, %v6418_v17  ;;  %v1018_v9 = vmul.f32 %v3640_v62, %v6481_v60  ;;  %v1006_v25 = vmul.f32 %v7156_v7, %v7155_v54  ;;  %v6513_v1 = vmin.f32 %v7157_v26, 16.0  ;;  %3341 = vmatpush.msrb.mxu2 %v3232_v11  ;;  %3325 = vmatmul.f32.vlgmr.msrb.gmra.mxu1 %v6465_v18  ;;  %v7164_v54 = vld [vmem:[#allocation22_spill] sm:$0xff] }
 0x322   :  { %v481_v38 = vmul.f32 0.5, %v7158_v57  ;;  %v1028_v49 = vand.u32 2147483648, %v6481_v60  ;;  %v893_v17 = vmul.f32 %v892_v56, %v7144_v14  ;;  %v677_v12 = vadd.f32 0.00028619796, %v676_v52  ;;  %v7165_v57 = vld [vmem:[#allocation12_spill] sm:$0xff] }
 0x323   :  { %v3470_v0 = vclamps-f32 %v1231_v42, 1.0  ;;  %v1019_v35 = vsub.f32 1.0, %v1018_v9  ;;  %v1046_v55 = vmul.f32 %v1045_v4, %v7159_v20  ;;  %vm1022_vm9 = vweird.f32 %v6481_v60 }
 0x324   :  { %vm6521_vm10 = vcmp.eq.f32.partialorder %v1026_v34, 8.507059e+37  ;;  %v687_v8 = vmul.f32 3.8918573e-05, %v7150_v46  ;;  %vm1023_vm11 = vweird.f32 %v3640_v62  ;;  %v894_v50 = vadd.f32 0.4994258, %v893_v17  ;;  %v7166_v17 = vld [vmem:[#allocation45_spill] sm:$0xff] }
 0x325   :  { %v3642_v15 = vpop.eup %3641  ;;  %v3169_v13 = vadd.f32 1.0, %v3470_v0  ;;  %v1020_v61 = vmul.f32 %v3640_v62, %v1019_v35  ;;  %v1029_v48 = vor.u32 1.1754944e-38, %v1028_v49  ;;  %v1066_v10 = vand.u32 2147483647, %v6494_v63  ;;  %vm1024_vm12 = vmor %vm1022_vm9, %vm1023_vm11 }
 0x326   :  { %v1058_v32 = vmul.f32 %v3642_v15, %v6494_v63  ;;  %v688_v24 = vadd.f32 0.001143296, %v687_v8  ;;  %v3644_v6 = vpop.eup %3643  ;;  %v895_v3 = vmul.f32 %v894_v50, %v7144_v14  ;;  %v678_v33 = vmul.f32 %v677_v12, %v7150_v46 }
 0x327   :  { %v3233_v37 = vmul.f32 %v3169_v13, %v481_v38  ;;  %v1021_v28 = vadd.f32 %v3640_v62, %v1020_v61  ;;  %vm1062_vm13 = vweird.f32 %v6494_v63  ;;  %v1068_v29 = vand.u32 2147483648, %v6494_v63 }
 0x328   :  { %v1059_v31 = vsub.f32 1.0, %v1058_v32  ;;  %v858_v53 = vmul.f32 %v3644_v6, %v6496_v43  ;;  %v868_v59 = vand.u32 2147483648, %v6496_v43  ;;  %v6536_v2 = vadd.f32 1.0, %v895_v3  ;;  %v7167_v3 = vld [vmem:[#allocation19_spill] sm:$0xff] }
 0x329   :  { %3361 = vmatpush.msrb.mxu3 %v3233_v37  ;;  %v1025_v19 = vsel %vm1024_vm12, %v3640_v62, %v1021_v28  ;;  %v689_v14 = vmul.f32 %v688_v24, %v7150_v46  ;;  %vm1063_vm14 = vweird.f32 %v3642_v15  ;;  %vm6541_vm15 = vcmp.eq.f32.partialorder %v1066_v10, 8.507059e+37 }
 0x32a   :  { %v1030_v22 = vsel %vm6521_vm10, %v1029_v48, %v1025_v19  ;;  %v1060_v60 = vmul.f32 %v3642_v15, %v1059_v31  ;;  %v859_v16 = vsub.f32 1.0, %v858_v53  ;;  %3645 = vrcp.f32 %v6536_v2  ;;  %vm1064_vm2 = vmor %vm1062_vm13, %vm1063_vm14 }
 0x32b   :  { %v1031_v27 = vmul.f32 %v1030_v22, %v1006_v25  ;;  %v679_v40 = vadd.f32 0.0036580483, %v678_v33  ;;  %vm863_vm1 = vweird.f32 %v3644_v6  ;;  %v866_v52 = vand.u32 2147483647, %v6496_v43  ;;  %v7168_v22 = vld [vmem:[#allocation6_spill] sm:$0xff] }
 0x32c   :  { %v1061_v39 = vadd.f32 %v3642_v15, %v1060_v60  ;;  %v860_v5 = vmul.f32 %v3644_v6, %v859_v16  ;;  %v1069_v41 = vor.u32 1.1754944e-38, %v1068_v29  ;;  %v690_v56 = vadd.f32 0.014752088, %v689_v14 }
 0x32d   :  { %v3465_v58 = vclamps-f32 %v1031_v27, 1.0  ;;  %v716_v62 = vmul.f32 2.1237322e-06, %v6513_v1  ;;  %vm862_vm3 = vweird.f32 %v6496_v43  ;;  %v869_v21 = vor.u32 1.1754944e-38, %v868_v59 }
 0x32e   :  { %v1065_v44 = vsel %vm1064_vm2, %v3642_v15, %v1061_v39  ;;  %v861_v4 = vadd.f32 %v3644_v6, %v860_v5  ;;  %vm864_vm4 = vmor %vm862_vm3, %vm863_vm1  ;;  %v680_v34 = vmul.f32 %v679_v40, %v7150_v46  ;;  %v691_v47 = vmul.f32 %v690_v56, %v7150_v46 }
 0x32f   :  { %v3164_v11 = vadd.f32 1.0, %v3465_v58  ;;  %v1070_v36 = vsel %vm6541_vm15, %v1069_v41, %v1065_v44  ;;  %vm867_vm5 = vcmp.eq.f32.partialorder %v866_v52, 8.507059e+37  ;;  %v727_v42 = vmul.f32 3.8918573e-05, %v6513_v1  ;;  %v7169_v58 = vld [vmem:[#allocation4_spill] sm:$0xff] }
 0x330   :  { %v1071_v63 = vmul.f32 %v1070_v36, %v1046_v55  ;;  %v865_v45 = vsel %vm864_vm4, %v3644_v6, %v861_v4  ;;  %v3646_v9 = vpop.eup %3645  ;;  %v692_v43 = vadd.f32 0.112945676, %v691_v47  ;;  %v717_v26 = vadd.f32 0.00028619796, %v716_v62 }
 0x331   :  { %v3228_v7 = vmul.f32 %v3164_v11, %v7164_v54  ;;  %v870_v25 = vsel %vm867_vm5, %v869_v21, %v865_v45  ;;  %v477_v38 = vmul.f32 0.5, %v7165_v57  ;;  %v898_v35 = vmul.f32 %v3646_v9, %v6536_v2 }
 0x332   :  { %v3466_v49 = vclamps-f32 %v1071_v63, 1.0  ;;  %v871_v0 = vmul.f32 %v870_v25, %v6505_v23  ;;  %v885_v12 = vadd.f32 1.1283791, %v7166_v17  ;;  %v681_v20 = vadd.f32 0.05243302, %v680_v34 }
 0x333   :  { %3342 = vmatpush.msrb.mxu2 %v3228_v7  ;;  %v693_v55 = vmul.f32 %v692_v43, %v7150_v46  ;;  %v728_v51 = vadd.f32 0.001143296, %v727_v42  ;;  %v899_v13 = vsub.f32 1.0, %v898_v35  ;;  %v906_v61 = vand.u32 2147483647, %v6536_v2 }
 0x334   :  { %v3165_v8 = vadd.f32 1.0, %v3466_v49  ;;  %v3461_v15 = vclamps-f32 %v871_v0, 1.0  ;;  %v908_v50 = vand.u32 2147483648, %v6536_v2  ;;  %v718_v32 = vmul.f32 %v717_v26, %v6513_v1  ;;  %v7170_v26 = vld [vmem:[#allocation43_spill] sm:$0xff] }
 0x335   :  { %v694_v48 = vadd.f32 0.4994258, %v693_v55  ;;  %v729_v23 = vmul.f32 %v728_v51, %v6513_v1  ;;  %v900_v6 = vmul.f32 %v3646_v9, %v899_v13  ;;  %vm903_vm6 = vweird.f32 %v3646_v9  ;;  %v7171_v51 = vld [vmem:[#allocation37_spill] sm:$0xff] }
 0x336   :  { %v3229_v10 = vmul.f32 %v3165_v8, %v477_v38  ;;  %v3160_v24 = vadd.f32 1.0, %v3461_v15  ;;  %vm902_vm7 = vweird.f32 %v6536_v2  ;;  %v682_v29 = vmul.f32 %v681_v20, %v7150_v46 }
 0x337   :  { %v695_v37 = vmul.f32 %v694_v48, %v7150_v46  ;;  %v730_v28 = vadd.f32 0.014752088, %v729_v23  ;;  %v901_v31 = vadd.f32 %v3646_v9, %v900_v6  ;;  %vm904_vm8 = vmor %vm902_vm7, %vm903_vm6  ;;  %v909_v53 = vor.u32 1.1754944e-38, %v908_v50 }
 0x338   :  { %3362 = vmatpush.msrb.mxu3 %v3229_v10  ;;  %v3224_v33 = vmul.f32 %v3160_v24, %v7167_v3  ;;  %v719_v59 = vadd.f32 0.0036580483, %v718_v32  ;;  %v886_v60 = vmul.f32 %v885_v12, %v7168_v22  ;;  %vm907_vm9 = vcmp.eq.f32.partialorder %v906_v61, 8.507059e+37  ;;  %v7172_v24 = vld [vmem:[#allocation44_spill] sm:$0xff] }
 0x339   :  { %v696_v19 = vadd.f32 1.0, %v695_v37  ;;  %v731_v14 = vmul.f32 %v730_v28, %v6513_v1  ;;  %v905_v16 = vsel %vm904_vm8, %v3646_v9, %v901_v31  ;;  %v683_v39 = vadd.f32 0.18741608, %v682_v29 }
 0x33a   :  { %3343 = vmatpush.msrb.mxu2 %v3224_v33  ;;  %v910_v27 = vsel %vm907_vm9, %v909_v53, %v905_v16  ;;  %v720_v2 = vmul.f32 %v719_v59, %v6513_v1  ;;  %v473_v41 = vmul.f32 0.5, %v7169_v58  ;;  %v468_v8 = vmul.f32 0.5, %v7171_v51  ;;  %v7173_v33 = vld [vmem:[#allocation15_spill] sm:$0xff] }
 0x33b   :  { %3647 = vrcp.f32 %v696_v19  ;;  %v911_v30 = vmul.f32 %v910_v27, %v886_v60  ;;  %v732_v40 = vadd.f32 0.112945676, %v731_v14  ;;  %v684_v4 = vmul.f32 %v683_v39, %v7150_v46  ;;  %v3287_v14 = vpop.permute.xlu1 %3286 }
 0x33c   :  { %v721_v21 = vadd.f32 0.05243302, %v720_v2  ;;  %v708_v42 = vand.u32 2147483648, %v696_v19  ;;  %v706_v7 = vand.u32 2147483647, %v696_v19  ;;  %vm702_vm11 = vweird.f32 %v696_v19 }
 0x33d   :  { %v3462_v5 = vclamps-f32 %v911_v30, 1.0  ;;  %v733_v52 = vmul.f32 %v732_v40, %v6513_v1  ;;  %v685_v45 = vadd.f32 1.1283791, %v684_v4  ;;  %v469_v31 = vmul.f32 0.5, %v7173_v33 }
 0x33e   :  { %v722_v9 = vmul.f32 %v721_v21, %v6513_v1  ;;  %v709_v46 = vor.u32 1.1754944e-38, %v708_v42  ;;  %vm707_vm13 = vcmp.eq.f32.partialorder %v706_v7, 8.507059e+37  ;;  %vm3376_vm3 = vcmask 1041408  }
 0x33f   :  { %v3161_v56 = vadd.f32 1.0, %v3462_v5  ;;  %v734_v62 = vadd.f32 0.4994258, %v733_v52  ;;  %v686_v57 = vmul.f32 %v685_v45, %v7170_v26  ;;  %vm3378_vm4 = vcmask 1045508  }
 0x340   :  { %v723_v43 = vadd.f32 0.18741608, %v722_v9 }
 0x341   :  { %v3648_v44 = vpop.eup %3647  ;;  %v3225_v11 = vmul.f32 %v3161_v56, %v473_v41  ;;  %v735_v34 = vmul.f32 %v734_v62, %v6513_v1 }
 0x342   :  { %v698_v36 = vmul.f32 %v3648_v44, %v696_v19  ;;  %vm703_vm10 = vweird.f32 %v3648_v44  ;;  %v724_v17 = vmul.f32 %v723_v43, %v6513_v1 }
 0x343   :  { %3363 = vmatpush.msrb.mxu3 %v3225_v11  ;;  %v736_v63 = vadd.f32 1.0, %v735_v34  ;;  %vm704_vm12 = vmor %vm702_vm11, %vm703_vm10 }
 0x344   :  { %v699_v47 = vsub.f32 1.0, %v698_v36  ;;  %v725_v61 = vadd.f32 1.1283791, %v724_v17 }
 0x345   :  { %3649 = vrcp.f32 %v736_v63  ;;  %v748_v13 = vand.u32 2147483648, %v736_v63  ;;  %v746_v48 = vand.u32 2147483647, %v736_v63  ;;  %vm742_vm15 = vweird.f32 %v736_v63 }
 0x346   :  { %v700_v54 = vmul.f32 %v3648_v44, %v699_v47  ;;  %v726_v6 = vmul.f32 %v725_v61, %v7172_v24 }
 0x347   :  { %v749_v10 = vor.u32 1.1754944e-38, %v748_v13  ;;  %vm747_vm2 = vcmp.eq.f32.partialorder %v746_v48, 8.507059e+37 }
 0x348   :  { %v701_v25 = vadd.f32 %v3648_v44, %v700_v54 }
 0x34a   :  { %v705_v38 = vsel %vm704_vm12, %v3648_v44, %v701_v25 }
 0x34b   :  { %v710_v49 = vsel %vm707_vm13, %v709_v46, %v705_v38  ;;  %v3650_v0 = vpop.eup %3649 }
 0x34c   :  { %v711_v35 = vmul.f32 %v710_v49, %v686_v57  ;;  %v738_v12 = vmul.f32 %v3650_v0, %v736_v63  ;;  %vm743_vm14 = vweird.f32 %v3650_v0 }
 0x34d   :  { %vm744_vm1 = vmor %vm742_vm15, %vm743_vm14 }
 0x34e   :  { %v3457_v20 = vclamps-f32 %v711_v35, 1.0  ;;  %v739_v55 = vsub.f32 1.0, %v738_v12 }
 0x350   :  { %v3156_v15 = vadd.f32 1.0, %v3457_v20  ;;  %v740_v50 = vmul.f32 %v3650_v0, %v739_v55 }
 0x352   :  { %v3220_v32 = vmul.f32 %v3156_v15, %v468_v8  ;;  %v741_v23 = vadd.f32 %v3650_v0, %v740_v50 }
 0x354   :  { %3344 = vmatpush.msrb.mxu2 %v3220_v32  ;;  %v745_v1 = vsel %vm744_vm1, %v3650_v0, %v741_v23 }
 0x355   :  { %3345 = vmatmul.f32.vlgmr.msrb.gmra.mxu2 %v6465_v18  ;;  %v750_v37 = vsel %vm747_vm2, %v749_v10, %v745_v1 }
 0x356   :  { %v751_v28 = vmul.f32 %v750_v37, %v726_v6 }
 0x358   :  { %v3458_v3 = vclamps-f32 %v751_v28, 1.0 }
 0x35a   :  { %v3157_v29 = vadd.f32 1.0, %v3458_v3 }
 0x35c   :  { %v3221_v53 = vmul.f32 %v3157_v29, %v469_v31 }
 0x35e   :  { %3364 = vmatpush.msrb.mxu3 %v3221_v53 }
 0x35f   :  { %3365 = vmatmul.f32.vlgmr.msrb.gmra.mxu3 %v6465_v18 }
 0x394   :  { %v3306_v16 = vpop.f32.mrf.mxu0 }
 0x395   :  { %v3307_v2 = vadd.f32 %v3306_v16, %v3287_v14 }
 0x39e   :  { %v3326_v19 = vpop.f32.mrf.mxu1 }
 0x39f   :  { %v3327_v22 = vadd.f32 %v3326_v19, %v3287_v14 }
 0x3a1   :  { %v3373_v30 = vrot.slane %v3327_v22, 6 }
 0x3a3   :  { %v3377_v52 = vsel %vm3376_vm3, %v3307_v2, %v3373_v30 }
 0x3d8   :  { %v3346_v59 = vpop.f32.mrf.mxu2 }
 0x3d9   :  { %v3347_v60 = vadd.f32 %v3346_v59, %v3287_v14 }
 0x3db   :  { %v3374_v40 = vrot.slane %v3347_v60, 4 }
 0x3e2   :  { %v3366_v27 = vpop.f32.mrf.mxu3 }
 0x3e3   :  { %v3367_v39 = vadd.f32 %v3366_v27, %v3287_v14 }
 0x3e5   :  { %v3375_v5 = vrot.slane %v3367_v39, 2 }
 0x3e7   :  { %v3379_v58 = vsel %vm3378_vm4, %v3374_v40, %v3375_v5 }
 0x3e8   :  { %v3380_v41 = vsel %vm193_vm0, %v3377_v52, %v3379_v58 }
 0x3e9   :  { %3382 = vst [vmem:[%s6594_s5] sm:$0xff] %v3380_v41 }

</bundles_post_ra>
